<compile_context>
chip_gen: v6e
topology: v6e:2x2x1
jax: 0.10.0
libtpu: 0.0.40
codegen_flags: <defaults>
</compile_context>

<pallas_src>
from collections import OrderedDict
import functools

import jax
import jax.numpy as jnp
from jax.experimental import pallas as pl
from jax.experimental.pallas import tpu as pltpu

EPS = 1e-5                       # nn.InstanceNorm2d / nn.BatchNorm2d default
_VMEM_LIMIT = 32 * 1024 * 1024   # explicit scoped-VMEM budget (> v5e 16 MiB default)


# ----------------------------------------------------------------------------
# In-kernel helpers (trace-time, fully unrolled)
# ----------------------------------------------------------------------------
def _col_masks(H, W):
    """(HW, 1) bool masks: pixel has a valid left / right neighbour."""
    col = jax.lax.broadcasted_iota(jnp.int32, (H * W, 1), 0) % W
    return col >= 1, col < (W - 1)


def _conv3x3_packed(a, pad_ref, wk, col_lo, col_hi, H, W):
    """3x3 / pad=1 / stride=1 conv of an (HW, Cin) f32 slab.

    The dx = -1/0/+1 column-shifted copies are packed along the lane axis of a
    row-padded VMEM scratch (W zero rows above and below), so every ky tap is a
    plain offset slice of that scratch and ONE bf16 MXU matmul with K = 3*Cin.
    Only two single-step sublane rolls (the dx shifts) touch the XLU.
    """
    HW = H * W
    Cin = a.shape[-1]
    # dx shifts of the flattened slab; mask the row-wrap columns.  Mask in f32
    # and cast once afterwards (v5e: VPU has no bf16 path).
    left = jnp.where(col_lo, pltpu.roll(a, 1, axis=0), 0.0)         # a[p-1]
    right = jnp.where(col_hi, pltpu.roll(a, HW - 1, axis=0), 0.0)   # a[p+1]

    zrow = jnp.zeros((W, 3 * Cin), jnp.bfloat16)
    pad_ref[pl.ds(0, W), :] = zrow                    # top halo (row - 1)
    pad_ref[pl.ds(W + HW, W), :] = zrow               # bottom halo (row + 1)
    pad_ref[pl.ds(W, HW), 0:Cin] = left.astype(jnp.bfloat16)
    pad_ref[pl.ds(W, HW), Cin:2 * Cin] = a.astype(jnp.bfloat16)
    pad_ref[pl.ds(W, HW), 2 * Cin:3 * Cin] = right.astype(jnp.bfloat16)

    acc = None
    for ky in range(3):                               # dy = ky - 1
        win = pad_ref[pl.ds(ky * W, HW), :]           # (HW, 3*Cin) bf16
        part = jnp.dot(win, wk[ky], preferred_element_type=jnp.float32)
        acc = part if acc is None else acc + part
    return acc                                        # (HW, Cout) f32


# ----------------------------------------------------------------------------
# Pallas kernels
# ----------------------------------------------------------------------------
def _attention_gate_kernel(x_ref, w_ref, b_ref, di_ref, gated_ref,
                           pad_ref, act_ref, *, H, W):
    """One grid step == (batch element i, conv layer l).

      x_ref:     (1, HW, C)   f32 input (channels-last), resident across l
      w_ref:     (1, 3, 3C, C) bf16 packed taps of layer l (streamed per layer)
      b_ref:     (1, 1, C)    f32 bias of layer l
      di_ref:    (1, 1, C)    f32 channel gate        (written at l == 3)
      gated_ref: (1, HW, C)   f32 di * x              (written at l == 3)
      pad_ref:   VMEM (HW+2W, 3C) bf16 padded conv scratch
      act_ref:   VMEM (HW, C) f32 activation carried across layer steps
    """
    l = pl.program_id(1)

    @pl.when(l == 0)
    def _():
        act_ref[...] = x_ref[0]

    col_lo, col_hi = _col_masks(H, W)
    wk = [w_ref[0, k] for k in range(3)]
    y = _conv3x3_packed(act_ref[...], pad_ref, wk, col_lo, col_hi, H, W) \
        + b_ref[0]                                          # (HW, C) f32

    @pl.when(l < 3)
    def _():
        # InstanceNorm2d(affine=False) over spatial, then ReLU (f32).
        mean = jnp.mean(y, axis=0, keepdims=True)
        var = jnp.mean(jnp.square(y - mean), axis=0, keepdims=True)
        act_ref[...] = jnp.maximum((y - mean) * jax.lax.rsqrt(var + EPS), 0.0)

    @pl.when(l == 3)
    def _():
        # Sigmoid + AdaptiveAvgPool2d(1) -> di; gate the input while it is
        # still resident in VMEM.
        di = jnp.mean(jax.nn.sigmoid(y), axis=0, keepdims=True)     # (1, C)
        di_ref[0] = di.astype(di_ref.dtype)
        gated_ref[0] = (x_ref[0] * di).astype(gated_ref.dtype)


def _domain_head_loss_kernel(labels_ref, x_ref, w1_ref, b1_ref, g_ref, be_ref,
                             w2_ref, b2_ref, loss_ref,
                             hbuf_ref, pad_ref, msum_ref, m2sum_ref,
                             *, H, W, B):
    """One grid step == (head j, batch element b); j=0 classifier, j=1 discrim.

    conv3x3 + ReLU of batch element b, one-pass BatchNorm moment accumulation,
    bf16 cache of the activation; at b == B-1 the BN affine is folded into the
    1x1-conv weights/bias and the dense cross entropy (mean over B*HW) is
    computed against the scalar-prefetched domain labels.
    """
    b = pl.program_id(1)
    HW = H * W
    Cmid = w1_ref.shape[-1]
    Dp = w2_ref.shape[-1]

    @pl.when(b == 0)
    def _():
        msum_ref[...] = jnp.zeros_like(msum_ref)
        m2sum_ref[...] = jnp.zeros_like(m2sum_ref)

    col_lo, col_hi = _col_masks(H, W)
    wk = [w1_ref[0, k] for k in range(3)]
    h = jnp.maximum(
        _conv3x3_packed(x_ref[0], pad_ref, wk, col_lo, col_hi, H, W)
        + b1_ref[0], 0.0)                                   # (HW, Cmid) f32
    msum_ref[...] += jnp.sum(h, axis=0, keepdims=True)
    m2sum_ref[...] += jnp.sum(h * h, axis=0, keepdims=True)
    hbuf_ref[b] = h.astype(jnp.bfloat16)

    @pl.when(b == B - 1)
    def _():
        inv_n = 1.0 / float(B * HW)
        # BatchNorm2d training-mode batch stats (biased variance), f32.
        mean = msum_ref[...] * inv_n                        # (1, Cmid)
        var = jnp.maximum(m2sum_ref[...] * inv_n - mean * mean, 0.0)
        scale = g_ref[0] * jax.lax.rsqrt(var + EPS)         # (1, Cmid)
        shift = be_ref[0] - mean * scale                    # (1, Cmid)
        # Fold BN into the 1x1 conv:  logits = h @ (diag(scale) @ w2)
        #                                      + (shift @ w2 + b2).
        # diag(scale) @ w2 is one tiny f32 matmul and avoids any lane->sublane
        # relayout of `scale` or per-slab scale/shift pass over h.
        w2 = w2_ref[0]                                      # (Cmid, Dp) f32
        r = jax.lax.broadcasted_iota(jnp.int32, (Cmid, Cmid), 0)
        c = jax.lax.broadcasted_iota(jnp.int32, (Cmid, Cmid), 1)
        diag = jnp.where(r == c, scale, 0.0)                # (Cmid, Cmid)
        w2f = jnp.dot(diag, w2,
                      preferred_element_type=jnp.float32).astype(jnp.bfloat16)
        b2f = jnp.dot(jnp.broadcast_to(shift, (8, Cmid)), w2,
                      preferred_element_type=jnp.float32)[0:1] + b2_ref[0]

        lane = jax.lax.broadcasted_iota(jnp.int32, (HW, Dp), 1)
        loss = jnp.zeros((1, 1), jnp.float32)
        for bb in range(B):                                 # static unroll
            logits = jnp.dot(hbuf_ref[bb], w2f,
                             preferred_element_type=jnp.float32) + b2f  # (HW, Dp)
            mx = jnp.max(logits, axis=-1, keepdims=True)
            lse = mx + jnp.log(jnp.sum(jnp.exp(logits - mx), axis=-1,
                                       keepdims=True))
            picked = jnp.sum(jnp.where(lane == labels_ref[bb], logits, 0.0),
                             axis=-1, keepdims=True)
            loss = loss + jnp.sum(lse - picked, axis=0, keepdims=True)
        # Lane-dense (1, 128) store of the scalar mean loss.
        loss_ref[0] = loss * inv_n + jnp.zeros((1, Dp), jnp.float32)


# ----------------------------------------------------------------------------
# Pallas wrappers
# ----------------------------------------------------------------------------
def channel_attention_gate(x_flat, att_w, att_b, H, W):
    """x_flat: (B, HW, C) f32 -> (di (B, C), gated (B, HW, C))."""
    B, HW, C = x_flat.shape
    di, gated = pl.pallas_call(
        functools.partial(_attention_gate_kernel, H=H, W=W),
        grid=(B, 4),                    # (batch, conv layer)
        in_specs=[
            pl.BlockSpec((1, HW, C), lambda i, l: (i, 0, 0)),
            pl.BlockSpec((1, 3, 3 * C, C), lambda i, l: (l, 0, 0, 0)),
            pl.BlockSpec((1, 1, C), lambda i, l: (l, 0, 0)),
        ],
        out_specs=(
            pl.BlockSpec((1, 1, C), lambda i, l: (i, 0, 0)),
            pl.BlockSpec((1, HW, C), lambda i, l: (i, 0, 0)),
        ),
        out_shape=(
            jax.ShapeDtypeStruct((B, 1, C), jnp.float32),
            jax.ShapeDtypeStruct((B, HW, C), jnp.float32),
        ),
        scratch_shapes=[
            pltpu.VMEM((HW + 2 * W, 3 * C), jnp.bfloat16),   # padded conv slab
            pltpu.VMEM((HW, C), jnp.float32),                # layer activation
        ],
        compiler_params=pltpu.CompilerParams(
            dimension_semantics=("parallel", "arbitrary"),
            vmem_limit_bytes=_VMEM_LIMIT),
    )(x_flat, att_w, att_b)
    return di.reshape(B, C), gated


def domain_head_losses(x_flat, labels, p, H, W):
    """Classifier head (grid j=0) and discriminator head (j=1) -> mean CE."""
    B, HW, C = x_flat.shape
    Cmid = p["w1"].shape[-1]
    Dp = p["w2"].shape[-1]
    out = pl.pallas_call(
        functools.partial(_domain_head_loss_kernel, H=H, W=W, B=B),
        grid_spec=pltpu.PrefetchScalarGridSpec(
            num_scalar_prefetch=1,                   # domain labels -> SMEM
            grid=(2, B),                             # (head, batch)
            in_specs=[
                pl.BlockSpec((1, HW, C), lambda j, b, lab: (b, 0, 0)),
                pl.BlockSpec((1, 3, 3 * C, Cmid), lambda j, b, lab: (j, 0, 0, 0)),
                pl.BlockSpec((1, 1, Cmid), lambda j, b, lab: (j, 0, 0)),
                pl.BlockSpec((1, 1, Cmid), lambda j, b, lab: (j, 0, 0)),
                pl.BlockSpec((1, 1, Cmid), lambda j, b, lab: (j, 0, 0)),
                pl.BlockSpec((1, Cmid, Dp), lambda j, b, lab: (j, 0, 0)),
                pl.BlockSpec((1, 1, Dp), lambda j, b, lab: (j, 0, 0)),
            ],
            out_specs=pl.BlockSpec((1, 1, Dp), lambda j, b, lab: (j, 0, 0)),
            scratch_shapes=[
                pltpu.VMEM((B, HW, Cmid), jnp.bfloat16),        # bf16 h cache
                pltpu.VMEM((HW + 2 * W, 3 * C), jnp.bfloat16),  # padded conv slab
                pltpu.VMEM((1, Cmid), jnp.float32),             # sum(h)
                pltpu.VMEM((1, Cmid), jnp.float32),             # sum(h*h)
            ]),
        out_shape=jax.ShapeDtypeStruct((2, 1, Dp), jnp.float32),
        compiler_params=pltpu.CompilerParams(
            dimension_semantics=("parallel", "arbitrary"),
            vmem_limit_bytes=_VMEM_LIMIT),
    )(labels, x_flat, p["w1"], p["b1"], p["gamma"], p["beta"], p["w2"], p["b2"])
    return out[0, 0, 0], out[1, 0, 0]


# ----------------------------------------------------------------------------
# Tiny JAX glue (scalar loss math / param init)
# ----------------------------------------------------------------------------
def _gate_loss(di, ds, gl_weight, gl_margin):
    # sum over the batch of per-sample di . ds; clamp to margin AFTER the sum
    # (matches the reference gate_loss), per pyramid level.
    l = jnp.sum(di * ds)
    l = jnp.maximum(l, gl_margin)
    return gl_weight * l


def _conv_w(key, kh, kw, cin, cout):
    std = (2.0 / (kh * kw * cin)) ** 0.5
    return jax.random.normal(key, (kh, kw, cin, cout), jnp.float32) * std


# ----------------------------------------------------------------------------
# CGM module (parameters built deterministically in-script)
# ----------------------------------------------------------------------------
class CGMPallas:
    def __init__(self, domain_num, key, gl_w=0.1, cls_w=0.01, dis_w=0.1,
                 gl_m=0.01, dense=True, s_init=True):
        assert dense, "only the dense=True classifier variant is implemented"
        self.domain_num = domain_num
        self.dpad = max(128, ((domain_num + 127) // 128) * 128)  # lane-dense D
        self.gl_weight = gl_w
        self.cls_weight = cls_w
        self.dis_weight = dis_w
        self.gl_margin = jnp.float32(gl_m)
        self.in_channel_list = [256] * 5

        keys = jax.random.split(key, 14)

        # channel_attention: 4x Conv2d(256,256,3,pad=1); s_init fills the LAST
        # conv's bias (module index 10 in the nn.Sequential) with 9.2.
        # Taps are packed per layer as (3 ky, 3*Cin, Cout): the kx taps sharing
        # a ky are stacked along Cin to match the in-kernel
        # [left | center | right] lane packing (K = 768 MXU matmuls).
        att_w, att_b = [], []
        for i in range(4):
            w = _conv_w(keys[i], 3, 3, 256, 256)          # (ky, kx, cin, cout)
            att_w.append(w.reshape(3, 3 * 256, 256))
            att_b.append(jnp.full((1, 256), 9.2, jnp.float32)
                         if (s_init and i == 3)
                         else jnp.zeros((1, 256), jnp.float32))
        self.att_w = jnp.stack(att_w).astype(jnp.bfloat16)   # (4, 3, 768, 256)
        self.att_b = jnp.stack(att_b)                         # (4, 1, 256)

        def mk_head(k, cin):
            k1, k2 = jax.random.split(k)
            mid = cin // 2
            w1 = _conv_w(k1, 3, 3, cin, mid).reshape(3, 3 * cin, mid)
            b1 = jnp.zeros((1, mid), jnp.float32)
            gamma = jnp.ones((1, mid), jnp.float32)
            beta = jnp.zeros((1, mid), jnp.float32)
            w2 = _conv_w(k2, 1, 1, mid, domain_num).reshape(mid, domain_num)
            # Pad the tiny domain_num output to 128 lanes; padded logit columns
            # get a huge negative bias so they vanish in the in-kernel softmax
            # (safe because the logsumexp path stays f32).
            w2p = jnp.zeros((mid, self.dpad), jnp.float32
                            ).at[:, :domain_num].set(w2)
            b2p = jnp.full((1, self.dpad), -1e30, jnp.float32
                           ).at[:, :domain_num].set(0.0)
            return w1, b1, gamma, beta, w2p, b2p

        self.clf_params = []
        for i, cin in enumerate(self.in_channel_list):
            cls = mk_head(keys[4 + i], cin)
            dis = mk_head(keys[9 + i], cin)
            self.clf_params.append(dict(
                w1=jnp.stack([cls[0], dis[0]]).astype(jnp.bfloat16),  # (2,3,3C,Cmid)
                b1=jnp.stack([cls[1], dis[1]]),                        # (2,1,Cmid)
                gamma=jnp.stack([cls[2], dis[2]]),
                beta=jnp.stack([cls[3], dis[3]]),
                w2=jnp.stack([cls[4], dis[4]]),                        # (2,Cmid,Dp) f32
                b2=jnp.stack([cls[5], dis[5]]),                        # (2,1,Dp)
            ))

        self._jit_forward = jax.jit(self._forward, static_argnames=("training",))

    def forward(self, features, domain_labels=None, training=True):
        return self._jit_forward(features, domain_labels, training=training)

    def _forward(self, features, domain_labels, training=True):
        di_features = OrderedDict()
        cls_losses, dis_losses, gl_losses = [], [], []
        losses = {}
        labels = None
        if training:
            labels = domain_labels.astype(jnp.int32)

        for i, k in enumerate(features.keys()):
            x_nchw = features[k].astype(jnp.float32)
            B, C, H, W = x_nchw.shape
            # TODO(synk): keep the CGM path channels-last end-to-end to drop
            # this remaining boundary transpose as well.
            x_flat = jnp.transpose(x_nchw, (0, 2, 3, 1)).reshape(B, H * W, C)

            di, gated = channel_attention_gate(x_flat, self.att_w, self.att_b,
                                               H, W)
            # Gate the original NCHW feature directly (no NHWC->NCHW transpose
            # of the kernel output).
            di_features[k] = di[:, :, None, None] * x_nchw

            if training:
                ds = 1.0 - di
                gl_losses.append(_gate_loss(di, ds, self.gl_weight,
                                            self.gl_margin))
                # grad_reverse is forward-identity: the discriminator head sees
                # the same (non-reversed) gated feature in the forward pass.
                cls_ce, dis_ce = domain_head_losses(gated, labels,
                                                    self.clf_params[i], H, W)
                cls_losses.append(self.cls_weight * cls_ce)
                dis_losses.append(self.dis_weight * dis_ce)

        if training:
            losses = {
                "gate_loss": sum(gl_losses),
                "cgm_cls_loss": sum(cls_losses),
                "cgm_dis_loss": sum(dis_losses),
            }
        return di_features, losses


# ----------------------------------------------------------------------------
# Demo
# ----------------------------------------------------------------------------
if __name__ == "__main__":
    key = jax.random.PRNGKey(0)
    kmod, kf1, kf2 = jax.random.split(key, 3)

    model = CGMPallas(domain_num=3, key=kmod)

    B = 2
    features = OrderedDict()
    features["p3"] = jax.random.normal(kf1, (B, 256, 8, 8), jnp.float32)
    features["p4"] = jax.random.normal(kf2, (B, 256, 4, 8), jnp.float32)
    domain_labels = jnp.array([0, 2], dtype=jnp.int32)

    di_features, losses = model.forward(features, domain_labels, training=True)
    jax.block_until_ready(di_features)
    jax.block_until_ready(losses)

    print("KERNEL_OK")
</pallas_src>

<mosaic_0001>
module attributes {stable_mosaic.version = 11 : i64} {
  func.func @_attention_gate_kernel(%arg0: i32, %arg1: i32, %arg2: memref<1x32x256xf32, #tpu.memory_space<vmem>>, %arg3: memref<1x3x768x256xbf16, #tpu.memory_space<vmem>>, %arg4: memref<1x1x256xf32, #tpu.memory_space<vmem>>, %arg5: memref<1x1x256xf32, #tpu.memory_space<vmem>>, %arg6: memref<1x32x256xf32, #tpu.memory_space<vmem>>, %arg7: memref<48x768xbf16, #tpu.memory_space<vmem>>, %arg8: memref<32x256xf32, #tpu.memory_space<vmem>>) attributes {dimension_semantics = [#tpu.dimension_semantics<parallel>, #tpu.dimension_semantics<arbitrary>], iteration_bounds = array<i64: 2, 4>, scalar_prefetch = 0 : i64, scratch_operands = 2 : i64, tpu.core_type = #tpu.core_type<tc>, window_params = [{transform_indices = @transform_0, window_bounds = array<i64: 1, 32, 256>}, {transform_indices = @transform_1, window_bounds = array<i64: 1, 3, 768, 256>}, {transform_indices = @transform_2, window_bounds = array<i64: 1, 1, 256>}, {transform_indices = @transform_3, window_bounds = array<i64: 1, 1, 256>}, {transform_indices = @transform_4, window_bounds = array<i64: 1, 32, 256>}]} {
    %c0_i32 = arith.constant 0 : i32
    %0 = arith.cmpi eq, %arg1, %c0_i32 : i32
    %1 = arith.extui %0 : i1 to i32
    %c0_i32_0 = arith.constant 0 : i32
    %2 = arith.cmpi ne, %1, %c0_i32_0 : i32
    scf.if %2 {
      %c0_40 = arith.constant 0 : index
      %c0_41 = arith.constant 0 : index
      %c0_42 = arith.constant 0 : index
      %68 = vector.load %arg2[%c0_40, %c0_41, %c0_42] : memref<1x32x256xf32, #tpu.memory_space<vmem>>, vector<1x32x256xf32>
      %69 = vector.shape_cast %68 : vector<1x32x256xf32> to vector<32x256xf32>
      %c0_43 = arith.constant 0 : index
      %c0_44 = arith.constant 0 : index
      %70 = vector.load %arg8[%c0_43, %c0_44] : memref<32x256xf32, #tpu.memory_space<vmem>>, vector<32x256xf32>
      tpu.vector_store %arg8[%c0_43, %c0_44], %69 {strides = array<i32>} : memref<32x256xf32, #tpu.memory_space<vmem>>, vector<32x256xf32>,
    } else {
    }
    %3 = tpu.iota {dimensions = array<i32: 0>} : vector<32x1xi32>
    %c8_i32 = arith.constant 8 : i32
    %c0_i32_1 = arith.constant 0 : i32
    %4 = arith.cmpi eq, %c8_i32, %c0_i32_1 : i32
    %c1_i32 = arith.constant 1 : i32
    %5 = arith.select %4, %c1_i32, %c8_i32 : i32
    %6 = vector.broadcast %5 : i32 to vector<32x1xi32>
    %7 = arith.remsi %3, %6 : vector<32x1xi32>
    %c0_i32_2 = arith.constant 0 : i32
    %8 = vector.broadcast %c0_i32_2 : i32 to vector<32x1xi32>
    %9 = arith.cmpi ne, %7, %8 : vector<32x1xi32>
    %c0_i32_3 = arith.constant 0 : i32
    %10 = vector.broadcast %c0_i32_3 : i32 to vector<32x1xi32>
    %11 = arith.cmpi slt, %7, %10 : vector<32x1xi32>
    %c0_i32_4 = arith.constant 0 : i32
    %12 = arith.cmpi slt, %5, %c0_i32_4 : i32
    %13 = vector.broadcast %12 : i1 to vector<32x1xi1>
    %14 = vector.broadcast %13 : vector<32x1xi1> to vector<32x1xi1>
    %15 = arith.xori %11, %14 : vector<32x1xi1>
    %16 = arith.andi %15, %9 : vector<32x1xi1>
    %17 = vector.broadcast %5 : i32 to vector<32x1xi32>
    %18 = arith.addi %7, %17 : vector<32x1xi32>
    %19 = arith.select %16, %18, %7 : vector<32x1xi1>, vector<32x1xi32>
    %c1_i32_5 = arith.constant 1 : i32
    %20 = vector.broadcast %c1_i32_5 : i32 to vector<32x1xi32>
    %21 = arith.cmpi sge, %19, %20 : vector<32x1xi32>
    %c7_i32 = arith.constant 7 : i32
    %22 = vector.broadcast %c7_i32 : i32 to vector<32x1xi32>
    %23 = arith.cmpi slt, %19, %22 : vector<32x1xi32>
    %c0 = arith.constant 0 : index
    %c0_6 = arith.constant 0 : index
    %c0_7 = arith.constant 0 : index
    %c0_8 = arith.constant 0 : index
    %24 = vector.load %arg3[%c0, %c0_6, %c0_7, %c0_8] : memref<1x3x768x256xbf16, #tpu.memory_space<vmem>>, vector<1x1x768x256xbf16>
    %25 = vector.shape_cast %24 : vector<1x1x768x256xbf16> to vector<768x256xbf16>
    %c0_9 = arith.constant 0 : index
    %c1 = arith.constant 1 : index
    %c0_10 = arith.constant 0 : index
    %c0_11 = arith.constant 0 : index
    %26 = vector.load %arg3[%c0_9, %c1, %c0_10, %c0_11] : memref<1x3x768x256xbf16, #tpu.memory_space<vmem>>, vector<1x1x768x256xbf16>
    %27 = vector.shape_cast %26 : vector<1x1x768x256xbf16> to vector<768x256xbf16>
    %c0_12 = arith.constant 0 : index
    %c2 = arith.constant 2 : index
    %c0_13 = arith.constant 0 : index
    %c0_14 = arith.constant 0 : index
    %28 = vector.load %arg3[%c0_12, %c2, %c0_13, %c0_14] : memref<1x3x768x256xbf16, #tpu.memory_space<vmem>>, vector<1x1x768x256xbf16>
    %29 = vector.shape_cast %28 : vector<1x1x768x256xbf16> to vector<768x256xbf16>
    %c0_15 = arith.constant 0 : index
    %c0_16 = arith.constant 0 : index
    %30 = vector.load %arg8[%c0_15, %c0_16] : memref<32x256xf32, #tpu.memory_space<vmem>>, vector<32x256xf32>
    %c1_i32_17 = arith.constant 1 : i32
    %31 = tpu.dynamic_rotate %30 by %c1_i32_17 dim 0 : vector<32x256xf32>, i32 -> vector<32x256xf32>
    %cst = arith.constant 0.000000e+00 : f32
    %32 = vector.shape_cast %21 : vector<32x1xi1> to vector<32x1xi1>
    %33 = vector.broadcast %32 : vector<32x1xi1> to vector<32x256xi1>
    %34 = vector.broadcast %cst : f32 to vector<32x256xf32>
    %35 = arith.select %33, %31, %34 : vector<32x256xi1>, vector<32x256xf32>
    %c31_i32 = arith.constant 31 : i32
    %36 = tpu.dynamic_rotate %30 by %c31_i32 dim 0 : vector<32x256xf32>, i32 -> vector<32x256xf32>
    %cst_18 = arith.constant 0.000000e+00 : f32
    %37 = vector.shape_cast %23 : vector<32x1xi1> to vector<32x1xi1>
    %38 = vector.broadcast %37 : vector<32x1xi1> to vector<32x256xi1>
    %39 = vector.broadcast %cst_18 : f32 to vector<32x256xf32>
    %40 = arith.select %38, %36, %39 : vector<32x256xi1>, vector<32x256xf32>
    %cst_19 = arith.constant 0.000000e+00 : bf16
    %41 = vector.broadcast %cst_19 : bf16 to vector<8x768xbf16>
    %c0_20 = arith.constant 0 : index
    %c0_21 = arith.constant 0 : index
    %42 = vector.load %arg7[%c0_20, %c0_21] : memref<48x768xbf16, #tpu.memory_space<vmem>>, vector<8x768xbf16>
    tpu.vector_store %arg7[%c0_20, %c0_21], %41 {strides = array<i32>} : memref<48x768xbf16, #tpu.memory_space<vmem>>, vector<8x768xbf16>,
    %c40 = arith.constant 40 : index
    %c0_22 = arith.constant 0 : index
    %43 = vector.load %arg7[%c40, %c0_22] : memref<48x768xbf16, #tpu.memory_space<vmem>>, vector<8x768xbf16>
    tpu.vector_store %arg7[%c40, %c0_22], %41 {strides = array<i32>} : memref<48x768xbf16, #tpu.memory_space<vmem>>, vector<8x768xbf16>,
    %44 = arith.truncf %35 : vector<32x256xf32> to vector<32x256xbf16>
    %c8 = arith.constant 8 : index
    %c0_23 = arith.constant 0 : index
    %45 = vector.load %arg7[%c8, %c0_23] : memref<48x768xbf16, #tpu.memory_space<vmem>>, vector<32x256xbf16>
    tpu.vector_store %arg7[%c8, %c0_23], %44 {strides = array<i32>} : memref<48x768xbf16, #tpu.memory_space<vmem>>, vector<32x256xbf16>,
    %46 = arith.truncf %30 : vector<32x256xf32> to vector<32x256xbf16>
    %c8_24 = arith.constant 8 : index
    %c256 = arith.constant 256 : index
    %47 = vector.load %arg7[%c8_24, %c256] : memref<48x768xbf16, #tpu.memory_space<vmem>>, vector<32x256xbf16>
    tpu.vector_store %arg7[%c8_24, %c256], %46 {strides = array<i32>} : memref<48x768xbf16, #tpu.memory_space<vmem>>, vector<32x256xbf16>,
    %48 = arith.truncf %40 : vector<32x256xf32> to vector<32x256xbf16>
    %c8_25 = arith.constant 8 : index
    %c512 = arith.constant 512 : index
    %49 = vector.load %arg7[%c8_25, %c512] : memref<48x768xbf16, #tpu.memory_space<vmem>>, vector<32x256xbf16>
    tpu.vector_store %arg7[%c8_25, %c512], %48 {strides = array<i32>} : memref<48x768xbf16, #tpu.memory_space<vmem>>, vector<32x256xbf16>,
    %c0_26 = arith.constant 0 : index
    %c0_27 = arith.constant 0 : index
    %50 = vector.load %arg7[%c0_26, %c0_27] : memref<48x768xbf16, #tpu.memory_space<vmem>>, vector<32x768xbf16>
    %cst_28 = arith.constant dense<0.000000e+00> : vector<32x256xf32>
    %51 = tpu.matmul %50, %25, %cst_28 {dimension_numbers = #tpu.dot_dimension_numbers<[1], [0], [0], [1], [0, 0, 1, 1], [], []>} : vector<32x768xbf16>, vector<768x256xbf16>, vector<32x256xf32> -> vector<32x256xf32>
    %c8_29 = arith.constant 8 : index
    %c0_30 = arith.constant 0 : index
    %52 = vector.load %arg7[%c8_29, %c0_30] : memref<48x768xbf16, #tpu.memory_space<vmem>>, vector<32x768xbf16>
    %cst_31 = arith.constant dense<0.000000e+00> : vector<32x256xf32>
    %53 = tpu.matmul %52, %27, %cst_31 {dimension_numbers = #tpu.dot_dimension_numbers<[1], [0], [0], [1], [0, 0, 1, 1], [], []>} : vector<32x768xbf16>, vector<768x256xbf16>, vector<32x256xf32> -> vector<32x256xf32>
    %54 = arith.addf %51, %53 : vector<32x256xf32>
    %c16 = arith.constant 16 : index
    %c0_32 = arith.constant 0 : index
    %55 = vector.load %arg7[%c16, %c0_32] : memref<48x768xbf16, #tpu.memory_space<vmem>>, vector<32x768xbf16>
    %cst_33 = arith.constant dense<0.000000e+00> : vector<32x256xf32>
    %56 = tpu.matmul %55, %29, %cst_33 {dimension_numbers = #tpu.dot_dimension_numbers<[1], [0], [0], [1], [0, 0, 1, 1], [], []>} : vector<32x768xbf16>, vector<768x256xbf16>, vector<32x256xf32> -> vector<32x256xf32>
    %57 = arith.addf %54, %56 : vector<32x256xf32>
    %c0_34 = arith.constant 0 : index
    %c0_35 = arith.constant 0 : index
    %c0_36 = arith.constant 0 : index
    %58 = vector.load %arg4[%c0_34, %c0_35, %c0_36] : memref<1x1x256xf32, #tpu.memory_space<vmem>>, vector<1x1x256xf32>
    %59 = vector.shape_cast %58 : vector<1x1x256xf32> to vector<1x256xf32>
    %60 = vector.broadcast %59 : vector<1x256xf32> to vector<32x256xf32>
    %61 = arith.addf %57, %60 : vector<32x256xf32>
    %c3_i32 = arith.constant 3 : i32
    %62 = arith.cmpi slt, %arg1, %c3_i32 : i32
    %63 = arith.extui %62 : i1 to i32
    %c0_i32_37 = arith.constant 0 : i32
    %64 = arith.cmpi ne, %63, %c0_i32_37 : i32
    scf.if %64 {
      %cst_40 = arith.constant dense<0.000000e+00> : vector<256xf32>
      %68 = vector.multi_reduction <add>, %61, %cst_40 [0] : vector<32x256xf32> to vector<256xf32>
      %69 = vector.shape_cast %68 : vector<256xf32> to vector<1x256xf32>
      %cst_41 = arith.constant 3.200000e+01 : f32
      %70 = vector.broadcast %cst_41 : f32 to vector<1x256xf32>
      %71 = arith.divf %69, %70 : vector<1x256xf32>
      %72 = vector.broadcast %71 : vector<1x256xf32> to vector<32x256xf32>
      %73 = arith.subf %61, %72 : vector<32x256xf32>
      %74 = arith.mulf %73, %73 : vector<32x256xf32>
      %cst_42 = arith.constant dense<0.000000e+00> : vector<256xf32>
      %75 = vector.multi_reduction <add>, %74, %cst_42 [0] : vector<32x256xf32> to vector<256xf32>
      %76 = vector.shape_cast %75 : vector<256xf32> to vector<1x256xf32>
      %cst_43 = arith.constant 3.200000e+01 : f32
      %77 = vector.broadcast %cst_43 : f32 to vector<1x256xf32>
      %78 = arith.divf %76, %77 : vector<1x256xf32>
      %79 = vector.broadcast %71 : vector<1x256xf32> to vector<32x256xf32>
      %80 = arith.subf %61, %79 : vector<32x256xf32>
      %cst_44 = arith.constant 9.99999974E-6 : f32
      %81 = vector.broadcast %cst_44 : f32 to vector<1x256xf32>
      %82 = arith.addf %78, %81 : vector<1x256xf32>
      %83 = math.rsqrt %82 : vector<1x256xf32>
      %84 = vector.broadcast %83 : vector<1x256xf32> to vector<32x256xf32>
      %85 = arith.mulf %80, %84 : vector<32x256xf32>
      %cst_45 = arith.constant 0.000000e+00 : f32
      %86 = vector.broadcast %cst_45 : f32 to vector<32x256xf32>
      %87 = arith.maximumf %85, %86 : vector<32x256xf32>
      %c0_46 = arith.constant 0 : index
      %c0_47 = arith.constant 0 : index
      %88 = vector.load %arg8[%c0_46, %c0_47] : memref<32x256xf32, #tpu.memory_space<vmem>>, vector<32x256xf32>
      tpu.vector_store %arg8[%c0_46, %c0_47], %87 {strides = array<i32>} : memref<32x256xf32, #tpu.memory_space<vmem>>, vector<32x256xf32>,
    } else {
    }
    %c3_i32_38 = arith.constant 3 : i32
    %65 = arith.cmpi eq, %arg1, %c3_i32_38 : i32
    %66 = arith.extui %65 : i1 to i32
    %c0_i32_39 = arith.constant 0 : i32
    %67 = arith.cmpi ne, %66, %c0_i32_39 : i32
    scf.if %67 {
      %68 = arith.negf %61 : vector<32x256xf32>
      %69 = math.exp %68 : vector<32x256xf32>
      %cst_40 = arith.constant 1.000000e+00 : f32
      %70 = vector.broadcast %cst_40 : f32 to vector<32x256xf32>
      %71 = arith.addf %70, %69 : vector<32x256xf32>
      %72 = arith.divf %70, %71 : vector<32x256xf32>
      %cst_41 = arith.constant dense<0.000000e+00> : vector<256xf32>
      %73 = vector.multi_reduction <add>, %72, %cst_41 [0] : vector<32x256xf32> to vector<256xf32>
      %74 = vector.shape_cast %73 : vector<256xf32> to vector<1x256xf32>
      %cst_42 = arith.constant 3.200000e+01 : f32
      %75 = vector.broadcast %cst_42 : f32 to vector<1x256xf32>
      %76 = arith.divf %74, %75 : vector<1x256xf32>
      %c0_43 = arith.constant 0 : index
      %c0_44 = arith.constant 0 : index
      %c0_45 = arith.constant 0 : index
      %77 = vector.load %arg5[%c0_43, %c0_44, %c0_45] : memref<1x1x256xf32, #tpu.memory_space<vmem>>, vector<1x1x256xf32>
      %78 = vector.shape_cast %77 : vector<1x1x256xf32> to vector<1x256xf32>
      %79 = vector.shape_cast %76 : vector<1x256xf32> to vector<1x1x256xf32>
      tpu.vector_store %arg5[%c0_43, %c0_44, %c0_45], %79 {strides = array<i32>} : memref<1x1x256xf32, #tpu.memory_space<vmem>>, vector<1x1x256xf32>,
      %c0_46 = arith.constant 0 : index
      %c0_47 = arith.constant 0 : index
      %c0_48 = arith.constant 0 : index
      %80 = vector.load %arg2[%c0_46, %c0_47, %c0_48] : memref<1x32x256xf32, #tpu.memory_space<vmem>>, vector<1x32x256xf32>
      %81 = vector.shape_cast %80 : vector<1x32x256xf32> to vector<32x256xf32>
      %82 = vector.broadcast %76 : vector<1x256xf32> to vector<32x256xf32>
      %83 = arith.mulf %81, %82 : vector<32x256xf32>
      %c0_49 = arith.constant 0 : index
      %c0_50 = arith.constant 0 : index
      %c0_51 = arith.constant 0 : index
      %84 = vector.load %arg6[%c0_49, %c0_50, %c0_51] : memref<1x32x256xf32, #tpu.memory_space<vmem>>, vector<1x32x256xf32>
      %85 = vector.shape_cast %84 : vector<1x32x256xf32> to vector<32x256xf32>
      %86 = vector.shape_cast %83 : vector<32x256xf32> to vector<1x32x256xf32>
      tpu.vector_store %arg6[%c0_49, %c0_50, %c0_51], %86 {strides = array<i32>} : memref<1x32x256xf32, #tpu.memory_space<vmem>>, vector<1x32x256xf32>,
    } else {
    }
    return
  }
  func.func @transform_0(%arg0: i32, %arg1: i32) -> (i32, i32, i32) {
    %c0_i32 = arith.constant 0 : i32
    %c0_i32_0 = arith.constant 0 : i32
    %c0_i32_1 = arith.constant 0 : i32
    return %arg0, %c0_i32, %c0_i32_0 : i32, i32, i32
  }
  func.func @transform_1(%arg0: i32, %arg1: i32) -> (i32, i32, i32, i32) {
    %c0_i32 = arith.constant 0 : i32
    %c0_i32_0 = arith.constant 0 : i32
    %c0_i32_1 = arith.constant 0 : i32
    %c0_i32_2 = arith.constant 0 : i32
    return %arg1, %c0_i32, %c0_i32_0, %c0_i32_1 : i32, i32, i32, i32
  }
  func.func @transform_2(%arg0: i32, %arg1: i32) -> (i32, i32, i32) {
    %c0_i32 = arith.constant 0 : i32
    %c0_i32_0 = arith.constant 0 : i32
    %c0_i32_1 = arith.constant 0 : i32
    return %arg1, %c0_i32, %c0_i32_0 : i32, i32, i32
  }
  func.func @transform_3(%arg0: i32, %arg1: i32) -> (i32, i32, i32) {
    %c0_i32 = arith.constant 0 : i32
    %c0_i32_0 = arith.constant 0 : i32
    %c0_i32_1 = arith.constant 0 : i32
    return %arg0, %c0_i32, %c0_i32_0 : i32, i32, i32
  }
  func.func @transform_4(%arg0: i32, %arg1: i32) -> (i32, i32, i32) {
    %c0_i32 = arith.constant 0 : i32
    %c0_i32_0 = arith.constant 0 : i32
    %c0_i32_1 = arith.constant 0 : i32
    return %arg0, %c0_i32, %c0_i32_0 : i32, i32, i32
  }
}

module attributes {stable_mosaic.version = 11 : i64} {
  func.func @_attention_gate_kernel(%arg0: i32, %arg1: i32, %arg2: memref<1x64x256xf32, #tpu.memory_space<vmem>>, %arg3: memref<1x3x768x256xbf16, #tpu.memory_space<vmem>>, %arg4: memref<1x1x256xf32, #tpu.memory_space<vmem>>, %arg5: memref<1x1x256xf32, #tpu.memory_space<vmem>>, %arg6: memref<1x64x256xf32, #tpu.memory_space<vmem>>, %arg7: memref<80x768xbf16, #tpu.memory_space<vmem>>, %arg8: memref<64x256xf32, #tpu.memory_space<vmem>>) attributes {dimension_semantics = [#tpu.dimension_semantics<parallel>, #tpu.dimension_semantics<arbitrary>], iteration_bounds = array<i64: 2, 4>, scalar_prefetch = 0 : i64, scratch_operands = 2 : i64, tpu.core_type = #tpu.core_type<tc>, window_params = [{transform_indices = @transform_0, window_bounds = array<i64: 1, 64, 256>}, {transform_indices = @transform_1, window_bounds = array<i64: 1, 3, 768, 256>}, {transform_indices = @transform_2, window_bounds = array<i64: 1, 1, 256>}, {transform_indices = @transform_3, window_bounds = array<i64: 1, 1, 256>}, {transform_indices = @transform_4, window_bounds = array<i64: 1, 64, 256>}]} {
    %c0_i32 = arith.constant 0 : i32
    %0 = arith.cmpi eq, %arg1, %c0_i32 : i32
    %1 = arith.extui %0 : i1 to i32
    %c0_i32_0 = arith.constant 0 : i32
    %2 = arith.cmpi ne, %1, %c0_i32_0 : i32
    scf.if %2 {
      %c0_40 = arith.constant 0 : index
      %c0_41 = arith.constant 0 : index
      %c0_42 = arith.constant 0 : index
      %68 = vector.load %arg2[%c0_40, %c0_41, %c0_42] : memref<1x64x256xf32, #tpu.memory_space<vmem>>, vector<1x64x256xf32>
      %69 = vector.shape_cast %68 : vector<1x64x256xf32> to vector<64x256xf32>
      %c0_43 = arith.constant 0 : index
      %c0_44 = arith.constant 0 : index
      %70 = vector.load %arg8[%c0_43, %c0_44] : memref<64x256xf32, #tpu.memory_space<vmem>>, vector<64x256xf32>
      tpu.vector_store %arg8[%c0_43, %c0_44], %69 {strides = array<i32>} : memref<64x256xf32, #tpu.memory_space<vmem>>, vector<64x256xf32>,
    } else {
    }
    %3 = tpu.iota {dimensions = array<i32: 0>} : vector<64x1xi32>
    %c8_i32 = arith.constant 8 : i32
    %c0_i32_1 = arith.constant 0 : i32
    %4 = arith.cmpi eq, %c8_i32, %c0_i32_1 : i32
    %c1_i32 = arith.constant 1 : i32
    %5 = arith.select %4, %c1_i32, %c8_i32 : i32
    %6 = vector.broadcast %5 : i32 to vector<64x1xi32>
    %7 = arith.remsi %3, %6 : vector<64x1xi32>
    %c0_i32_2 = arith.constant 0 : i32
    %8 = vector.broadcast %c0_i32_2 : i32 to vector<64x1xi32>
    %9 = arith.cmpi ne, %7, %8 : vector<64x1xi32>
    %c0_i32_3 = arith.constant 0 : i32
    %10 = vector.broadcast %c0_i32_3 : i32 to vector<64x1xi32>
    %11 = arith.cmpi slt, %7, %10 : vector<64x1xi32>
    %c0_i32_4 = arith.constant 0 : i32
    %12 = arith.cmpi slt, %5, %c0_i32_4 : i32
    %13 = vector.broadcast %12 : i1 to vector<64x1xi1>
    %14 = vector.broadcast %13 : vector<64x1xi1> to vector<64x1xi1>
    %15 = arith.xori %11, %14 : vector<64x1xi1>
    %16 = arith.andi %15, %9 : vector<64x1xi1>
    %17 = vector.broadcast %5 : i32 to vector<64x1xi32>
    %18 = arith.addi %7, %17 : vector<64x1xi32>
    %19 = arith.select %16, %18, %7 : vector<64x1xi1>, vector<64x1xi32>
    %c1_i32_5 = arith.constant 1 : i32
    %20 = vector.broadcast %c1_i32_5 : i32 to vector<64x1xi32>
    %21 = arith.cmpi sge, %19, %20 : vector<64x1xi32>
    %c7_i32 = arith.constant 7 : i32
    %22 = vector.broadcast %c7_i32 : i32 to vector<64x1xi32>
    %23 = arith.cmpi slt, %19, %22 : vector<64x1xi32>
    %c0 = arith.constant 0 : index
    %c0_6 = arith.constant 0 : index
    %c0_7 = arith.constant 0 : index
    %c0_8 = arith.constant 0 : index
    %24 = vector.load %arg3[%c0, %c0_6, %c0_7, %c0_8] : memref<1x3x768x256xbf16, #tpu.memory_space<vmem>>, vector<1x1x768x256xbf16>
    %25 = vector.shape_cast %24 : vector<1x1x768x256xbf16> to vector<768x256xbf16>
    %c0_9 = arith.constant 0 : index
    %c1 = arith.constant 1 : index
    %c0_10 = arith.constant 0 : index
    %c0_11 = arith.constant 0 : index
    %26 = vector.load %arg3[%c0_9, %c1, %c0_10, %c0_11] : memref<1x3x768x256xbf16, #tpu.memory_space<vmem>>, vector<1x1x768x256xbf16>
    %27 = vector.shape_cast %26 : vector<1x1x768x256xbf16> to vector<768x256xbf16>
    %c0_12 = arith.constant 0 : index
    %c2 = arith.constant 2 : index
    %c0_13 = arith.constant 0 : index
    %c0_14 = arith.constant 0 : index
    %28 = vector.load %arg3[%c0_12, %c2, %c0_13, %c0_14] : memref<1x3x768x256xbf16, #tpu.memory_space<vmem>>, vector<1x1x768x256xbf16>
    %29 = vector.shape_cast %28 : vector<1x1x768x256xbf16> to vector<768x256xbf16>
    %c0_15 = arith.constant 0 : index
    %c0_16 = arith.constant 0 : index
    %30 = vector.load %arg8[%c0_15, %c0_16] : memref<64x256xf32, #tpu.memory_space<vmem>>, vector<64x256xf32>
    %c1_i32_17 = arith.constant 1 : i32
    %31 = tpu.dynamic_rotate %30 by %c1_i32_17 dim 0 : vector<64x256xf32>, i32 -> vector<64x256xf32>
    %cst = arith.constant 0.000000e+00 : f32
    %32 = vector.shape_cast %21 : vector<64x1xi1> to vector<64x1xi1>
    %33 = vector.broadcast %32 : vector<64x1xi1> to vector<64x256xi1>
    %34 = vector.broadcast %cst : f32 to vector<64x256xf32>
    %35 = arith.select %33, %31, %34 : vector<64x256xi1>, vector<64x256xf32>
    %c63_i32 = arith.constant 63 : i32
    %36 = tpu.dynamic_rotate %30 by %c63_i32 dim 0 : vector<64x256xf32>, i32 -> vector<64x256xf32>
    %cst_18 = arith.constant 0.000000e+00 : f32
    %37 = vector.shape_cast %23 : vector<64x1xi1> to vector<64x1xi1>
    %38 = vector.broadcast %37 : vector<64x1xi1> to vector<64x256xi1>
    %39 = vector.broadcast %cst_18 : f32 to vector<64x256xf32>
    %40 = arith.select %38, %36, %39 : vector<64x256xi1>, vector<64x256xf32>
    %cst_19 = arith.constant 0.000000e+00 : bf16
    %41 = vector.broadcast %cst_19 : bf16 to vector<8x768xbf16>
    %c0_20 = arith.constant 0 : index
    %c0_21 = arith.constant 0 : index
    %42 = vector.load %arg7[%c0_20, %c0_21] : memref<80x768xbf16, #tpu.memory_space<vmem>>, vector<8x768xbf16>
    tpu.vector_store %arg7[%c0_20, %c0_21], %41 {strides = array<i32>} : memref<80x768xbf16, #tpu.memory_space<vmem>>, vector<8x768xbf16>,
    %c72 = arith.constant 72 : index
    %c0_22 = arith.constant 0 : index
    %43 = vector.load %arg7[%c72, %c0_22] : memref<80x768xbf16, #tpu.memory_space<vmem>>, vector<8x768xbf16>
    tpu.vector_store %arg7[%c72, %c0_22], %41 {strides = array<i32>} : memref<80x768xbf16, #tpu.memory_space<vmem>>, vector<8x768xbf16>,
    %44 = arith.truncf %35 : vector<64x256xf32> to vector<64x256xbf16>
    %c8 = arith.constant 8 : index
    %c0_23 = arith.constant 0 : index
    %45 = vector.load %arg7[%c8, %c0_23] : memref<80x768xbf16, #tpu.memory_space<vmem>>, vector<64x256xbf16>
    tpu.vector_store %arg7[%c8, %c0_23], %44 {strides = array<i32>} : memref<80x768xbf16, #tpu.memory_space<vmem>>, vector<64x256xbf16>,
    %46 = arith.truncf %30 : vector<64x256xf32> to vector<64x256xbf16>
    %c8_24 = arith.constant 8 : index
    %c256 = arith.constant 256 : index
    %47 = vector.load %arg7[%c8_24, %c256] : memref<80x768xbf16, #tpu.memory_space<vmem>>, vector<64x256xbf16>
    tpu.vector_store %arg7[%c8_24, %c256], %46 {strides = array<i32>} : memref<80x768xbf16, #tpu.memory_space<vmem>>, vector<64x256xbf16>,
    %48 = arith.truncf %40 : vector<64x256xf32> to vector<64x256xbf16>
    %c8_25 = arith.constant 8 : index
    %c512 = arith.constant 512 : index
    %49 = vector.load %arg7[%c8_25, %c512] : memref<80x768xbf16, #tpu.memory_space<vmem>>, vector<64x256xbf16>
    tpu.vector_store %arg7[%c8_25, %c512], %48 {strides = array<i32>} : memref<80x768xbf16, #tpu.memory_space<vmem>>, vector<64x256xbf16>,
    %c0_26 = arith.constant 0 : index
    %c0_27 = arith.constant 0 : index
    %50 = vector.load %arg7[%c0_26, %c0_27] : memref<80x768xbf16, #tpu.memory_space<vmem>>, vector<64x768xbf16>
    %cst_28 = arith.constant dense<0.000000e+00> : vector<64x256xf32>
    %51 = tpu.matmul %50, %25, %cst_28 {dimension_numbers = #tpu.dot_dimension_numbers<[1], [0], [0], [1], [0, 0, 1, 1], [], []>} : vector<64x768xbf16>, vector<768x256xbf16>, vector<64x256xf32> -> vector<64x256xf32>
    %c8_29 = arith.constant 8 : index
    %c0_30 = arith.constant 0 : index
    %52 = vector.load %arg7[%c8_29, %c0_30] : memref<80x768xbf16, #tpu.memory_space<vmem>>, vector<64x768xbf16>
    %cst_31 = arith.constant dense<0.000000e+00> : vector<64x256xf32>
    %53 = tpu.matmul %52, %27, %cst_31 {dimension_numbers = #tpu.dot_dimension_numbers<[1], [0], [0], [1], [0, 0, 1, 1], [], []>} : vector<64x768xbf16>, vector<768x256xbf16>, vector<64x256xf32> -> vector<64x256xf32>
    %54 = arith.addf %51, %53 : vector<64x256xf32>
    %c16 = arith.constant 16 : index
    %c0_32 = arith.constant 0 : index
    %55 = vector.load %arg7[%c16, %c0_32] : memref<80x768xbf16, #tpu.memory_space<vmem>>, vector<64x768xbf16>
    %cst_33 = arith.constant dense<0.000000e+00> : vector<64x256xf32>
    %56 = tpu.matmul %55, %29, %cst_33 {dimension_numbers = #tpu.dot_dimension_numbers<[1], [0], [0], [1], [0, 0, 1, 1], [], []>} : vector<64x768xbf16>, vector<768x256xbf16>, vector<64x256xf32> -> vector<64x256xf32>
    %57 = arith.addf %54, %56 : vector<64x256xf32>
    %c0_34 = arith.constant 0 : index
    %c0_35 = arith.constant 0 : index
    %c0_36 = arith.constant 0 : index
    %58 = vector.load %arg4[%c0_34, %c0_35, %c0_36] : memref<1x1x256xf32, #tpu.memory_space<vmem>>, vector<1x1x256xf32>
    %59 = vector.shape_cast %58 : vector<1x1x256xf32> to vector<1x256xf32>
    %60 = vector.broadcast %59 : vector<1x256xf32> to vector<64x256xf32>
    %61 = arith.addf %57, %60 : vector<64x256xf32>
    %c3_i32 = arith.constant 3 : i32
    %62 = arith.cmpi slt, %arg1, %c3_i32 : i32
    %63 = arith.extui %62 : i1 to i32
    %c0_i32_37 = arith.constant 0 : i32
    %64 = arith.cmpi ne, %63, %c0_i32_37 : i32
    scf.if %64 {
      %cst_40 = arith.constant dense<0.000000e+00> : vector<256xf32>
      %68 = vector.multi_reduction <add>, %61, %cst_40 [0] : vector<64x256xf32> to vector<256xf32>
      %69 = vector.shape_cast %68 : vector<256xf32> to vector<1x256xf32>
      %cst_41 = arith.constant 6.400000e+01 : f32
      %70 = vector.broadcast %cst_41 : f32 to vector<1x256xf32>
      %71 = arith.divf %69, %70 : vector<1x256xf32>
      %72 = vector.broadcast %71 : vector<1x256xf32> to vector<64x256xf32>
      %73 = arith.subf %61, %72 : vector<64x256xf32>
      %74 = arith.mulf %73, %73 : vector<64x256xf32>
      %cst_42 = arith.constant dense<0.000000e+00> : vector<256xf32>
      %75 = vector.multi_reduction <add>, %74, %cst_42 [0] : vector<64x256xf32> to vector<256xf32>
      %76 = vector.shape_cast %75 : vector<256xf32> to vector<1x256xf32>
      %cst_43 = arith.constant 6.400000e+01 : f32
      %77 = vector.broadcast %cst_43 : f32 to vector<1x256xf32>
      %78 = arith.divf %76, %77 : vector<1x256xf32>
      %79 = vector.broadcast %71 : vector<1x256xf32> to vector<64x256xf32>
      %80 = arith.subf %61, %79 : vector<64x256xf32>
      %cst_44 = arith.constant 9.99999974E-6 : f32
      %81 = vector.broadcast %cst_44 : f32 to vector<1x256xf32>
      %82 = arith.addf %78, %81 : vector<1x256xf32>
      %83 = math.rsqrt %82 : vector<1x256xf32>
      %84 = vector.broadcast %83 : vector<1x256xf32> to vector<64x256xf32>
      %85 = arith.mulf %80, %84 : vector<64x256xf32>
      %cst_45 = arith.constant 0.000000e+00 : f32
      %86 = vector.broadcast %cst_45 : f32 to vector<64x256xf32>
      %87 = arith.maximumf %85, %86 : vector<64x256xf32>
      %c0_46 = arith.constant 0 : index
      %c0_47 = arith.constant 0 : index
      %88 = vector.load %arg8[%c0_46, %c0_47] : memref<64x256xf32, #tpu.memory_space<vmem>>, vector<64x256xf32>
      tpu.vector_store %arg8[%c0_46, %c0_47], %87 {strides = array<i32>} : memref<64x256xf32, #tpu.memory_space<vmem>>, vector<64x256xf32>,
    } else {
    }
    %c3_i32_38 = arith.constant 3 : i32
    %65 = arith.cmpi eq, %arg1, %c3_i32_38 : i32
    %66 = arith.extui %65 : i1 to i32
    %c0_i32_39 = arith.constant 0 : i32
    %67 = arith.cmpi ne, %66, %c0_i32_39 : i32
    scf.if %67 {
      %68 = arith.negf %61 : vector<64x256xf32>
      %69 = math.exp %68 : vector<64x256xf32>
      %cst_40 = arith.constant 1.000000e+00 : f32
      %70 = vector.broadcast %cst_40 : f32 to vector<64x256xf32>
      %71 = arith.addf %70, %69 : vector<64x256xf32>
      %72 = arith.divf %70, %71 : vector<64x256xf32>
      %cst_41 = arith.constant dense<0.000000e+00> : vector<256xf32>
      %73 = vector.multi_reduction <add>, %72, %cst_41 [0] : vector<64x256xf32> to vector<256xf32>
      %74 = vector.shape_cast %73 : vector<256xf32> to vector<1x256xf32>
      %cst_42 = arith.constant 6.400000e+01 : f32
      %75 = vector.broadcast %cst_42 : f32 to vector<1x256xf32>
      %76 = arith.divf %74, %75 : vector<1x256xf32>
      %c0_43 = arith.constant 0 : index
      %c0_44 = arith.constant 0 : index
      %c0_45 = arith.constant 0 : index
      %77 = vector.load %arg5[%c0_43, %c0_44, %c0_45] : memref<1x1x256xf32, #tpu.memory_space<vmem>>, vector<1x1x256xf32>
      %78 = vector.shape_cast %77 : vector<1x1x256xf32> to vector<1x256xf32>
      %79 = vector.shape_cast %76 : vector<1x256xf32> to vector<1x1x256xf32>
      tpu.vector_store %arg5[%c0_43, %c0_44, %c0_45], %79 {strides = array<i32>} : memref<1x1x256xf32, #tpu.memory_space<vmem>>, vector<1x1x256xf32>,
      %c0_46 = arith.constant 0 : index
      %c0_47 = arith.constant 0 : index
      %c0_48 = arith.constant 0 : index
      %80 = vector.load %arg2[%c0_46, %c0_47, %c0_48] : memref<1x64x256xf32, #tpu.memory_space<vmem>>, vector<1x64x256xf32>
      %81 = vector.shape_cast %80 : vector<1x64x256xf32> to vector<64x256xf32>
      %82 = vector.broadcast %76 : vector<1x256xf32> to vector<64x256xf32>
      %83 = arith.mulf %81, %82 : vector<64x256xf32>
      %c0_49 = arith.constant 0 : index
      %c0_50 = arith.constant 0 : index
      %c0_51 = arith.constant 0 : index
      %84 = vector.load %arg6[%c0_49, %c0_50, %c0_51] : memref<1x64x256xf32, #tpu.memory_space<vmem>>, vector<1x64x256xf32>
      %85 = vector.shape_cast %84 : vector<1x64x256xf32> to vector<64x256xf32>
      %86 = vector.shape_cast %83 : vector<64x256xf32> to vector<1x64x256xf32>
      tpu.vector_store %arg6[%c0_49, %c0_50, %c0_51], %86 {strides = array<i32>} : memref<1x64x256xf32, #tpu.memory_space<vmem>>, vector<1x64x256xf32>,
    } else {
    }
    return
  }
  func.func @transform_0(%arg0: i32, %arg1: i32) -> (i32, i32, i32) {
    %c0_i32 = arith.constant 0 : i32
    %c0_i32_0 = arith.constant 0 : i32
    %c0_i32_1 = arith.constant 0 : i32
    return %arg0, %c0_i32, %c0_i32_0 : i32, i32, i32
  }
  func.func @transform_1(%arg0: i32, %arg1: i32) -> (i32, i32, i32, i32) {
    %c0_i32 = arith.constant 0 : i32
    %c0_i32_0 = arith.constant 0 : i32
    %c0_i32_1 = arith.constant 0 : i32
    %c0_i32_2 = arith.constant 0 : i32
    return %arg1, %c0_i32, %c0_i32_0, %c0_i32_1 : i32, i32, i32, i32
  }
  func.func @transform_2(%arg0: i32, %arg1: i32) -> (i32, i32, i32) {
    %c0_i32 = arith.constant 0 : i32
    %c0_i32_0 = arith.constant 0 : i32
    %c0_i32_1 = arith.constant 0 : i32
    return %arg1, %c0_i32, %c0_i32_0 : i32, i32, i32
  }
  func.func @transform_3(%arg0: i32, %arg1: i32) -> (i32, i32, i32) {
    %c0_i32 = arith.constant 0 : i32
    %c0_i32_0 = arith.constant 0 : i32
    %c0_i32_1 = arith.constant 0 : i32
    return %arg0, %c0_i32, %c0_i32_0 : i32, i32, i32
  }
  func.func @transform_4(%arg0: i32, %arg1: i32) -> (i32, i32, i32) {
    %c0_i32 = arith.constant 0 : i32
    %c0_i32_0 = arith.constant 0 : i32
    %c0_i32_1 = arith.constant 0 : i32
    return %arg0, %c0_i32, %c0_i32_0 : i32, i32, i32
  }
}

module attributes {stable_mosaic.version = 11 : i64} {
  func.func @_domain_head_loss_kernel(%arg0: i32, %arg1: i32, %arg2: memref<2xi32, #tpu.memory_space<smem>>, %arg3: memref<1x32x256xf32, #tpu.memory_space<vmem>>, %arg4: memref<1x3x768x128xbf16, #tpu.memory_space<vmem>>, %arg5: memref<1x1x128xf32, #tpu.memory_space<vmem>>, %arg6: memref<1x1x128xf32, #tpu.memory_space<vmem>>, %arg7: memref<1x1x128xf32, #tpu.memory_space<vmem>>, %arg8: memref<1x128x128xf32, #tpu.memory_space<vmem>>, %arg9: memref<1x1x128xf32, #tpu.memory_space<vmem>>, %arg10: memref<1x1x128xf32, #tpu.memory_space<vmem>>, %arg11: memref<2x32x128xbf16, #tpu.memory_space<vmem>>, %arg12: memref<48x768xbf16, #tpu.memory_space<vmem>>, %arg13: memref<1x128xf32, #tpu.memory_space<vmem>>, %arg14: memref<1x128xf32, #tpu.memory_space<vmem>>) attributes {dimension_semantics = [#tpu.dimension_semantics<parallel>, #tpu.dimension_semantics<arbitrary>], iteration_bounds = array<i64: 2, 2>, scalar_prefetch = 1 : i64, scratch_operands = 4 : i64, tpu.core_type = #tpu.core_type<tc>, window_params = [{transform_indices = @transform_0, window_bounds = array<i64: 1, 32, 256>}, {transform_indices = @transform_1, window_bounds = array<i64: 1, 3, 768, 128>}, {transform_indices = @transform_2, window_bounds = array<i64: 1, 1, 128>}, {transform_indices = @transform_3, window_bounds = array<i64: 1, 1, 128>}, {transform_indices = @transform_4, window_bounds = array<i64: 1, 1, 128>}, {transform_indices = @transform_5, window_bounds = array<i64: 1, 128, 128>}, {transform_indices = @transform_6, window_bounds = array<i64: 1, 1, 128>}, {transform_indices = @transform_7, window_bounds = array<i64: 1, 1, 128>}]} {
    %c0_i32 = arith.constant 0 : i32
    %0 = arith.cmpi eq, %arg1, %c0_i32 : i32
    %1 = arith.extui %0 : i1 to i32
    %c0_i32_0 = arith.constant 0 : i32
    %2 = arith.cmpi ne, %1, %c0_i32_0 : i32
    scf.if %2 {
      %cst_53 = arith.constant 0.000000e+00 : f32
      %84 = vector.broadcast %cst_53 : f32 to vector<1x128xf32>
      %c0_54 = arith.constant 0 : index
      %c0_55 = arith.constant 0 : index
      %85 = vector.load %arg13[%c0_54, %c0_55] : memref<1x128xf32, #tpu.memory_space<vmem>>, vector<1x128xf32>
      tpu.vector_store %arg13[%c0_54, %c0_55], %84 {strides = array<i32>} : memref<1x128xf32, #tpu.memory_space<vmem>>, vector<1x128xf32>,
      %cst_56 = arith.constant 0.000000e+00 : f32
      %86 = vector.broadcast %cst_56 : f32 to vector<1x128xf32>
      %c0_57 = arith.constant 0 : index
      %c0_58 = arith.constant 0 : index
      %87 = vector.load %arg14[%c0_57, %c0_58] : memref<1x128xf32, #tpu.memory_space<vmem>>, vector<1x128xf32>
      tpu.vector_store %arg14[%c0_57, %c0_58], %86 {strides = array<i32>} : memref<1x128xf32, #tpu.memory_space<vmem>>, vector<1x128xf32>,
    } else {
    }
    %3 = tpu.iota {dimensions = array<i32: 0>} : vector<32x1xi32>
    %c8_i32 = arith.constant 8 : i32
    %c0_i32_1 = arith.constant 0 : i32
    %4 = arith.cmpi eq, %c8_i32, %c0_i32_1 : i32
    %c1_i32 = arith.constant 1 : i32
    %5 = arith.select %4, %c1_i32, %c8_i32 : i32
    %6 = vector.broadcast %5 : i32 to vector<32x1xi32>
    %7 = arith.remsi %3, %6 : vector<32x1xi32>
    %c0_i32_2 = arith.constant 0 : i32
    %8 = vector.broadcast %c0_i32_2 : i32 to vector<32x1xi32>
    %9 = arith.cmpi ne, %7, %8 : vector<32x1xi32>
    %c0_i32_3 = arith.constant 0 : i32
    %10 = vector.broadcast %c0_i32_3 : i32 to vector<32x1xi32>
    %11 = arith.cmpi slt, %7, %10 : vector<32x1xi32>
    %c0_i32_4 = arith.constant 0 : i32
    %12 = arith.cmpi slt, %5, %c0_i32_4 : i32
    %13 = vector.broadcast %12 : i1 to vector<32x1xi1>
    %14 = vector.broadcast %13 : vector<32x1xi1> to vector<32x1xi1>
    %15 = arith.xori %11, %14 : vector<32x1xi1>
    %16 = arith.andi %15, %9 : vector<32x1xi1>
    %17 = vector.broadcast %5 : i32 to vector<32x1xi32>
    %18 = arith.addi %7, %17 : vector<32x1xi32>
    %19 = arith.select %16, %18, %7 : vector<32x1xi1>, vector<32x1xi32>
    %c1_i32_5 = arith.constant 1 : i32
    %20 = vector.broadcast %c1_i32_5 : i32 to vector<32x1xi32>
    %21 = arith.cmpi sge, %19, %20 : vector<32x1xi32>
    %c7_i32 = arith.constant 7 : i32
    %22 = vector.broadcast %c7_i32 : i32 to vector<32x1xi32>
    %23 = arith.cmpi slt, %19, %22 : vector<32x1xi32>
    %c0 = arith.constant 0 : index
    %c0_6 = arith.constant 0 : index
    %c0_7 = arith.constant 0 : index
    %c0_8 = arith.constant 0 : index
    %24 = vector.load %arg4[%c0, %c0_6, %c0_7, %c0_8] : memref<1x3x768x128xbf16, #tpu.memory_space<vmem>>, vector<1x1x768x128xbf16>
    %25 = vector.shape_cast %24 : vector<1x1x768x128xbf16> to vector<768x128xbf16>
    %c0_9 = arith.constant 0 : index
    %c1 = arith.constant 1 : index
    %c0_10 = arith.constant 0 : index
    %c0_11 = arith.constant 0 : index
    %26 = vector.load %arg4[%c0_9, %c1, %c0_10, %c0_11] : memref<1x3x768x128xbf16, #tpu.memory_space<vmem>>, vector<1x1x768x128xbf16>
    %27 = vector.shape_cast %26 : vector<1x1x768x128xbf16> to vector<768x128xbf16>
    %c0_12 = arith.constant 0 : index
    %c2 = arith.constant 2 : index
    %c0_13 = arith.constant 0 : index
    %c0_14 = arith.constant 0 : index
    %28 = vector.load %arg4[%c0_12, %c2, %c0_13, %c0_14] : memref<1x3x768x128xbf16, #tpu.memory_space<vmem>>, vector<1x1x768x128xbf16>
    %29 = vector.shape_cast %28 : vector<1x1x768x128xbf16> to vector<768x128xbf16>
    %c0_15 = arith.constant 0 : index
    %c0_16 = arith.constant 0 : index
    %c0_17 = arith.constant 0 : index
    %30 = vector.load %arg3[%c0_15, %c0_16, %c0_17] : memref<1x32x256xf32, #tpu.memory_space<vmem>>, vector<1x32x256xf32>
    %31 = vector.shape_cast %30 : vector<1x32x256xf32> to vector<32x256xf32>
    %c1_i32_18 = arith.constant 1 : i32
    %32 = tpu.dynamic_rotate %31 by %c1_i32_18 dim 0 : vector<32x256xf32>, i32 -> vector<32x256xf32>
    %cst = arith.constant 0.000000e+00 : f32
    %33 = vector.shape_cast %21 : vector<32x1xi1> to vector<32x1xi1>
    %34 = vector.broadcast %33 : vector<32x1xi1> to vector<32x256xi1>
    %35 = vector.broadcast %cst : f32 to vector<32x256xf32>
    %36 = arith.select %34, %32, %35 : vector<32x256xi1>, vector<32x256xf32>
    %c31_i32 = arith.constant 31 : i32
    %37 = tpu.dynamic_rotate %31 by %c31_i32 dim 0 : vector<32x256xf32>, i32 -> vector<32x256xf32>
    %cst_19 = arith.constant 0.000000e+00 : f32
    %38 = vector.shape_cast %23 : vector<32x1xi1> to vector<32x1xi1>
    %39 = vector.broadcast %38 : vector<32x1xi1> to vector<32x256xi1>
    %40 = vector.broadcast %cst_19 : f32 to vector<32x256xf32>
    %41 = arith.select %39, %37, %40 : vector<32x256xi1>, vector<32x256xf32>
    %cst_20 = arith.constant 0.000000e+00 : bf16
    %42 = vector.broadcast %cst_20 : bf16 to vector<8x768xbf16>
    %c0_21 = arith.constant 0 : index
    %c0_22 = arith.constant 0 : index
    %43 = vector.load %arg12[%c0_21, %c0_22] : memref<48x768xbf16, #tpu.memory_space<vmem>>, vector<8x768xbf16>
    tpu.vector_store %arg12[%c0_21, %c0_22], %42 {strides = array<i32>} : memref<48x768xbf16, #tpu.memory_space<vmem>>, vector<8x768xbf16>,
    %c40 = arith.constant 40 : index
    %c0_23 = arith.constant 0 : index
    %44 = vector.load %arg12[%c40, %c0_23] : memref<48x768xbf16, #tpu.memory_space<vmem>>, vector<8x768xbf16>
    tpu.vector_store %arg12[%c40, %c0_23], %42 {strides = array<i32>} : memref<48x768xbf16, #tpu.memory_space<vmem>>, vector<8x768xbf16>,
    %45 = arith.truncf %36 : vector<32x256xf32> to vector<32x256xbf16>
    %c8 = arith.constant 8 : index
    %c0_24 = arith.constant 0 : index
    %46 = vector.load %arg12[%c8, %c0_24] : memref<48x768xbf16, #tpu.memory_space<vmem>>, vector<32x256xbf16>
    tpu.vector_store %arg12[%c8, %c0_24], %45 {strides = array<i32>} : memref<48x768xbf16, #tpu.memory_space<vmem>>, vector<32x256xbf16>,
    %47 = arith.truncf %31 : vector<32x256xf32> to vector<32x256xbf16>
    %c8_25 = arith.constant 8 : index
    %c256 = arith.constant 256 : index
    %48 = vector.load %arg12[%c8_25, %c256] : memref<48x768xbf16, #tpu.memory_space<vmem>>, vector<32x256xbf16>
    tpu.vector_store %arg12[%c8_25, %c256], %47 {strides = array<i32>} : memref<48x768xbf16, #tpu.memory_space<vmem>>, vector<32x256xbf16>,
    %49 = arith.truncf %41 : vector<32x256xf32> to vector<32x256xbf16>
    %c8_26 = arith.constant 8 : index
    %c512 = arith.constant 512 : index
    %50 = vector.load %arg12[%c8_26, %c512] : memref<48x768xbf16, #tpu.memory_space<vmem>>, vector<32x256xbf16>
    tpu.vector_store %arg12[%c8_26, %c512], %49 {strides = array<i32>} : memref<48x768xbf16, #tpu.memory_space<vmem>>, vector<32x256xbf16>,
    %c0_27 = arith.constant 0 : index
    %c0_28 = arith.constant 0 : index
    %51 = vector.load %arg12[%c0_27, %c0_28] : memref<48x768xbf16, #tpu.memory_space<vmem>>, vector<32x768xbf16>
    %cst_29 = arith.constant dense<0.000000e+00> : vector<32x128xf32>
    %52 = tpu.matmul %51, %25, %cst_29 {dimension_numbers = #tpu.dot_dimension_numbers<[1], [0], [0], [1], [0, 0, 1, 1], [], []>} : vector<32x768xbf16>, vector<768x128xbf16>, vector<32x128xf32> -> vector<32x128xf32>
    %c8_30 = arith.constant 8 : index
    %c0_31 = arith.constant 0 : index
    %53 = vector.load %arg12[%c8_30, %c0_31] : memref<48x768xbf16, #tpu.memory_space<vmem>>, vector<32x768xbf16>
    %cst_32 = arith.constant dense<0.000000e+00> : vector<32x128xf32>
    %54 = tpu.matmul %53, %27, %cst_32 {dimension_numbers = #tpu.dot_dimension_numbers<[1], [0], [0], [1], [0, 0, 1, 1], [], []>} : vector<32x768xbf16>, vector<768x128xbf16>, vector<32x128xf32> -> vector<32x128xf32>
    %55 = arith.addf %52, %54 : vector<32x128xf32>
    %c16 = arith.constant 16 : index
    %c0_33 = arith.constant 0 : index
    %56 = vector.load %arg12[%c16, %c0_33] : memref<48x768xbf16, #tpu.memory_space<vmem>>, vector<32x768xbf16>
    %cst_34 = arith.constant dense<0.000000e+00> : vector<32x128xf32>
    %57 = tpu.matmul %56, %29, %cst_34 {dimension_numbers = #tpu.dot_dimension_numbers<[1], [0], [0], [1], [0, 0, 1, 1], [], []>} : vector<32x768xbf16>, vector<768x128xbf16>, vector<32x128xf32> -> vector<32x128xf32>
    %58 = arith.addf %55, %57 : vector<32x128xf32>
    %c0_35 = arith.constant 0 : index
    %c0_36 = arith.constant 0 : index
    %c0_37 = arith.constant 0 : index
    %59 = vector.load %arg5[%c0_35, %c0_36, %c0_37] : memref<1x1x128xf32, #tpu.memory_space<vmem>>, vector<1x1x128xf32>
    %60 = vector.shape_cast %59 : vector<1x1x128xf32> to vector<1x128xf32>
    %61 = vector.broadcast %60 : vector<1x128xf32> to vector<32x128xf32>
    %62 = arith.addf %58, %61 : vector<32x128xf32>
    %cst_38 = arith.constant 0.000000e+00 : f32
    %63 = vector.broadcast %cst_38 : f32 to vector<32x128xf32>
    %64 = arith.maximumf %62, %63 : vector<32x128xf32>
    %c0_39 = arith.constant 0 : index
    %c0_40 = arith.constant 0 : index
    %65 = vector.load %arg13[%c0_39, %c0_40] : memref<1x128xf32, #tpu.memory_space<vmem>>, vector<1x128xf32>
    %cst_41 = arith.constant dense<0.000000e+00> : vector<128xf32>
    %66 = vector.multi_reduction <add>, %64, %cst_41 [0] : vector<32x128xf32> to vector<128xf32>
    %67 = vector.shape_cast %66 : vector<128xf32> to vector<1x128xf32>
    %68 = arith.addf %65, %67 : vector<1x128xf32>
    %c0_42 = arith.constant 0 : index
    %c0_43 = arith.constant 0 : index
    %69 = vector.load %arg13[%c0_42, %c0_43] : memref<1x128xf32, #tpu.memory_space<vmem>>, vector<1x128xf32>
    tpu.vector_store %arg13[%c0_42, %c0_43], %68 {strides = array<i32>} : memref<1x128xf32, #tpu.memory_space<vmem>>, vector<1x128xf32>,
    %c0_44 = arith.constant 0 : index
    %c0_45 = arith.constant 0 : index
    %70 = vector.load %arg14[%c0_44, %c0_45] : memref<1x128xf32, #tpu.memory_space<vmem>>, vector<1x128xf32>
    %71 = arith.mulf %64, %64 : vector<32x128xf32>
    %cst_46 = arith.constant dense<0.000000e+00> : vector<128xf32>
    %72 = vector.multi_reduction <add>, %71, %cst_46 [0] : vector<32x128xf32> to vector<128xf32>
    %73 = vector.shape_cast %72 : vector<128xf32> to vector<1x128xf32>
    %74 = arith.addf %70, %73 : vector<1x128xf32>
    %c0_47 = arith.constant 0 : index
    %c0_48 = arith.constant 0 : index
    %75 = vector.load %arg14[%c0_47, %c0_48] : memref<1x128xf32, #tpu.memory_space<vmem>>, vector<1x128xf32>
    tpu.vector_store %arg14[%c0_47, %c0_48], %74 {strides = array<i32>} : memref<1x128xf32, #tpu.memory_space<vmem>>, vector<1x128xf32>,
    %76 = arith.truncf %64 : vector<32x128xf32> to vector<32x128xbf16>
    %77 = arith.index_cast %arg1 : i32 to index
    %c0_49 = arith.constant 0 : index
    %c0_50 = arith.constant 0 : index
    %78 = vector.load %arg11[%77, %c0_49, %c0_50] : memref<2x32x128xbf16, #tpu.memory_space<vmem>>, vector<1x32x128xbf16>
    %79 = vector.shape_cast %78 : vector<1x32x128xbf16> to vector<32x128xbf16>
    %80 = vector.shape_cast %76 : vector<32x128xbf16> to vector<1x32x128xbf16>
    tpu.vector_store %arg11[%77, %c0_49, %c0_50], %80 {strides = array<i32>} : memref<2x32x128xbf16, #tpu.memory_space<vmem>>, vector<1x32x128xbf16>,
    %c1_i32_51 = arith.constant 1 : i32
    %81 = arith.cmpi eq, %arg1, %c1_i32_51 : i32
    %82 = arith.extui %81 : i1 to i32
    %c0_i32_52 = arith.constant 0 : i32
    %83 = arith.cmpi ne, %82, %c0_i32_52 : i32
    scf.if %83 {
      %c0_53 = arith.constant 0 : index
      %c0_54 = arith.constant 0 : index
      %84 = vector.load %arg13[%c0_53, %c0_54] : memref<1x128xf32, #tpu.memory_space<vmem>>, vector<1x128xf32>
      %cst_55 = arith.constant 1.562500e-02 : f32
      %85 = vector.broadcast %cst_55 : f32 to vector<1x128xf32>
      %86 = arith.mulf %84, %85 : vector<1x128xf32>
      %c0_56 = arith.constant 0 : index
      %c0_57 = arith.constant 0 : index
      %87 = vector.load %arg14[%c0_56, %c0_57] : memref<1x128xf32, #tpu.memory_space<vmem>>, vector<1x128xf32>
      %cst_58 = arith.constant 1.562500e-02 : f32
      %88 = vector.broadcast %cst_58 : f32 to vector<1x128xf32>
      %89 = arith.mulf %87, %88 : vector<1x128xf32>
      %90 = arith.mulf %86, %86 : vector<1x128xf32>
      %91 = arith.subf %89, %90 : vector<1x128xf32>
      %cst_59 = arith.constant 0.000000e+00 : f32
      %92 = vector.broadcast %cst_59 : f32 to vector<1x128xf32>
      %93 = arith.maximumf %91, %92 : vector<1x128xf32>
      %c0_60 = arith.constant 0 : index
      %c0_61 = arith.constant 0 : index
      %c0_62 = arith.constant 0 : index
      %94 = vector.load %arg6[%c0_60, %c0_61, %c0_62] : memref<1x1x128xf32, #tpu.memory_space<vmem>>, vector<1x1x128xf32>
      %95 = vector.shape_cast %94 : vector<1x1x128xf32> to vector<1x128xf32>
      %cst_63 = arith.constant 9.99999974E-6 : f32
      %96 = vector.broadcast %cst_63 : f32 to vector<1x128xf32>
      %97 = arith.addf %93, %96 : vector<1x128xf32>
      %98 = math.rsqrt %97 : vector<1x128xf32>
      %99 = arith.mulf %95, %98 : vector<1x128xf32>
      %c0_64 = arith.constant 0 : index
      %c0_65 = arith.constant 0 : index
      %c0_66 = arith.constant 0 : index
      %100 = vector.load %arg7[%c0_64, %c0_65, %c0_66] : memref<1x1x128xf32, #tpu.memory_space<vmem>>, vector<1x1x128xf32>
      %101 = vector.shape_cast %100 : vector<1x1x128xf32> to vector<1x128xf32>
      %102 = arith.mulf %86, %99 : vector<1x128xf32>
      %103 = arith.subf %101, %102 : vector<1x128xf32>
      %c0_67 = arith.constant 0 : index
      %c0_68 = arith.constant 0 : index
      %c0_69 = arith.constant 0 : index
      %104 = vector.load %arg8[%c0_67, %c0_68, %c0_69] : memref<1x128x128xf32, #tpu.memory_space<vmem>>, vector<1x128x128xf32>
      %105 = vector.shape_cast %104 : vector<1x128x128xf32> to vector<128x128xf32>
      %106 = tpu.iota {dimensions = array<i32: 0>} : vector<128x128xi32>
      %107 = tpu.iota {dimensions = array<i32: 1>} : vector<128x128xi32>
      %108 = arith.cmpi eq, %106, %107 : vector<128x128xi32>
      %cst_70 = arith.constant 0.000000e+00 : f32
      %109 = vector.shape_cast %99 : vector<1x128xf32> to vector<1x128xf32>
      %110 = vector.broadcast %109 : vector<1x128xf32> to vector<128x128xf32>
      %111 = vector.broadcast %cst_70 : f32 to vector<128x128xf32>
      %112 = arith.select %108, %110, %111 : vector<128x128xi1>, vector<128x128xf32>
      %cst_71 = arith.constant dense<0.000000e+00> : vector<128x128xf32>
      %113 = tpu.matmul %112, %105, %cst_71 {dimension_numbers = #tpu.dot_dimension_numbers<[1], [0], [0], [1], [0, 0, 1, 1], [], []>} : vector<128x128xf32>, vector<128x128xf32>, vector<128x128xf32> -> vector<128x128xf32>
      %114 = arith.truncf %113 : vector<128x128xf32> to vector<128x128xbf16>
      %115 = vector.shape_cast %103 : vector<1x128xf32> to vector<1x128xf32>
      %116 = vector.broadcast %115 : vector<1x128xf32> to vector<8x128xf32>
      %cst_72 = arith.constant dense<0.000000e+00> : vector<8x128xf32>
      %117 = tpu.matmul %116, %105, %cst_72 {dimension_numbers = #tpu.dot_dimension_numbers<[1], [0], [0], [1], [0, 0, 1, 1], [], []>} : vector<8x128xf32>, vector<128x128xf32>, vector<8x128xf32> -> vector<8x128xf32>
      %118 = vector.extract_strided_slice %117 {offsets = [0, 0], sizes = [1, 128], strides = [1, 1]} : vector<8x128xf32> to vector<1x128xf32>
      %c0_73 = arith.constant 0 : index
      %c0_74 = arith.constant 0 : index
      %c0_75 = arith.constant 0 : index
      %119 = vector.load %arg9[%c0_73, %c0_74, %c0_75] : memref<1x1x128xf32, #tpu.memory_space<vmem>>, vector<1x1x128xf32>
      %120 = vector.shape_cast %119 : vector<1x1x128xf32> to vector<1x128xf32>
      %121 = arith.addf %118, %120 : vector<1x128xf32>
      %122 = tpu.iota {dimensions = array<i32: 1>} : vector<32x128xi32>
      %cst_76 = arith.constant 0.000000e+00 : f32
      %123 = vector.broadcast %cst_76 : f32 to vector<1x1xf32>
      %c0_77 = arith.constant 0 : index
      %c0_78 = arith.constant 0 : index
      %c0_79 = arith.constant 0 : index
      %124 = vector.load %arg11[%c0_77, %c0_78, %c0_79] : memref<2x32x128xbf16, #tpu.memory_space<vmem>>, vector<1x32x128xbf16>
      %125 = vector.shape_cast %124 : vector<1x32x128xbf16> to vector<32x128xbf16>
      %cst_80 = arith.constant dense<0.000000e+00> : vector<32x128xf32>
      %126 = tpu.matmul %125, %114, %cst_80 {dimension_numbers = #tpu.dot_dimension_numbers<[1], [0], [0], [1], [0, 0, 1, 1], [], []>} : vector<32x128xbf16>, vector<128x128xbf16>, vector<32x128xf32> -> vector<32x128xf32>
      %127 = vector.broadcast %121 : vector<1x128xf32> to vector<32x128xf32>
      %128 = arith.addf %126, %127 : vector<32x128xf32>
      %cst_81 = arith.constant dense<0xFF800000> : vector<32xf32>
      %129 = vector.multi_reduction <maximumf>, %128, %cst_81 [1] : vector<32x128xf32> to vector<32xf32>
      %130 = vector.shape_cast %129 : vector<32xf32> to vector<32x1xf32>
      %131 = vector.broadcast %130 : vector<32x1xf32> to vector<32x128xf32>
      %132 = arith.subf %128, %131 : vector<32x128xf32>
      %133 = math.exp %132 : vector<32x128xf32>
      %cst_82 = arith.constant dense<0.000000e+00> : vector<32xf32>
      %134 = vector.multi_reduction <add>, %133, %cst_82 [1] : vector<32x128xf32> to vector<32xf32>
      %135 = vector.shape_cast %134 : vector<32xf32> to vector<32x1xf32>
      %136 = math.log %135 : vector<32x1xf32>
      %137 = arith.addf %130, %136 : vector<32x1xf32>
      %c0_83 = arith.constant 0 : index
      %138 = memref.load %arg2[%c0_83] : memref<2xi32, #tpu.memory_space<smem>>
      %139 = vector.broadcast %138 : i32 to vector<32x128xi32>
      %140 = arith.cmpi eq, %122, %139 : vector<32x128xi32>
      %cst_84 = arith.constant 0.000000e+00 : f32
      %141 = vector.broadcast %cst_84 : f32 to vector<32x128xf32>
      %142 = arith.select %140, %128, %141 : vector<32x128xi1>, vector<32x128xf32>
      %cst_85 = arith.constant dense<0.000000e+00> : vector<32xf32>
      %143 = vector.multi_reduction <add>, %142, %cst_85 [1] : vector<32x128xf32> to vector<32xf32>
      %144 = vector.shape_cast %143 : vector<32xf32> to vector<32x1xf32>
      %145 = arith.subf %137, %144 : vector<32x1xf32>
      %cst_86 = arith.constant dense<0.000000e+00> : vector<1xf32>
      %146 = vector.multi_reduction <add>, %145, %cst_86 [0] : vector<32x1xf32> to vector<1xf32>
      %147 = vector.shape_cast %146 : vector<1xf32> to vector<1x1xf32>
      %148 = arith.addf %123, %147 : vector<1x1xf32>
      %c1_87 = arith.constant 1 : index
      %c0_88 = arith.constant 0 : index
      %c0_89 = arith.constant 0 : index
      %149 = vector.load %arg11[%c1_87, %c0_88, %c0_89] : memref<2x32x128xbf16, #tpu.memory_space<vmem>>, vector<1x32x128xbf16>
      %150 = vector.shape_cast %149 : vector<1x32x128xbf16> to vector<32x128xbf16>
      %cst_90 = arith.constant dense<0.000000e+00> : vector<32x128xf32>
      %151 = tpu.matmul %150, %114, %cst_90 {dimension_numbers = #tpu.dot_dimension_numbers<[1], [0], [0], [1], [0, 0, 1, 1], [], []>} : vector<32x128xbf16>, vector<128x128xbf16>, vector<32x128xf32> -> vector<32x128xf32>
      %152 = vector.broadcast %121 : vector<1x128xf32> to vector<32x128xf32>
      %153 = arith.addf %151, %152 : vector<32x128xf32>
      %cst_91 = arith.constant dense<0xFF800000> : vector<32xf32>
      %154 = vector.multi_reduction <maximumf>, %153, %cst_91 [1] : vector<32x128xf32> to vector<32xf32>
      %155 = vector.shape_cast %154 : vector<32xf32> to vector<32x1xf32>
      %156 = vector.broadcast %155 : vector<32x1xf32> to vector<32x128xf32>
      %157 = arith.subf %153, %156 : vector<32x128xf32>
      %158 = math.exp %157 : vector<32x128xf32>
      %cst_92 = arith.constant dense<0.000000e+00> : vector<32xf32>
      %159 = vector.multi_reduction <add>, %158, %cst_92 [1] : vector<32x128xf32> to vector<32xf32>
      %160 = vector.shape_cast %159 : vector<32xf32> to vector<32x1xf32>
      %161 = math.log %160 : vector<32x1xf32>
      %162 = arith.addf %155, %161 : vector<32x1xf32>
      %c1_93 = arith.constant 1 : index
      %163 = memref.load %arg2[%c1_93] : memref<2xi32, #tpu.memory_space<smem>>
      %164 = vector.broadcast %163 : i32 to vector<32x128xi32>
      %165 = arith.cmpi eq, %122, %164 : vector<32x128xi32>
      %cst_94 = arith.constant 0.000000e+00 : f32
      %166 = vector.broadcast %cst_94 : f32 to vector<32x128xf32>
      %167 = arith.select %165, %153, %166 : vector<32x128xi1>, vector<32x128xf32>
      %cst_95 = arith.constant dense<0.000000e+00> : vector<32xf32>
      %168 = vector.multi_reduction <add>, %167, %cst_95 [1] : vector<32x128xf32> to vector<32xf32>
      %169 = vector.shape_cast %168 : vector<32xf32> to vector<32x1xf32>
      %170 = arith.subf %162, %169 : vector<32x1xf32>
      %cst_96 = arith.constant dense<0.000000e+00> : vector<1xf32>
      %171 = vector.multi_reduction <add>, %170, %cst_96 [0] : vector<32x1xf32> to vector<1xf32>
      %172 = vector.shape_cast %171 : vector<1xf32> to vector<1x1xf32>
      %173 = arith.addf %148, %172 : vector<1x1xf32>
      %cst_97 = arith.constant 1.562500e-02 : f32
      %174 = vector.broadcast %cst_97 : f32 to vector<1x1xf32>
      %175 = arith.mulf %173, %174 : vector<1x1xf32>
      %cst_98 = arith.constant 0.000000e+00 : f32
      %176 = vector.broadcast %cst_98 : f32 to vector<1x128xf32>
      %177 = vector.broadcast %175 : vector<1x1xf32> to vector<1x128xf32>
      %178 = arith.addf %177, %176 : vector<1x128xf32>
      %c0_99 = arith.constant 0 : index
      %c0_100 = arith.constant 0 : index
      %c0_101 = arith.constant 0 : index
      %179 = vector.load %arg10[%c0_99, %c0_100, %c0_101] : memref<1x1x128xf32, #tpu.memory_space<vmem>>, vector<1x1x128xf32>
      %180 = vector.shape_cast %179 : vector<1x1x128xf32> to vector<1x128xf32>
      %181 = vector.shape_cast %178 : vector<1x128xf32> to vector<1x1x128xf32>
      tpu.vector_store %arg10[%c0_99, %c0_100, %c0_101], %181 {strides = array<i32>} : memref<1x1x128xf32, #tpu.memory_space<vmem>>, vector<1x1x128xf32>,
    } else {
    }
    return
  }
  func.func @transform_0(%arg0: i32, %arg1: i32, %arg2: memref<2xi32, #tpu.memory_space<smem>>) -> (i32, i32, i32) {
    %c0_i32 = arith.constant 0 : i32
    %c0_i32_0 = arith.constant 0 : i32
    %c0_i32_1 = arith.constant 0 : i32
    return %arg1, %c0_i32, %c0_i32_0 : i32, i32, i32
  }
  func.func @transform_1(%arg0: i32, %arg1: i32, %arg2: memref<2xi32, #tpu.memory_space<smem>>) -> (i32, i32, i32, i32) {
    %c0_i32 = arith.constant 0 : i32
    %c0_i32_0 = arith.constant 0 : i32
    %c0_i32_1 = arith.constant 0 : i32
    %c0_i32_2 = arith.constant 0 : i32
    return %arg0, %c0_i32, %c0_i32_0, %c0_i32_1 : i32, i32, i32, i32
  }
  func.func @transform_2(%arg0: i32, %arg1: i32, %arg2: memref<2xi32, #tpu.memory_space<smem>>) -> (i32, i32, i32) {
    %c0_i32 = arith.constant 0 : i32
    %c0_i32_0 = arith.constant 0 : i32
    %c0_i32_1 = arith.constant 0 : i32
    return %arg0, %c0_i32, %c0_i32_0 : i32, i32, i32
  }
  func.func @transform_3(%arg0: i32, %arg1: i32, %arg2: memref<2xi32, #tpu.memory_space<smem>>) -> (i32, i32, i32) {
    %c0_i32 = arith.constant 0 : i32
    %c0_i32_0 = arith.constant 0 : i32
    %c0_i32_1 = arith.constant 0 : i32
    return %arg0, %c0_i32, %c0_i32_0 : i32, i32, i32
  }
  func.func @transform_4(%arg0: i32, %arg1: i32, %arg2: memref<2xi32, #tpu.memory_space<smem>>) -> (i32, i32, i32) {
    %c0_i32 = arith.constant 0 : i32
    %c0_i32_0 = arith.constant 0 : i32
    %c0_i32_1 = arith.constant 0 : i32
    return %arg0, %c0_i32, %c0_i32_0 : i32, i32, i32
  }
  func.func @transform_5(%arg0: i32, %arg1: i32, %arg2: memref<2xi32, #tpu.memory_space<smem>>) -> (i32, i32, i32) {
    %c0_i32 = arith.constant 0 : i32
    %c0_i32_0 = arith.constant 0 : i32
    %c0_i32_1 = arith.constant 0 : i32
    return %arg0, %c0_i32, %c0_i32_0 : i32, i32, i32
  }
  func.func @transform_6(%arg0: i32, %arg1: i32, %arg2: memref<2xi32, #tpu.memory_space<smem>>) -> (i32, i32, i32) {
    %c0_i32 = arith.constant 0 : i32
    %c0_i32_0 = arith.constant 0 : i32
    %c0_i32_1 = arith.constant 0 : i32
    return %arg0, %c0_i32, %c0_i32_0 : i32, i32, i32
  }
  func.func @transform_7(%arg0: i32, %arg1: i32, %arg2: memref<2xi32, #tpu.memory_space<smem>>) -> (i32, i32, i32) {
    %c0_i32 = arith.constant 0 : i32
    %c0_i32_0 = arith.constant 0 : i32
    %c0_i32_1 = arith.constant 0 : i32
    return %arg0, %c0_i32, %c0_i32_0 : i32, i32, i32
  }
}

module attributes {stable_mosaic.version = 11 : i64} {
  func.func @_domain_head_loss_kernel(%arg0: i32, %arg1: i32, %arg2: memref<2xi32, #tpu.memory_space<smem>>, %arg3: memref<1x64x256xf32, #tpu.memory_space<vmem>>, %arg4: memref<1x3x768x128xbf16, #tpu.memory_space<vmem>>, %arg5: memref<1x1x128xf32, #tpu.memory_space<vmem>>, %arg6: memref<1x1x128xf32, #tpu.memory_space<vmem>>, %arg7: memref<1x1x128xf32, #tpu.memory_space<vmem>>, %arg8: memref<1x128x128xf32, #tpu.memory_space<vmem>>, %arg9: memref<1x1x128xf32, #tpu.memory_space<vmem>>, %arg10: memref<1x1x128xf32, #tpu.memory_space<vmem>>, %arg11: memref<2x64x128xbf16, #tpu.memory_space<vmem>>, %arg12: memref<80x768xbf16, #tpu.memory_space<vmem>>, %arg13: memref<1x128xf32, #tpu.memory_space<vmem>>, %arg14: memref<1x128xf32, #tpu.memory_space<vmem>>) attributes {dimension_semantics = [#tpu.dimension_semantics<parallel>, #tpu.dimension_semantics<arbitrary>], iteration_bounds = array<i64: 2, 2>, scalar_prefetch = 1 : i64, scratch_operands = 4 : i64, tpu.core_type = #tpu.core_type<tc>, window_params = [{transform_indices = @transform_0, window_bounds = array<i64: 1, 64, 256>}, {transform_indices = @transform_1, window_bounds = array<i64: 1, 3, 768, 128>}, {transform_indices = @transform_2, window_bounds = array<i64: 1, 1, 128>}, {transform_indices = @transform_3, window_bounds = array<i64: 1, 1, 128>}, {transform_indices = @transform_4, window_bounds = array<i64: 1, 1, 128>}, {transform_indices = @transform_5, window_bounds = array<i64: 1, 128, 128>}, {transform_indices = @transform_6, window_bounds = array<i64: 1, 1, 128>}, {transform_indices = @transform_7, window_bounds = array<i64: 1, 1, 128>}]} {
    %c0_i32 = arith.constant 0 : i32
    %0 = arith.cmpi eq, %arg1, %c0_i32 : i32
    %1 = arith.extui %0 : i1 to i32
    %c0_i32_0 = arith.constant 0 : i32
    %2 = arith.cmpi ne, %1, %c0_i32_0 : i32
    scf.if %2 {
      %cst_53 = arith.constant 0.000000e+00 : f32
      %84 = vector.broadcast %cst_53 : f32 to vector<1x128xf32>
      %c0_54 = arith.constant 0 : index
      %c0_55 = arith.constant 0 : index
      %85 = vector.load %arg13[%c0_54, %c0_55] : memref<1x128xf32, #tpu.memory_space<vmem>>, vector<1x128xf32>
      tpu.vector_store %arg13[%c0_54, %c0_55], %84 {strides = array<i32>} : memref<1x128xf32, #tpu.memory_space<vmem>>, vector<1x128xf32>,
      %cst_56 = arith.constant 0.000000e+00 : f32
      %86 = vector.broadcast %cst_56 : f32 to vector<1x128xf32>
      %c0_57 = arith.constant 0 : index
      %c0_58 = arith.constant 0 : index
      %87 = vector.load %arg14[%c0_57, %c0_58] : memref<1x128xf32, #tpu.memory_space<vmem>>, vector<1x128xf32>
      tpu.vector_store %arg14[%c0_57, %c0_58], %86 {strides = array<i32>} : memref<1x128xf32, #tpu.memory_space<vmem>>, vector<1x128xf32>,
    } else {
    }
    %3 = tpu.iota {dimensions = array<i32: 0>} : vector<64x1xi32>
    %c8_i32 = arith.constant 8 : i32
    %c0_i32_1 = arith.constant 0 : i32
    %4 = arith.cmpi eq, %c8_i32, %c0_i32_1 : i32
    %c1_i32 = arith.constant 1 : i32
    %5 = arith.select %4, %c1_i32, %c8_i32 : i32
    %6 = vector.broadcast %5 : i32 to vector<64x1xi32>
    %7 = arith.remsi %3, %6 : vector<64x1xi32>
    %c0_i32_2 = arith.constant 0 : i32
    %8 = vector.broadcast %c0_i32_2 : i32 to vector<64x1xi32>
    %9 = arith.cmpi ne, %7, %8 : vector<64x1xi32>
    %c0_i32_3 = arith.constant 0 : i32
    %10 = vector.broadcast %c0_i32_3 : i32 to vector<64x1xi32>
    %11 = arith.cmpi slt, %7, %10 : vector<64x1xi32>
    %c0_i32_4 = arith.constant 0 : i32
    %12 = arith.cmpi slt, %5, %c0_i32_4 : i32
    %13 = vector.broadcast %12 : i1 to vector<64x1xi1>
    %14 = vector.broadcast %13 : vector<64x1xi1> to vector<64x1xi1>
    %15 = arith.xori %11, %14 : vector<64x1xi1>
    %16 = arith.andi %15, %9 : vector<64x1xi1>
    %17 = vector.broadcast %5 : i32 to vector<64x1xi32>
    %18 = arith.addi %7, %17 : vector<64x1xi32>
    %19 = arith.select %16, %18, %7 : vector<64x1xi1>, vector<64x1xi32>
    %c1_i32_5 = arith.constant 1 : i32
    %20 = vector.broadcast %c1_i32_5 : i32 to vector<64x1xi32>
    %21 = arith.cmpi sge, %19, %20 : vector<64x1xi32>
    %c7_i32 = arith.constant 7 : i32
    %22 = vector.broadcast %c7_i32 : i32 to vector<64x1xi32>
    %23 = arith.cmpi slt, %19, %22 : vector<64x1xi32>
    %c0 = arith.constant 0 : index
    %c0_6 = arith.constant 0 : index
    %c0_7 = arith.constant 0 : index
    %c0_8 = arith.constant 0 : index
    %24 = vector.load %arg4[%c0, %c0_6, %c0_7, %c0_8] : memref<1x3x768x128xbf16, #tpu.memory_space<vmem>>, vector<1x1x768x128xbf16>
    %25 = vector.shape_cast %24 : vector<1x1x768x128xbf16> to vector<768x128xbf16>
    %c0_9 = arith.constant 0 : index
    %c1 = arith.constant 1 : index
    %c0_10 = arith.constant 0 : index
    %c0_11 = arith.constant 0 : index
    %26 = vector.load %arg4[%c0_9, %c1, %c0_10, %c0_11] : memref<1x3x768x128xbf16, #tpu.memory_space<vmem>>, vector<1x1x768x128xbf16>
    %27 = vector.shape_cast %26 : vector<1x1x768x128xbf16> to vector<768x128xbf16>
    %c0_12 = arith.constant 0 : index
    %c2 = arith.constant 2 : index
    %c0_13 = arith.constant 0 : index
    %c0_14 = arith.constant 0 : index
    %28 = vector.load %arg4[%c0_12, %c2, %c0_13, %c0_14] : memref<1x3x768x128xbf16, #tpu.memory_space<vmem>>, vector<1x1x768x128xbf16>
    %29 = vector.shape_cast %28 : vector<1x1x768x128xbf16> to vector<768x128xbf16>
    %c0_15 = arith.constant 0 : index
    %c0_16 = arith.constant 0 : index
    %c0_17 = arith.constant 0 : index
    %30 = vector.load %arg3[%c0_15, %c0_16, %c0_17] : memref<1x64x256xf32, #tpu.memory_space<vmem>>, vector<1x64x256xf32>
    %31 = vector.shape_cast %30 : vector<1x64x256xf32> to vector<64x256xf32>
    %c1_i32_18 = arith.constant 1 : i32
    %32 = tpu.dynamic_rotate %31 by %c1_i32_18 dim 0 : vector<64x256xf32>, i32 -> vector<64x256xf32>
    %cst = arith.constant 0.000000e+00 : f32
    %33 = vector.shape_cast %21 : vector<64x1xi1> to vector<64x1xi1>
    %34 = vector.broadcast %33 : vector<64x1xi1> to vector<64x256xi1>
    %35 = vector.broadcast %cst : f32 to vector<64x256xf32>
    %36 = arith.select %34, %32, %35 : vector<64x256xi1>, vector<64x256xf32>
    %c63_i32 = arith.constant 63 : i32
    %37 = tpu.dynamic_rotate %31 by %c63_i32 dim 0 : vector<64x256xf32>, i32 -> vector<64x256xf32>
    %cst_19 = arith.constant 0.000000e+00 : f32
    %38 = vector.shape_cast %23 : vector<64x1xi1> to vector<64x1xi1>
    %39 = vector.broadcast %38 : vector<64x1xi1> to vector<64x256xi1>
    %40 = vector.broadcast %cst_19 : f32 to vector<64x256xf32>
    %41 = arith.select %39, %37, %40 : vector<64x256xi1>, vector<64x256xf32>
    %cst_20 = arith.constant 0.000000e+00 : bf16
    %42 = vector.broadcast %cst_20 : bf16 to vector<8x768xbf16>
    %c0_21 = arith.constant 0 : index
    %c0_22 = arith.constant 0 : index
    %43 = vector.load %arg12[%c0_21, %c0_22] : memref<80x768xbf16, #tpu.memory_space<vmem>>, vector<8x768xbf16>
    tpu.vector_store %arg12[%c0_21, %c0_22], %42 {strides = array<i32>} : memref<80x768xbf16, #tpu.memory_space<vmem>>, vector<8x768xbf16>,
    %c72 = arith.constant 72 : index
    %c0_23 = arith.constant 0 : index
    %44 = vector.load %arg12[%c72, %c0_23] : memref<80x768xbf16, #tpu.memory_space<vmem>>, vector<8x768xbf16>
    tpu.vector_store %arg12[%c72, %c0_23], %42 {strides = array<i32>} : memref<80x768xbf16, #tpu.memory_space<vmem>>, vector<8x768xbf16>,
    %45 = arith.truncf %36 : vector<64x256xf32> to vector<64x256xbf16>
    %c8 = arith.constant 8 : index
    %c0_24 = arith.constant 0 : index
    %46 = vector.load %arg12[%c8, %c0_24] : memref<80x768xbf16, #tpu.memory_space<vmem>>, vector<64x256xbf16>
    tpu.vector_store %arg12[%c8, %c0_24], %45 {strides = array<i32>} : memref<80x768xbf16, #tpu.memory_space<vmem>>, vector<64x256xbf16>,
    %47 = arith.truncf %31 : vector<64x256xf32> to vector<64x256xbf16>
    %c8_25 = arith.constant 8 : index
    %c256 = arith.constant 256 : index
    %48 = vector.load %arg12[%c8_25, %c256] : memref<80x768xbf16, #tpu.memory_space<vmem>>, vector<64x256xbf16>
    tpu.vector_store %arg12[%c8_25, %c256], %47 {strides = array<i32>} : memref<80x768xbf16, #tpu.memory_space<vmem>>, vector<64x256xbf16>,
    %49 = arith.truncf %41 : vector<64x256xf32> to vector<64x256xbf16>
    %c8_26 = arith.constant 8 : index
    %c512 = arith.constant 512 : index
    %50 = vector.load %arg12[%c8_26, %c512] : memref<80x768xbf16, #tpu.memory_space<vmem>>, vector<64x256xbf16>
    tpu.vector_store %arg12[%c8_26, %c512], %49 {strides = array<i32>} : memref<80x768xbf16, #tpu.memory_space<vmem>>, vector<64x256xbf16>,
    %c0_27 = arith.constant 0 : index
    %c0_28 = arith.constant 0 : index
    %51 = vector.load %arg12[%c0_27, %c0_28] : memref<80x768xbf16, #tpu.memory_space<vmem>>, vector<64x768xbf16>
    %cst_29 = arith.constant dense<0.000000e+00> : vector<64x128xf32>
    %52 = tpu.matmul %51, %25, %cst_29 {dimension_numbers = #tpu.dot_dimension_numbers<[1], [0], [0], [1], [0, 0, 1, 1], [], []>} : vector<64x768xbf16>, vector<768x128xbf16>, vector<64x128xf32> -> vector<64x128xf32>
    %c8_30 = arith.constant 8 : index
    %c0_31 = arith.constant 0 : index
    %53 = vector.load %arg12[%c8_30, %c0_31] : memref<80x768xbf16, #tpu.memory_space<vmem>>, vector<64x768xbf16>
    %cst_32 = arith.constant dense<0.000000e+00> : vector<64x128xf32>
    %54 = tpu.matmul %53, %27, %cst_32 {dimension_numbers = #tpu.dot_dimension_numbers<[1], [0], [0], [1], [0, 0, 1, 1], [], []>} : vector<64x768xbf16>, vector<768x128xbf16>, vector<64x128xf32> -> vector<64x128xf32>
    %55 = arith.addf %52, %54 : vector<64x128xf32>
    %c16 = arith.constant 16 : index
    %c0_33 = arith.constant 0 : index
    %56 = vector.load %arg12[%c16, %c0_33] : memref<80x768xbf16, #tpu.memory_space<vmem>>, vector<64x768xbf16>
    %cst_34 = arith.constant dense<0.000000e+00> : vector<64x128xf32>
    %57 = tpu.matmul %56, %29, %cst_34 {dimension_numbers = #tpu.dot_dimension_numbers<[1], [0], [0], [1], [0, 0, 1, 1], [], []>} : vector<64x768xbf16>, vector<768x128xbf16>, vector<64x128xf32> -> vector<64x128xf32>
    %58 = arith.addf %55, %57 : vector<64x128xf32>
    %c0_35 = arith.constant 0 : index
    %c0_36 = arith.constant 0 : index
    %c0_37 = arith.constant 0 : index
    %59 = vector.load %arg5[%c0_35, %c0_36, %c0_37] : memref<1x1x128xf32, #tpu.memory_space<vmem>>, vector<1x1x128xf32>
    %60 = vector.shape_cast %59 : vector<1x1x128xf32> to vector<1x128xf32>
    %61 = vector.broadcast %60 : vector<1x128xf32> to vector<64x128xf32>
    %62 = arith.addf %58, %61 : vector<64x128xf32>
    %cst_38 = arith.constant 0.000000e+00 : f32
    %63 = vector.broadcast %cst_38 : f32 to vector<64x128xf32>
    %64 = arith.maximumf %62, %63 : vector<64x128xf32>
    %c0_39 = arith.constant 0 : index
    %c0_40 = arith.constant 0 : index
    %65 = vector.load %arg13[%c0_39, %c0_40] : memref<1x128xf32, #tpu.memory_space<vmem>>, vector<1x128xf32>
    %cst_41 = arith.constant dense<0.000000e+00> : vector<128xf32>
    %66 = vector.multi_reduction <add>, %64, %cst_41 [0] : vector<64x128xf32> to vector<128xf32>
    %67 = vector.shape_cast %66 : vector<128xf32> to vector<1x128xf32>
    %68 = arith.addf %65, %67 : vector<1x128xf32>
    %c0_42 = arith.constant 0 : index
    %c0_43 = arith.constant 0 : index
    %69 = vector.load %arg13[%c0_42, %c0_43] : memref<1x128xf32, #tpu.memory_space<vmem>>, vector<1x128xf32>
    tpu.vector_store %arg13[%c0_42, %c0_43], %68 {strides = array<i32>} : memref<1x128xf32, #tpu.memory_space<vmem>>, vector<1x128xf32>,
    %c0_44 = arith.constant 0 : index
    %c0_45 = arith.constant 0 : index
    %70 = vector.load %arg14[%c0_44, %c0_45] : memref<1x128xf32, #tpu.memory_space<vmem>>, vector<1x128xf32>
    %71 = arith.mulf %64, %64 : vector<64x128xf32>
    %cst_46 = arith.constant dense<0.000000e+00> : vector<128xf32>
    %72 = vector.multi_reduction <add>, %71, %cst_46 [0] : vector<64x128xf32> to vector<128xf32>
    %73 = vector.shape_cast %72 : vector<128xf32> to vector<1x128xf32>
    %74 = arith.addf %70, %73 : vector<1x128xf32>
    %c0_47 = arith.constant 0 : index
    %c0_48 = arith.constant 0 : index
    %75 = vector.load %arg14[%c0_47, %c0_48] : memref<1x128xf32, #tpu.memory_space<vmem>>, vector<1x128xf32>
    tpu.vector_store %arg14[%c0_47, %c0_48], %74 {strides = array<i32>} : memref<1x128xf32, #tpu.memory_space<vmem>>, vector<1x128xf32>,
    %76 = arith.truncf %64 : vector<64x128xf32> to vector<64x128xbf16>
    %77 = arith.index_cast %arg1 : i32 to index
    %c0_49 = arith.constant 0 : index
    %c0_50 = arith.constant 0 : index
    %78 = vector.load %arg11[%77, %c0_49, %c0_50] : memref<2x64x128xbf16, #tpu.memory_space<vmem>>, vector<1x64x128xbf16>
    %79 = vector.shape_cast %78 : vector<1x64x128xbf16> to vector<64x128xbf16>
    %80 = vector.shape_cast %76 : vector<64x128xbf16> to vector<1x64x128xbf16>
    tpu.vector_store %arg11[%77, %c0_49, %c0_50], %80 {strides = array<i32>} : memref<2x64x128xbf16, #tpu.memory_space<vmem>>, vector<1x64x128xbf16>,
    %c1_i32_51 = arith.constant 1 : i32
    %81 = arith.cmpi eq, %arg1, %c1_i32_51 : i32
    %82 = arith.extui %81 : i1 to i32
    %c0_i32_52 = arith.constant 0 : i32
    %83 = arith.cmpi ne, %82, %c0_i32_52 : i32
    scf.if %83 {
      %c0_53 = arith.constant 0 : index
      %c0_54 = arith.constant 0 : index
      %84 = vector.load %arg13[%c0_53, %c0_54] : memref<1x128xf32, #tpu.memory_space<vmem>>, vector<1x128xf32>
      %cst_55 = arith.constant 7.812500e-03 : f32
      %85 = vector.broadcast %cst_55 : f32 to vector<1x128xf32>
      %86 = arith.mulf %84, %85 : vector<1x128xf32>
      %c0_56 = arith.constant 0 : index
      %c0_57 = arith.constant 0 : index
      %87 = vector.load %arg14[%c0_56, %c0_57] : memref<1x128xf32, #tpu.memory_space<vmem>>, vector<1x128xf32>
      %cst_58 = arith.constant 7.812500e-03 : f32
      %88 = vector.broadcast %cst_58 : f32 to vector<1x128xf32>
      %89 = arith.mulf %87, %88 : vector<1x128xf32>
      %90 = arith.mulf %86, %86 : vector<1x128xf32>
      %91 = arith.subf %89, %90 : vector<1x128xf32>
      %cst_59 = arith.constant 0.000000e+00 : f32
      %92 = vector.broadcast %cst_59 : f32 to vector<1x128xf32>
      %93 = arith.maximumf %91, %92 : vector<1x128xf32>
      %c0_60 = arith.constant 0 : index
      %c0_61 = arith.constant 0 : index
      %c0_62 = arith.constant 0 : index
      %94 = vector.load %arg6[%c0_60, %c0_61, %c0_62] : memref<1x1x128xf32, #tpu.memory_space<vmem>>, vector<1x1x128xf32>
      %95 = vector.shape_cast %94 : vector<1x1x128xf32> to vector<1x128xf32>
      %cst_63 = arith.constant 9.99999974E-6 : f32
      %96 = vector.broadcast %cst_63 : f32 to vector<1x128xf32>
      %97 = arith.addf %93, %96 : vector<1x128xf32>
      %98 = math.rsqrt %97 : vector<1x128xf32>
      %99 = arith.mulf %95, %98 : vector<1x128xf32>
      %c0_64 = arith.constant 0 : index
      %c0_65 = arith.constant 0 : index
      %c0_66 = arith.constant 0 : index
      %100 = vector.load %arg7[%c0_64, %c0_65, %c0_66] : memref<1x1x128xf32, #tpu.memory_space<vmem>>, vector<1x1x128xf32>
      %101 = vector.shape_cast %100 : vector<1x1x128xf32> to vector<1x128xf32>
      %102 = arith.mulf %86, %99 : vector<1x128xf32>
      %103 = arith.subf %101, %102 : vector<1x128xf32>
      %c0_67 = arith.constant 0 : index
      %c0_68 = arith.constant 0 : index
      %c0_69 = arith.constant 0 : index
      %104 = vector.load %arg8[%c0_67, %c0_68, %c0_69] : memref<1x128x128xf32, #tpu.memory_space<vmem>>, vector<1x128x128xf32>
      %105 = vector.shape_cast %104 : vector<1x128x128xf32> to vector<128x128xf32>
      %106 = tpu.iota {dimensions = array<i32: 0>} : vector<128x128xi32>
      %107 = tpu.iota {dimensions = array<i32: 1>} : vector<128x128xi32>
      %108 = arith.cmpi eq, %106, %107 : vector<128x128xi32>
      %cst_70 = arith.constant 0.000000e+00 : f32
      %109 = vector.shape_cast %99 : vector<1x128xf32> to vector<1x128xf32>
      %110 = vector.broadcast %109 : vector<1x128xf32> to vector<128x128xf32>
      %111 = vector.broadcast %cst_70 : f32 to vector<128x128xf32>
      %112 = arith.select %108, %110, %111 : vector<128x128xi1>, vector<128x128xf32>
      %cst_71 = arith.constant dense<0.000000e+00> : vector<128x128xf32>
      %113 = tpu.matmul %112, %105, %cst_71 {dimension_numbers = #tpu.dot_dimension_numbers<[1], [0], [0], [1], [0, 0, 1, 1], [], []>} : vector<128x128xf32>, vector<128x128xf32>, vector<128x128xf32> -> vector<128x128xf32>
      %114 = arith.truncf %113 : vector<128x128xf32> to vector<128x128xbf16>
      %115 = vector.shape_cast %103 : vector<1x128xf32> to vector<1x128xf32>
      %116 = vector.broadcast %115 : vector<1x128xf32> to vector<8x128xf32>
      %cst_72 = arith.constant dense<0.000000e+00> : vector<8x128xf32>
      %117 = tpu.matmul %116, %105, %cst_72 {dimension_numbers = #tpu.dot_dimension_numbers<[1], [0], [0], [1], [0, 0, 1, 1], [], []>} : vector<8x128xf32>, vector<128x128xf32>, vector<8x128xf32> -> vector<8x128xf32>
      %118 = vector.extract_strided_slice %117 {offsets = [0, 0], sizes = [1, 128], strides = [1, 1]} : vector<8x128xf32> to vector<1x128xf32>
      %c0_73 = arith.constant 0 : index
      %c0_74 = arith.constant 0 : index
      %c0_75 = arith.constant 0 : index
      %119 = vector.load %arg9[%c0_73, %c0_74, %c0_75] : memref<1x1x128xf32, #tpu.memory_space<vmem>>, vector<1x1x128xf32>
      %120 = vector.shape_cast %119 : vector<1x1x128xf32> to vector<1x128xf32>
      %121 = arith.addf %118, %120 : vector<1x128xf32>
      %122 = tpu.iota {dimensions = array<i32: 1>} : vector<64x128xi32>
      %cst_76 = arith.constant 0.000000e+00 : f32
      %123 = vector.broadcast %cst_76 : f32 to vector<1x1xf32>
      %c0_77 = arith.constant 0 : index
      %c0_78 = arith.constant 0 : index
      %c0_79 = arith.constant 0 : index
      %124 = vector.load %arg11[%c0_77, %c0_78, %c0_79] : memref<2x64x128xbf16, #tpu.memory_space<vmem>>, vector<1x64x128xbf16>
      %125 = vector.shape_cast %124 : vector<1x64x128xbf16> to vector<64x128xbf16>
      %cst_80 = arith.constant dense<0.000000e+00> : vector<64x128xf32>
      %126 = tpu.matmul %125, %114, %cst_80 {dimension_numbers = #tpu.dot_dimension_numbers<[1], [0], [0], [1], [0, 0, 1, 1], [], []>} : vector<64x128xbf16>, vector<128x128xbf16>, vector<64x128xf32> -> vector<64x128xf32>
      %127 = vector.broadcast %121 : vector<1x128xf32> to vector<64x128xf32>
      %128 = arith.addf %126, %127 : vector<64x128xf32>
      %cst_81 = arith.constant dense<0xFF800000> : vector<64xf32>
      %129 = vector.multi_reduction <maximumf>, %128, %cst_81 [1] : vector<64x128xf32> to vector<64xf32>
      %130 = vector.shape_cast %129 : vector<64xf32> to vector<64x1xf32>
      %131 = vector.broadcast %130 : vector<64x1xf32> to vector<64x128xf32>
      %132 = arith.subf %128, %131 : vector<64x128xf32>
      %133 = math.exp %132 : vector<64x128xf32>
      %cst_82 = arith.constant dense<0.000000e+00> : vector<64xf32>
      %134 = vector.multi_reduction <add>, %133, %cst_82 [1] : vector<64x128xf32> to vector<64xf32>
      %135 = vector.shape_cast %134 : vector<64xf32> to vector<64x1xf32>
      %136 = math.log %135 : vector<64x1xf32>
      %137 = arith.addf %130, %136 : vector<64x1xf32>
      %c0_83 = arith.constant 0 : index
      %138 = memref.load %arg2[%c0_83] : memref<2xi32, #tpu.memory_space<smem>>
      %139 = vector.broadcast %138 : i32 to vector<64x128xi32>
      %140 = arith.cmpi eq, %122, %139 : vector<64x128xi32>
      %cst_84 = arith.constant 0.000000e+00 : f32
      %141 = vector.broadcast %cst_84 : f32 to vector<64x128xf32>
      %142 = arith.select %140, %128, %141 : vector<64x128xi1>, vector<64x128xf32>
      %cst_85 = arith.constant dense<0.000000e+00> : vector<64xf32>
      %143 = vector.multi_reduction <add>, %142, %cst_85 [1] : vector<64x128xf32> to vector<64xf32>
      %144 = vector.shape_cast %143 : vector<64xf32> to vector<64x1xf32>
      %145 = arith.subf %137, %144 : vector<64x1xf32>
      %cst_86 = arith.constant dense<0.000000e+00> : vector<1xf32>
      %146 = vector.multi_reduction <add>, %145, %cst_86 [0] : vector<64x1xf32> to vector<1xf32>
      %147 = vector.shape_cast %146 : vector<1xf32> to vector<1x1xf32>
      %148 = arith.addf %123, %147 : vector<1x1xf32>
      %c1_87 = arith.constant 1 : index
      %c0_88 = arith.constant 0 : index
      %c0_89 = arith.constant 0 : index
      %149 = vector.load %arg11[%c1_87, %c0_88, %c0_89] : memref<2x64x128xbf16, #tpu.memory_space<vmem>>, vector<1x64x128xbf16>
      %150 = vector.shape_cast %149 : vector<1x64x128xbf16> to vector<64x128xbf16>
      %cst_90 = arith.constant dense<0.000000e+00> : vector<64x128xf32>
      %151 = tpu.matmul %150, %114, %cst_90 {dimension_numbers = #tpu.dot_dimension_numbers<[1], [0], [0], [1], [0, 0, 1, 1], [], []>} : vector<64x128xbf16>, vector<128x128xbf16>, vector<64x128xf32> -> vector<64x128xf32>
      %152 = vector.broadcast %121 : vector<1x128xf32> to vector<64x128xf32>
      %153 = arith.addf %151, %152 : vector<64x128xf32>
      %cst_91 = arith.constant dense<0xFF800000> : vector<64xf32>
      %154 = vector.multi_reduction <maximumf>, %153, %cst_91 [1] : vector<64x128xf32> to vector<64xf32>
      %155 = vector.shape_cast %154 : vector<64xf32> to vector<64x1xf32>
      %156 = vector.broadcast %155 : vector<64x1xf32> to vector<64x128xf32>
      %157 = arith.subf %153, %156 : vector<64x128xf32>
      %158 = math.exp %157 : vector<64x128xf32>
      %cst_92 = arith.constant dense<0.000000e+00> : vector<64xf32>
      %159 = vector.multi_reduction <add>, %158, %cst_92 [1] : vector<64x128xf32> to vector<64xf32>
      %160 = vector.shape_cast %159 : vector<64xf32> to vector<64x1xf32>
      %161 = math.log %160 : vector<64x1xf32>
      %162 = arith.addf %155, %161 : vector<64x1xf32>
      %c1_93 = arith.constant 1 : index
      %163 = memref.load %arg2[%c1_93] : memref<2xi32, #tpu.memory_space<smem>>
      %164 = vector.broadcast %163 : i32 to vector<64x128xi32>
      %165 = arith.cmpi eq, %122, %164 : vector<64x128xi32>
      %cst_94 = arith.constant 0.000000e+00 : f32
      %166 = vector.broadcast %cst_94 : f32 to vector<64x128xf32>
      %167 = arith.select %165, %153, %166 : vector<64x128xi1>, vector<64x128xf32>
      %cst_95 = arith.constant dense<0.000000e+00> : vector<64xf32>
      %168 = vector.multi_reduction <add>, %167, %cst_95 [1] : vector<64x128xf32> to vector<64xf32>
      %169 = vector.shape_cast %168 : vector<64xf32> to vector<64x1xf32>
      %170 = arith.subf %162, %169 : vector<64x1xf32>
      %cst_96 = arith.constant dense<0.000000e+00> : vector<1xf32>
      %171 = vector.multi_reduction <add>, %170, %cst_96 [0] : vector<64x1xf32> to vector<1xf32>
      %172 = vector.shape_cast %171 : vector<1xf32> to vector<1x1xf32>
      %173 = arith.addf %148, %172 : vector<1x1xf32>
      %cst_97 = arith.constant 7.812500e-03 : f32
      %174 = vector.broadcast %cst_97 : f32 to vector<1x1xf32>
      %175 = arith.mulf %173, %174 : vector<1x1xf32>
      %cst_98 = arith.constant 0.000000e+00 : f32
      %176 = vector.broadcast %cst_98 : f32 to vector<1x128xf32>
      %177 = vector.broadcast %175 : vector<1x1xf32> to vector<1x128xf32>
      %178 = arith.addf %177, %176 : vector<1x128xf32>
      %c0_99 = arith.constant 0 : index
      %c0_100 = arith.constant 0 : index
      %c0_101 = arith.constant 0 : index
      %179 = vector.load %arg10[%c0_99, %c0_100, %c0_101] : memref<1x1x128xf32, #tpu.memory_space<vmem>>, vector<1x1x128xf32>
      %180 = vector.shape_cast %179 : vector<1x1x128xf32> to vector<1x128xf32>
      %181 = vector.shape_cast %178 : vector<1x128xf32> to vector<1x1x128xf32>
      tpu.vector_store %arg10[%c0_99, %c0_100, %c0_101], %181 {strides = array<i32>} : memref<1x1x128xf32, #tpu.memory_space<vmem>>, vector<1x1x128xf32>,
    } else {
    }
    return
  }
  func.func @transform_0(%arg0: i32, %arg1: i32, %arg2: memref<2xi32, #tpu.memory_space<smem>>) -> (i32, i32, i32) {
    %c0_i32 = arith.constant 0 : i32
    %c0_i32_0 = arith.constant 0 : i32
    %c0_i32_1 = arith.constant 0 : i32
    return %arg1, %c0_i32, %c0_i32_0 : i32, i32, i32
  }
  func.func @transform_1(%arg0: i32, %arg1: i32, %arg2: memref<2xi32, #tpu.memory_space<smem>>) -> (i32, i32, i32, i32) {
    %c0_i32 = arith.constant 0 : i32
    %c0_i32_0 = arith.constant 0 : i32
    %c0_i32_1 = arith.constant 0 : i32
    %c0_i32_2 = arith.constant 0 : i32
    return %arg0, %c0_i32, %c0_i32_0, %c0_i32_1 : i32, i32, i32, i32
  }
  func.func @transform_2(%arg0: i32, %arg1: i32, %arg2: memref<2xi32, #tpu.memory_space<smem>>) -> (i32, i32, i32) {
    %c0_i32 = arith.constant 0 : i32
    %c0_i32_0 = arith.constant 0 : i32
    %c0_i32_1 = arith.constant 0 : i32
    return %arg0, %c0_i32, %c0_i32_0 : i32, i32, i32
  }
  func.func @transform_3(%arg0: i32, %arg1: i32, %arg2: memref<2xi32, #tpu.memory_space<smem>>) -> (i32, i32, i32) {
    %c0_i32 = arith.constant 0 : i32
    %c0_i32_0 = arith.constant 0 : i32
    %c0_i32_1 = arith.constant 0 : i32
    return %arg0, %c0_i32, %c0_i32_0 : i32, i32, i32
  }
  func.func @transform_4(%arg0: i32, %arg1: i32, %arg2: memref<2xi32, #tpu.memory_space<smem>>) -> (i32, i32, i32) {
    %c0_i32 = arith.constant 0 : i32
    %c0_i32_0 = arith.constant 0 : i32
    %c0_i32_1 = arith.constant 0 : i32
    return %arg0, %c0_i32, %c0_i32_0 : i32, i32, i32
  }
  func.func @transform_5(%arg0: i32, %arg1: i32, %arg2: memref<2xi32, #tpu.memory_space<smem>>) -> (i32, i32, i32) {
    %c0_i32 = arith.constant 0 : i32
    %c0_i32_0 = arith.constant 0 : i32
    %c0_i32_1 = arith.constant 0 : i32
    return %arg0, %c0_i32, %c0_i32_0 : i32, i32, i32
  }
  func.func @transform_6(%arg0: i32, %arg1: i32, %arg2: memref<2xi32, #tpu.memory_space<smem>>) -> (i32, i32, i32) {
    %c0_i32 = arith.constant 0 : i32
    %c0_i32_0 = arith.constant 0 : i32
    %c0_i32_1 = arith.constant 0 : i32
    return %arg0, %c0_i32, %c0_i32_0 : i32, i32, i32
  }
  func.func @transform_7(%arg0: i32, %arg1: i32, %arg2: memref<2xi32, #tpu.memory_space<smem>>) -> (i32, i32, i32) {
    %c0_i32 = arith.constant 0 : i32
    %c0_i32_0 = arith.constant 0 : i32
    %c0_i32_1 = arith.constant 0 : i32
    return %arg0, %c0_i32, %c0_i32_0 : i32, i32, i32
  }
}

</mosaic_0001>

<bundles_post_ra>
// kernel: _forward.7
= control target key start
LH: loop header
LB: loop body
LE: loop exit
PB: predicated region body
PF: predicated region fallthrough
CT: control target
= control target key end

     0   :  { %s5393_s0 = inlined_call_operand.vmem [shape: s32[2], index: 0, kind: input, shape index: {}]   ;;  %s5394_s1 = inlined_call_operand.vmem [shape: f32[2,32,256], index: 1, kind: input, shape index: {}]   ;;  %s5395_s2 = inlined_call_operand.vmem [shape: bf16[2,3,768,128], index: 2, kind: input, shape index: {}]   ;;  %s5396_s3 = inlined_call_operand.vmem [shape: f32[2,1,128], index: 3, kind: input, shape index: {}, may-alias: {3,5}]   ;;  %s5397_s4 = inlined_call_operand.vmem [shape: f32[2,1,128], index: 4, kind: input, shape index: {}]   ;;  %s5398_s5 = inlined_call_operand.vmem [shape: f32[2,1,128], index: 5, kind: input, shape index: {}, may-alias: {3,5}]   ;;  %s5399_s6 = inlined_call_operand.vmem [shape: f32[2,128,128], index: 6, kind: input, shape index: {}]   ;;  %s5400_s7 = inlined_call_operand.vmem [shape: f32[2,1,128], index: 7, kind: input, shape index: {}]   ;;  %s5401_s8 = inlined_call_operand.vmem [shape: f32[2,1,128], index: 8, kind: output, shape index: {}]  }
   0x1   :  { %5408 = sst [smem:[#allocation20_spill]] %s5394_s1  ;;  %s13_s29 = sshll.u32 %s5393_s0, 4  ;;  %s14_s29 = int_to_ptr.vmem [resolvable:$true] %s13_s29 }
   0x2   :  { %s4398_s30 = scalar_lea.vmem %s14_s29, 16  ;;  %p4403_p1 = scmp.lt.s32.totalorder %s14_s29, %s14_s29 }
   0x3   :  { %p4399_p0 = scmp.ne.s32.totalorder %s14_s29, %s4398_s30  ;;  %p4404_p2 = scmp.lt.s32.totalorder %s4398_s30, %s4398_s30 }
   0x5   :  { %p4405_p3 = por %p4404_p2, %p4403_p1 }
   0x7   :  { %p4406_p4 = pnand %p4405_p3, %p4399_p0 }
   0x9   :  { %4409 = shalt.err (!%p4406_p4)  }
   0xa   :  { %s4452_s9 = smov [#allocation7]  }
   0xb   :  { %16 = dma.vmem_to_smem %s14_s29, 16, %s4452_s9, [#allocation6] }
   0xc   :  { %4430 = dma.done.wait [#allocation6], 16 }
   0xd   :  { %4431 = vsyncadd [#allocation6], 4294967280 }
   0xe   :  { %18 = sfence }
   0xf   :  { %s4505_s10 = smov 0   ;;  %s4507_s11 = smov 0  }
  0x10   :  { %s4509_s12 = smov 0   ;;  %s4511_s0 = smov 0  }
  0x11   :  { %s4513_s13 = smov 0  }
  0x12 LB: > { %s33_s14 = sadd.s32 1, %s4442_s12  ;;  %s36_s15 = sadd.s32 1, %s4446_s0  ;;  %s4450_s13 = sphi %s4513_s13, %s24_s13   ;;  %s4446_s0 = sphi %s4511_s0, %s5459_s0   ;;  %s4442_s12 = sphi %s4509_s12, %s5458_s12   ;;  %s4438_s11 = sphi %s4507_s11, %s5457_s11   ;;  %s4434_s10 = sphi %s4505_s10, %s5456_s10  }
  0x13   : > { %p34_p5 = scmp.ge.s32.totalorder %s33_s14, 2  ;;  %p3184_p6 = scmp.ge.s32.totalorder %s4450_s13, 1 }
  0x14   : > { %p308_p7 = scmp.lt.s32.totalorder %s4450_s13, 5 }
  0x15   : > { %s5461_s14 = smov (%p34_p5, %s33_s14), 0  ;;  %s5463_s15 = smov (!%p34_p5, %s36_s15), %s4446_s0 }
  0x16   : > { %p309_p8 = pnand %p3184_p6, %p308_p7  ;;  %p38_p9 = scmp.ge.s32.totalorder %s5463_s15, 2 }
  0x18   : > { %s5465_s15 = smov (%p38_p9, %s5463_s15), 0  ;;  %312 = sbr.rel (%p309_p8) target bundleno = 1275 (0x4fb), region = 48 }
  0x19   : > { %5409 = sst [smem:[#allocation9_spill]] %s5465_s15 }
  0x1d   : > { %p360_p10 = scmp.lt.s32.totalorder %s4434_s10, 1  ;;  %p365_p11 = scmp.lt.s32.totalorder %s4438_s11, 1 }
  0x1e   : > { %s5410_s1 = sld [smem:[#allocation20_spill]]  ;;  %p3190_p12 = scmp.ne.s32.totalorder %s4434_s10, 0 }
  0x1f   : > { %s361_s16 = scalar_select %p360_p10, %s4434_s10, 1 }
  0x20   : > { %s5467_s11 = smov (!%p365_p11, %s4438_s11), 1 }
  0x21   : > { %s3606_s17 = sshll.u32 %s361_s16, 6  ;;  %s4170_s21 = smul.u32 1152, %s5467_s11 }
  0x22   : > { %s375_s27 = scalar_lea.vmem %s5397_s4, %s5467_s11  ;;  %s378_s18 = scalar_lea.vmem %s5398_s5, %s5467_s11 }
  0x23   : > { %s4558_s30 = scalar_lea.vmem %s5395_s2, %s4170_s21  ;;  %s386_s15 = scalar_lea.vmem %s5400_s7, %s5467_s11 }
  0x24   : > { %s4544_s20 = scalar_lea.vmem %s5410_s1, %s3606_s17  ;;  %s3607_s17 = sshll.u32 %s5467_s11, 7 }
  0x25   : > { %s4572_s24 = scalar_lea.vmem %s5399_s6, %s3607_s17  ;;  %s389_s28 = scalar_lea.vmem %s5401_s8, %s5467_s11 }
  0x26   : > { %394 = sbr.rel (%p3190_p12) target bundleno = 45 (0x2d), region = 52 }
  0x2b   : > { %v4453_v0 = vmov 0.0  }
  0x2c   : > { %395 = vst [vmem:[#allocation4] sm:$0x1] %v4453_v0  ;;  %396 = vst [vmem:[#allocation5] sm:$0x1] %v4453_v0 }
  0x2d PF: > { %v4216_v1 = vld [vmem:[%s4558_s30 + $0x1f8] sm:$0xff]   ;;  %v4220_v5 = vld [vmem:[%s4558_s30 + $0x1f0] sm:$0xff]   ;;  %v4224_v9 = vld [vmem:[%s4558_s30 + $0x1e8] sm:$0xff]   ;;  %v5402_v18 = vlaneseq  ;;  %s5447_s21 = scalar_lea.vmem %s5396_s3, %s5467_s11  ;;  %s3624_s29 = sshll.u32 %s4434_s10, 4 }
  0x2e   : > { %v4217_v2 = vld [vmem:[%s4558_s30 + $0x278] sm:$0xff]   ;;  %3702 = vmatprep.subr.bf16.mxu0 %v4216_v1  ;;  %v4221_v6 = vld [vmem:[%s4558_s30 + $0x270] sm:$0xff]   ;;  %v4225_v10 = vld [vmem:[%s4558_s30 + $0x268] sm:$0xff]   ;;  %p3582_p13 = scmp.ne.s32.totalorder %s4434_s10, 1 }
  0x2f   : > { %v4218_v3 = vld [vmem:[%s4558_s30 + $0x1b8] sm:$0xff]   ;;  %3730 = vmatprep.subr.bf16.mxu1 %v4217_v2  ;;  %v4222_v7 = vld [vmem:[%s4558_s30 + $0x1b0] sm:$0xff]   ;;  %v4226_v11 = vld [vmem:[%s4558_s30 + $0x1a8] sm:$0xff]   ;;  %v4601_v23 = vshrl.u32 %v5402_v18, 7  ;;  %s3603_s17 = sld [smem:[#allocation7 + $0x1]] (!%p3582_p13) }
  0x30   : > { %v4219_v4 = vld [vmem:[%s4558_s30 + $0x238] sm:$0xff]   ;;  %3703 = vmatpush3.bf16.msra.mxu0 %v4218_v3  ;;  %v4223_v8 = vld [vmem:[%s4558_s30 + $0x230] sm:$0xff]   ;;  %v4227_v12 = vld [vmem:[%s4558_s30 + $0x228] sm:$0xff]  }
  0x31   : > { %3731 = vmatpush3.bf16.msra.mxu1 %v4219_v4  ;;  %3704 = vmatprep.subr.bf16.mxu0 %v4220_v5  ;;  %v4228_v13 = vld [vmem:[%s4558_s30 + $0x1e0] sm:$0xff]   ;;  %v4232_v17 = vld [vmem:[%s4558_s30 + $0x1d8] sm:$0xff]   ;;  %v4236_v22 = vld [vmem:[%s4558_s30 + $0x1d0] sm:$0xff]   ;;  %5411 = vst [vmem:[#allocation10_spill] sm:$0xff] %v4601_v23  ;;  %v4608_v28 = vadd.s32 8, %v4601_v23  ;;  %v406_v32 = vand.u32 7, %v4601_v23 }
  0x32   : > { %3732 = vmatprep.subr.bf16.mxu1 %v4221_v6  ;;  %v4229_v14 = vld [vmem:[%s4558_s30 + $0x260] sm:$0xff]   ;;  %v4233_v19 = vld [vmem:[%s4558_s30 + $0x258] sm:$0xff]   ;;  %v4237_v24 = vld [vmem:[%s4558_s30 + $0x250] sm:$0xff]   ;;  %v4618_v36 = vadd.s32 24, %v4601_v23  ;;  %v4623_v39 = vadd.s32 16, %v4601_v23  ;;  %vm764_vm2 = vcmp.lt.s32.totalorder %v4601_v23, 1 }
  0x33   : > { %v4230_v15 = vld [vmem:[%s4558_s30 + $0x1a0] sm:$0xff]   ;;  %v4234_v20 = vld [vmem:[%s4558_s30 + $0x198] sm:$0xff]   ;;  %v4238_v25 = vld [vmem:[%s4558_s30 + $0x190] sm:$0xff]   ;;  %5412 = vst [vmem:[#allocation11_spill] sm:$0xff] %v4608_v28  ;;  %v413_v34 = vand.u32 7, %v4608_v28  ;;  %vm4627_vm0 = vcmp.ge.s32.totalorder %v406_v32, 1 }
  0x34   : > { %3705 = vmatpush3.bf16.msra.mxu0 %v4222_v7  ;;  %v4231_v16 = vld [vmem:[%s4558_s30 + $0x220] sm:$0xff]   ;;  %v4235_v21 = vld [vmem:[%s4558_s30 + $0x218] sm:$0xff]   ;;  %v4239_v26 = vld [vmem:[%s4558_s30 + $0x210] sm:$0xff]   ;;  %5413 = vst [vmem:[#allocation12_spill] sm:$0xff] %v4618_v36  ;;  %v427_v50 = vand.u32 7, %v4618_v36  ;;  %v420_v60 = vand.u32 7, %v4623_v39 }
  0x35   : > { %3733 = vmatpush3.bf16.msra.mxu1 %v4223_v8  ;;  %3706 = vmatprep.subr.bf16.mxu0 %v4224_v9  ;;  %v4240_v27 = vld [vmem:[%s4558_s30 + $0x1c8] sm:$0xff]   ;;  %v4244_v33 = vld [vmem:[%s4558_s30 + $0x1c0] sm:$0xff]   ;;  %5414 = vst [vmem:[#allocation13_spill] sm:$0xff] %v4623_v39  ;;  %vm4633_vm1 = vcmp.ge.s32.totalorder %v413_v34, 1  ;;  %v4644_v44 = vld [vmem:[%s4544_s20 + $0x10] sm:$0xff]  ;;  %vm797_vm5 = vcmp.lt.s32.totalorder %v4601_v23, 7 }
  0x36   : > { %3734 = vmatprep.subr.bf16.mxu1 %v4225_v10  ;;  %v4241_v29 = vld [vmem:[%s4558_s30 + $0x248] sm:$0xff]   ;;  %v4245_v35 = vld [vmem:[%s4558_s30 + $0x240] sm:$0xff]   ;;  %v4648_v45 = vld [vmem:[%s4544_s20 + $0x18] sm:$0xff]  ;;  %v758_v49 = vrot.slane %v4644_v44, 7  ;;  %vm4704_vm4 = vcmp.ge.s32.totalorder %v427_v50, 1  ;;  %vm4713_vm6 = vcmp.lt.s32.totalorder %v427_v50, 7 }
  0x37   : > { %v4242_v30 = vld [vmem:[%s4558_s30 + $0x188] sm:$0xff]   ;;  %v4246_v37 = vld [vmem:[%s4558_s30 + $0x180] sm:$0xff]   ;;  %v4651_v46 = vld [vmem:[%s4544_s20 + $0x30] sm:$0xff]  ;;  %v759_v53 = vrot.slane %v4648_v45, 7  ;;  %vm4802_vm7 = vcmp.ge.s32.totalorder %v420_v60, 1  ;;  %vm4880_vm10 = vcmp.lt.s32.totalorder %v406_v32, 7 }
  0x38   : > { %3707 = vmatpush3.bf16.msra.mxu0 %v4226_v11  ;;  %v4243_v31 = vld [vmem:[%s4558_s30 + $0x208] sm:$0xff]   ;;  %v4247_v38 = vld [vmem:[%s4558_s30 + $0x200] sm:$0xff]   ;;  %v4661_v52 = vld [vmem:[%s4544_s20 + $0x38] sm:$0xff]  ;;  %v762_v54 = vrot.slane %v4651_v46, 7  ;;  %vm4887_vm11 = vcmp.lt.s32.totalorder %v413_v34, 7  ;;  %vm4941_vm13 = vcmp.lt.s32.totalorder %v420_v60, 7 }
  0x39   : > { %3735 = vmatpush3.bf16.msra.mxu1 %v4227_v12  ;;  %3708 = vmatprep.subr.bf16.mxu0 %v4228_v13  ;;  %v4638_v42 = vld [vmem:[%s4544_s20] sm:$0xff]  ;;  %v4641_v43 = vld [vmem:[%s4544_s20 + $0x8] sm:$0xff]  ;;  %v4248_v56 = vld [vmem:[%s4558_s30 + $0x2f8] sm:$0xff]   ;;  %v763_v57 = vrot.slane %v4661_v52, 7  ;;  %v3615_v12 = vpack.c.bf16 %v4661_v52, %v4651_v46 }
  0x3a   : > { %3736 = vmatprep.subr.bf16.mxu1 %v4229_v14  ;;  %v756_v47 = vrot.slane %v4638_v42, 7  ;;  %v757_v48 = vrot.slane %v4641_v43, 7  ;;  %v4658_v51 = vld [vmem:[%s4544_s20 + $0x28] sm:$0xff]  ;;  %v3638_v55 = vpack.c.bf16 %v4644_v44, %v4638_v42  ;;  %vm3648_vm3 = vmpackc.low %vm4633_vm1, %vm4627_vm0  ;;  %v3639_v59 = vpack.c.bf16 %v4648_v45, %v4641_v43  ;;  %v4249_v63 = vld [vmem:[%s4558_s30 + $0x78] sm:$0xff]  }
  0x3b   : > { %v3645_v0 = vpack.c.bf16 %v4661_v52, %v4658_v51  ;;  %v4250_v3 = vld [vmem:[%s4558_s30 + $0x2b8] sm:$0xff]   ;;  %v4252_v7 = vld [vmem:[%s4558_s30 + $0x2f0] sm:$0xff]   ;;  %v761_v9 = vrot.slane %v4658_v51, 7  ;;  %v4726_v11 = vpack.c.bf16 %v4658_v51, %v4648_v45  ;;  %v789_v13 = vrot.slane %v4638_v42, 1  ;;  %vm3654_vm8 = vmpackc.low %vm4704_vm4, %vm4802_vm7 }
  0x3c   : > { %3709 = vmatpush3.bf16.msra.mxu0 %v4230_v15  ;;  %v4673_v58 = vsel %vm764_vm2, %v756_v47, %v758_v49  ;;  %v4686_v61 = vsel %vm764_vm2, %v757_v48, %v759_v53  ;;  %v4692_v62 = vsel %vm764_vm2, %v762_v54, %v756_v47  ;;  %v4699_v1 = vsel %vm764_vm2, %v763_v57, %v757_v48  ;;  %v4251_v6 = vld [vmem:[%s4558_s30 + $0x38] sm:$0xff]   ;;  %v4253_v10 = vld [vmem:[%s4558_s30 + $0x70] sm:$0xff]   ;;  %v4261_v47 = vld [vmem:[%s4558_s30 + $0x60] sm:$0xff]  }
  0x3d   : > { %3737 = vmatpush3.bf16.msra.mxu1 %v4231_v16  ;;  %3710 = vmatprep.subr.bf16.mxu0 %v4232_v17  ;;  %v3652_v2 = vpack.c.bf16 %v4673_v58, %v4692_v62  ;;  %v3649_v5 = vpack.c.bf16 %v4686_v61, %v4699_v1  ;;  %v4254_v14 = vld [vmem:[%s4558_s30 + $0x2b0] sm:$0xff]   ;;  %v796_v16 = vrot.slane %v4661_v52, 1  ;;  %v4454_v17 = vmov 0   ;;  %v4274_v4 = vld [vmem:[%s4558_s30 + $0x288] sm:$0xff]   ;;  %vm4873_vm9 = vmpackc.low %vm4802_vm7, %vm4633_vm1 }
  0x3e   : > { %3738 = vmatprep.subr.bf16.mxu1 %v4233_v19  ;;  %1356 = vmatprep.mubr.bf16.mxu1 %v3639_v59  ;;  %v4255_v15 = vld [vmem:[%s4558_s30 + $0x30] sm:$0xff]   ;;  %v4740_v19 = vcombine.high %v3615_v12, %v4454_v17  ;;  %v4786_v50 = vsel %vm764_vm2, %v759_v53, %v761_v9  ;;  %v4263_v59 = vld [vmem:[%s4558_s30 + $0x20] sm:$0xff]   ;;  %vm3660_vm12 = vmpackc.low %vm4887_vm11, %vm4880_vm10 }
  0x3f   : > { %3650 = vmatprep.mubr.msk.bf16.mxu0 %vm3648_vm3, %v3649_v5  ;;  %v4267_v5 = vld [vmem:[%s4558_s30 + $0x18] sm:$0xff]   ;;  %v4277_v40 = vld [vmem:[%s4558_s30 + $0x40] sm:$0xff]   ;;  %v4285_v52 = vld [vmem:[%s4558_s30 + $0x170] sm:$0xff]  }
  0x40   : > { %3711 = vmatpush3.bf16.msra.mxu0 %v4234_v20  ;;  %v4256_v20 = vld [vmem:[%s4558_s30 + $0x2e8] sm:$0xff]   ;;  %v4287_v60 = vld [vmem:[%s4558_s30 + $0x130] sm:$0xff]   ;;  %vm3666_vm14 = vmpackc.low %vm4713_vm6, %vm4941_vm13 }
  0x41   : > { %3739 = vmatpush3.bf16.msra.mxu1 %v4235_v21  ;;  %3712 = vmatprep.subr.bf16.mxu0 %v4236_v22  ;;  %v795_v21 = vrot.slane %v4651_v46, 1  ;;  %v4745_v22 = vcombine.low %v3615_v12, %v4454_v17  ;;  %v4268_v12 = vld [vmem:[%s4558_s30 + $0x2d0] sm:$0xff]   ;;  %v4290_v8 = vld [vmem:[%s4558_s30 + $0xa8] sm:$0xff]   ;;  %vm5032_vm15 = vmpackc.low %vm4941_vm13, %vm4887_vm11 }
  0x42   : > { %3740 = vmatprep.subr.bf16.mxu1 %v4237_v24  ;;  %v781_v24 = vsel %vm4627_vm0, %v4692_v62, 0.0  ;;  %v4264_v62 = vld [vmem:[%s4558_s30 + $0x2d8] sm:$0xff]   ;;  %v4324_v41 = vld [vmem:[%s4558_s30 + $0x360] sm:$0xff]  }
  0x44   : > { %3713 = vmatpush3.bf16.msra.mxu0 %v4238_v25  ;;  %v4257_v25 = vld [vmem:[%s4558_s30 + $0x68] sm:$0xff]  }
  0x45   : > { %3741 = vmatpush3.bf16.msra.mxu1 %v4239_v26  ;;  %3714 = vmatprep.subr.bf16.mxu0 %v4240_v27  ;;  %v766_v26 = vsel %vm764_vm2, %v761_v9, %v763_v57  ;;  %v4258_v27 = vld [vmem:[%s4558_s30 + $0x2a8] sm:$0xff]  }
  0x46   : > { %3742 = vmatprep.subr.bf16.mxu1 %v4241_v29  ;;  %v790_v29 = vrot.slane %v4641_v43, 1 }
  0x48   : > { %3715 = vmatpush3.bf16.msra.mxu0 %v4242_v30  ;;  %v4259_v30 = vld [vmem:[%s4558_s30 + $0x28] sm:$0xff]  }
  0x49   : > { %3743 = vmatpush3.bf16.msra.mxu1 %v4243_v31  ;;  %3716 = vmatprep.subr.bf16.mxu0 %v4244_v33  ;;  %v4762_v31 = vsel %vm797_vm5, %v795_v21, %v789_v13  ;;  %v788_v33 = vsel %vm4704_vm4, %v766_v26, 0.0 }
  0x4a   : > { %3744 = vmatprep.subr.bf16.mxu1 %v4245_v35  ;;  %v4260_v35 = vld [vmem:[%s4558_s30 + $0x2e0] sm:$0xff]  }
  0x4c   : > { %3717 = vmatpush3.bf16.msra.mxu0 %v4246_v37  ;;  %v4773_v37 = vsel %vm797_vm5, %v796_v16, %v790_v29 }
  0x4d   : > { %3745 = vmatpush3.bf16.msra.mxu1 %v4247_v38  ;;  %3758 = vmatprep.subr.bf16.mxu0 %v4248_v56  ;;  %v820_v38 = vsel %vm4713_vm6, %v4762_v31, 0.0  ;;  %v821_v48 = vsel %vm4713_vm6, %v4773_v37, 0.0  ;;  %v4262_v56 = vld [vmem:[%s4558_s30 + $0x2a0] sm:$0xff]  }
  0x4e   : > { %3786 = vmatprep.subr.bf16.mxu1 %v4249_v63  ;;  %v3619_v57 = vpack.c.bf16 %v821_v48, %v820_v38 }
  0x4f   : > { %3653 = vmatmul.mubr.msk.bf16.vlgmr.msra.gmra.mxu0 %vm3648_vm3, %v3652_v2  ;;  %v4265_v2 = vld [vmem:[%s4558_s30 + $0x58] sm:$0xff]  }
  0x50   : > { %1357 = vmatmul.mubr.bf16.vlgmr.msra.gmra.mxu1 %v3638_v55  ;;  %3759 = vmatpush3.bf16.msra.mxu0 %v4250_v3  ;;  %v782_v55 = vsel %vm4627_vm0, %v4699_v1, 0.0  ;;  %v4795_v63 = vcombine.low %v3619_v57, %v4454_v17  ;;  %v4798_v53 = vcombine.high %v3619_v57, %v4454_v17  ;;  %v3655_v1 = vpack.c.bf16 %v766_v26, %v4786_v50  ;;  %v4266_v3 = vld [vmem:[%s4558_s30 + $0x298] sm:$0xff]   ;;  %v4303_v57 = vld [vmem:[%s4558_s30 + $0x110] sm:$0xff]  }
  0x51   : > { %1364 = vmatprep.mubr.bf16.mxu1 %v3645_v0  ;;  %3787 = vmatpush3.bf16.msra.mxu1 %v4251_v6  ;;  %v3608_v0 = vpack.c.bf16 %v782_v55, %v781_v24  ;;  %v4815_v6 = vld [vmem:[%s4544_s20 + $0x20] sm:$0xff] }
  0x52   : > { %3788 = vmatprep.subr.bf16.mxu1 %v4253_v10  ;;  %3760 = vmatprep.subr.bf16.mxu0 %v4252_v7  ;;  %v792_v7 = vrot.slane %v4648_v45, 1  ;;  %v760_v9 = vrot.slane %v4815_v6, 7  ;;  %v3644_v10 = vpack.c.bf16 %v4651_v46, %v4815_v6 }
  0x53   : > { %3656 = vmatprep.mubr.msk.bf16.mxu0 %vm3654_vm8, %v3655_v1  ;;  %v3456_v45 = vcombine.high %v4454_v17, %v3608_v0  ;;  %v4278_v1 = vld [vmem:[%s4558_s30 + $0x280] sm:$0xff]  }
  0x54   : > { %3761 = vmatpush3.bf16.msra.mxu0 %v4254_v14  ;;  %v4269_v14 = vld [vmem:[%s4558_s30 + $0x50] sm:$0xff]   ;;  %v4838_v24 = vsel %vm764_vm2, %v758_v49, %v760_v9  ;;  %v4273_v49 = vld [vmem:[%s4558_s30 + $0x48] sm:$0xff]  }
  0x55   : > { %3789 = vmatpush3.bf16.msra.mxu1 %v4255_v15  ;;  %3762 = vmatprep.subr.bf16.mxu0 %v4256_v20  ;;  %v794_v15 = vrot.slane %v4658_v51, 1  ;;  %v765_v20 = vsel %vm764_vm2, %v760_v9, %v762_v54  ;;  %v4271_v51 = vld [vmem:[%s4558_s30 + $0x10] sm:$0xff]   ;;  %v4968_v46 = vpack.c.bf16 %v4838_v24, %v4673_v58 }
  0x56   : > { %3790 = vmatprep.subr.bf16.mxu1 %v4257_v25  ;;  %v4270_v25 = vld [vmem:[%s4558_s30 + $0x290] sm:$0xff]   ;;  %v3658_v26 = vpack.c.bf16 %v765_v20, %v4838_v24  ;;  %v4291_v24 = vld [vmem:[%s4558_s30 + $0x128] sm:$0xff]  }
  0x57   : > { %v4855_v38 = vsel %vm797_vm5, %v792_v7, %v794_v15 }
  0x58   : > { %3763 = vmatpush3.bf16.msra.mxu0 %v4258_v27  ;;  %1365 = vmatmul.mubr.bf16.gmra.mxu1 %v3644_v10  ;;  %v787_v27 = vsel %vm4704_vm4, %v765_v20, 0.0  ;;  %v4920_v10 = vpack.c.bf16 %v4786_v50, %v4686_v61  ;;  %v4284_v20 = vld [vmem:[%s4558_s30 + $0xf0] sm:$0xff]   ;;  %v4327_v61 = vld [vmem:[%s4558_s30 + $0x3a0] sm:$0xff]  }
  0x59   : > { %3791 = vmatpush3.bf16.msra.mxu1 %v4259_v30  ;;  %3764 = vmatprep.subr.bf16.mxu0 %v4260_v35  ;;  %v4272_v30 = vld [vmem:[%s4558_s30 + $0x2c8] sm:$0xff]   ;;  %v3611_v54 = vpack.c.bf16 %v788_v33, %v787_v27  ;;  %v791_v35 = vrot.slane %v4644_v44, 1  ;;  %v803_v33 = vsel %vm797_vm5, %v790_v29, %v792_v7  ;;  %v4281_v7 = vld [vmem:[%s4558_s30 + $0x178] sm:$0xff]   ;;  %v4294_v27 = vld [vmem:[%s4558_s30 + $0xa0] sm:$0xff]  }
  0x5a   : > { %3792 = vmatprep.subr.bf16.mxu1 %v4261_v47  ;;  %1775 = vmatprep.mubr.bf16.mxu1 %v3456_v45  ;;  %v793_v47 = vrot.slane %v4815_v6, 1  ;;  %v4275_v29 = vld [vmem:[%s4558_s30 + $0x8] sm:$0xff]   ;;  %v4283_v45 = vld [vmem:[%s4558_s30 + $0x138] sm:$0xff]  }
  0x5b   : > { %3659 = vmatmul.mubr.msk.bf16.gmra.mxu0 %vm3654_vm8, %v3658_v26  ;;  %v4864_v48 = vcombine.high %v3611_v54, %v4454_v17  ;;  %v4867_v55 = vcombine.low %v3611_v54, %v4454_v17  ;;  %v802_v34 = vsel %vm797_vm5, %v789_v13, %v791_v35  ;;  %v4288_v26 = vld [vmem:[%s4558_s30 + $0xe8] sm:$0xff]   ;;  %v4296_v54 = vld [vmem:[%s4558_s30 + $0xd8] sm:$0xff]  }
  0x5c   : > { %3765 = vmatpush3.bf16.msra.mxu0 %v4262_v56  ;;  %v4896_v32 = vsel %vm797_vm5, %v791_v35, %v793_v47  ;;  %v814_v9 = vsel %vm4880_vm10, %v802_v34, 0.0  ;;  %v4297_v35 = vld [vmem:[%s4558_s30 + $0x158] sm:$0xff]   ;;  %v4350_v56 = vld [vmem:[%s4558_s30 + $0x460] sm:$0xff]  }
  0x5d   : > { %3793 = vmatpush3.bf16.msra.mxu1 %v4263_v59  ;;  %3766 = vmatprep.subr.bf16.mxu0 %v4264_v62  ;;  %v4276_v59 = vld [vmem:[%s4558_s30 + $0x2c0] sm:$0xff]   ;;  %v3661_v62 = vpack.c.bf16 %v4855_v38, %v803_v33  ;;  %v3664_v13 = vpack.c.bf16 %v4896_v32, %v802_v34 }
  0x5e   : > { %3794 = vmatprep.subr.bf16.mxu1 %v4265_v2  ;;  %v4279_v2 = vld [vmem:[%s4558_s30] sm:$0xff]  }
  0x5f   : > { %3662 = vmatprep.mubr.msk.bf16.mxu0 %vm3660_vm12, %v3661_v62  ;;  %v4305_v62 = vld [vmem:[%s4558_s30 + $0x148] sm:$0xff]   ;;  %v4308_v34 = vld [vmem:[%s4558_s30 + $0xc0] sm:$0xff]  }
  0x60   : > { %3767 = vmatpush3.bf16.msra.mxu0 %v4266_v3  ;;  %v3455_v3 = vcombine.low %v4454_v17, %v3608_v0  ;;  %v4282_v0 = vld [vmem:[%s4558_s30 + $0xb8] sm:$0xff]  }
  0x61   : > { %3795 = vmatpush3.bf16.msra.mxu1 %v4267_v5  ;;  %3768 = vmatprep.subr.bf16.mxu0 %v4268_v12  ;;  %v4280_v5 = vld [vmem:[%s4558_s30 + $0xf8] sm:$0xff]   ;;  %v4927_v12 = vsel %vm797_vm5, %v794_v15, %v796_v16  ;;  %v4286_v15 = vld [vmem:[%s4558_s30 + $0xb0] sm:$0xff]  }
  0x62   : > { %3796 = vmatprep.subr.bf16.mxu1 %v4269_v14  ;;  %v815_v14 = vsel %vm4880_vm10, %v803_v33, 0.0  ;;  %v3667_v16 = vpack.c.bf16 %v4773_v37, %v4927_v12  ;;  %v3612_v37 = vpack.c.bf16 %v4641_v43, %v4638_v42  ;;  %v4289_v43 = vld [vmem:[%s4558_s30 + $0x168] sm:$0xff]   ;;  %v4299_v33 = vld [vmem:[%s4558_s30 + $0x118] sm:$0xff]  }
  0x63   : > { %v4947_v50 = vpack.c.bf16 %v815_v14, %v814_v9  ;;  %v4312_v9 = vld [vmem:[%s4558_s30 + $0x378] sm:$0xff]  }
  0x64   : > { %3769 = vmatpush3.bf16.msra.mxu0 %v4270_v25  ;;  %v4954_v25 = vsel %vm797_vm5, %v793_v47, %v795_v21  ;;  %v3458_v58 = vcombine.high %v4454_v17, %v3612_v37  ;;  %v4300_v47 = vld [vmem:[%s4558_s30 + $0xd0] sm:$0xff]   ;;  %v4314_v14 = vld [vmem:[%s4558_s30 + $0x338] sm:$0xff]  }
  0x65   : > { %3797 = vmatpush3.bf16.msra.mxu1 %v4271_v51  ;;  %3770 = vmatprep.subr.bf16.mxu0 %v4272_v30  ;;  %v3670_v21 = vpack.c.bf16 %v4762_v31, %v4954_v25  ;;  %v3460_v42 = vcombine.high %v4454_v17, %v4947_v50  ;;  %v4292_v31 = vld [vmem:[%s4558_s30 + $0xe0] sm:$0xff]  }
  0x66   : > { %3798 = vmatprep.subr.bf16.mxu1 %v4273_v49  ;;  %v4293_v51 = vld [vmem:[%s4558_s30 + $0x160] sm:$0xff]   ;;  %v4298_v49 = vld [vmem:[%s4558_s30 + $0x98] sm:$0xff]  }
  0x67   : > { %v4295_v30 = vld [vmem:[%s4558_s30 + $0x120] sm:$0xff]  }
  0x68   : > { %3771 = vmatpush3.bf16.msra.mxu0 %v4274_v4  ;;  %v4301_v4 = vld [vmem:[%s4558_s30 + $0x150] sm:$0xff]  }
  0x69   : > { %3799 = vmatpush3.bf16.msra.mxu1 %v4275_v29  ;;  %3772 = vmatprep.subr.bf16.mxu0 %v4276_v59  ;;  %v4302_v29 = vld [vmem:[%s4558_s30 + $0x90] sm:$0xff]   ;;  %v4304_v59 = vld [vmem:[%s4558_s30 + $0xc8] sm:$0xff]  }
  0x6a   : > { %3800 = vmatprep.subr.bf16.mxu1 %v4277_v40  ;;  %v4306_v40 = vld [vmem:[%s4558_s30 + $0x88] sm:$0xff]  }
  0x6c   : > { %3773 = vmatpush3.bf16.msra.mxu0 %v4278_v1  ;;  %v4307_v1 = vld [vmem:[%s4558_s30 + $0x108] sm:$0xff]  }
  0x6d   : > { %3801 = vmatpush3.bf16.msra.mxu1 %v4279_v2  ;;  %3814 = vmatprep.subr.bf16.mxu0 %v4280_v5  ;;  %v4309_v2 = vld [vmem:[%s4558_s30 + $0x140] sm:$0xff]  }
  0x6e   : > { %3842 = vmatprep.subr.bf16.mxu1 %v4281_v7  ;;  %v4311_v5 = vld [vmem:[%s4558_s30 + $0x100] sm:$0xff]   ;;  %v3459_v7 = vcombine.low %v4454_v17, %v4947_v50  ;;  %v4319_v50 = vld [vmem:[%s4558_s30 + $0x3b0] sm:$0xff]  }
  0x6f   : > { %3665 = vmatmul.mubr.msk.bf16.vlgmr.msra.gmra.mxu0 %vm3660_vm12, %v3664_v13  ;;  %v3457_v13 = vcombine.low %v4454_v17, %v3612_v37  ;;  %v4318_v17 = vld [vmem:[%s4558_s30 + $0x330] sm:$0xff]   ;;  %v5025_v37 = vpack.c.bf16 %v4954_v25, %v4896_v32  ;;  %v4325_v32 = vld [vmem:[%s4558_s30 + $0x3e0] sm:$0xff]   ;;  %v4328_v25 = vld [vmem:[%s4558_s30 + $0x358] sm:$0xff]  }
  0x70   : > { %1776 = vmatmul.mubr.bf16.vlgmr.msra.gmra.mxu1 %v3455_v3  ;;  %3815 = vmatpush3.bf16.msra.mxu0 %v4282_v0  ;;  %v4310_v3 = vld [vmem:[%s4558_s30 + $0x80] sm:$0xff]   ;;  %v4313_v0 = vld [vmem:[%s4558_s30 + $0x3f8] sm:$0xff]  }
  0x71   : > { %3843 = vmatpush3.bf16.msra.mxu1 %v4283_v45  ;;  %3680 = vmatprep.mubr.msk.bf16.mxu1 %vm4873_vm9, %v4920_v10  ;;  %v4315_v45 = vld [vmem:[%s4558_s30 + $0x3b8] sm:$0xff]  }
  0x72   : > { %3816 = vmatprep.subr.bf16.mxu0 %v4284_v20  ;;  %3844 = vmatprep.subr.bf16.mxu1 %v4285_v52  ;;  %v4316_v20 = vld [vmem:[%s4558_s30 + $0x370] sm:$0xff]  }
  0x73   : > { %3668 = vmatprep.mubr.msk.bf16.mxu0 %vm3666_vm14, %v3667_v16  ;;  %v4317_v52 = vld [vmem:[%s4558_s30 + $0x3f0] sm:$0xff]   ;;  %v5015_v16 = vpack.c.bf16 %v4927_v12, %v4855_v38  ;;  %v4326_v12 = vld [vmem:[%s4558_s30 + $0x320] sm:$0xff]  }
  0x74   : > { %3817 = vmatpush3.bf16.msra.mxu0 %v4286_v15  ;;  %v5020_v15 = vpack.c.bf16 %v4815_v6, %v4644_v44  ;;  %v4322_v44 = vld [vmem:[%s4558_s30 + $0x328] sm:$0xff]  }
  0x75   : > { %3845 = vmatpush3.bf16.msra.mxu1 %v4287_v60  ;;  %3818 = vmatprep.subr.bf16.mxu0 %v4288_v26  ;;  %v4320_v60 = vld [vmem:[%s4558_s30 + $0x368] sm:$0xff]   ;;  %v4329_v26 = vld [vmem:[%s4558_s30 + $0x3d8] sm:$0xff]  }
  0x76   : > { %3846 = vmatprep.subr.bf16.mxu1 %v4289_v43  ;;  %v4323_v6 = vld [vmem:[%s4558_s30 + $0x3a8] sm:$0xff]   ;;  %v4331_v43 = vld [vmem:[%s4558_s30 + $0x398] sm:$0xff]  }
  0x77   : > { %3671 = vmatmul.mubr.msk.bf16.gmra.mxu0 %vm3666_vm14, %v3670_v21  ;;  %v4321_v21 = vld [vmem:[%s4558_s30 + $0x3e8] sm:$0xff]  }
  0x78   : > { %3683 = vmatmul.mubr.msk.bf16.gmra.mxu1 %vm4873_vm9, %v4968_v46  ;;  %3819 = vmatpush3.bf16.msra.mxu0 %v4290_v8  ;;  %v4332_v8 = vld [vmem:[%s4558_s30 + $0x350] sm:$0xff]  }
  0x79   : > { %1873 = vmatprep.mubr.bf16.mxu1 %v3460_v42  ;;  %3847 = vmatpush3.bf16.msra.mxu1 %v4291_v24  ;;  %v4330_v42 = vld [vmem:[%s4558_s30 + $0x318] sm:$0xff]   ;;  %v4336_v24 = vld [vmem:[%s4558_s30 + $0x348] sm:$0xff]  }
  0x7a   : > { %3820 = vmatprep.subr.bf16.mxu0 %v4292_v31  ;;  %1824 = vmatprep.mubr.bf16.mxu0 %v3458_v58  ;;  %v4335_v58 = vld [vmem:[%s4558_s30 + $0x390] sm:$0xff]   ;;  %v4337_v31 = vld [vmem:[%s4558_s30 + $0x3c8] sm:$0xff]  }
  0x7b   : > { %3848 = vmatprep.subr.bf16.mxu1 %v4293_v51  ;;  %v4338_v51 = vld [vmem:[%s4558_s30 + $0x308] sm:$0xff]  }
  0x7c   : > { %3821 = vmatpush3.bf16.msra.mxu0 %v4294_v27  ;;  %v4339_v27 = vld [vmem:[%s4558_s30 + $0x388] sm:$0xff]  }
  0x7d   : > { %3849 = vmatpush3.bf16.msra.mxu1 %v4295_v30  ;;  %3822 = vmatprep.subr.bf16.mxu0 %v4296_v54  ;;  %v4340_v30 = vld [vmem:[%s4558_s30 + $0x340] sm:$0xff]  }
  0x7e   : > { %3850 = vmatprep.subr.bf16.mxu1 %v4297_v35  ;;  %v4341_v54 = vld [vmem:[%s4558_s30 + $0x3c0] sm:$0xff]  }
  0x7f   : > { %v4342_v35 = vld [vmem:[%s4558_s30 + $0x300] sm:$0xff]  }
  0x80   : > { %3823 = vmatpush3.bf16.msra.mxu0 %v4298_v49  ;;  %v4343_v49 = vld [vmem:[%s4558_s30 + $0x380] sm:$0xff]  }
  0x81   : > { %3851 = vmatpush3.bf16.msra.mxu1 %v4299_v33  ;;  %3824 = vmatprep.subr.bf16.mxu0 %v4300_v47  ;;  %v4344_v33 = vld [vmem:[%s4558_s30 + $0x478] sm:$0xff]  }
  0x82   : > { %3852 = vmatprep.subr.bf16.mxu1 %v4301_v4  ;;  %v4345_v47 = vld [vmem:[%s4558_s30 + $0x438] sm:$0xff]   ;;  %v4346_v4 = vld [vmem:[%s4558_s30 + $0x470] sm:$0xff]  }
  0x84   : > { %3825 = vmatpush3.bf16.msra.mxu0 %v4302_v29  ;;  %v4347_v29 = vld [vmem:[%s4558_s30 + $0x430] sm:$0xff]  }
  0x85   : > { %3853 = vmatpush3.bf16.msra.mxu1 %v4303_v57  ;;  %3826 = vmatprep.subr.bf16.mxu0 %v4304_v59  ;;  %v4348_v57 = vld [vmem:[%s4558_s30 + $0x468] sm:$0xff]  }
  0x86   : > { %3854 = vmatprep.subr.bf16.mxu1 %v4305_v62  ;;  %v4349_v59 = vld [vmem:[%s4558_s30 + $0x428] sm:$0xff]  }
  0x87   : > { %v4356_v62 = vld [vmem:[%s4558_s30 + $0x448] sm:$0xff]  }
  0x88   : > { %3827 = vmatpush3.bf16.msra.mxu0 %v4306_v40  ;;  %v4357_v40 = vld [vmem:[%s4558_s30 + $0x408] sm:$0xff]  }
  0x89   : > { %3855 = vmatpush3.bf16.msra.mxu1 %v4307_v1  ;;  %3828 = vmatprep.subr.bf16.mxu0 %v4308_v34  ;;  %v4359_v1 = vld [vmem:[%s4558_s30 + $0x400] sm:$0xff]  }
  0x8a   : > { %3856 = vmatprep.subr.bf16.mxu1 %v4309_v2 }
  0x8c   : > { %3829 = vmatpush3.bf16.msra.mxu0 %v4310_v3 }
  0x8d   : > { %3857 = vmatpush3.bf16.msra.mxu1 %v4311_v5  ;;  %3870 = vmatprep.subr.bf16.mxu0 %v4312_v9 }
  0x8e   : > { %3898 = vmatprep.subr.bf16.mxu1 %v4313_v0 }
  0x8f   : > { %1825 = vmatmul.mubr.bf16.vlgmr.msra.gmra.mxu0 %v3457_v13 }
  0x90   : > { %1874 = vmatmul.mubr.bf16.vlgmr.msra.gmra.mxu1 %v3459_v7  ;;  %3871 = vmatpush3.bf16.msra.mxu0 %v4314_v14 }
  0x91   : > { %3899 = vmatpush3.bf16.msra.mxu1 %v4315_v45  ;;  %3872 = vmatprep.subr.bf16.mxu0 %v4316_v20 }
  0x92   : > { %1832 = vmatprep.mubr.bf16.mxu0 %v4726_v11  ;;  %3900 = vmatprep.subr.bf16.mxu1 %v4317_v52 }
  0x93   : > { %3686 = vmatprep.mubr.msk.bf16.mxu1 %vm5032_vm15, %v5015_v16 }
  0x94   : > { %3873 = vmatpush3.bf16.msra.mxu0 %v4318_v17 }
  0x95   : > { %3901 = vmatpush3.bf16.msra.mxu1 %v4319_v50  ;;  %3874 = vmatprep.subr.bf16.mxu0 %v4320_v60 }
  0x96   : > { %3902 = vmatprep.subr.bf16.mxu1 %v4321_v21 }
  0x97   : > { %1833 = vmatmul.mubr.bf16.gmra.mxu0 %v5020_v15 }
  0x98   : > { %3689 = vmatmul.mubr.msk.bf16.gmra.mxu1 %vm5032_vm15, %v5025_v37  ;;  %3875 = vmatpush3.bf16.msra.mxu0 %v4322_v44 }
  0x99   : > { %3903 = vmatpush3.bf16.msra.mxu1 %v4323_v6  ;;  %3876 = vmatprep.subr.bf16.mxu0 %v4324_v41 }
  0x9a   : > { %3692 = vmatprep.mubr.msk.bf16.mxu0 %vm4873_vm9, %v4920_v10  ;;  %3904 = vmatprep.subr.bf16.mxu1 %v4325_v32  ;;  %v4333_v10 = vld [vmem:[%s4558_s30 + $0x3d0] sm:$0xff]  }
  0x9b   : > { %2331 = vmatprep.mubr.bf16.mxu1 %v4726_v11  ;;  %v4334_v11 = vld [vmem:[%s4558_s30 + $0x310] sm:$0xff]  }
  0x9c   : > { %3877 = vmatpush3.bf16.msra.mxu0 %v4326_v12 }
  0x9d   : > { %3905 = vmatpush3.bf16.msra.mxu1 %v4327_v61  ;;  %3878 = vmatprep.subr.bf16.mxu0 %v4328_v25 }
  0x9e   : > { %3906 = vmatprep.subr.bf16.mxu1 %v4329_v26 }
  0xa0   : > { %3879 = vmatpush3.bf16.msra.mxu0 %v4330_v42 }
  0xa1   : > { %3907 = vmatpush3.bf16.msra.mxu1 %v4331_v43  ;;  %3880 = vmatprep.subr.bf16.mxu0 %v4332_v8 }
  0xa2   : > { %3908 = vmatprep.subr.bf16.mxu1 %v4333_v10 }
  0xa4   : > { %3881 = vmatpush3.bf16.msra.mxu0 %v4334_v11 }
  0xa5   : > { %3909 = vmatpush3.bf16.msra.mxu1 %v4335_v58  ;;  %3882 = vmatprep.subr.bf16.mxu0 %v4336_v24 }
  0xa6   : > { %3910 = vmatprep.subr.bf16.mxu1 %v4337_v31 }
  0xa8   : > { %3883 = vmatpush3.bf16.msra.mxu0 %v4338_v51 }
  0xa9   : > { %3911 = vmatpush3.bf16.msra.mxu1 %v4339_v27  ;;  %3884 = vmatprep.subr.bf16.mxu0 %v4340_v30 }
  0xaa   : > { %3912 = vmatprep.subr.bf16.mxu1 %v4341_v54 }
  0xac   : > { %3885 = vmatpush3.bf16.msra.mxu0 %v4342_v35 }
  0xad   : > { %3913 = vmatpush3.bf16.msra.mxu1 %v4343_v49  ;;  %3926 = vmatprep.subr.bf16.mxu0 %v4344_v33 }
  0xae   : > { %4154 = vmatprep.subr.bf16.mxu1 %v4344_v33 }
  0xaf   : > { %3695 = vmatmul.mubr.msk.bf16.vlgmr.msra.gmra.mxu0 %vm4873_vm9, %v4968_v46  ;;  %v4351_v46 = vld [vmem:[%s4558_s30 + $0x420] sm:$0xff]  }
  0xb0   : > { %2332 = vmatmul.mubr.bf16.vlgmr.msra.gmra.mxu1 %v5020_v15  ;;  %3927 = vmatpush3.bf16.msra.mxu0 %v4345_v47 }
  0xb1   : > { %4162 = vmatpush3.bf16.msra.mxu1 %v4345_v47  ;;  %3928 = vmatprep.subr.bf16.mxu0 %v4346_v4 }
  0xb2   : > { %4155 = vmatprep.subr.bf16.mxu1 %v4346_v4  ;;  %2290 = vmatprep.mubr.bf16.mxu0 %v4864_v48  ;;  %v4353_v48 = vld [vmem:[%s4558_s30 + $0x418] sm:$0xff]  }
  0xb3   : > { %2339 = vmatprep.mubr.bf16.mxu1 %v4740_v19  ;;  %v4352_v19 = vld [vmem:[%s4558_s30 + $0x458] sm:$0xff]  }
  0xb4   : > { %3929 = vmatpush3.bf16.msra.mxu0 %v4347_v29 }
  0xb5   : > { %4163 = vmatpush3.bf16.msra.mxu1 %v4347_v29  ;;  %3930 = vmatprep.subr.bf16.mxu0 %v4348_v57 }
  0xb6   : > { %4156 = vmatprep.subr.bf16.mxu1 %v4348_v57 }
  0xb7   : > { %2291 = vmatmul.mubr.bf16.gmra.mxu0 %v4867_v55  ;;  %v4355_v55 = vld [vmem:[%s4558_s30 + $0x410] sm:$0xff]  }
  0xb8   : > { %2340 = vmatmul.mubr.bf16.gmra.mxu1 %v4745_v22  ;;  %3931 = vmatpush3.bf16.msra.mxu0 %v4349_v59  ;;  %v4354_v22 = vld [vmem:[%s4558_s30 + $0x450] sm:$0xff]  }
  0xb9   : > { %4164 = vmatpush3.bf16.msra.mxu1 %v4349_v59  ;;  %3932 = vmatprep.subr.bf16.mxu0 %v4350_v56 }
  0xba   : > { %4157 = vmatprep.subr.bf16.mxu1 %v4350_v56  ;;  %3698 = vmatprep.mubr.msk.bf16.mxu0 %vm5032_vm15, %v5015_v16 }
  0xbb   : > { %2388 = vmatprep.mubr.bf16.mxu1 %v4798_v53  ;;  %v4358_v53 = vld [vmem:[%s4558_s30 + $0x440] sm:$0xff]   ;;  %s2462_s30 = scalar_lea.vmem [#allocation2], %s3624_s29 }
  0xbc   : > { %3933 = vmatpush3.bf16.msra.mxu0 %v4351_v46 }
  0xbd   : > { %4165 = vmatpush3.bf16.msra.mxu1 %v4351_v46  ;;  %3934 = vmatprep.subr.bf16.mxu0 %v4352_v19 }
  0xbe   : > { %4158 = vmatprep.subr.bf16.mxu1 %v4352_v19 }
  0xc0   : > { %3935 = vmatpush3.bf16.msra.mxu0 %v4353_v48 }
  0xc1   : > { %4166 = vmatpush3.bf16.msra.mxu1 %v4353_v48  ;;  %3936 = vmatprep.subr.bf16.mxu0 %v4354_v22 }
  0xc2   : > { %4159 = vmatprep.subr.bf16.mxu1 %v4354_v22 }
  0xc4   : > { %3937 = vmatpush3.bf16.msra.mxu0 %v4355_v55 }
  0xc5   : > { %4167 = vmatpush3.bf16.msra.mxu1 %v4355_v55  ;;  %3938 = vmatprep.subr.bf16.mxu0 %v4356_v62 }
  0xc6   : > { %4160 = vmatprep.subr.bf16.mxu1 %v4356_v62 }
  0xc8   : > { %3939 = vmatpush3.bf16.msra.mxu0 %v4357_v40 }
  0xc9   : > { %4168 = vmatpush3.bf16.msra.mxu1 %v4357_v40  ;;  %3940 = vmatprep.subr.bf16.mxu0 %v4358_v53 }
  0xca   : > { %4161 = vmatprep.subr.bf16.mxu1 %v4358_v53 }
  0xcc   : > { %3941 = vmatpush3.bf16.msra.mxu0 %v4359_v1 }
  0xcd   : > { %4169 = vmatpush3.bf16.msra.mxu1 %v4359_v1 }
  0xcf   : > { %3701 = vmatmul.mubr.msk.bf16.vlgmr.msra.gmra.mxu0 %vm5032_vm15, %v5025_v37 }
  0xd0   : > { %2389 = vmatmul.mubr.bf16.vlgmr.msra.gmra.mxu1 %v4795_v63 }
 0x10f   : > { %v3718_v34 = vpop.f32.mrf.mxu0 }
 0x110   : > { %v3746_v2 = vpop.f32.mrf.mxu1 }
 0x111   : > { %v3719_v3 = vpop.f32.mrf.mxu0 }
 0x112   : > { %v3747_v5 = vpop.f32.mrf.mxu1  ;;  %v3720_v1 = vadd.f32 %v3719_v3, %v3718_v34 }
 0x113   : > { %v3721_v13 = vpop.f32.mrf.mxu0  ;;  %v3748_v18 = vadd.f32 %v3747_v5, %v3746_v2 }
 0x114   : > { %v3749_v7 = vpop.f32.mrf.mxu1 }
 0x115   : > { %v3722_v9 = vpop.f32.mrf.mxu0  ;;  %v1359_v3 = vadd.f32 %v3748_v18, %v3720_v1 }
 0x116   : > { %v3750_v14 = vpop.f32.mrf.mxu1 }
 0x118   : > { %v3752_v45 = vpop.f32.mrf.mxu1 }
 0x11a   : > { %v3753_v52 = vpop.f32.mrf.mxu1 }
 0x11b   : > { %v3724_v0 = vpop.f32.mrf.mxu0  ;;  %v3754_v39 = vadd.f32 %v3753_v52, %v3752_v45 }
 0x11c   : > { %v3755_v16 = vpop.f32.mrf.mxu1 }
 0x11d   : > { %v3725_v20 = vpop.f32.mrf.mxu0 }
 0x11e   : > { %v3756_v60 = vpop.f32.mrf.mxu1  ;;  %v3726_v36 = vadd.f32 %v3725_v20, %v3724_v0 }
 0x11f   : > { %v3727_v17 = vpop.f32.mrf.mxu0 }
 0x120   : > { %v1367_v34 = vadd.f32 %v3754_v39, %v3726_v36 }
 0x121   : > { %v3728_v50 = vpop.f32.mrf.mxu0 }
 0x12f   : > { %v3774_v15 = vpop.f32.mrf.mxu0 }
 0x130   : > { %v3802_v37 = vpop.f32.mrf.mxu1 }
 0x131   : > { %v3775_v21 = vpop.f32.mrf.mxu0 }
 0x132   : > { %v3803_v63 = vpop.f32.mrf.mxu1  ;;  %v3776_v28 = vadd.f32 %v3775_v21, %v3774_v15 }
 0x133   : > { %v3777_v38 = vpop.f32.mrf.mxu0  ;;  %v3804_v20 = vadd.f32 %v3803_v63, %v3802_v37 }
 0x134   : > { %v5101_v44 = vpop.f32.mrf.mxu1  ;;  %v1408_v0 = vadd.f32 %v3776_v28, %v1359_v3  ;;  %v3575_v3 = vld [vmem:[%s5447_s21] ss:$0 sm:$0xff] }
 0x135   : > { %5435 = vst [vmem:[#allocation14_spill] sm:$0xff] %v5101_v44  ;;  %v3778_v6 = vpop.f32.mrf.mxu0  ;;  %v3757_v44 = vadd.f32 %v3756_v60, %v3755_v16 }
 0x136   : > { %v5103_v41 = vpop.f32.mrf.mxu1  ;;  %v3779_v2 = vadd.f32 %v3778_v6, %v3777_v38 }
 0x137   : > { %5436 = vst [vmem:[#allocation15_spill] sm:$0xff] %v5103_v41  ;;  %v3780_v32 = vpop.f32.mrf.mxu0  ;;  %v3729_v41 = vadd.f32 %v3728_v50, %v3727_v17  ;;  %v1778_v50 = vadd.f32 %v3804_v20, %v1408_v0 }
 0x138   : > { %v3808_v12 = vpop.f32.mrf.mxu1 }
 0x139   : > { %v3781_v61 = vpop.f32.mrf.mxu0 }
 0x13a   : > { %v3809_v25 = vpop.f32.mrf.mxu1  ;;  %v3782_v23 = vadd.f32 %v3781_v61, %v3780_v32  ;;  %v1370_v61 = vadd.f32 %v3757_v44, %v3729_v41 }
 0x13b   : > { %v3783_v26 = vpop.f32.mrf.mxu0  ;;  %v3810_v52 = vadd.f32 %v3809_v25, %v3808_v12 }
 0x13c   : > { %v3811_v42 = vpop.f32.mrf.mxu1  ;;  %v1416_v45 = vadd.f32 %v3782_v23, %v1367_v34  ;;  %v5441_v16 = vld [vmem:[#allocation14_spill] sm:$0xff] }
 0x13d   : > { %v3784_v43 = vpop.f32.mrf.mxu0 }
 0x13e   : > { %v3812_v8 = vpop.f32.mrf.mxu1  ;;  %v3785_v5 = vadd.f32 %v3784_v43, %v3783_v26  ;;  %v5442_v60 = vld [vmem:[#allocation15_spill] sm:$0xff]  ;;  %v1786_v36 = vadd.f32 %v3810_v52, %v1416_v45 }
 0x13f   : > { %v3813_v17 = vadd.f32 %v3812_v8, %v3811_v42  ;;  %v3807_v18 = vadd.f32 %v5442_v60, %v5441_v16 }
 0x14f   : > { %v3830_v10 = vpop.f32.mrf.mxu0 }
 0x150   : > { %v3858_v11 = vpop.f32.mrf.mxu1 }
 0x151   : > { %v3831_v58 = vpop.f32.mrf.mxu0 }
 0x152   : > { %v3859_v24 = vpop.f32.mrf.mxu1 }
 0x153   : > { %v3833_v31 = vpop.f32.mrf.mxu0  ;;  %v3860_v39 = vadd.f32 %v3859_v24, %v3858_v11 }
 0x154   : > { %v5105_v51 = vpop.f32.mrf.mxu1 }
 0x155   : > { %5437 = vst [vmem:[#allocation16_spill] sm:$0xff] %v5105_v51  ;;  %v3834_v27 = vpop.f32.mrf.mxu0 }
 0x156   : > { %v5107_v30 = vpop.f32.mrf.mxu1  ;;  %v3835_v25 = vadd.f32 %v3834_v27, %v3833_v31 }
 0x157   : > { %5438 = vst [vmem:[#allocation17_spill] sm:$0xff] %v5107_v30  ;;  %v3836_v54 = vpop.f32.mrf.mxu0 }
 0x158   : > { %v3864_v35 = vpop.f32.mrf.mxu1 }
 0x159   : > { %v3837_v49 = vpop.f32.mrf.mxu0 }
 0x15a   : > { %v3865_v33 = vpop.f32.mrf.mxu1 }
 0x15b   : > { %v3839_v47 = vpop.f32.mrf.mxu0  ;;  %v3866_v41 = vadd.f32 %v3865_v33, %v3864_v35 }
 0x15c   : > { %v5109_v4 = vpop.f32.mrf.mxu1 }
 0x15d   : > { %5439 = vst [vmem:[#allocation18_spill] sm:$0xff] %v5109_v4  ;;  %v3840_v29 = vpop.f32.mrf.mxu0  ;;  %v3723_v4 = vadd.f32 %v3722_v9, %v3721_v13  ;;  %v3832_v9 = vadd.f32 %v3831_v58, %v3830_v10  ;;  %v3838_v13 = vadd.f32 %v3837_v49, %v3836_v54 }
 0x15e   : > { %v5111_v57 = vpop.f32.mrf.mxu1  ;;  %v3841_v8 = vadd.f32 %v3840_v29, %v3839_v47 }
 0x15f   : > { %5440 = vst [vmem:[#allocation19_spill] sm:$0xff] %v5111_v57  ;;  %v3751_v57 = vadd.f32 %v3750_v14, %v3749_v7  ;;  %v1419_v14 = vadd.f32 %v3785_v5, %v1370_v61  ;;  %v1827_v12 = vadd.f32 %v3832_v9, %v1778_v50  ;;  %v1835_v44 = vadd.f32 %v3838_v13, %v1786_v36 }
 0x161   : > { %v1362_v32 = vadd.f32 %v3751_v57, %v3723_v4  ;;  %v1789_v42 = vadd.f32 %v3813_v17, %v1419_v14  ;;  %v1884_v27 = vadd.f32 %v3866_v41, %v1835_v44 }
 0x163   : > { %v1411_v7 = vadd.f32 %v3779_v2, %v1362_v32 }
 0x165   : > { %v1781_v10 = vadd.f32 %v3807_v18, %v1411_v7 }
 0x167   : > { %v1830_v31 = vadd.f32 %v3835_v25, %v1781_v10 }
 0x16f   : > { %v3886_v59 = vpop.f32.mrf.mxu0 }
 0x170   : > { %v3914_v56 = vpop.f32.mrf.mxu1 }
 0x171   : > { %v3887_v46 = vpop.f32.mrf.mxu0 }
 0x172   : > { %v3915_v19 = vpop.f32.mrf.mxu1  ;;  %v3888_v37 = vadd.f32 %v3887_v46, %v3886_v59  ;;  %v1838_v46 = vadd.f32 %v3841_v8, %v1789_v42 }
 0x173   : > { %v3889_v48 = vpop.f32.mrf.mxu0  ;;  %v3916_v23 = vadd.f32 %v3915_v19, %v3914_v56  ;;  %v1876_v56 = vadd.f32 %v3860_v39, %v1827_v12  ;;  %v5443_v19 = vld [vmem:[#allocation18_spill] sm:$0xff] }
 0x174   : > { %v3917_v22 = vpop.f32.mrf.mxu1 }
 0x175   : > { %v3890_v55 = vpop.f32.mrf.mxu0  ;;  %v2334_v57 = vadd.f32 %v3916_v23, %v3888_v37 }
 0x176   : > { %v3918_v62 = vpop.f32.mrf.mxu1  ;;  %v3891_v58 = vadd.f32 %v3890_v55, %v3889_v48  ;;  %v5446_v55 = vld [vmem:[#allocation17_spill] sm:$0xff] }
 0x177   : > { %v3892_v40 = vpop.f32.mrf.mxu0  ;;  %v3919_v54 = vadd.f32 %v3918_v62, %v3917_v22  ;;  %v5445_v22 = vld [vmem:[#allocation16_spill] sm:$0xff] }
 0x178   : > { %v3920_v53 = vpop.f32.mrf.mxu1  ;;  %v3863_v62 = vadd.f32 %v5446_v55, %v5445_v22 }
 0x179   : > { %v3893_v30 = vpop.f32.mrf.mxu0 }
 0x17a   : > { %v3921_v51 = vpop.f32.mrf.mxu1  ;;  %v3894_v63 = vadd.f32 %v3893_v30, %v3892_v40  ;;  %v5444_v40 = vld [vmem:[#allocation19_spill] sm:$0xff]  ;;  %v1879_v52 = vadd.f32 %v3863_v62, %v1830_v31 }
 0x17b   : > { %v3895_v15 = vpop.f32.mrf.mxu0  ;;  %v3922_v6 = vadd.f32 %v3921_v51, %v3920_v53  ;;  %v3869_v47 = vadd.f32 %v5444_v40, %v5443_v19  ;;  %v2337_v53 = vadd.f32 %v3919_v54, %v3891_v58 }
 0x17c   : > { %v3923_v21 = vpop.f32.mrf.mxu1 }
 0x17d   : > { %v3896_v38 = vpop.f32.mrf.mxu0  ;;  %v2342_v59 = vadd.f32 %v3922_v6, %v3894_v63 }
 0x17e   : > { %v3924_v28 = vpop.f32.mrf.mxu1  ;;  %v3897_v49 = vadd.f32 %v3896_v38, %v3895_v15  ;;  %v1887_v15 = vadd.f32 %v3869_v47, %v1838_v46 }
 0x17f   : > { %v3925_v4 = vadd.f32 %v3924_v28, %v3923_v21 }
 0x181   : > { %v2345_v1 = vadd.f32 %v3925_v4, %v3897_v49 }
 0x18f   : > { %v3942_v26 = vpop.f32.mrf.mxu0 }
 0x190   : > { %v3948_v43 = vpop.f32.mrf.mxu1 }
 0x191   : > { %v3943_v11 = vpop.f32.mrf.mxu0 }
 0x192   : > { %v3949_v24 = vpop.f32.mrf.mxu1  ;;  %v3944_v30 = vadd.f32 %v3943_v11, %v3942_v26  ;;  %v2416_v11 = vld [vmem:[#allocation4] sm:$0x1] }
 0x193   : > { %v3950_v51 = vadd.f32 %v3949_v24, %v3948_v43  ;;  %v3945_v35 = vpop.f32.mrf.mxu0 }
 0x194   : > { %v3951_v33 = vpop.f32.mrf.mxu1  ;;  %v2383_v29 = vadd.f32 %v3944_v30, %v2334_v57 }
 0x195   : > { %v2391_v48 = vadd.f32 %v3950_v51, %v2342_v59  ;;  %v3946_v34 = vpop.f32.mrf.mxu0  ;;  %v2428_v59 = vld [vmem:[#allocation5] sm:$0x1] }
 0x196   : > { %v3952_v2 = vpop.f32.mrf.mxu1  ;;  %v2397_v5 = vadd.f32 %v2383_v29, %v1876_v56  ;;  %v3947_v20 = vadd.f32 %v3946_v34, %v3945_v35 }
 0x197   : > { %v2399_v0 = vadd.f32 %v2391_v48, %v1884_v27  ;;  %v3953_v45 = vadd.f32 %v3952_v2, %v3951_v33 }
 0x198   : > { %v2408_v21 = vadd.f32 %v3575_v3, %v2397_v5  ;;  %v2386_v32 = vadd.f32 %v3947_v20, %v2337_v53 }
 0x199   : > { %v2394_v61 = vadd.f32 %v3953_v45, %v2345_v1  ;;  %v2410_v9 = vadd.f32 %v3575_v3, %v2399_v0 }
 0x19a   : > { %v2398_v13 = vadd.f32 %v2386_v32, %v1879_v52  ;;  %v2412_v14 = vmax.f32 %v2408_v21, 0.0 }
 0x19b   : > { %v2400_v7 = vadd.f32 %v2394_v61, %v1887_v15  ;;  %v2414_v16 = vmax.f32 %v2410_v9, 0.0 }
 0x19c   : > { %v2409_v17 = vadd.f32 %v3575_v3, %v2398_v13  ;;  %v2429_v36 = vmul.f32 %v2412_v14, %v2412_v14 }
 0x19d   : > { %v2411_v50 = vadd.f32 %v3575_v3, %v2400_v7  ;;  %v2431_v23 = vmul.f32 %v2414_v16, %v2414_v16 }
 0x19e   : > { %v2413_v60 = vmax.f32 %v2409_v17, 0.0 }
 0x19f   : > { %v2415_v18 = vmax.f32 %v2411_v50, 0.0 }
 0x1a0   : > { %v2417_v39 = vadd.f32 %v2413_v60, %v2412_v14  ;;  %v2430_v38 = vmul.f32 %v2413_v60, %v2413_v60  ;;  %v3628_v28 = vpack.c.bf16 %v2413_v60, %v2412_v14 }
 0x1a1   : > { %v3633_v37 = vpack.c.bf16 %v2415_v18, %v2414_v16  ;;  %v2432_v25 = vmul.f32 %v2415_v18, %v2415_v18 }
 0x1a2   : > { %v2433_v63 = vadd.f32 %v2430_v38, %v2429_v36  ;;  %3629 = vst [vmem:[%s2462_s30] sm:$0xff] %v3628_v28   ;;  %v2418_v6 = vadd.f32 %v2417_v39, %v2414_v16 }
 0x1a3   : > { %3635 = vst [vmem:[%s2462_s30 + $0x8] sm:$0xff] %v3633_v37  }
 0x1a4   : > { %v2419_v12 = vadd.f32 %v2418_v6, %v2415_v18  ;;  %v2434_v44 = vadd.f32 %v2433_v63, %v2431_v23 }
 0x1a6   : > { %v2420_v41 = vrot.slane %v2419_v12, 4  ;;  %v2435_v26 = vadd.f32 %v2434_v44, %v2432_v25 }
 0x1a8   : > { %v2421_v43 = vadd.f32 %v2420_v41, %v2419_v12  ;;  %v2436_v10 = vrot.slane %v2435_v26, 4 }
 0x1aa   : > { %v2422_v42 = vrot.slane %v2421_v43, 2  ;;  %v2437_v8 = vadd.f32 %v2436_v10, %v2435_v26 }
 0x1ac   : > { %v2423_v58 = vadd.f32 %v2422_v42, %v2421_v43  ;;  %v2438_v54 = vrot.slane %v2437_v8, 2 }
 0x1ae   : > { %v2424_v49 = vrot.slane %v2423_v58, 1  ;;  %v2439_v4 = vadd.f32 %v2438_v54, %v2437_v8 }
 0x1b0   : > { %v2425_v24 = vadd.f32 %v2424_v49, %v2423_v58  ;;  %v2440_v57 = vrot.slane %v2439_v4, 1 }
 0x1b2   : > { %v2426_v30 = vadd.f32 %v2425_v24, %v2416_v11  ;;  %v2441_v51 = vadd.f32 %v2440_v57, %v2439_v4  ;;  %2470 = sbr.rel (%p3582_p13) target bundleno = 1275 (0x4fb), region = 56 }
 0x1b4   : > { %2427 = vst [vmem:[#allocation4] sm:$0x1] %v2426_v30  ;;  %v2442_v56 = vadd.f32 %v2441_v51, %v2428_v59 }
 0x1b6   : > { %2443 = vst [vmem:[#allocation5] sm:$0x1] %v2442_v56 }
 0x1b7   : > { %v5127_v31 = vld [vmem:[%s4572_s24 + $0x78] sm:$0xff]  ;;  %v5130_v27 = vld [vmem:[%s4572_s24 + $0x70] sm:$0xff]  ;;  %v5135_v35 = vld [vmem:[%s4572_s24 + $0x68] sm:$0xff]  ;;  %v5448_v21 = vlaneseq  ;;  %v4455_v41 = vmov 0.0  }
 0x1b8   : > { %4023 = vmatprep.subr.mxu0 %v5127_v31  ;;  %v5140_v33 = vld [vmem:[%s4572_s24 + $0x60] sm:$0xff]  ;;  %v5145_v40 = vld [vmem:[%s4572_s24 + $0x58] sm:$0xff]  ;;  %v5152_v48 = vld [vmem:[%s4572_s24 + $0x50] sm:$0xff]  ;;  %4079 = vmatprep.subr.mxu1 %v4455_v41 }
 0x1b9   : > { %4024 = vmatpush3.msra.mxu0 %v5127_v31  ;;  %v5159_v55 = vld [vmem:[%s4572_s24 + $0x48] sm:$0xff]  ;;  %v5164_v53 = vld [vmem:[%s4572_s24 + $0x40] sm:$0xff]  ;;  %v5169_v3 = vld [vmem:[%s4572_s24 + $0x38] sm:$0xff]  ;;  %v5208_v32 = vand.u32 127, %v5448_v21  ;;  %4080 = vmatpush3.msra.mxu1 %v5127_v31 }
 0x1ba   : > { %4025 = vmatprep.subr.mxu0 %v5130_v27  ;;  %v5174_v2 = vld [vmem:[%s4572_s24 + $0x30] sm:$0xff]  ;;  %v5179_v5 = vld [vmem:[%s4572_s24 + $0x28] sm:$0xff]  ;;  %v5184_v0 = vld [vmem:[%s4572_s24 + $0x20] sm:$0xff]  ;;  %4081 = vmatprep.subr.mxu1 %v4455_v41 }
 0x1bb   : > { %4026 = vmatpush3.msra.mxu0 %v5130_v27  ;;  %v2471_v46 = vld [vmem:[#allocation4] sm:$0x1]  ;;  %v5189_v20 = vld [vmem:[%s4572_s24 + $0x18] sm:$0xff]  ;;  %v5194_v45 = vld [vmem:[%s4572_s24 + $0x10] sm:$0xff]  ;;  %4082 = vmatpush3.msra.mxu1 %v5130_v27 }
 0x1bc   : > { %4027 = vmatprep.subr.mxu0 %v5135_v35  ;;  %v5147_v47 = vmul.f32 0.015625, %v2471_v46  ;;  %v5199_v52 = vld [vmem:[%s4572_s24 + $0x8] sm:$0xff]  ;;  %v2478_v15 = vld [vmem:[%s375_s27] sm:$0x1]  ;;  %v5452_v18 = vld [vmem:[#allocation12_spill] sm:$0xff]  ;;  %4083 = vmatprep.subr.mxu1 %v4455_v41 }
 0x1bd   : > { %v2473_v19 = vld [vmem:[#allocation5] sm:$0x1]  ;;  %4028 = vmatpush3.msra.mxu0 %v5135_v35  ;;  %v5449_v9 = vld [vmem:[#allocation10_spill] sm:$0xff]  ;;  %v5450_v50 = vld [vmem:[#allocation11_spill] sm:$0xff]  ;;  %vm2518_vm3 = vcmp.eq.s32.totalorder %v5452_v18, %v5208_v32  ;;  %4084 = vmatpush3.msra.mxu1 %v5135_v35 }
 0x1be   : > { %v2474_v29 = vmul.f32 0.015625, %v2473_v19  ;;  %4029 = vmatprep.subr.mxu0 %v5140_v33  ;;  %v2475_v22 = vmul.f32 %v5147_v47, %v5147_v47  ;;  %v5212_v61 = vld [vmem:[%s4572_s24] sm:$0xff]  ;;  %v5215_v13 = vsub.s32 0, %v5449_v9  ;;  %vm2515_vm0 = vcmp.eq.s32.totalorder %v5449_v9, %v5208_v32  ;;  %4085 = vmatprep.subr.mxu1 %v4455_v41  ;;  %v4361_v58 = vld [vmem:[#allocation2 + $0x10] sm:$0xff]  }
 0x1bf   : > { %4030 = vmatpush3.msra.mxu0 %v5140_v33  ;;  %vm2516_vm1 = vcmp.eq.s32.totalorder %v5450_v50, %v5208_v32  ;;  %v5451_v16 = vld [vmem:[#allocation13_spill] sm:$0xff]  ;;  %v2501_v60 = vadd.s32 32, %v5449_v9  ;;  %v2502_v36 = vadd.s32 40, %v5449_v9  ;;  %v2503_v39 = vadd.s32 48, %v5449_v9  ;;  %4086 = vmatpush3.msra.mxu1 %v5140_v33 }
 0x1c0   : > { %4031 = vmatprep.subr.mxu0 %v5145_v40  ;;  %v2476_v62 = vsub.f32 %v2474_v29, %v2475_v22  ;;  %vm2517_vm2 = vcmp.eq.s32.totalorder %v5451_v16, %v5208_v32  ;;  %v2504_v38 = vadd.s32 56, %v5449_v9  ;;  %v2505_v28 = vadd.s32 64, %v5449_v9  ;;  %4087 = vmatprep.subr.mxu1 %v4455_v41  ;;  %v2482_v43 = vld [vmem:[%s378_s18] sm:$0x1] }
 0x1c1   : > { %4032 = vmatpush3.msra.mxu0 %v5145_v40  ;;  %vm2519_vm4 = vcmp.eq.s32.totalorder %v2501_v60, %v5208_v32  ;;  %vm2520_vm5 = vcmp.eq.s32.totalorder %v2502_v36, %v5208_v32  ;;  %vm2521_vm6 = vcmp.eq.s32.totalorder %v2503_v39, %v5208_v32  ;;  %v2506_v37 = vadd.s32 72, %v5449_v9  ;;  %4088 = vmatpush3.msra.mxu1 %v5145_v40  ;;  %v4360_v8 = vld [vmem:[#allocation2] sm:$0xff]  }
 0x1c2   : > { %4033 = vmatprep.subr.mxu0 %v5152_v48  ;;  %v2477_v1 = vmax.f32 %v2476_v62, 0.0  ;;  %vm2522_vm7 = vcmp.eq.s32.totalorder %v2504_v38, %v5208_v32  ;;  %vm2523_vm8 = vcmp.eq.s32.totalorder %v2505_v28, %v5208_v32  ;;  %v2507_v23 = vadd.s32 80, %v5449_v9  ;;  %4089 = vmatprep.subr.mxu1 %v4455_v41 }
 0x1c3   : > { %4034 = vmatpush3.msra.mxu0 %v5152_v48  ;;  %vm2524_vm9 = vcmp.eq.s32.totalorder %v2506_v37, %v5208_v32  ;;  %v2508_v63 = vadd.s32 88, %v5449_v9  ;;  %v2509_v6 = vadd.s32 96, %v5449_v9  ;;  %v2510_v12 = vadd.s32 104, %v5449_v9  ;;  %4090 = vmatpush3.msra.mxu1 %v5152_v48 }
 0x1c4   : > { %4035 = vmatprep.subr.mxu0 %v5159_v55  ;;  %v2479_v34 = vadd.f32 1e-05, %v2477_v1  ;;  %vm2525_vm10 = vcmp.eq.s32.totalorder %v2507_v23, %v5208_v32  ;;  %v2511_v25 = vadd.s32 112, %v5449_v9  ;;  %v2512_v44 = vadd.s32 120, %v5449_v9  ;;  %4091 = vmatprep.subr.mxu1 %v4455_v41  ;;  %v4362_v1 = vld [vmem:[#allocation2 + $0x8] sm:$0xff]  }
 0x1c5   : > { %4036 = vmatpush3.msra.mxu0 %v5159_v55  ;;  %vm2526_vm11 = vcmp.eq.s32.totalorder %v2508_v63, %v5208_v32  ;;  %vm2527_vm12 = vcmp.eq.s32.totalorder %v2509_v6, %v5208_v32  ;;  %vm2528_vm13 = vcmp.eq.s32.totalorder %v2510_v12, %v5208_v32  ;;  %4092 = vmatpush3.msra.mxu1 %v5159_v55 }
 0x1c6   : > { %4037 = vmatprep.subr.mxu0 %v5164_v53  ;;  %4364 = vrsqrt.f32 %v2479_v34  ;;  %vm2529_vm14 = vcmp.eq.s32.totalorder %v2511_v25, %v5208_v32  ;;  %vm2530_vm15 = vcmp.eq.s32.totalorder %v2512_v44, %v5208_v32  ;;  %4093 = vmatprep.subr.mxu1 %v4455_v41 }
 0x1c7   : > { %4038 = vmatpush3.msra.mxu0 %v5164_v53  ;;  %4094 = vmatpush3.msra.mxu1 %v5164_v53 }
 0x1c8   : > { %4039 = vmatprep.subr.mxu0 %v5169_v3  ;;  %4095 = vmatprep.subr.mxu1 %v4455_v41 }
 0x1c9   : > { %4040 = vmatpush3.msra.mxu0 %v5169_v3  ;;  %4096 = vmatpush3.msra.mxu1 %v5169_v3  ;;  %v4363_v3 = vld [vmem:[#allocation2 + $0x18] sm:$0xff]  }
 0x1ca   : > { %4041 = vmatprep.subr.mxu0 %v5174_v2  ;;  %4097 = vmatprep.subr.mxu1 %v4455_v41 }
 0x1cb   : > { %4042 = vmatpush3.msra.mxu0 %v5174_v2  ;;  %4098 = vmatpush3.msra.mxu1 %v5174_v2 }
 0x1cc   : > { %4043 = vmatprep.subr.mxu0 %v5179_v5  ;;  %4099 = vmatprep.subr.mxu1 %v4455_v41 }
 0x1cd   : > { %4044 = vmatpush3.msra.mxu0 %v5179_v5  ;;  %4100 = vmatpush3.msra.mxu1 %v5179_v5  ;;  %v2782_v5 = vld [vmem:[%s386_s15] sm:$0x1]  ;;  %s2893_s15 = sld [smem:[#allocation7]] }
 0x1ce   : > { %4045 = vmatprep.subr.mxu0 %v5184_v0  ;;  %4101 = vmatprep.subr.mxu1 %v4455_v41 }
 0x1cf   : > { %4046 = vmatpush3.msra.mxu0 %v5184_v0  ;;  %4102 = vmatpush3.msra.mxu1 %v5184_v0 }
 0x1d0   : > { %4047 = vmatprep.subr.mxu0 %v5189_v20  ;;  %4103 = vmatprep.subr.mxu1 %v4455_v41 }
 0x1d1   : > { %4048 = vmatpush3.msra.mxu0 %v5189_v20  ;;  %4104 = vmatpush3.msra.mxu1 %v5189_v20 }
 0x1d2   : > { %4049 = vmatprep.subr.mxu0 %v5194_v45  ;;  %4105 = vmatprep.subr.mxu1 %v4455_v41 }
 0x1d3   : > { %4050 = vmatpush3.msra.mxu0 %v5194_v45  ;;  %v4365_v7 = vpop.eup %4364  ;;  %4106 = vmatpush3.msra.mxu1 %v5194_v45 }
 0x1d4   : > { %4051 = vmatprep.subr.mxu0 %v5199_v52  ;;  %v5219_v14 = vmul.f32 %v4365_v7, %v2478_v15  ;;  %4107 = vmatprep.subr.mxu1 %v4455_v41 }
 0x1d5   : > { %4052 = vmatpush3.msra.mxu0 %v5199_v52  ;;  %4108 = vmatpush3.msra.mxu1 %v5199_v52 }
 0x1d6   : > { %4053 = vmatprep.subr.mxu0 %v5212_v61  ;;  %v2535_v17 = vrot.slane %v5219_v14, %v5215_v13  ;;  %v2483_v26 = vmul.f32 %v5219_v14, %v5147_v47  ;;  %4109 = vmatprep.subr.mxu1 %v4455_v41 }
 0x1d7   : > { %4054 = vmatpush3.msra.mxu0 %v5212_v61  ;;  %4110 = vmatpush3.msra.mxu1 %v5212_v61 }
 0x1d8   : > { %4055 = vmatprep.mubr.msk.f32.mxu0 %vm2515_vm0, %v2535_v17  ;;  %v2484_v10 = vsub.f32 %v2482_v43, %v2483_v26  ;;  %vm4456_vm0 = vmmov 0  }
 0x1d9   : > { %4056 = vmatmul.mubr.msk.f32.vlgmr.msra.gmra.mxu0 %vm2516_vm1, %v2535_v17  ;;  %4111 = vmatprep.mubr.msk.f32.mxu1 %vm4456_vm0, %v4455_v41 }
 0x1da   : > { %4058 = vmatprep.mubr.msk.f32.mxu0 %vm2517_vm2, %v2535_v17  ;;  %v2710_v42 = vrot.slane %v2484_v10, %v5215_v13 }
 0x1dc   : > { %4112 = vmatmul.mubr.f32.vlgmr.msra.gmra.mxu1 %v2710_v42 }
 0x1dd   : > { %4059 = vmatmul.mubr.msk.f32.gmra.mxu0 %vm2518_vm3, %v2535_v17  ;;  %4150 = vmatprep.mubr.bf16.mxu1 %v4361_v58 }
 0x1de   : > { %4061 = vmatprep.mubr.msk.f32.mxu0 %vm2519_vm4, %v2535_v17 }
 0x1e1   : > { %4062 = vmatmul.mubr.msk.f32.gmra.mxu0 %vm2520_vm5, %v2535_v17 }
 0x1e2   : > { %4064 = vmatprep.mubr.msk.f32.mxu0 %vm2521_vm6, %v2535_v17 }
 0x1e5   : > { %4065 = vmatmul.mubr.msk.f32.gmra.mxu0 %vm2522_vm7, %v2535_v17 }
 0x1e6   : > { %4067 = vmatprep.mubr.msk.f32.mxu0 %vm2523_vm8, %v2535_v17 }
 0x1e9   : > { %4068 = vmatmul.mubr.msk.f32.gmra.mxu0 %vm2524_vm9, %v2535_v17 }
 0x1ea   : > { %4070 = vmatprep.mubr.msk.f32.mxu0 %vm2525_vm10, %v2535_v17 }
 0x1ed   : > { %4071 = vmatmul.mubr.msk.f32.gmra.mxu0 %vm2526_vm11, %v2535_v17 }
 0x1ee   : > { %4073 = vmatprep.mubr.msk.f32.mxu0 %vm2527_vm12, %v2535_v17 }
 0x1f1   : > { %4074 = vmatmul.mubr.msk.f32.gmra.mxu0 %vm2528_vm13, %v2535_v17 }
 0x1f2   : > { %4076 = vmatprep.mubr.msk.f32.mxu0 %vm2529_vm14, %v2535_v17 }
 0x1f5   : > { %4077 = vmatmul.mubr.msk.f32.gmra.mxu0 %vm2530_vm15, %v2535_v17 }
 0x1f6   : > { %4130 = vmatprep.mubr.bf16.mxu0 %v4360_v8 }
 0x299   : > { %v4057_v54 = vpop.f32.mrf.mxu0 }
 0x29b   : > { %v2619_v49 = vpop.f32.mrf.mxu0 }
 0x29c   : > { %v2698_v53 = vpack.c.bf16 %v4057_v54, %v2619_v49  ;;  %v2778_v34 = vpop.f32.mrf.mxu1 }
 0x29d   : > { %v4060_v4 = vpop.f32.mrf.mxu0  ;;  %v2783_v0 = vadd.f32 %v2782_v5, %v2778_v34 }
 0x29e   : > { %v4113_v2 = vpop.f32.mrf.mxu1 }
 0x29f   : > { %v2629_v11 = vpop.f32.mrf.mxu0  ;;  %v2791_v20 = vrot.slane %v2783_v0, %v5215_v13 }
 0x2a0   : > { %v2699_v62 = vpack.c.bf16 %v4060_v4, %v2629_v11 }
 0x2a1   : > { %v4063_v24 = vpop.f32.mrf.mxu0 }
 0x2a3   : > { %v2639_v57 = vpop.f32.mrf.mxu0 }
 0x2a4   : > { %v2700_v55 = vpack.c.bf16 %v4063_v24, %v2639_v57 }
 0x2a5   : > { %v4066_v59 = vpop.f32.mrf.mxu0 }
 0x2a7   : > { %v2649_v30 = vpop.f32.mrf.mxu0 }
 0x2a8   : > { %v2701_v22 = vpack.c.bf16 %v4066_v59, %v2649_v30 }
 0x2a9   : > { %v4069_v51 = vpop.f32.mrf.mxu0 }
 0x2ab   : > { %v2659_v56 = vpop.f32.mrf.mxu0 }
 0x2ac   : > { %v2702_v48 = vpack.c.bf16 %v4069_v51, %v2659_v56 }
 0x2ad   : > { %v4072_v31 = vpop.f32.mrf.mxu0 }
 0x2af   : > { %v2669_v27 = vpop.f32.mrf.mxu0 }
 0x2b0   : > { %v2703_v29 = vpack.c.bf16 %v4072_v31, %v2669_v27 }
 0x2b1   : > { %v4075_v35 = vpop.f32.mrf.mxu0 }
 0x2b3   : > { %v2679_v33 = vpop.f32.mrf.mxu0 }
 0x2b4   : > { %v2704_v47 = vpack.c.bf16 %v4075_v35, %v2679_v33 }
 0x2b5   : > { %v4078_v46 = vpop.f32.mrf.mxu0 }
 0x2b7   : > { %v2689_v19 = vpop.f32.mrf.mxu0 }
 0x2b8   : > { %v2705_v40 = vpack.c.bf16 %v4078_v46, %v2689_v19  ;;  %v2894_v19 = vstv %s2893_s15 }
 0x2b9   : > { %vm5344_vm1 = vcmp.eq.s32.totalorder %v5208_v32, %v2894_v19 }
 0x2ba   : > { %4114 = vmatprep.subr.bf16.mxu0 %v2705_v40  ;;  %4134 = vmatprep.subr.bf16.mxu1 %v2705_v40 }
 0x2bb   : > { %4115 = vmatpush3.bf16.msra.mxu0 %v2705_v40  ;;  %4135 = vmatpush3.bf16.msra.mxu1 %v2705_v40 }
 0x2bc   : > { %4116 = vmatprep.subr.bf16.mxu0 %v2704_v47  ;;  %4136 = vmatprep.subr.bf16.mxu1 %v2704_v47 }
 0x2bf   : > { %4117 = vmatpush3.bf16.msra.mxu0 %v2704_v47  ;;  %4137 = vmatpush3.bf16.msra.mxu1 %v2704_v47 }
 0x2c0   : > { %4118 = vmatprep.subr.bf16.mxu0 %v2703_v29  ;;  %4138 = vmatprep.subr.bf16.mxu1 %v2703_v29 }
 0x2c3   : > { %4119 = vmatpush3.bf16.msra.mxu0 %v2703_v29  ;;  %4139 = vmatpush3.bf16.msra.mxu1 %v2703_v29 }
 0x2c4   : > { %4120 = vmatprep.subr.bf16.mxu0 %v2702_v48  ;;  %4140 = vmatprep.subr.bf16.mxu1 %v2702_v48 }
 0x2c7   : > { %4121 = vmatpush3.bf16.msra.mxu0 %v2702_v48  ;;  %4141 = vmatpush3.bf16.msra.mxu1 %v2702_v48  ;;  %v3029_v48 = vstv %s3603_s17 }
 0x2c8   : > { %4122 = vmatprep.subr.bf16.mxu0 %v2701_v22  ;;  %4142 = vmatprep.subr.bf16.mxu1 %v2701_v22  ;;  %vm3030_vm2 = vcmp.eq.s32.totalorder %v5208_v32, %v3029_v48 }
 0x2cb   : > { %4123 = vmatpush3.bf16.msra.mxu0 %v2701_v22  ;;  %4143 = vmatpush3.bf16.msra.mxu1 %v2701_v22 }
 0x2cc   : > { %4124 = vmatprep.subr.bf16.mxu0 %v2700_v55  ;;  %4144 = vmatprep.subr.bf16.mxu1 %v2700_v55 }
 0x2cf   : > { %4125 = vmatpush3.bf16.msra.mxu0 %v2700_v55  ;;  %4145 = vmatpush3.bf16.msra.mxu1 %v2700_v55 }
 0x2d0   : > { %4126 = vmatprep.subr.bf16.mxu0 %v2699_v62  ;;  %4146 = vmatprep.subr.bf16.mxu1 %v2699_v62 }
 0x2d3   : > { %4127 = vmatpush3.bf16.msra.mxu0 %v2699_v62  ;;  %4147 = vmatpush3.bf16.msra.mxu1 %v2699_v62 }
 0x2d4   : > { %4128 = vmatprep.subr.bf16.mxu0 %v2698_v53  ;;  %4148 = vmatprep.subr.bf16.mxu1 %v2698_v53 }
 0x2d7   : > { %4129 = vmatpush3.bf16.msra.mxu0 %v2698_v53  ;;  %4149 = vmatpush3.bf16.msra.mxu1 %v2698_v53 }
 0x2da   : > { %4131 = vmatmul.mubr.bf16.vlgmr.msra.gmra.mxu0 %v4362_v1  ;;  %4151 = vmatmul.mubr.bf16.vlgmr.msra.gmra.mxu1 %v4363_v3 }
 0x39a   : > { %v4132_v45 = vpop.f32.mrf.mxu0  ;;  %v4152_v52 = vpop.f32.mrf.mxu1 }
 0x39b   : > { %v5287_v15 = vadd.f32 %v4132_v45, %v2791_v20  ;;  %v5289_v21 = vadd.f32 %v4152_v52, %v2791_v20 }
 0x39c   : > { %v2838_v61 = vpop.f32.mrf.mxu0  ;;  %v2973_v9 = vpop.f32.mrf.mxu1 }
 0x39d   : > { %2857 = vmax.xlane.f32.xlu0 %v5287_v15  ;;  %2992 = vmax.xlane.f32.xlu1 %v5289_v21  ;;  %v5293_v17 = vadd.f32 %v2838_v61, %v2791_v20  ;;  %v5295_v50 = vadd.f32 %v2973_v9, %v2791_v20  ;;  %v2898_v53 = vsel %vm5344_vm1, %v5287_v15, 0.0  ;;  %v3033_v1 = vsel %vm3030_vm2, %v5289_v21, 0.0 }
 0x39e   : > { %v4133_v7 = vpop.f32.mrf.mxu0  ;;  %v4153_v14 = vpop.f32.mrf.mxu1 }
 0x39f   : > { %v5305_v36 = vadd.f32 %v4133_v7, %v2791_v20  ;;  %v5307_v39 = vadd.f32 %v4153_v14, %v2791_v20  ;;  %v2896_v29 = vsel %vm5344_vm1, %v5293_v17, 0.0  ;;  %v3031_v55 = vsel %vm3030_vm2, %v5295_v50, 0.0 }
 0x3a0   : > { %v2841_v16 = vpop.f32.mrf.mxu0  ;;  %v2976_v13 = vpop.f32.mrf.mxu1 }
 0x3a1   : > { %2853 = vmax.xlane.f32.xlu0 %v5293_v17  ;;  %2988 = vmax.xlane.f32.xlu1 %v5295_v50  ;;  %v5299_v60 = vadd.f32 %v2841_v16, %v2791_v20  ;;  %v5301_v18 = vadd.f32 %v2976_v13, %v2791_v20  ;;  %v2899_v32 = vsel %vm5344_vm1, %v5305_v36, 0.0  ;;  %v3034_v3 = vsel %vm3030_vm2, %v5307_v39, 0.0 }
 0x3a3   : > { %v2897_v22 = vsel %vm5344_vm1, %v5299_v60, 0.0  ;;  %v3032_v62 = vsel %vm3030_vm2, %v5301_v18, 0.0 }
 0x3a5   : > { %2855 = vmax.xlane.f32.xlu0 %v5299_v60  ;;  %2990 = vmax.xlane.f32.xlu1 %v5301_v18 }
 0x3a9   : > { %2859 = vmax.xlane.f32.xlu0 %v5305_v36  ;;  %2994 = vmax.xlane.f32.xlu1 %v5307_v39 }
 0x426   : > { %v5311_v38 = vpop.xlane.xlu0 %2857  ;;  %v5313_v28 = vpop.xlane.xlu1 %2992 }
 0x427   : > { %v2863_v37 = vsub.f32 %v5287_v15, %v5311_v38  ;;  %v2998_v23 = vsub.f32 %v5289_v21, %v5313_v28 }
 0x429   : > { %v2869_v63 = vmul.f32 1.442695, %v2863_v37  ;;  %v3004_v6 = vmul.f32 1.442695, %v2998_v23 }
 0x42a   : > { %v5319_v12 = vpop.xlane.xlu0 %2853  ;;  %v5321_v25 = vpop.xlane.xlu1 %2988 }
 0x42b   : > { %4366 = vpow2.f32 %v2869_v63  ;;  %v2861_v44 = vsub.f32 %v5293_v17, %v5319_v12  ;;  %v2996_v41 = vsub.f32 %v5295_v50, %v5321_v25 }
 0x42c   : > { %4368 = vpow2.f32 %v3004_v6 }
 0x42d   : > { %v2865_v26 = vmul.f32 1.442695, %v2861_v44  ;;  %v3000_v43 = vmul.f32 1.442695, %v2996_v41 }
 0x42e   : > { %v5327_v10 = vpop.xlane.xlu0 %2855  ;;  %v5329_v42 = vpop.xlane.xlu1 %2990 }
 0x42f   : > { %4370 = vpow2.f32 %v2865_v26  ;;  %v2862_v8 = vsub.f32 %v5299_v60, %v5327_v10  ;;  %v2997_v58 = vsub.f32 %v5301_v18, %v5329_v42 }
 0x430   : > { %4372 = vpow2.f32 %v3000_v43 }
 0x431   : > { %v2867_v54 = vmul.f32 1.442695, %v2862_v8  ;;  %v3002_v49 = vmul.f32 1.442695, %v2997_v58 }
 0x432   : > { %v5335_v4 = vpop.xlane.xlu0 %2859  ;;  %v5337_v11 = vpop.xlane.xlu1 %2994 }
 0x433   : > { %4374 = vpow2.f32 %v2867_v54  ;;  %v2864_v24 = vsub.f32 %v5305_v36, %v5335_v4  ;;  %v2999_v57 = vsub.f32 %v5307_v39, %v5337_v11 }
 0x434   : > { %4376 = vpow2.f32 %v3002_v49 }
 0x435   : > { %v2871_v59 = vmul.f32 1.442695, %v2864_v24  ;;  %v3006_v30 = vmul.f32 1.442695, %v2999_v57 }
 0x437   : > { %4378 = vpow2.f32 %v2871_v59 }
 0x438   : > { %v4367_v51 = vpop.eup %4366  ;;  %4380 = vpow2.f32 %v3006_v30 }
 0x439   : > { %v4369_v56 = vpop.eup %4368  ;;  %2877 = vadd.xlane.f32.xlu0 %v4367_v51 }
 0x43a   : > { %3012 = vadd.xlane.f32.xlu1 %v4369_v56 }
 0x43c   : > { %v4371_v31 = vpop.eup %4370 }
 0x43d   : > { %2873 = vadd.xlane.f32.xlu0 %v4371_v31  ;;  %v4373_v27 = vpop.eup %4372 }
 0x440   : > { %v4375_v35 = vpop.eup %4374 }
 0x441   : > { %2875 = vadd.xlane.f32.xlu1 %v4375_v35  ;;  %3008 = vadd.xlane.f32.xlu0 %v4373_v27  ;;  %v4377_v33 = vpop.eup %4376 }
 0x444   : > { %v4379_v46 = vpop.eup %4378 }
 0x445   : > { %2879 = vadd.xlane.f32.xlu0 %v4379_v46  ;;  %3010 = vadd.xlane.f32.xlu1 %v4377_v33  ;;  %v4381_v47 = vpop.eup %4380 }
 0x449   : > { %2900 = vadd.xlane.f32.xlu0 %v2896_v29  ;;  %3014 = vadd.xlane.f32.xlu1 %v4381_v47 }
 0x44d   : > { %2902 = vadd.xlane.f32.xlu1 %v2897_v22  ;;  %3035 = vadd.xlane.f32.xlu0 %v3031_v55 }
 0x451   : > { %3037 = vadd.xlane.f32.xlu1 %v3032_v62  ;;  %2904 = vadd.xlane.f32.xlu0 %v2898_v53 }
 0x455   : > { %3039 = vadd.xlane.f32.xlu1 %v3033_v1  ;;  %2906 = vadd.xlane.f32.xlu0 %v2899_v32 }
 0x459   : > { %3041 = vadd.xlane.f32.xlu1 %v3034_v3 }
 0x4c2   : > { %v2878_v34 = vpop.xlane.xlu0 %2877 }
 0x4c3   : > { %v3013_v2 = vpop.xlane.xlu1 %3012 }
 0x4c6   : > { %v2874_v5 = vpop.xlane.xlu0 %2873 }
 0x4c7   : > { %4382 = vlog2.f32 %v2874_v5 }
 0x4c8   : > { %4384 = vlog2.f32 %v2878_v34 }
 0x4ca   : > { %v3009_v0 = vpop.xlane.xlu0 %3008  ;;  %v2876_v20 = vpop.xlane.xlu1 %2875 }
 0x4cb   : > { %4386 = vlog2.f32 %v3009_v0 }
 0x4cc   : > { %4388 = vlog2.f32 %v2876_v20 }
 0x4cd   : > { %4390 = vlog2.f32 %v3013_v2 }
 0x4ce   : > { %v2880_v45 = vpop.xlane.xlu0 %2879  ;;  %v3011_v52 = vpop.xlane.xlu1 %3010 }
 0x4cf   : > { %4392 = vlog2.f32 %v2880_v45 }
 0x4d0   : > { %4394 = vlog2.f32 %v3011_v52 }
 0x4d2   : > { %v2901_v15 = vpop.xlane.xlu0 %2900  ;;  %v3015_v21 = vpop.xlane.xlu1 %3014 }
 0x4d3   : > { %4396 = vlog2.f32 %v3015_v21 }
 0x4d4   : > { %v4383_v61 = vpop.eup %4382 }
 0x4d5   : > { %v4385_v9 = vpop.eup %4384  ;;  %v2882_v7 = vmul.f32 0.6931472, %v4383_v61 }
 0x4d6   : > { %v2903_v14 = vpop.xlane.xlu1 %2902  ;;  %v3036_v17 = vpop.xlane.xlu0 %3035  ;;  %v2886_v13 = vmul.f32 0.6931472, %v4385_v9 }
 0x4d7   : > { %v2889_v39 = vadd.f32 %v2882_v7, %v5319_v12 }
 0x4d8   : > { %v4387_v50 = vpop.eup %4386  ;;  %v2891_v43 = vadd.f32 %v2886_v13, %v5311_v38 }
 0x4d9   : > { %v4389_v16 = vpop.eup %4388  ;;  %v3017_v18 = vmul.f32 0.6931472, %v4387_v50  ;;  %v2908_v58 = vsub.f32 %v2889_v39, %v2901_v15 }
 0x4da   : > { %v4391_v60 = vpop.eup %4390  ;;  %v2884_v36 = vmul.f32 0.6931472, %v4389_v16  ;;  %v3038_v37 = vpop.xlane.xlu1 %3037 }
 0x4db   : > { %v2905_v23 = vpop.xlane.xlu0 %2904  ;;  %v3021_v41 = vmul.f32 0.6931472, %v4391_v60  ;;  %v3024_v49 = vadd.f32 %v3017_v18, %v5321_v25 }
 0x4dc   : > { %v4393_v63 = vpop.eup %4392  ;;  %v2890_v6 = vadd.f32 %v2884_v36, %v5327_v10  ;;  %v2910_v51 = vsub.f32 %v2891_v43, %v2905_v23 }
 0x4dd   : > { %v4395_v44 = vpop.eup %4394  ;;  %v2888_v26 = vmul.f32 0.6931472, %v4393_v63  ;;  %v3043_v27 = vsub.f32 %v3024_v49, %v3036_v17  ;;  %v3026_v38 = vadd.f32 %v3021_v41, %v5313_v28 }
 0x4de   : > { %v3019_v8 = vmul.f32 0.6931472, %v4395_v44  ;;  %v2909_v54 = vsub.f32 %v2890_v6, %v2903_v14  ;;  %v3040_v24 = vpop.xlane.xlu1 %3039 }
 0x4df   : > { %v2892_v57 = vadd.f32 %v2888_v26, %v5335_v4  ;;  %v2907_v56 = vpop.xlane.xlu0 %2906  ;;  %v3045_v25 = vsub.f32 %v3026_v38, %v3040_v24 }
 0x4e0   : > { %v4397_v59 = vpop.eup %4396  ;;  %v2912_v12 = vadd.f32 %v2909_v54, %v2908_v58  ;;  %v3025_v30 = vadd.f32 %v3019_v8, %v5329_v42 }
 0x4e1   : > { %v3023_v10 = vmul.f32 0.6931472, %v4397_v59  ;;  %v2911_v31 = vsub.f32 %v2892_v57, %v2907_v56 }
 0x4e2   : > { %v3044_v35 = vsub.f32 %v3025_v30, %v3038_v37  ;;  %v2913_v33 = vadd.f32 %v2912_v12, %v2910_v51  ;;  %v3042_v47 = vpop.xlane.xlu1 %3041 }
 0x4e3   : > { %v3027_v46 = vadd.f32 %v3023_v10, %v5337_v11 }
 0x4e4   : > { %v3047_v19 = vadd.f32 %v3044_v35, %v3043_v27  ;;  %v2914_v40 = vadd.f32 %v2913_v33, %v2911_v31 }
 0x4e5   : > { %v3046_v4 = vsub.f32 %v3027_v46, %v3042_v47 }
 0x4e6   : > { %v3048_v29 = vadd.f32 %v3047_v19, %v3045_v25  ;;  %v2915_v48 = vrot.slane %v2914_v40, 4 }
 0x4e8   : > { %v2916_v42 = vadd.f32 %v2915_v48, %v2914_v40  ;;  %v3049_v22 = vadd.f32 %v3048_v29, %v3046_v4 }
 0x4ea   : > { %v2917_v55 = vrot.slane %v2916_v42, 2  ;;  %v3050_v62 = vrot.slane %v3049_v22, 4 }
 0x4ec   : > { %v2918_v53 = vadd.f32 %v2917_v55, %v2916_v42  ;;  %v3051_v1 = vadd.f32 %v3050_v62, %v3049_v22 }
 0x4ee   : > { %v3052_v32 = vrot.slane %v3051_v1, 2  ;;  %v2919_v3 = vrot.slane %v2918_v53, 1 }
 0x4f0   : > { %v3053_v34 = vadd.f32 %v3052_v32, %v3051_v1  ;;  %v2920_v2 = vadd.f32 %v2919_v3, %v2918_v53 }
 0x4f2   : > { %v3054_v28 = vrot.slane %v3053_v34, 1 }
 0x4f4   : > { %v3055_v11 = vadd.f32 %v3054_v28, %v3053_v34 }
 0x4f6   : > { %v3056_v5 = vadd.f32 %v3055_v11, %v2920_v2 }
 0x4f8   : > { %v3057_v0 = vmul.f32 0.015625, %v3056_v5 }
 0x4fa   : > { %3059 = vst [vmem:[%s389_s28] sm:$0x1] %v3057_v0 }
 0x4fb PF: > { %s24_s13 = sadd.s32 1, %s4450_s13   ;;  %s5455_s23 = sld [smem:[#allocation9_spill]] }
 0x4fc   : > { %p21_p0 = scmp.ge.s32.totalorder %s24_s13, 6   ;;  %s5456_s10 = smov %s4442_s12 }
 0x4fd   : > { %s5457_s11 = smov %s4446_s0  ;;  %s5458_s12 = smov %s5461_s14 }
 0x4fe   :  { %23 = sbr.rel (!%p21_p0) target bundleno = 18 (0x12), region = 108 }
 0x501   : > { %s5459_s0 = smov %s5455_s23 }

// kernel: _forward.4
= control target key start
LH: loop header
LB: loop body
LE: loop exit
PB: predicated region body
PF: predicated region fallthrough
CT: control target
= control target key end

     0   :  { %s7399_s0 = inlined_call_operand.hbm [shape: f32[2,64,256], index: 0, kind: input, shape index: {}]   ;;  %s7400_s1 = inlined_call_operand.hbm [shape: bf16[4,3,768,256], index: 1, kind: input, shape index: {}]   ;;  %s7401_s2 = inlined_call_operand.hbm [shape: f32[4,1,256], index: 2, kind: input, shape index: {}]   ;;  %s7402_s3 = inlined_call_operand.vmem [shape: f32[2,1,256], index: 3, kind: output, shape index: {0}]   ;;  %s7403_s4 = inlined_call_operand.vmem [shape: f32[2,64,256], index: 4, kind: output, shape index: {1}]  }
   0x1   :  { %7442 = sst [smem:[#allocation31_spill]] %s7399_s0 }
   0x2   :  { %7443 = sst [smem:[#allocation32_spill]] %s7400_s1 }
   0x3   :  { %7444 = sst [smem:[#allocation33_spill]] %s7403_s4 }
   0x4   :  { %10 = vsyncpa [#allocation5], 0 }
   0x5   :  { %12 = vsyncpa [#allocation5 + $0x1], 0 }
   0x6   :  { %13 = vsyncpa [#allocation7], 0 }
   0x7   :  { %15 = vsyncpa [#allocation7 + $0x1], 0  ;;  %s5735_s15 = smov 0   ;;  %s5737_s16 = smov 0  }
   0x8   :  { %s5739_s17 = smov 0   ;;  %s5741_s18 = smov 0  }
   0x9   :  { %s5743_s19 = smov 0   ;;  %s5745_s20 = smov 0  }
   0xa   :  { %s5747_s21 = smov 0   ;;  %s5749_s22 = smov 0  }
   0xb   :  { %s5751_s23 = smov 0   ;;  %s5753_s24 = smov 0  }
   0xc   :  { %s5755_s25 = smov 0  }
   0xd LB: > { %7445 = sst [smem:[#allocation11_spill]] %s5683_s21  ;;  %s7404_s26 = sadd.s32 4294967295, %s5699_s25   ;;  %s5699_s25 = sphi %s5755_s25, %s21_s25   ;;  %s5695_s24 = sphi %s5753_s24, %s7591_s24   ;;  %s5691_s23 = sphi %s5751_s23, %s7599_s23   ;;  %s5687_s22 = sphi %s5749_s22, %s7589_s22   ;;  %s5683_s21 = sphi %s5747_s21, %s7598_s21   ;;  %s5679_s20 = sphi %s5745_s20, %s7597_s20   ;;  %s5675_s19 = sphi %s5743_s19, %s7596_s19   ;;  %s5671_s18 = sphi %s5741_s18, %s7595_s18   ;;  %s5667_s17 = sphi %s5739_s17, %s7594_s17   ;;  %s5663_s16 = sphi %s5737_s16, %s7593_s16   ;;  %s5659_s15 = sphi %s5735_s15, %s7592_s15  }
   0xe   : > { %7446 = sst [smem:[#allocation12_spill]] %s5695_s24  ;;  %s30_s27 = sadd.s32 1, %s5691_s23 }
   0xf   : > { %p5790_p0 = scmp.ge.s32.totalorder %s30_s27, 4  ;;  %p48_p1 = scmp.eq.s32.totalorder %s5699_s25, 0 }
  0x10   : > { %p5797_p2 = scmp.eq.s32.totalorder %s7404_s26, 0  ;;  %s66_s30 = sadd.s32 1, %s5667_s17 }
  0x11   : > { %s7601_s27 = smov (%p5790_p0, %s30_s27), 0  ;;  %p73_p3 = scmp.ne.s32.totalorder %s5667_s17, %s5663_s16 }
  0x12   : > { %7449 = sst [smem:[#allocation13_spill]] %s7601_s27  ;;  %p79_p4 = scmp.ne.s32.totalorder %s5663_s16, %s5659_s15 }
  0x13   : > { %s63_s5 = ssub.s32 %s5691_s23, %s7601_s27  ;;  %p75_p6 = por %p73_p3, %p48_p1 }
  0x14   : > { %p64_p5 = scmp.eq.s32.totalorder %s63_s5, 0  ;;  %p5815_p7 = por %p79_p4, %p5797_p2 }
  0x15   : > { %p7407_p8 = scmp.lt.s32.totalorder %s5699_s25, 8  ;;  %s202_s8 = sand.u32 1, %s5699_s25  }
  0x16   : > { %s5821_s7 = scalar_select %p64_p5, %s5667_s17, %s66_s30  }
  0x17   : > { %s7405_s9 = sand.u32 1, %s5667_s17   ;;  %s4906_s11 = smul.u32 36864, %s5691_s23 }
  0x18   : > { %7451 = sst [smem:[#allocation14_spill]] %s5821_s7  ;;  %s4905_s10 = smul.u32 2304, %s7405_s9 }
  0x19   : > { %p5830_p9 = pnand %p7407_p8, %p75_p6  ;;  %s7453_s1 = sld [smem:[#allocation32_spill]] }
  0x1a   : > { %s206_s5 = scalar_lea.vmem [#allocation6], %s4905_s10  ;;  %p4081_p10 = scmp.ge.s32.totalorder %s5699_s25, 1 }
  0x1b   : > { %s213_s26 = sshll.u32 %s206_s5, 4  ;;  %s5838_s30 = scalar_lea.sflag [#allocation7], %s202_s8  ;;  %s214_s26 = int_to_ptr.vmem [resolvable:$true] %s213_s26 }
  0x1c   : > { %p5523_p11 = pneg %p5830_p9  ;;  %s5534_s9 = scalar_lea.vmem %s214_s26, 36864 }
  0x1d   : > { %p5535_p12 = scmp.ne.s32.totalorder %s214_s26, %s5534_s9  ;;  %s5701_s27 = smov [#allocation6]  }
  0x1e   : > { %s5539_s7 = sshll.u32 %s5701_s27, 4  ;;  %s5540_s7 = int_to_ptr.vmem [resolvable:$false] %s5539_s7 }
  0x1f   : > { %s212_s15 = scalar_lea.hbm %s7453_s1, %s4906_s11  ;;  %p5537_p13 = pnand %p5535_p12, %p5523_p11 }
  0x20   : > { %s5541_s13 = scalar_lea.vmem %s5540_s7, 73728  ;;  %p5542_p4 = scmp.lt.s32.totalorder %s214_s26, %s5540_s7 }
  0x21   : > { %p5538_p3 = pneg %p5537_p13  ;;  %p5543_p5 = scmp.lt.s32.totalorder %s5541_s13, %s5534_s9 }
  0x23   : > { %p5544_p6 = por %p5543_p5, %p5542_p4 }
  0x25   : > { %p5545_p8 = pnand %p5544_p6, %p5538_p3 }
  0x27   : > { %5548 = shalt.err (!%p5545_p8)
}
  0x28   : > { %s5702_s10 = smov 128   ;;  %s5703_s27 = smov 8  }
  0x29   : > { %4920 = dma.hbm_to_vmem [thread:$0]  (!%p5830_p9), %s212_s15, 36864, %s214_s26, %s5838_s30, %s5702_s10, %s5702_s10, %s5703_s27  }
  0x2a   : > { %p240_p8 = scmp.lt.s32.totalorder %s5699_s25, 9  ;;  %s33_s8 = sadd.s32 1, %s5695_s24 }
  0x2b   : > { %s40_s9 = sadd.s32 1, %s5679_s20  ;;  %s7603_s8 = smov (!%p5790_p0, %s33_s8), %s5695_s24 }
  0x2c   : > { %p5851_p12 = pnand %p4081_p10, %p240_p8  ;;  %p47_p13 = scmp.ne.s32.totalorder %s5679_s20, %s5675_s19 }
  0x2d   : > { %p53_p3 = scmp.ne.s32.totalorder %s5675_s19, %s5671_s18  ;;  %p35_p4 = scmp.ge.s32.totalorder %s7603_s8, 2 }
  0x2e   : > { %s181_s11 = sand.u32 1, %s5679_s20   ;;  %p49_p5 = por %p48_p1, %p47_p13 }
  0x2f   : > { %p5869_p6 = por %p5797_p2, %p53_p3  ;;  %s7605_s8 = smov (%p35_p4, %s7603_s8), 0 }
  0x30   : > { %7456 = sst [smem:[#allocation15_spill]] %s7605_s8  ;;  %s4074_s14 = sshll.u32 %s181_s11, 7 }
  0x31   : > { %s37_s28 = ssub.s32 %s5695_s24, %s7605_s8  ;;  %s4684_s15 = sshll.u32 %s5695_s24, 11 }
  0x32   : > { %p38_p10 = scmp.eq.s32.totalorder %s37_s28, 0  ;;  %s7457_s0 = sld [smem:[#allocation31_spill]] }
  0x33   : > { %s185_s10 = scalar_lea.vmem [#allocation4], %s4074_s14  ;;  %p7459_p0 = scmp.lt.s32.totalorder %s5699_s25, 8 }
  0x34   : > { %s192_s27 = sshll.u32 %s185_s10, 4  ;;  %s7461_s21 = sand.u32 1, %s5667_s17   ;;  %s193_s27 = int_to_ptr.vmem [resolvable:$true] %s192_s27 }
  0x35   : > { %s5882_s1 = scalar_select %p38_p10, %s5679_s20, %s40_s9  }
  0x36   : > { %p5886_p1 = pnand %p7459_p0, %p49_p5  ;;  %s4078_s4 = sshll.u32 %s7461_s21, 1 }
  0x37   : > { %7458 = sst [smem:[#allocation16_spill]] %s5882_s1  ;;  %s182_s8 = scalar_lea.sflag [#allocation5], %s181_s11 }
  0x38   : > { %s191_s18 = scalar_lea.hbm %s7457_s0, %s4684_s15  ;;  %p5551_p2 = pneg %p5886_p1 }
  0x39   : > { %s5562_s28 = scalar_lea.vmem %s193_s27, 2048  ;;  %s5704_s14 = smov [#allocation4]  }
  0x3a   : > { %p5563_p8 = scmp.ne.s32.totalorder %s193_s27, %s5562_s28  ;;  %s5567_s15 = sshll.u32 %s5704_s14, 4  ;;  %s5568_s15 = int_to_ptr.vmem [resolvable:$false] %s5567_s15 }
  0x3b   : > { %s5569_s9 = scalar_lea.vmem %s5568_s15, 4096  ;;  %p5570_p4 = scmp.lt.s32.totalorder %s193_s27, %s5568_s15 }
  0x3c   : > { %p5565_p13 = pnand %p5563_p8, %p5551_p2  ;;  %p5571_p10 = scmp.lt.s32.totalorder %s5569_s9, %s5562_s28 }
  0x3e   : > { %p5566_p3 = pneg %p5565_p13  ;;  %p5572_p5 = por %p5571_p10, %p5570_p4 }
  0x40   : > { %p5573_p0 = pnand %p5572_p5, %p5566_p3 }
  0x42   : > { %5576 = shalt.err (!%p5573_p0)
}
  0x43   : > { %s5705_s5 = smov 256   ;;  %s5706_s21 = smov 16  }
  0x44   : > { %4917 = dma.hbm_to_vmem [thread:$0]  (!%p5886_p1), %s191_s18, 2048, %s193_s27, %s182_s8, %s5705_s5, %s5705_s5, %s5706_s21  }
  0x45   : > { %s4685_s11 = sshll.u32 %s5691_s23, 5  ;;  %s227_s14 = scalar_lea.vmem [#allocation8], %s4078_s4 }
  0x46   : > { %s233_s0 = scalar_lea.hbm %s7401_s2, %s4685_s11  ;;  %s235_s24 = sshll.u32 %s227_s14, 4  ;;  %s236_s24 = int_to_ptr.vmem [resolvable:$true] %s235_s24 }
  0x47   : > { %s5590_s15 = scalar_lea.vmem %s236_s24, 32  ;;  %s5707_s28 = smov [#allocation8]  }
  0x48   : > { %p5591_p2 = scmp.ne.s32.totalorder %s236_s24, %s5590_s15  ;;  %s5595_s9 = sshll.u32 %s5707_s28, 4  ;;  %s5596_s9 = int_to_ptr.vmem [resolvable:$false] %s5595_s9 }
  0x49   : > { %s5597_s1 = scalar_lea.vmem %s5596_s9, 64  ;;  %p5598_p3 = scmp.lt.s32.totalorder %s236_s24, %s5596_s9 }
  0x4a   : > { %p5593_p8 = pnand %p5591_p2, %p5523_p11  ;;  %p5599_p1 = scmp.lt.s32.totalorder %s5597_s1, %s5590_s15 }
  0x4c   : > { %p5594_p13 = pneg %p5593_p8  ;;  %p5600_p4 = por %p5599_p1, %p5598_p3 }
  0x4e   : > { %p5601_p10 = pnand %p5600_p4, %p5594_p13 }
  0x50   : > { %5604 = shalt.err (!%p5601_p10)
}
  0x51   : > { %4923 = dma.hbm_to_vmem [thread:$0]  (!%p5830_p9), %s233_s0, 32, %s236_s24, %s5838_s30  }
  0x52   : > { %244 = sbr.rel (%p5851_p12) target bundleno = 828 (0x33c), region = 32 }
  0x57   : > { %s246_s4 = sand.u32 1, %s5675_s19  }
  0x58   : > { %s4082_s8 = sshll.u32 %s246_s4, 7  ;;  %s247_s18 = scalar_lea.sflag [#allocation5], %s246_s4 }
  0x59   : > { %s5909_s27 = scalar_lea.vmem [#allocation4], %s4082_s8 }
  0x5a   : > { %5650 = dma.done.wait (%p5869_p6), %s247_s18, 2048  }
  0x5b   : > { %5652 = vsyncadd (%p5869_p6), %s247_s18, 4294965248  ;;  %s7462_s1 = sadd.s32 4294967295, %s5699_s25   ;;  %s257_s24 = sand.u32 1, %s5663_s16  }
  0x5c   : > { %s255_s0 = sand.u32 1, %s7462_s1   ;;  %s4907_s12 = smul.u32 2304, %s257_s24 }
  0x5d   : > { %s256_s30 = scalar_lea.sflag [#allocation7], %s255_s0 }
  0x5e   : > { %s5918_s7 = scalar_lea.vmem [#allocation6], %s4907_s12 }
  0x5f   : > { %5654 = dma.done.wait (%p5815_p7), %s256_s30, 36896  }
  0x60   : > { %5656 = vsyncadd (%p5815_p7), %s256_s30, 4294930400  ;;  %s5924_s29 = sshll.u32 %s257_s24, 1  ;;  %p307_p9 = scmp.lt.s32.totalorder %s5687_s22, 1 }
  0x61   : > { %s7463_s15 = sld [smem:[#allocation33_spill]]  ;;  %s268_s6 = scalar_lea.vmem [#allocation8], %s5924_s29 }
  0x62   : > { %s7607_s22 = smov (!%p307_p9, %s5687_s22), 1  ;;  %s7464_s9 = sld [smem:[#allocation11_spill]] }
  0x63   : > { %s4084_s26 = sshll.u32 %s7607_s22, 1  ;;  %s4686_s5 = sshll.u32 %s7607_s22, 7 }
  0x64   : > { %s5931_s13 = scalar_lea.vmem %s7402_s3, %s4084_s26 }
  0x67   : > { %s5936_s28 = scalar_lea.vmem %s7463_s15, %s4686_s5 }
  0x68   : > { %p4087_p7 = scmp.ne.s32.totalorder %s7464_s9, 0 }
  0x6a   : > { %320 = sbr.rel (%p4087_p7) target bundleno = 120 (0x78), region = 48 }
  0x6f   : > { %v321_v0 = vld [vmem:[%s5909_s27] sm:$0xff]  ;;  %v322_v1 = vld [vmem:[%s5909_s27 + $0x8] sm:$0xff]  ;;  %v323_v2 = vld [vmem:[%s5909_s27 + $0x10] sm:$0xff] }
  0x70   : > { %337 = vst [vmem:[#allocation3 + $0x30] sm:$0xff] %v321_v0  ;;  %338 = vst [vmem:[#allocation3] sm:$0xff] %v322_v1  ;;  %v324_v3 = vld [vmem:[%s5909_s27 + $0x18] sm:$0xff]  ;;  %v325_v4 = vld [vmem:[%s5909_s27 + $0x20] sm:$0xff] }
  0x71   : > { %339 = vst [vmem:[#allocation3 + $0x58] sm:$0xff] %v323_v2  ;;  %v326_v5 = vld [vmem:[%s5909_s27 + $0x28] sm:$0xff]  ;;  %340 = vst [vmem:[#allocation3 + $0x18] sm:$0xff] %v324_v3  ;;  %v327_v6 = vld [vmem:[%s5909_s27 + $0x30] sm:$0xff] }
  0x72   : > { %341 = vst [vmem:[#allocation3 + $0x50] sm:$0xff] %v325_v4  ;;  %342 = vst [vmem:[#allocation3 + $0x68] sm:$0xff] %v326_v5  ;;  %v328_v7 = vld [vmem:[%s5909_s27 + $0x38] sm:$0xff]  ;;  %v329_v8 = vld [vmem:[%s5909_s27 + $0x40] sm:$0xff] }
  0x73   : > { %343 = vst [vmem:[#allocation3 + $0x8] sm:$0xff] %v327_v6  ;;  %344 = vst [vmem:[#allocation3 + $0x48] sm:$0xff] %v328_v7  ;;  %v330_v9 = vld [vmem:[%s5909_s27 + $0x48] sm:$0xff]  ;;  %v331_v10 = vld [vmem:[%s5909_s27 + $0x50] sm:$0xff] }
  0x74   : > { %345 = vst [vmem:[#allocation3 + $0x40] sm:$0xff] %v329_v8  ;;  %v332_v11 = vld [vmem:[%s5909_s27 + $0x58] sm:$0xff]  ;;  %346 = vst [vmem:[#allocation3 + $0x20] sm:$0xff] %v330_v9  ;;  %v333_v12 = vld [vmem:[%s5909_s27 + $0x60] sm:$0xff] }
  0x75   : > { %347 = vst [vmem:[#allocation3 + $0x10] sm:$0xff] %v331_v10  ;;  %348 = vst [vmem:[#allocation3 + $0x38] sm:$0xff] %v332_v11  ;;  %v334_v13 = vld [vmem:[%s5909_s27 + $0x68] sm:$0xff]  ;;  %v335_v14 = vld [vmem:[%s5909_s27 + $0x70] sm:$0xff] }
  0x76   : > { %349 = vst [vmem:[#allocation3 + $0x60] sm:$0xff] %v333_v12  ;;  %350 = vst [vmem:[#allocation3 + $0x70] sm:$0xff] %v334_v13  ;;  %v336_v15 = vld [vmem:[%s5909_s27 + $0x78] sm:$0xff] }
  0x77   : > { %351 = vst [vmem:[#allocation3 + $0x78] sm:$0xff] %v335_v14  ;;  %352 = vst [vmem:[#allocation3 + $0x28] sm:$0xff] %v336_v15 }
  0x78 PF: > { %v5019_v16 = vld [vmem:[%s5918_s7 + $0x374] ss:$8 sps:$4 sm:$0xff]   ;;  %v5023_v18 = vld [vmem:[%s5918_s7 + $0x370] ss:$8 sps:$4 sm:$0xff]   ;;  %v5025_v20 = vld [vmem:[%s5918_s7 + $0x364] ss:$8 sps:$4 sm:$0xff]   ;;  %v7410_v47 = vlaneseq }
  0x79   : > { %v5021_v17 = vld [vmem:[%s5918_s7 + $0x474] ss:$8 sps:$4 sm:$0xff]   ;;  %1711 = vmatprep.subr.bf16.mxu0 %v5019_v16  ;;  %v5024_v19 = vld [vmem:[%s5918_s7 + $0x470] ss:$8 sps:$4 sm:$0xff]   ;;  %v5027_v21 = vld [vmem:[%s5918_s7 + $0x464] ss:$8 sps:$4 sm:$0xff]  }
  0x7a   : > { %1784 = vmatprep.subr.bf16.mxu1 %v5021_v17  ;;  %1712 = vmatpush1.bf16.msra.mxu0 %v5023_v18  ;;  %v5029_v22 = vld [vmem:[%s5918_s7 + $0x360] ss:$8 sps:$4 sm:$0xff]   ;;  %v5031_v24 = vld [vmem:[%s5918_s7 + $0x354] ss:$8 sps:$4 sm:$0xff]   ;;  %v5035_v26 = vld [vmem:[%s5918_s7 + $0x350] ss:$8 sps:$4 sm:$0xff]  }
  0x7b   : > { %1785 = vmatpush1.bf16.msra.mxu1 %v5024_v19  ;;  %1713 = vmatprep.subr.bf16.mxu0 %v5025_v20  ;;  %v5030_v23 = vld [vmem:[%s5918_s7 + $0x460] ss:$8 sps:$4 sm:$0xff]   ;;  %v5033_v25 = vld [vmem:[%s5918_s7 + $0x454] ss:$8 sps:$4 sm:$0xff]   ;;  %v5036_v27 = vld [vmem:[%s5918_s7 + $0x450] ss:$8 sps:$4 sm:$0xff]  }
  0x7c   : > { %1786 = vmatprep.subr.bf16.mxu1 %v5027_v21  ;;  %v5037_v28 = vld [vmem:[%s5918_s7 + $0x344] ss:$8 sps:$4 sm:$0xff]   ;;  %v5041_v30 = vld [vmem:[%s5918_s7 + $0x340] ss:$8 sps:$4 sm:$0xff]   ;;  %v5043_v32 = vld [vmem:[%s5918_s7 + $0x334] ss:$8 sps:$4 sm:$0xff]  }
  0x7d   : > { %v5039_v29 = vld [vmem:[%s5918_s7 + $0x444] ss:$8 sps:$4 sm:$0xff]   ;;  %v5042_v31 = vld [vmem:[%s5918_s7 + $0x440] ss:$8 sps:$4 sm:$0xff]   ;;  %v5045_v33 = vld [vmem:[%s5918_s7 + $0x434] ss:$8 sps:$4 sm:$0xff]  }
  0x7e   : > { %1714 = vmatpush1.bf16.msra.mxu0 %v5029_v22  ;;  %v5047_v34 = vld [vmem:[%s5918_s7 + $0x330] ss:$8 sps:$4 sm:$0xff]   ;;  %v5049_v36 = vld [vmem:[%s5918_s7 + $0x324] ss:$8 sps:$4 sm:$0xff]   ;;  %v5053_v38 = vld [vmem:[%s5918_s7 + $0x320] ss:$8 sps:$4 sm:$0xff]  }
  0x7f   : > { %1787 = vmatpush1.bf16.msra.mxu1 %v5030_v23  ;;  %1715 = vmatprep.subr.bf16.mxu0 %v5031_v24  ;;  %v5048_v35 = vld [vmem:[%s5918_s7 + $0x430] ss:$8 sps:$4 sm:$0xff]   ;;  %v5051_v37 = vld [vmem:[%s5918_s7 + $0x424] ss:$8 sps:$4 sm:$0xff]   ;;  %v5054_v39 = vld [vmem:[%s5918_s7 + $0x420] ss:$8 sps:$4 sm:$0xff]  }
  0x80   : > { %1788 = vmatprep.subr.bf16.mxu1 %v5033_v25  ;;  %v5055_v40 = vld [vmem:[%s5918_s7 + $0x314] ss:$8 sps:$4 sm:$0xff]   ;;  %v5059_v42 = vld [vmem:[%s5918_s7 + $0x310] ss:$8 sps:$4 sm:$0xff]   ;;  %v5061_v44 = vld [vmem:[%s5918_s7 + $0x304] ss:$8 sps:$4 sm:$0xff]  }
  0x81   : > { %v5057_v41 = vld [vmem:[%s5918_s7 + $0x414] ss:$8 sps:$4 sm:$0xff]   ;;  %v5060_v43 = vld [vmem:[%s5918_s7 + $0x410] ss:$8 sps:$4 sm:$0xff]   ;;  %v5063_v45 = vld [vmem:[%s5918_s7 + $0x404] ss:$8 sps:$4 sm:$0xff]  }
  0x82   : > { %1716 = vmatpush1.bf16.msra.mxu0 %v5035_v26  ;;  %v5065_v46 = vld [vmem:[%s5918_s7 + $0x300] ss:$8 sps:$4 sm:$0xff]   ;;  %v5067_v49 = vld [vmem:[%s5918_s7 + $0x3f4] ss:$8 sps:$4 sm:$0xff]   ;;  %v5071_v51 = vld [vmem:[%s5918_s7 + $0x3f0] ss:$8 sps:$4 sm:$0xff]  }
  0x83   : > { %1789 = vmatpush1.bf16.msra.mxu1 %v5036_v27  ;;  %1717 = vmatprep.subr.bf16.mxu0 %v5037_v28  ;;  %v5066_v48 = vld [vmem:[%s5918_s7 + $0x400] ss:$8 sps:$4 sm:$0xff]   ;;  %v5069_v50 = vld [vmem:[%s5918_s7 + $0x4f4] ss:$8 sps:$4 sm:$0xff]   ;;  %v5072_v52 = vld [vmem:[%s5918_s7 + $0x4f0] ss:$8 sps:$4 sm:$0xff]  }
  0x84   : > { %1790 = vmatprep.subr.bf16.mxu1 %v5039_v29  ;;  %v5993_v53 = vshrl.u32 %v7410_v47, 7  ;;  %v5073_v54 = vld [vmem:[%s5918_s7 + $0x3e4] ss:$8 sps:$4 sm:$0xff]   ;;  %v5077_v56 = vld [vmem:[%s5918_s7 + $0x3e0] ss:$8 sps:$4 sm:$0xff]   ;;  %v6027_v8 = vld [vmem:[#allocation3 + $0x18] sm:$0xff] }
  0x85   : > { %v5075_v55 = vld [vmem:[%s5918_s7 + $0x4e4] ss:$8 sps:$4 sm:$0xff]   ;;  %v5078_v58 = vld [vmem:[%s5918_s7 + $0x4e0] ss:$8 sps:$4 sm:$0xff]   ;;  %v5079_v59 = vld [vmem:[%s5918_s7 + $0x3d4] ss:$8 sps:$4 sm:$0xff]  }
  0x86   : > { %1718 = vmatpush1.bf16.msra.mxu0 %v5041_v30  ;;  %7465 = vst [vmem:[#allocation17_spill] sm:$0xff] %v5993_v53  ;;  %v5999_v57 = vadd.s32 8, %v5993_v53  ;;  %v5081_v60 = vld [vmem:[%s5918_s7 + $0x4d4] ss:$8 sps:$4 sm:$0xff]   ;;  %v5083_v61 = vld [vmem:[%s5918_s7 + $0x3d0] ss:$8 sps:$4 sm:$0xff]  }
  0x87   : > { %1791 = vmatpush1.bf16.msra.mxu1 %v5042_v31  ;;  %1719 = vmatprep.subr.bf16.mxu0 %v5043_v32  ;;  %v5084_v62 = vld [vmem:[%s5918_s7 + $0x4d0] ss:$8 sps:$4 sm:$0xff]   ;;  %v7420_v63 = vand.u32 7, %v5993_v53  ;;  %v5085_v1 = vld [vmem:[%s5918_s7 + $0x3c4] ss:$8 sps:$4 sm:$0xff]   ;;  %vm796_vm0 = vcmp.lt.s32.totalorder %v5993_v53, 1 }
  0x88   : > { %1792 = vmatprep.subr.bf16.mxu1 %v5045_v33  ;;  %v7416_v0 = vand.u32 7, %v5999_v57  ;;  %v5087_v2 = vld [vmem:[%s5918_s7 + $0x4c4] ss:$8 sps:$4 sm:$0xff]   ;;  %v5089_v3 = vld [vmem:[%s5918_s7 + $0x3c0] ss:$8 sps:$4 sm:$0xff]   ;;  %v6030_v10 = vld [vmem:[#allocation3 + $0x30] sm:$0xff] }
  0x89   : > { %v5090_v4 = vld [vmem:[%s5918_s7 + $0x4c0] ss:$8 sps:$4 sm:$0xff]   ;;  %vm6015_vm1 = vcmp.ge.s32.totalorder %v7420_v63, 1  ;;  %v5091_v9 = vld [vmem:[%s5918_s7 + $0x3b4] ss:$8 sps:$4 sm:$0xff]   ;;  %7470 = vst [vmem:[#allocation18_spill] sm:$0xff] %v6030_v10 }
  0x8a   : > { %1720 = vmatpush1.bf16.msra.mxu0 %v5047_v34  ;;  %vm6021_vm2 = vcmp.ge.s32.totalorder %v7416_v0, 1  ;;  %v6025_v7 = vld [vmem:[#allocation3] sm:$0xff]  ;;  %v6032_v11 = vld [vmem:[#allocation3 + $0x58] sm:$0xff]  ;;  %v783_v13 = vrot.slane %v6027_v8, 7  ;;  %v6039_v16 = vld [vmem:[#allocation3 + $0x28] sm:$0xff]  ;;  %v7411_v17 = vrot.slane %v6030_v10, 1 }
  0x8b   : > { %1793 = vmatpush1.bf16.msra.mxu1 %v5048_v35  ;;  %1721 = vmatprep.subr.bf16.mxu0 %v5049_v36  ;;  %v781_v12 = vrot.slane %v6025_v7, 7  ;;  %v4714_v14 = vpack.c.bf16 %v6027_v8, %v6025_v7  ;;  %v5093_v15 = vld [vmem:[%s5918_s7 + $0x4b4] ss:$8 sps:$4 sm:$0xff]   ;;  %v847_v18 = vrot.slane %v6032_v11, 1  ;;  %v7422_v19 = vrot.slane %v6039_v16, 7  ;;  %vm4735_vm4 = vmpackc.low %vm6021_vm2, %vm6015_vm1  ;;  %v772_v0 = vld [vmem:[#allocation3 + $0x40] sm:$0xff] }
  0x8c   : > { %1794 = vmatprep.subr.bf16.mxu1 %v5051_v37  ;;  %vm7440_vm3 = vcmp.lt.s32.totalorder %v5993_v53, 7  ;;  %v5095_v21 = vld [vmem:[%s5918_s7 + $0x3b0] ss:$8 sps:$4 sm:$0xff]   ;;  %v5097_v24 = vld [vmem:[%s5918_s7 + $0x3a4] ss:$8 sps:$4 sm:$0xff]   ;;  %v780_v37 = vrot.slane %v6030_v10, 7 }
  0x8d   : > { %v6048_v20 = vsel %vm796_vm0, %v781_v12, %v783_v13  ;;  %1816 = vmatprep.mubr.bf16.mxu1 %v4714_v14  ;;  %v5096_v22 = vld [vmem:[%s5918_s7 + $0x4b0] ss:$8 sps:$4 sm:$0xff]   ;;  %v6057_v23 = vsel %vm796_vm0, %v7422_v19, %v781_v12  ;;  %v5099_v25 = vld [vmem:[%s5918_s7 + $0x4a4] ss:$8 sps:$4 sm:$0xff]   ;;  %v6073_v27 = vsel %vm7440_vm3, %v7411_v17, %v847_v18  ;;  %v5101_v28 = vld [vmem:[%s5918_s7 + $0x3a0] ss:$8 sps:$4 sm:$0xff]  }
  0x8e   : > { %1722 = vmatpush1.bf16.msra.mxu0 %v5053_v38  ;;  %v4736_v26 = vpack.c.bf16 %v6048_v20, %v6057_v23  ;;  %v5102_v29 = vld [vmem:[%s5918_s7 + $0x4a0] ss:$8 sps:$4 sm:$0xff]   ;;  %v5103_v30 = vld [vmem:[%s5918_s7 + $0x394] ss:$8 sps:$4 sm:$0xff]   ;;  %v5107_v33 = vld [vmem:[%s5918_s7 + $0x390] ss:$8 sps:$4 sm:$0xff]  }
  0x8f   : > { %1795 = vmatpush1.bf16.msra.mxu1 %v5054_v39  ;;  %1723 = vmatprep.subr.bf16.mxu0 %v5055_v40  ;;  %v5105_v31 = vld [vmem:[%s5918_s7 + $0x494] ss:$8 sps:$4 sm:$0xff]   ;;  %v5108_v34 = vld [vmem:[%s5918_s7 + $0x490] ss:$8 sps:$4 sm:$0xff]   ;;  %v5109_v35 = vld [vmem:[%s5918_s7 + $0x384] ss:$8 sps:$4 sm:$0xff]  }
  0x90   : > { %1796 = vmatprep.subr.bf16.mxu1 %v5057_v41  ;;  %4737 = vmatprep.mubr.msk.bf16.mxu0 %vm4735_vm4, %v4736_v26  ;;  %v6084_v32 = vld [vmem:[#allocation3 + $0x78] sm:$0xff]  ;;  %v5111_v36 = vld [vmem:[%s5918_s7 + $0x484] ss:$8 sps:$4 sm:$0xff]   ;;  %v782_v38 = vrot.slane %v6032_v11, 7  ;;  %v6153_v12 = vadd.s32 40, %v5993_v53  ;;  %v6159_v14 = vadd.s32 56, %v5993_v53 }
  0x91   : > { %v7421_v39 = vrot.slane %v6084_v32, 7  ;;  %v6093_v40 = vld [vmem:[#allocation3 + $0x68] sm:$0xff]  ;;  %v7419_v26 = vrot.slane %v6027_v8, 1  ;;  %v5141_v17 = vld [vmem:[%s5918_s7 + $0x534] ss:$8 sps:$4 sm:$0xff]   ;;  %s7583_s22 = sld [smem:[#allocation11_spill]] }
  0x92   : > { %1724 = vmatpush1.bf16.msra.mxu0 %v5059_v42  ;;  %v6095_v41 = vld [vmem:[#allocation3 + $0x48] sm:$0xff]  ;;  %v5142_v19 = vld [vmem:[%s5918_s7 + $0x30] ss:$8 sps:$4 sm:$0xff]  }
  0x93   : > { %1797 = vmatpush1.bf16.msra.mxu1 %v5060_v43  ;;  %1725 = vmatprep.subr.bf16.mxu0 %v5061_v44  ;;  %v5113_v42 = vld [vmem:[%s5918_s7 + $0x380] ss:$8 sps:$4 sm:$0xff]   ;;  %v6099_v43 = vadd.s32 16, %v5993_v53  ;;  %v6102_v44 = vadd.s32 24, %v5993_v53 }
  0x94   : > { %1798 = vmatprep.subr.bf16.mxu1 %v5063_v45  ;;  %v5114_v45 = vld [vmem:[%s5918_s7 + $0x480] ss:$8 sps:$4 sm:$0xff]  }
  0x95   : > { %v5220_v6 = vld [vmem:[%s5918_s7 + $0x260] ss:$8 sps:$4 sm:$0xff]  }
  0x96   : > { %1726 = vmatpush1.bf16.msra.mxu0 %v5065_v46  ;;  %v785_v46 = vrot.slane %v6093_v40, 7 }
  0x97   : > { %1799 = vmatpush1.bf16.msra.mxu1 %v5066_v48  ;;  %1727 = vmatprep.subr.bf16.mxu0 %v5067_v49  ;;  %v787_v48 = vrot.slane %v6095_v41, 7  ;;  %v6111_v49 = vsel %vm796_vm0, %v780_v37, %v782_v38  ;;  %p4664_p11 = scmp.ge.s32.totalorder %s7583_s22, 3 }
  0x98   : > { %1800 = vmatprep.subr.bf16.mxu1 %v5069_v50  ;;  %v6117_v50 = vsel %vm796_vm0, %v7421_v39, %v780_v37  ;;  %v7418_v37 = vand.u32 7, %v6159_v14  ;;  %v5139_v39 = vld [vmem:[%s5918_s7 + $0x530] ss:$8 sps:$4 sm:$0xff]  }
  0x9a   : > { %1728 = vmatpush2.bf16.msra.mxu0 %v5071_v51  ;;  %v5117_v51 = vld [vmem:[%s5918_s7 + $0x574] ss:$8 sps:$4 sm:$0xff]   ;;  %vm6292_vm11 = vcmp.ge.s32.totalorder %v7418_v37, 1  ;;  %v830_v37 = vsel %vm6015_vm1, %v6057_v23, 0.0 }
  0x9b   : > { %1801 = vmatpush2.bf16.msra.mxu1 %v5072_v52  ;;  %1729 = vmatprep.subr.bf16.mxu0 %v5073_v54  ;;  %v5120_v52 = vld [vmem:[%s5918_s7 + $0x74] ss:$8 sps:$4 sm:$0xff]   ;;  %v6123_v54 = vpack.c.bf16 %v6025_v7, %v6030_v10 }
  0x9c   : > { %1802 = vmatprep.subr.bf16.mxu1 %v5075_v55  ;;  %v7415_v55 = vand.u32 7, %v6099_v43 }
  0x9d   : > { %7471 = vst [vmem:[#allocation19_spill] sm:$0xff] %v6123_v54  ;;  %v777_v54 = vld [vmem:[#allocation3 + $0x70] sm:$0xff] }
  0x9e   : > { %1730 = vmatpush2.bf16.msra.mxu0 %v5077_v56  ;;  %v4739_v56 = vpack.c.bf16 %v6111_v49, %v6117_v50  ;;  %vm6163_vm5 = vcmp.ge.s32.totalorder %v7415_v55, 1 }
  0x9f   : > { %1803 = vmatpush2.bf16.msra.mxu1 %v5078_v58  ;;  %1731 = vmatprep.subr.bf16.mxu0 %v5079_v59  ;;  %v4713_v58 = vpack.c.bf16 %v6032_v11, %v6030_v10  ;;  %v7414_v59 = vand.u32 7, %v6102_v44 }
  0xa0   : > { %1804 = vmatprep.subr.bf16.mxu1 %v5081_v60  ;;  %v6135_v60 = vsel %vm796_vm0, %v785_v46, %v787_v48 }
  0xa1   : > { %vm6177_vm6 = vcmp.ge.s32.totalorder %v7414_v59, 1  ;;  %v5452_v59 = vld [vmem:[#allocation3 + $0x78] sm:$0xff] }
  0xa2   : > { %1732 = vmatpush2.bf16.msra.mxu0 %v5083_v61  ;;  %v6141_v61 = vsel %vm796_vm0, %v783_v13, %v785_v46  ;;  %v6156_v13 = vadd.s32 48, %v5993_v53  ;;  %vm4741_vm7 = vmpackc.low %vm6177_vm6, %vm6163_vm5 }
  0xa3   : > { %1805 = vmatpush2.bf16.msra.mxu1 %v5084_v62  ;;  %1733 = vmatprep.subr.bf16.mxu0 %v5085_v1  ;;  %v5115_v62 = vld [vmem:[%s5918_s7 + $0x570] ss:$8 sps:$4 sm:$0xff]  }
  0xa4   : > { %1806 = vmatprep.subr.bf16.mxu1 %v5087_v2  ;;  %v5118_v1 = vld [vmem:[%s5918_s7 + $0x70] ss:$8 sps:$4 sm:$0xff]   ;;  %v5123_v2 = vld [vmem:[%s5918_s7 + $0x564] ss:$8 sps:$4 sm:$0xff]  }
  0xa6   : > { %1734 = vmatpush2.bf16.msra.mxu0 %v5089_v3  ;;  %v5126_v3 = vld [vmem:[%s5918_s7 + $0x64] ss:$8 sps:$4 sm:$0xff]  }
  0xa7   : > { %1807 = vmatpush2.bf16.msra.mxu1 %v5090_v4  ;;  %1735 = vmatprep.subr.bf16.mxu0 %v5091_v9  ;;  %v6148_v4 = vadd.s32 32, %v5993_v53  ;;  %v4720_v9 = vpack.c.bf16 %v6095_v41, %v6093_v40 }
  0xa8   : > { %1808 = vmatprep.subr.bf16.mxu1 %v5093_v15  ;;  %v5228_v15 = vld [vmem:[%s5918_s7 + $0x254] ss:$8 sps:$4 sm:$0xff]  }
  0xaa   : > { %1736 = vmatpush2.bf16.msra.mxu0 %v5095_v21  ;;  %v4742_v21 = vpack.c.bf16 %v6135_v60, %v6141_v61 }
  0xab   : > { %1809 = vmatpush2.bf16.msra.mxu1 %v5096_v22  ;;  %1737 = vmatprep.subr.bf16.mxu0 %v5097_v24  ;;  %v5121_v22 = vld [vmem:[%s5918_s7 + $0x560] ss:$8 sps:$4 sm:$0xff]   ;;  %v7527_v24 = vand.u32 7, %v6156_v13 }
  0xac   : > { %1810 = vmatprep.subr.bf16.mxu1 %v5099_v25  ;;  %v5124_v25 = vld [vmem:[%s5918_s7 + $0x60] ss:$8 sps:$4 sm:$0xff]  }
  0xae   : > { %1738 = vmatpush2.bf16.msra.mxu0 %v5101_v28  ;;  %v850_v28 = vrot.slane %v6093_v40, 1 }
  0xaf   : > { %1811 = vmatpush2.bf16.msra.mxu1 %v5102_v29  ;;  %1739 = vmatprep.subr.bf16.mxu0 %v5103_v30  ;;  %v5129_v29 = vld [vmem:[%s5918_s7 + $0x554] ss:$8 sps:$4 sm:$0xff]  }
  0xb0   : > { %1812 = vmatprep.subr.bf16.mxu1 %v5105_v31  ;;  %v5132_v30 = vld [vmem:[%s5918_s7 + $0x54] ss:$8 sps:$4 sm:$0xff]   ;;  %v7412_v31 = vand.u32 7, %v6148_v4 }
  0xb2   : > { %1740 = vmatpush2.bf16.msra.mxu0 %v5107_v33  ;;  %v768_v33 = vld [vmem:[#allocation3 + $0x50] sm:$0xff]  ;;  %vm6260_vm8 = vcmp.ge.s32.totalorder %v7412_v31, 1  ;;  %v773_v31 = vld [vmem:[#allocation3 + $0x20] sm:$0xff] }
  0xb3   : > { %1813 = vmatpush2.bf16.msra.mxu1 %v5108_v34  ;;  %1741 = vmatprep.subr.bf16.mxu0 %v5109_v35  ;;  %v6191_v34 = vld [vmem:[#allocation3 + $0x8] sm:$0xff]  ;;  %v7413_v35 = vand.u32 7, %v6153_v12 }
  0xb4   : > { %1814 = vmatprep.subr.bf16.mxu1 %v5111_v36  ;;  %v7417_v36 = vand.u32 7, %v6156_v13  ;;  %v786_v46 = vrot.slane %v6191_v34, 7  ;;  %v6377_v10 = vpack.c.bf16 %v772_v0, %v6191_v34  ;;  %v7533_v13 = vrot.slane %v6025_v7, 1 }
  0xb5   : > { %vm6266_vm9 = vcmp.ge.s32.totalorder %v7413_v35, 1  ;;  %v6282_v35 = vld [vmem:[#allocation3 + $0x38] sm:$0xff] }
  0xb6   : > { %1742 = vmatpush2.bf16.msra.mxu0 %v5113_v42  ;;  %v7424_v42 = vrot.slane %v6095_v41, 1  ;;  %vm6286_vm10 = vcmp.ge.s32.totalorder %v7417_v36, 1  ;;  %v4726_v55 = vpack.c.bf16 %v6282_v35, %v773_v31  ;;  %v6299_v36 = vld [vmem:[#allocation3 + $0x10] sm:$0xff]  ;;  %vm4747_vm12 = vmpackc.low %vm6266_vm9, %vm6260_vm8  ;;  %7493 = vst [vmem:[#allocation27_spill] sm:$0xff] %v6377_v10  ;;  %v858_v10 = vrot.slane %v777_v54, 1 }
  0xb7   : > { %1815 = vmatpush2.bf16.msra.mxu1 %v5114_v45  ;;  %1857 = vmatprep.subr.bf16.mxu0 %v5117_v51  ;;  %v784_v45 = vrot.slane %v768_v33, 7  ;;  %v849_v51 = vrot.slane %v768_v33, 1  ;;  %v4725_v23 = vpack.c.bf16 %v6299_v36, %v772_v0  ;;  %vm4753_vm13 = vmpackc.low %vm6292_vm11, %vm6286_vm10 }
  0xb8   : > { %2467 = vmatprep.subr.bf16.mxu1 %v5120_v52  ;;  %v4719_v52 = vpack.c.bf16 %v6191_v34, %v768_v33 }
  0xb9   : > { %4740 = vmatmul.mubr.msk.bf16.vlgmr.msra.gmra.mxu0 %vm4735_vm4, %v4739_v56  ;;  %v5127_v56 = vld [vmem:[%s5918_s7 + $0x550] ss:$8 sps:$4 sm:$0xff]  }
  0xba   : > { %1817 = vmatmul.mubr.bf16.vlgmr.msra.gmra.mxu1 %v4713_v58  ;;  %1858 = vmatpush1.bf16.msra.mxu0 %v5115_v62  ;;  %v5130_v58 = vld [vmem:[%s5918_s7 + $0x50] ss:$8 sps:$4 sm:$0xff]   ;;  %v6210_v62 = vsel %vm7440_vm3, %v7419_v26, %v850_v28  ;;  %v854_v26 = vrot.slane %v773_v31, 1 }
  0xbb   : > { %2468 = vmatpush1.bf16.msra.mxu1 %v5118_v1  ;;  %1859 = vmatprep.subr.bf16.mxu0 %v5123_v2  ;;  %v7423_v1 = vrot.slane %v6191_v34, 1  ;;  %v6215_v2 = vpack.c.bf16 %v6093_v40, %v6027_v8  ;;  %v6238_v40 = vsel %vm7440_vm3, %v847_v18, %v849_v51  ;;  %v5136_v18 = vld [vmem:[%s5918_s7 + $0x40] ss:$8 sps:$4 sm:$0xff]  }
  0xbc   : > { %2469 = vmatprep.subr.bf16.mxu1 %v5126_v3  ;;  %1826 = vmatprep.mubr.bf16.mxu1 %v4720_v9  ;;  %v6218_v3 = vpack.c.bf16 %v768_v33, %v6032_v11  ;;  %v5135_v9 = vld [vmem:[%s5918_s7 + $0x544] ss:$8 sps:$4 sm:$0xff]   ;;  %v7542_v33 = vrot.slane %v6084_v32, 1 }
  0xbd   : > { %4743 = vmatprep.mubr.msk.bf16.mxu0 %vm4741_vm7, %v4742_v21  ;;  %7476 = vst [vmem:[#allocation20_spill] sm:$0xff] %v6215_v2  ;;  %v5138_v21 = vld [vmem:[%s5918_s7 + $0x44] ss:$8 sps:$4 sm:$0xff]   ;;  %v6255_v11 = vsel %vm7440_vm3, %v849_v51, %v7423_v1  ;;  %v5153_v2 = vld [vmem:[%s5918_s7 + $0x514] ss:$8 sps:$4 sm:$0xff]  }
  0xbe   : > { %1860 = vmatpush1.bf16.msra.mxu0 %v5121_v22  ;;  %7477 = vst [vmem:[#allocation21_spill] sm:$0xff] %v6218_v3  ;;  %v6226_v22 = vsel %vm796_vm0, %v784_v45, %v786_v46  ;;  %v6276_v51 = vpack.c.bf16 %v6255_v11, %v6238_v40  ;;  %v5150_v1 = vld [vmem:[%s5918_s7 + $0x24] ss:$8 sps:$4 sm:$0xff]  }
  0xbf   : > { %2470 = vmatpush1.bf16.msra.mxu1 %v5124_v25  ;;  %1861 = vmatprep.subr.bf16.mxu0 %v5129_v29  ;;  %v6232_v25 = vsel %vm796_vm0, %v782_v38, %v784_v45  ;;  %v5133_v29 = vld [vmem:[%s5918_s7 + $0x540] ss:$8 sps:$4 sm:$0xff]   ;;  %v6249_v38 = vsel %vm7440_vm3, %v850_v28, %v7424_v42  ;;  %v855_v42 = vrot.slane %v6299_v36, 1  ;;  %v5276_v45 = vld [vmem:[%s5918_s7 + $0x2d4] ss:$8 sps:$4 sm:$0xff]  }
  0xc0   : > { %2471 = vmatprep.subr.bf16.mxu1 %v5132_v30  ;;  %v4745_v30 = vpack.c.bf16 %v6226_v22, %v6232_v25  ;;  %v6272_v47 = vpack.c.bf16 %v6249_v38, %v6210_v62  ;;  %7483 = vst [vmem:[#allocation23_spill] sm:$0xff] %v6276_v51  ;;  %v5145_v51 = vld [vmem:[%s5918_s7 + $0x520] ss:$8 sps:$4 sm:$0xff]  }
  0xc2   : > { %1827 = vmatmul.mubr.bf16.gmra.mxu1 %v4719_v52  ;;  %7482 = vst [vmem:[#allocation22_spill] sm:$0xff] %v6272_v47  ;;  %v829_v52 = vsel %vm6015_vm1, %v6117_v50, 0.0  ;;  %1862 = vmatpush1.bf16.msra.mxu0 %v5127_v56  ;;  %v5144_v50 = vld [vmem:[%s5918_s7 + $0x34] ss:$8 sps:$4 sm:$0xff]   ;;  %v789_v56 = vrot.slane %v773_v31, 7 }
  0xc3   : > { %2472 = vmatpush1.bf16.msra.mxu1 %v5130_v58  ;;  %1863 = vmatprep.subr.bf16.mxu0 %v5135_v9  ;;  %v791_v58 = vrot.slane %v6282_v35, 7  ;;  %v788_v9 = vrot.slane %v772_v0, 7 }
  0xc4   : > { %2473 = vmatprep.subr.bf16.mxu1 %v5138_v21  ;;  %4746 = vmatmul.mubr.msk.bf16.gmra.mxu0 %vm4741_vm7, %v4745_v30  ;;  %v790_v21 = vrot.slane %v6299_v36, 7  ;;  %v6318_v5 = vsel %vm796_vm0, %v787_v48, %v789_v56  ;;  %v853_v30 = vrot.slane %v772_v0, 1  ;;  %v5156_v0 = vld [vmem:[%s5918_s7 + $0x14] ss:$8 sps:$4 sm:$0xff]  }
  0xc5   : > { %v6312_v63 = vsel %vm796_vm0, %v789_v56, %v791_v58  ;;  %1836 = vmatprep.mubr.bf16.mxu1 %v4726_v55  ;;  %v6337_v55 = vsel %vm796_vm0, %v786_v46, %v788_v9  ;;  %v7490_v46 = vrot.slane %v6095_v41, 1 }
  0xc6   : > { %7488 = vst [vmem:[#allocation24_spill] sm:$0xff] %v6312_v63  ;;  %1864 = vmatpush1.bf16.msra.mxu0 %v5133_v29  ;;  %v4748_v48 = vpack.c.bf16 %v6312_v63, %v6318_v5  ;;  %v6331_v56 = vsel %vm796_vm0, %v788_v9, %v790_v21  ;;  %v856_v29 = vrot.slane %v6282_v35, 1  ;;  %v776_v63 = vld [vmem:[#allocation3 + $0x60] sm:$0xff] }
  0xc7   : > { %2474 = vmatpush1.bf16.msra.mxu1 %v5136_v18  ;;  %7489 = vst [vmem:[#allocation25_spill] sm:$0xff] %v6331_v56  ;;  %1865 = vmatprep.subr.bf16.mxu0 %v5141_v17  ;;  %v5147_v18 = vld [vmem:[%s5918_s7 + $0x524] ss:$8 sps:$4 sm:$0xff]   ;;  %v4751_v3 = vpack.c.bf16 %v6331_v56, %v6337_v55  ;;  %v6355_v17 = vsel %vm7440_vm3, %v7490_v46, %v854_v26 }
  0xc8   : > { %2475 = vmatprep.subr.bf16.mxu1 %v5144_v50  ;;  %4749 = vmatprep.mubr.msk.bf16.mxu0 %vm4747_vm12, %v4748_v48  ;;  %v7491_v50 = vrot.slane %v6191_v34, 1  ;;  %v6365_v47 = vsel %vm7440_vm3, %v854_v26, %v856_v29  ;;  %v5148_v48 = vld [vmem:[%s5918_s7 + $0x20] ss:$8 sps:$4 sm:$0xff]   ;;  %v6371_v56 = vsel %vm7440_vm3, %v853_v30, %v855_v42  ;;  %v6374_v46 = vpack.c.bf16 %v773_v31, %v6095_v41 }
  0xc9   : > { %v6381_v26 = vpack.c.bf16 %v6365_v47, %v6355_v17  ;;  %v6389_v31 = vpack.c.bf16 %v830_v37, %v829_v52  ;;  %v792_v34 = vrot.slane %v776_v63, 7  ;;  %v857_v52 = vrot.slane %v776_v63, 1 }
  0xca   : > { %v6361_v9 = vsel %vm7440_vm3, %v7491_v50, %v853_v30  ;;  %1837 = vmatmul.mubr.bf16.gmra.mxu1 %v4725_v23  ;;  %7492 = vst [vmem:[#allocation26_spill] sm:$0xff] %v6374_v46  ;;  %1866 = vmatpush1.bf16.msra.mxu0 %v5139_v39  ;;  %v793_v23 = vrot.slane %v777_v54, 7  ;;  %v4732_v50 = vpack.c.bf16 %v6039_v16, %v777_v54  ;;  %v5151_v39 = vld [vmem:[%s5918_s7 + $0x510] ss:$8 sps:$4 sm:$0xff]   ;;  %v7496_v30 = vrot.slane %v6039_v16, 7 }
  0xcb   : > { %7494 = vst [vmem:[#allocation28_spill] sm:$0xff] %v6381_v26  ;;  %2476 = vmatpush1.bf16.msra.mxu1 %v5142_v19  ;;  %v6387_v41 = vpack.c.bf16 %v6371_v56, %v6361_v9  ;;  %1867 = vmatprep.subr.bf16.mxu0 %v5147_v18  ;;  %v5154_v18 = vld [vmem:[%s5918_s7 + $0x10] ss:$8 sps:$4 sm:$0xff]   ;;  %v7499_v19 = vand.u32 7, %v5993_v53  ;;  %v5244_v26 = vld [vmem:[%s5918_s7 + $0x220] ss:$8 sps:$4 sm:$0xff]  }
  0xcc   : > { %2477 = vmatprep.subr.bf16.mxu1 %v5150_v1  ;;  %4752 = vmatmul.mubr.msk.bf16.gmra.mxu0 %vm4747_vm12, %v4751_v3  ;;  %v6403_v37 = vsel %vm796_vm0, %v793_v23, %v7496_v30  ;;  %v6407_v1 = vsel %vm796_vm0, %v791_v58, %v793_v23  ;;  %v7498_v30 = vrot.slane %v6084_v32, 7  ;;  %v6424_v23 = vsel %vm796_vm0, %v790_v21, %v792_v34  ;;  %vm6577_vm12 = vmpackc.low %vm6163_vm5, %vm6021_vm2 }
  0xcd   : > { %7495 = vst [vmem:[#allocation29_spill] sm:$0xff] %v6387_v41  ;;  %7497 = vst [vmem:[#allocation30_spill] sm:$0xff] %v6403_v37  ;;  %1846 = vmatprep.mubr.bf16.mxu1 %v4732_v50  ;;  %v4754_v3 = vpack.c.bf16 %v6403_v37, %v6407_v1  ;;  %v4731_v50 = vpack.c.bf16 %v6084_v32, %v776_v63  ;;  %vm6430_vm14 = vcmp.lt.s32.totalorder %v7499_v19, 7  ;;  %v7502_v37 = vrot.slane %v6027_v8, 1 }
  0xce   : > { %v6420_v58 = vsel %vm796_vm0, %v792_v34, %v7498_v30  ;;  %1868 = vmatpush1.bf16.msra.mxu0 %v5145_v51  ;;  %v7503_v30 = vrot.slane %v6025_v7, 1  ;;  %v5159_v51 = vld [vmem:[%s5918_s7 + $0x504] ss:$8 sps:$4 sm:$0xff]   ;;  %v7504_v19 = vand.u32 7, %v5999_v57  ;;  %v7438_v8 = vmov 0  }
  0xcf   : > { %2478 = vmatpush1.bf16.msra.mxu1 %v5148_v48  ;;  %1869 = vmatprep.subr.bf16.mxu0 %v5153_v2  ;;  %v5162_v48 = vld [vmem:[%s5918_s7 + $0x4] ss:$8 sps:$4 sm:$0xff]   ;;  %v4757_v34 = vpack.c.bf16 %v6420_v58, %v6424_v23  ;;  %v4425_v46 = vcombine.high %v7438_v8, %v6389_v31  ;;  %v6456_v2 = vsel %vm7440_vm3, %v856_v29, %v858_v10  ;;  %v7508_v29 = vrot.slane %v6084_v32, 1  ;;  %v5241_v7 = vld [vmem:[%s5918_s7 + $0x120] ss:$8 sps:$4 sm:$0xff]  }
  0xd0   : > { %v6440_v21 = vsel %vm7440_vm3, %v7503_v30, %v7502_v37  ;;  %2479 = vmatprep.subr.bf16.mxu1 %v5156_v0  ;;  %vm6448_vm15 = vcmp.lt.s32.totalorder %v7504_v19, 7  ;;  %4755 = vmatprep.mubr.msk.bf16.mxu0 %vm4753_vm13, %v4754_v3  ;;  %v6465_v57 = vsel %vm7440_vm3, %v855_v42, %v857_v52  ;;  %v7507_v0 = vrot.slane %v6039_v16, 1  ;;  %v5157_v19 = vld [vmem:[%s5918_s7 + $0x500] ss:$8 sps:$4 sm:$0xff]  }
  0xd1   : > { %v6477_v30 = vsel %vm7440_vm3, %v857_v52, %v7508_v29  ;;  %v6480_v3 = vpack.c.bf16 %v777_v54, %v6282_v35  ;;  %v4760_v42 = vpack.c.bf16 %v6210_v62, %v6440_v21  ;;  %v6486_v8 = vpack.c.bf16 %v776_v63, %v6299_v36  ;;  %v5160_v54 = vld [vmem:[%s5918_s7] ss:$8 sps:$4 sm:$0xff]   ;;  %vm4759_vm0 = vmpackc.low %vm6448_vm15, %vm6430_vm14  ;;  %v5165_v63 = vld [vmem:[%s5918_s7 + $0x5f4] ss:$8 sps:$4 sm:$0xff]  }
  0xd2   : > { %v6471_v37 = vsel %vm7440_vm3, %v858_v10, %v7507_v0  ;;  %1847 = vmatmul.mubr.bf16.gmra.mxu1 %v4731_v50  ;;  %v6494_v0 = vpack.c.bf16 %v6477_v30, %v6465_v57  ;;  %1870 = vmatpush1.bf16.msra.mxu0 %v5151_v39  ;;  %v5168_v35 = vld [vmem:[%s5918_s7 + $0xf4] ss:$8 sps:$4 sm:$0xff]   ;;  %v7509_v36 = vand.u32 7, %v6099_v43  ;;  %v7512_v39 = vand.u32 7, %v6102_v44  ;;  %v5171_v43 = vld [vmem:[%s5918_s7 + $0x5e4] ss:$8 sps:$4 sm:$0xff]  }
  0xd3   : > { %v6490_v10 = vpack.c.bf16 %v6471_v37, %v6456_v2  ;;  %2480 = vmatpush1.bf16.msra.mxu1 %v5154_v18  ;;  %1871 = vmatprep.subr.bf16.mxu0 %v5159_v51  ;;  %v5166_v18 = vld [vmem:[%s5918_s7 + $0xf0] ss:$8 sps:$4 sm:$0xff]   ;;  %v5174_v50 = vld [vmem:[%s5918_s7 + $0xe4] ss:$8 sps:$4 sm:$0xff]   ;;  %v5169_v44 = vld [vmem:[%s5918_s7 + $0x5e0] ss:$8 sps:$4 sm:$0xff]  }
  0xd4   : > { %2481 = vmatprep.subr.bf16.mxu1 %v5162_v48  ;;  %4758 = vmatmul.mubr.msk.bf16.gmra.mxu0 %vm4753_vm13, %v4757_v34  ;;  %vm6515_vm1 = vcmp.lt.s32.totalorder %v7509_v36, 7  ;;  %vm6521_vm4 = vcmp.lt.s32.totalorder %v7512_v39, 7  ;;  %v5172_v51 = vld [vmem:[%s5918_s7 + $0xe0] ss:$8 sps:$4 sm:$0xff]   ;;  %v5177_v48 = vld [vmem:[%s5918_s7 + $0x5d4] ss:$8 sps:$4 sm:$0xff]  }
  0xd5   : > { %2499 = vmatprep.mubr.bf16.mxu1 %v4425_v46  ;;  %4761 = vmatprep.mubr.msk.bf16.mxu0 %vm4759_vm0, %v4760_v42  ;;  %v5163_v46 = vld [vmem:[%s5918_s7 + $0x5f0] ss:$8 sps:$4 sm:$0xff]   ;;  %vm4765_vm7 = vmpackc.low %vm6521_vm4, %vm6515_vm1  ;;  %v5180_v34 = vld [vmem:[%s5918_s7 + $0xd4] ss:$8 sps:$4 sm:$0xff]   ;;  %v895_v62 = vsel %vm6430_vm14, %v6440_v21, 0.0 }
  0xd6   : > { %1872 = vmatpush1.bf16.msra.mxu0 %v5157_v19  ;;  %v5175_v29 = vld [vmem:[%s5918_s7 + $0x5d0] ss:$8 sps:$4 sm:$0xff]   ;;  %v5183_v42 = vld [vmem:[%s5918_s7 + $0x5c4] ss:$8 sps:$4 sm:$0xff]   ;;  %v5189_v36 = vld [vmem:[%s5918_s7 + $0x5b4] ss:$8 sps:$4 sm:$0xff]  }
  0xd7   : > { %2482 = vmatpush1.bf16.msra.mxu1 %v5160_v54  ;;  %1873 = vmatprep.subr.bf16.mxu0 %v5165_v63  ;;  %v5178_v19 = vld [vmem:[%s5918_s7 + $0xd0] ss:$8 sps:$4 sm:$0xff]   ;;  %v5186_v54 = vld [vmem:[%s5918_s7 + $0xc4] ss:$8 sps:$4 sm:$0xff]   ;;  %v5181_v63 = vld [vmem:[%s5918_s7 + $0x5c0] ss:$8 sps:$4 sm:$0xff]  }
  0xd8   : > { %2483 = vmatprep.subr.bf16.mxu1 %v5168_v35  ;;  %v5184_v35 = vld [vmem:[%s5918_s7 + $0xc0] ss:$8 sps:$4 sm:$0xff]   ;;  %v5192_v39 = vld [vmem:[%s5918_s7 + $0xb4] ss:$8 sps:$4 sm:$0xff]   ;;  %v5255_v52 = vld [vmem:[%s5918_s7 + $0x104] ss:$8 sps:$4 sm:$0xff]  }
  0xda   : > { %1874 = vmatpush2.bf16.msra.mxu0 %v5163_v46  ;;  %v5187_v46 = vld [vmem:[%s5918_s7 + $0x5b0] ss:$8 sps:$4 sm:$0xff]  }
  0xdb   : > { %2484 = vmatpush2.bf16.msra.mxu1 %v5166_v18  ;;  %1875 = vmatprep.subr.bf16.mxu0 %v5171_v43  ;;  %v5190_v18 = vld [vmem:[%s5918_s7 + $0xb0] ss:$8 sps:$4 sm:$0xff]   ;;  %v5195_v43 = vld [vmem:[%s5918_s7 + $0x5a4] ss:$8 sps:$4 sm:$0xff]  }
  0xdc   : > { %2485 = vmatprep.subr.bf16.mxu1 %v5174_v50  ;;  %v5198_v50 = vld [vmem:[%s5918_s7 + $0xa4] ss:$8 sps:$4 sm:$0xff]  }
  0xde   : > { %1876 = vmatpush2.bf16.msra.mxu0 %v5169_v44  ;;  %v5193_v44 = vld [vmem:[%s5918_s7 + $0x5a0] ss:$8 sps:$4 sm:$0xff]  }
  0xdf   : > { %2486 = vmatpush2.bf16.msra.mxu1 %v5172_v51  ;;  %1877 = vmatprep.subr.bf16.mxu0 %v5177_v48  ;;  %v5196_v51 = vld [vmem:[%s5918_s7 + $0xa0] ss:$8 sps:$4 sm:$0xff]   ;;  %v5201_v48 = vld [vmem:[%s5918_s7 + $0x594] ss:$8 sps:$4 sm:$0xff]  }
  0xe0   : > { %2487 = vmatprep.subr.bf16.mxu1 %v5180_v34  ;;  %v5204_v34 = vld [vmem:[%s5918_s7 + $0x94] ss:$8 sps:$4 sm:$0xff]  }
  0xe2   : > { %1878 = vmatpush2.bf16.msra.mxu0 %v5175_v29  ;;  %v5199_v29 = vld [vmem:[%s5918_s7 + $0x590] ss:$8 sps:$4 sm:$0xff]  }
  0xe3   : > { %2488 = vmatpush2.bf16.msra.mxu1 %v5178_v19  ;;  %1879 = vmatprep.subr.bf16.mxu0 %v5183_v42  ;;  %v5202_v19 = vld [vmem:[%s5918_s7 + $0x90] ss:$8 sps:$4 sm:$0xff]   ;;  %v5207_v42 = vld [vmem:[%s5918_s7 + $0x584] ss:$8 sps:$4 sm:$0xff]  }
  0xe4   : > { %2489 = vmatprep.subr.bf16.mxu1 %v5186_v54  ;;  %v5210_v54 = vld [vmem:[%s5918_s7 + $0x84] ss:$8 sps:$4 sm:$0xff]  }
  0xe6   : > { %1880 = vmatpush2.bf16.msra.mxu0 %v5181_v63  ;;  %v5205_v63 = vld [vmem:[%s5918_s7 + $0x580] ss:$8 sps:$4 sm:$0xff]  }
  0xe7   : > { %2490 = vmatpush2.bf16.msra.mxu1 %v5184_v35  ;;  %1881 = vmatprep.subr.bf16.mxu0 %v5189_v36  ;;  %v5208_v35 = vld [vmem:[%s5918_s7 + $0x80] ss:$8 sps:$4 sm:$0xff]   ;;  %v5213_v36 = vld [vmem:[%s5918_s7 + $0x174] ss:$8 sps:$4 sm:$0xff]  }
  0xe8   : > { %2491 = vmatprep.subr.bf16.mxu1 %v5192_v39  ;;  %v5216_v39 = vld [vmem:[%s5918_s7 + $0x274] ss:$8 sps:$4 sm:$0xff]  }
  0xea   : > { %1882 = vmatpush2.bf16.msra.mxu0 %v5187_v46  ;;  %v7515_v46 = vmov 0  }
  0xeb   : > { %2492 = vmatpush2.bf16.msra.mxu1 %v5190_v18  ;;  %1883 = vmatprep.subr.bf16.mxu0 %v5195_v43  ;;  %v4424_v18 = vcombine.low %v7515_v46, %v6389_v31  ;;  %v5211_v43 = vld [vmem:[%s5918_s7 + $0x170] ss:$8 sps:$4 sm:$0xff]  }
  0xec   : > { %2493 = vmatprep.subr.bf16.mxu1 %v5198_v50  ;;  %v5214_v50 = vld [vmem:[%s5918_s7 + $0x270] ss:$8 sps:$4 sm:$0xff]  }
  0xee   : > { %1884 = vmatpush2.bf16.msra.mxu0 %v5193_v44  ;;  %v5219_v44 = vld [vmem:[%s5918_s7 + $0x164] ss:$8 sps:$4 sm:$0xff]  }
  0xef   : > { %2494 = vmatpush2.bf16.msra.mxu1 %v5196_v51  ;;  %1885 = vmatprep.subr.bf16.mxu0 %v5201_v48  ;;  %v5222_v51 = vld [vmem:[%s5918_s7 + $0x264] ss:$8 sps:$4 sm:$0xff]   ;;  %v6569_v48 = vpack.c.bf16 %v6141_v61, %v6048_v20  ;;  %v5217_v20 = vld [vmem:[%s5918_s7 + $0x160] ss:$8 sps:$4 sm:$0xff]   ;;  %v5225_v61 = vld [vmem:[%s5918_s7 + $0x154] ss:$8 sps:$4 sm:$0xff]  }
  0xf0   : > { %2495 = vmatprep.subr.bf16.mxu1 %v5204_v34  ;;  %v4766_v34 = vpack.c.bf16 %v6355_v17, %v6249_v38  ;;  %v5223_v38 = vld [vmem:[%s5918_s7 + $0x150] ss:$8 sps:$4 sm:$0xff]   ;;  %v6606_v17 = vpack.c.bf16 %v6232_v25, %v6111_v49  ;;  %v5234_v49 = vld [vmem:[%s5918_s7 + $0x244] ss:$8 sps:$4 sm:$0xff]   ;;  %v5229_v25 = vld [vmem:[%s5918_s7 + $0x140] ss:$8 sps:$4 sm:$0xff]  }
  0xf2   : > { %1886 = vmatpush2.bf16.msra.mxu0 %v5199_v29  ;;  %v7518_v29 = vpack.c.bf16 %v6238_v40, %v6073_v27  ;;  %v4769_v40 = vpack.c.bf16 %v6361_v9, %v6255_v11  ;;  %v5226_v11 = vld [vmem:[%s5918_s7 + $0x250] ss:$8 sps:$4 sm:$0xff]   ;;  %v5231_v9 = vld [vmem:[%s5918_s7 + $0x144] ss:$8 sps:$4 sm:$0xff]  }
  0xf3   : > { %2496 = vmatpush2.bf16.msra.mxu1 %v5202_v19  ;;  %1887 = vmatprep.subr.bf16.mxu0 %v5207_v42  ;;  %v7519_v19 = vand.u32 7, %v6148_v4  ;;  %v4772_v4 = vpack.c.bf16 %v6456_v2, %v6365_v47  ;;  %v5240_v2 = vld [vmem:[%s5918_s7 + $0x234] ss:$8 sps:$4 sm:$0xff]  }
  0xf4   : > { %2497 = vmatprep.subr.bf16.mxu1 %v5210_v54  ;;  %v7522_v54 = vand.u32 7, %v6153_v12  ;;  %v6631_v12 = vpack.c.bf16 %v6318_v5, %v6135_v60  ;;  %v5232_v60 = vld [vmem:[%s5918_s7 + $0x240] ss:$8 sps:$4 sm:$0xff]   ;;  %v5237_v5 = vld [vmem:[%s5918_s7 + $0x134] ss:$8 sps:$4 sm:$0xff]  }
  0xf5   : > { %vm6610_vm2 = vcmp.lt.s32.totalorder %v7519_v19, 7  ;;  %v7547_v19 = vld [vmem:[#allocation19_spill] sm:$0xff] }
  0xf6   : > { %1888 = vmatpush2.bf16.msra.mxu0 %v5205_v63  ;;  %vm6616_vm5 = vcmp.lt.s32.totalorder %v7522_v54, 7  ;;  %v4427_v42 = vcombine.high %v7515_v46, %v7547_v19  ;;  %v5256_v54 = vld [vmem:[%s5918_s7 + $0x200] ss:$8 sps:$4 sm:$0xff]   ;;  %v5262_v63 = vld [vmem:[%s5918_s7 + $0x2f0] ss:$8 sps:$4 sm:$0xff]  }
  0xf7   : > { %2498 = vmatpush2.bf16.msra.mxu1 %v5208_v35  ;;  %2540 = vmatprep.subr.bf16.mxu0 %v5213_v36  ;;  %vm4771_vm13 = vmpackc.low %vm6616_vm5, %vm6610_vm2  ;;  %v4775_v35 = vpack.c.bf16 %v6465_v57, %v6371_v56  ;;  %v5235_v36 = vld [vmem:[%s5918_s7 + $0x130] ss:$8 sps:$4 sm:$0xff]   ;;  %v5243_v57 = vld [vmem:[%s5918_s7 + $0x124] ss:$8 sps:$4 sm:$0xff]  }
  0xf8   : > { %2613 = vmatprep.subr.bf16.mxu1 %v5216_v39  ;;  %v5238_v39 = vld [vmem:[%s5918_s7 + $0x230] ss:$8 sps:$4 sm:$0xff]  }
  0xf9   : > { %4764 = vmatmul.mubr.msk.bf16.vlgmr.msra.gmra.mxu0 %vm4759_vm0, %v7518_v29  ;;  %vm6646_vm0 = vmpackc.low %vm6260_vm8, %vm6177_vm6  ;;  %vm6663_vm6 = vcmp.lt.s32.totalorder %v7527_v24, 7  ;;  %v5273_v24 = vld [vmem:[%s5918_s7 + $0x1d4] ss:$8 sps:$4 sm:$0xff]  }
  0xfa   : > { %2500 = vmatmul.mubr.bf16.vlgmr.msra.gmra.mxu1 %v4424_v18  ;;  %2541 = vmatpush1.bf16.msra.mxu0 %v5211_v43  ;;  %v6673_v18 = vpack.c.bf16 %v6337_v55, %v6226_v22  ;;  %v7530_v43 = vand.u32 7, %v6159_v14  ;;  %v5246_v22 = vld [vmem:[%s5918_s7 + $0x224] ss:$8 sps:$4 sm:$0xff]   ;;  %v7537_v55 = vld [vmem:[#allocation24_spill] sm:$0xff] }
  0xfb   : > { %2614 = vmatpush1.bf16.msra.mxu1 %v5214_v50  ;;  %2542 = vmatprep.subr.bf16.mxu0 %v5219_v44  ;;  %v7534_v44 = vrot.slane %v6039_v16, 1 }
  0xfc   : > { %2615 = vmatprep.subr.bf16.mxu1 %v5222_v51  ;;  %4767 = vmatprep.mubr.msk.bf16.mxu0 %vm4765_vm7, %v4766_v34  ;;  %vm6677_vm8 = vcmp.lt.s32.totalorder %v7530_v43, 7  ;;  %v6708_v51 = vpack.c.bf16 %v6407_v1, %v7537_v55  ;;  %v894_v1 = vsel %vm6430_vm14, %v6073_v27, 0.0  ;;  %v7540_v34 = vld [vmem:[#allocation18_spill] sm:$0xff]  ;;  %v5252_v27 = vld [vmem:[%s5918_s7 + $0x214] ss:$8 sps:$4 sm:$0xff]   ;;  %vm6789_vm14 = vmpackc.low %vm6663_vm6, %vm6616_vm5 }
  0xfd   : > { %4803 = vmatprep.mubr.msk.bf16.mxu1 %vm6577_vm12, %v6569_v48  ;;  %v6687_v56 = vsel %vm7440_vm3, %v7534_v44, %v7533_v13  ;;  %vm4777_vm3 = vmpackc.low %vm6677_vm8, %vm6663_vm6  ;;  %v7541_v28 = vrot.slane %v7540_v34, 1  ;;  %v6751_v32 = vpack.c.bf16 %v895_v62, %v894_v1  ;;  %v5282_v43 = vld [vmem:[%s5918_s7 + $0x2c4] ss:$8 sps:$4 sm:$0xff]   ;;  %v5277_v13 = vld [vmem:[%s5918_s7 + $0x1c0] ss:$8 sps:$4 sm:$0xff]  }
  0xfe   : > { %2543 = vmatpush1.bf16.msra.mxu0 %v5217_v20  ;;  %v4778_v16 = vpack.c.bf16 %v6687_v56, %v6471_v37  ;;  %v5249_v20 = vld [vmem:[%s5918_s7 + $0x114] ss:$8 sps:$4 sm:$0xff]   ;;  %v5280_v44 = vld [vmem:[%s5918_s7 + $0x2c0] ss:$8 sps:$4 sm:$0xff]   ;;  %v5291_v55 = vld [vmem:[%s5918_s7 + $0x1a4] ss:$8 sps:$4 sm:$0xff]  }
  0xff   : > { %2616 = vmatpush1.bf16.msra.mxu1 %v5220_v6  ;;  %2544 = vmatprep.subr.bf16.mxu0 %v5225_v61  ;;  %v5247_v6 = vld [vmem:[%s5918_s7 + $0x110] ss:$8 sps:$4 sm:$0xff]   ;;  %v7546_v61 = vld [vmem:[#allocation25_spill] sm:$0xff]  ;;  %v5297_v34 = vld [vmem:[%s5918_s7 + $0x194] ss:$8 sps:$4 sm:$0xff]  }
 0x100   : > { %2617 = vmatprep.subr.bf16.mxu1 %v5228_v15  ;;  %v6766_v15 = vpack.c.bf16 %v6424_v23, %v7546_v61  ;;  %v5253_v23 = vld [vmem:[%s5918_s7 + $0x100] ss:$8 sps:$4 sm:$0xff]  }
 0x101   : > { %4770 = vmatmul.mubr.msk.bf16.gmra.mxu0 %vm4765_vm7, %v4769_v40  ;;  %vm6695_vm7 = vmpackc.low %vm6515_vm1, %vm6448_vm15  ;;  %v5250_v40 = vld [vmem:[%s5918_s7 + $0x210] ss:$8 sps:$4 sm:$0xff]   ;;  %v5289_v1 = vld [vmem:[%s5918_s7 + $0x1a0] ss:$8 sps:$4 sm:$0xff]  }
 0x102   : > { %4806 = vmatmul.mubr.msk.bf16.gmra.mxu1 %vm6577_vm12, %v6606_v17  ;;  %2545 = vmatpush1.bf16.msra.mxu0 %v5223_v38  ;;  %vm6723_vm15 = vmpackc.low %vm6286_vm10, %vm6266_vm9  ;;  %vm7543_vm9 = vcmp.lt.s32.totalorder %v5993_v53, 7  ;;  %v5258_v38 = vld [vmem:[%s5918_s7 + $0x204] ss:$8 sps:$4 sm:$0xff]   ;;  %v5292_v62 = vld [vmem:[%s5918_s7 + $0x2a0] ss:$8 sps:$4 sm:$0xff]  }
 0x103   : > { %2618 = vmatpush1.bf16.msra.mxu1 %v5226_v11  ;;  %2546 = vmatprep.subr.bf16.mxu0 %v5231_v9  ;;  %v6739_v29 = vsel %vm7543_vm9, %v7542_v33, %v7541_v28  ;;  %vm6757_vm10 = vmpackc.low %vm6610_vm2, %vm6521_vm4  ;;  %v5261_v9 = vld [vmem:[%s5918_s7 + $0x1f4] ss:$8 sps:$4 sm:$0xff]   ;;  %v5295_v33 = vld [vmem:[%s5918_s7 + $0x190] ss:$8 sps:$4 sm:$0xff]  }
 0x104   : > { %2619 = vmatprep.subr.bf16.mxu1 %v5234_v49  ;;  %4773 = vmatprep.mubr.msk.bf16.mxu0 %vm4771_vm13, %v4772_v4  ;;  %v4781_v21 = vpack.c.bf16 %v6739_v29, %v6477_v30  ;;  %v4429_v30 = vcombine.high %v7515_v46, %v6751_v32  ;;  %v5264_v49 = vld [vmem:[%s5918_s7 + $0x2f4] ss:$8 sps:$4 sm:$0xff]   ;;  %v5259_v4 = vld [vmem:[%s5918_s7 + $0x1f0] ss:$8 sps:$4 sm:$0xff]   ;;  %v5304_v61 = vld [vmem:[%s5918_s7 + $0x280] ss:$8 sps:$4 sm:$0xff]  }
 0x105   : > { %4809 = vmatprep.mubr.msk.bf16.mxu1 %vm6646_vm0, %v6631_v12  ;;  %v5300_v28 = vld [vmem:[%s5918_s7 + $0x294] ss:$8 sps:$4 sm:$0xff]  }
 0x106   : > { %2547 = vmatpush1.bf16.msra.mxu0 %v5229_v25  ;;  %v5267_v25 = vld [vmem:[%s5918_s7 + $0x1e4] ss:$8 sps:$4 sm:$0xff]  }
 0x107   : > { %2620 = vmatpush1.bf16.msra.mxu1 %v5232_v60  ;;  %2548 = vmatprep.subr.bf16.mxu0 %v5237_v5  ;;  %v5270_v60 = vld [vmem:[%s5918_s7 + $0x2e4] ss:$8 sps:$4 sm:$0xff]   ;;  %v5265_v5 = vld [vmem:[%s5918_s7 + $0x1e0] ss:$8 sps:$4 sm:$0xff]  }
 0x108   : > { %2621 = vmatprep.subr.bf16.mxu1 %v5240_v2  ;;  %v5268_v2 = vld [vmem:[%s5918_s7 + $0x2e0] ss:$8 sps:$4 sm:$0xff]  }
 0x109   : > { %4776 = vmatmul.mubr.msk.bf16.gmra.mxu0 %vm4771_vm13, %v4775_v35  ;;  %v5271_v35 = vld [vmem:[%s5918_s7 + $0x1d0] ss:$8 sps:$4 sm:$0xff]  }
 0x10a   : > { %4812 = vmatmul.mubr.msk.bf16.gmra.mxu1 %vm6646_vm0, %v6673_v18  ;;  %2549 = vmatpush1.bf16.msra.mxu0 %v5235_v36  ;;  %v5274_v36 = vld [vmem:[%s5918_s7 + $0x2d0] ss:$8 sps:$4 sm:$0xff]  }
 0x10b   : > { %2622 = vmatpush1.bf16.msra.mxu1 %v5238_v39  ;;  %2550 = vmatprep.subr.bf16.mxu0 %v5243_v57  ;;  %v5279_v39 = vld [vmem:[%s5918_s7 + $0x1c4] ss:$8 sps:$4 sm:$0xff]   ;;  %v5285_v57 = vld [vmem:[%s5918_s7 + $0x1b4] ss:$8 sps:$4 sm:$0xff]  }
 0x10c   : > { %2623 = vmatprep.subr.bf16.mxu1 %v5246_v22  ;;  %4779 = vmatprep.mubr.msk.bf16.mxu0 %vm4777_vm3, %v4778_v16  ;;  %v5288_v22 = vld [vmem:[%s5918_s7 + $0x2b4] ss:$8 sps:$4 sm:$0xff]   ;;  %v5286_v16 = vld [vmem:[%s5918_s7 + $0x2b0] ss:$8 sps:$4 sm:$0xff]  }
 0x10d   : > { %4815 = vmatprep.mubr.msk.bf16.mxu1 %vm6723_vm15, %v6708_v51 }
 0x10e   : > { %2551 = vmatpush1.bf16.msra.mxu0 %v5241_v7  ;;  %v5283_v7 = vld [vmem:[%s5918_s7 + $0x1b0] ss:$8 sps:$4 sm:$0xff]  }
 0x10f   : > { %2624 = vmatpush1.bf16.msra.mxu1 %v5244_v26  ;;  %2552 = vmatprep.subr.bf16.mxu0 %v5249_v20  ;;  %v5294_v26 = vld [vmem:[%s5918_s7 + $0x2a4] ss:$8 sps:$4 sm:$0xff]   ;;  %v5298_v20 = vld [vmem:[%s5918_s7 + $0x290] ss:$8 sps:$4 sm:$0xff]  }
 0x110   : > { %2625 = vmatprep.subr.bf16.mxu1 %v5252_v27  ;;  %v5303_v27 = vld [vmem:[%s5918_s7 + $0x184] ss:$8 sps:$4 sm:$0xff]  }
 0x111   : > { %4782 = vmatmul.mubr.msk.bf16.gmra.mxu0 %vm4777_vm3, %v4781_v21  ;;  %v5306_v21 = vld [vmem:[%s5918_s7 + $0x284] ss:$8 sps:$4 sm:$0xff]  }
 0x112   : > { %4818 = vmatmul.mubr.msk.bf16.gmra.mxu1 %vm6723_vm15, %v6766_v15  ;;  %2553 = vmatpush1.bf16.msra.mxu0 %v5247_v6  ;;  %v5301_v6 = vld [vmem:[%s5918_s7 + $0x180] ss:$8 sps:$4 sm:$0xff]  }
 0x113   : > { %2626 = vmatpush1.bf16.msra.mxu1 %v5250_v40  ;;  %2554 = vmatprep.subr.bf16.mxu0 %v5255_v52  ;;  %v5309_v40 = vld [vmem:[%s5918_s7 + $0x674] ss:$8 sps:$4 sm:$0xff]  }
 0x114   : > { %2627 = vmatprep.subr.bf16.mxu1 %v5258_v38  ;;  %2572 = vmatprep.mubr.bf16.mxu0 %v4427_v42  ;;  %v5312_v52 = vld [vmem:[%s5918_s7 + $0x774] ss:$8 sps:$4 sm:$0xff]   ;;  %v4426_v38 = vcombine.low %v7515_v46, %v7547_v19  ;;  %v4428_v42 = vcombine.low %v7515_v46, %v6751_v32  ;;  %v5313_v19 = vld [vmem:[%s5918_s7 + $0x660] ss:$8 sps:$4 sm:$0xff]  }
 0x115   : > { %2645 = vmatprep.mubr.bf16.mxu1 %v4429_v30  ;;  %v5307_v30 = vld [vmem:[%s5918_s7 + $0x670] ss:$8 sps:$4 sm:$0xff]   ;;  %v5316_v32 = vld [vmem:[%s5918_s7 + $0x760] ss:$8 sps:$4 sm:$0xff]  }
 0x116   : > { %2555 = vmatpush1.bf16.msra.mxu0 %v5253_v23  ;;  %v5310_v23 = vld [vmem:[%s5918_s7 + $0x770] ss:$8 sps:$4 sm:$0xff]  }
 0x117   : > { %2628 = vmatpush1.bf16.msra.mxu1 %v5256_v54  ;;  %2556 = vmatprep.subr.bf16.mxu0 %v5261_v9  ;;  %v5315_v54 = vld [vmem:[%s5918_s7 + $0x664] ss:$8 sps:$4 sm:$0xff]  }
 0x118   : > { %2629 = vmatprep.subr.bf16.mxu1 %v5264_v49  ;;  %v5318_v9 = vld [vmem:[%s5918_s7 + $0x764] ss:$8 sps:$4 sm:$0xff]   ;;  %v5321_v49 = vld [vmem:[%s5918_s7 + $0x654] ss:$8 sps:$4 sm:$0xff]  }
 0x11a   : > { %2557 = vmatpush2.bf16.msra.mxu0 %v5259_v4  ;;  %v5324_v4 = vld [vmem:[%s5918_s7 + $0x754] ss:$8 sps:$4 sm:$0xff]  }
 0x11b   : > { %2630 = vmatpush2.bf16.msra.mxu1 %v5262_v63  ;;  %2558 = vmatprep.subr.bf16.mxu0 %v5267_v25  ;;  %v7550_v63 = vld [vmem:[#allocation20_spill] sm:$0xff]  ;;  %v7551_v25 = vld [vmem:[#allocation22_spill] sm:$0xff] }
 0x11c   : > { %2631 = vmatprep.subr.bf16.mxu1 %v5270_v60  ;;  %v5319_v60 = vld [vmem:[%s5918_s7 + $0x650] ss:$8 sps:$4 sm:$0xff]  }
 0x11e   : > { %2559 = vmatpush2.bf16.msra.mxu0 %v5265_v5  ;;  %v5322_v5 = vld [vmem:[%s5918_s7 + $0x750] ss:$8 sps:$4 sm:$0xff]  }
 0x11f   : > { %2632 = vmatpush2.bf16.msra.mxu1 %v5268_v2  ;;  %2560 = vmatprep.subr.bf16.mxu0 %v5273_v24  ;;  %v5327_v2 = vld [vmem:[%s5918_s7 + $0x644] ss:$8 sps:$4 sm:$0xff]  }
 0x120   : > { %2633 = vmatprep.subr.bf16.mxu1 %v5276_v45  ;;  %v5330_v24 = vld [vmem:[%s5918_s7 + $0x744] ss:$8 sps:$4 sm:$0xff]  }
 0x121   : > { %v7552_v45 = vld [vmem:[#allocation21_spill] sm:$0xff] }
 0x122   : > { %2561 = vmatpush2.bf16.msra.mxu0 %v5271_v35  ;;  %v7553_v35 = vld [vmem:[#allocation23_spill] sm:$0xff] }
 0x123   : > { %2634 = vmatpush2.bf16.msra.mxu1 %v5274_v36  ;;  %2562 = vmatprep.subr.bf16.mxu0 %v5279_v39  ;;  %v5325_v36 = vld [vmem:[%s5918_s7 + $0x640] ss:$8 sps:$4 sm:$0xff]  }
 0x124   : > { %2635 = vmatprep.subr.bf16.mxu1 %v5282_v43  ;;  %v5328_v39 = vld [vmem:[%s5918_s7 + $0x740] ss:$8 sps:$4 sm:$0xff]   ;;  %v5333_v43 = vld [vmem:[%s5918_s7 + $0x634] ss:$8 sps:$4 sm:$0xff]  }
 0x126   : > { %2563 = vmatpush2.bf16.msra.mxu0 %v5277_v13  ;;  %v5336_v13 = vld [vmem:[%s5918_s7 + $0x734] ss:$8 sps:$4 sm:$0xff]  }
 0x127   : > { %2636 = vmatpush2.bf16.msra.mxu1 %v5280_v44  ;;  %2564 = vmatprep.subr.bf16.mxu0 %v5285_v57  ;;  %v7554_v44 = vld [vmem:[#allocation26_spill] sm:$0xff]  ;;  %v7555_v57 = vld [vmem:[#allocation28_spill] sm:$0xff] }
 0x128   : > { %2637 = vmatprep.subr.bf16.mxu1 %v5288_v22  ;;  %v5331_v22 = vld [vmem:[%s5918_s7 + $0x630] ss:$8 sps:$4 sm:$0xff]  }
 0x12a   : > { %2565 = vmatpush2.bf16.msra.mxu0 %v5283_v7  ;;  %v5334_v7 = vld [vmem:[%s5918_s7 + $0x730] ss:$8 sps:$4 sm:$0xff]  }
 0x12b   : > { %2638 = vmatpush2.bf16.msra.mxu1 %v5286_v16  ;;  %2566 = vmatprep.subr.bf16.mxu0 %v5291_v55  ;;  %v5339_v16 = vld [vmem:[%s5918_s7 + $0x624] ss:$8 sps:$4 sm:$0xff]  }
 0x12c   : > { %2639 = vmatprep.subr.bf16.mxu1 %v5294_v26  ;;  %v5342_v55 = vld [vmem:[%s5918_s7 + $0x724] ss:$8 sps:$4 sm:$0xff]   ;;  %v7556_v26 = vld [vmem:[#allocation27_spill] sm:$0xff] }
 0x12e   : > { %2567 = vmatpush2.bf16.msra.mxu0 %v5289_v1  ;;  %v7557_v1 = vld [vmem:[#allocation29_spill] sm:$0xff] }
 0x12f   : > { %2640 = vmatpush2.bf16.msra.mxu1 %v5292_v62  ;;  %2568 = vmatprep.subr.bf16.mxu0 %v5297_v34  ;;  %v5337_v62 = vld [vmem:[%s5918_s7 + $0x620] ss:$8 sps:$4 sm:$0xff]  }
 0x130   : > { %2641 = vmatprep.subr.bf16.mxu1 %v5300_v28  ;;  %v5340_v34 = vld [vmem:[%s5918_s7 + $0x720] ss:$8 sps:$4 sm:$0xff]   ;;  %v5345_v28 = vld [vmem:[%s5918_s7 + $0x614] ss:$8 sps:$4 sm:$0xff]  }
 0x132   : > { %2569 = vmatpush2.bf16.msra.mxu0 %v5295_v33  ;;  %v5348_v33 = vld [vmem:[%s5918_s7 + $0x714] ss:$8 sps:$4 sm:$0xff]  }
 0x133   : > { %2642 = vmatpush2.bf16.msra.mxu1 %v5298_v20  ;;  %2570 = vmatprep.subr.bf16.mxu0 %v5303_v27  ;;  %v5343_v20 = vld [vmem:[%s5918_s7 + $0x610] ss:$8 sps:$4 sm:$0xff]  }
 0x134   : > { %2643 = vmatprep.subr.bf16.mxu1 %v5306_v21  ;;  %v5346_v27 = vld [vmem:[%s5918_s7 + $0x710] ss:$8 sps:$4 sm:$0xff]   ;;  %v5351_v21 = vld [vmem:[%s5918_s7 + $0x604] ss:$8 sps:$4 sm:$0xff]  }
 0x136   : > { %2571 = vmatpush2.bf16.msra.mxu0 %v5301_v6  ;;  %v5354_v6 = vld [vmem:[%s5918_s7 + $0x704] ss:$8 sps:$4 sm:$0xff]  }
 0x137   : > { %2644 = vmatpush2.bf16.msra.mxu1 %v5304_v61  ;;  %3310 = vmatprep.subr.bf16.mxu0 %v5309_v40  ;;  %v5349_v61 = vld [vmem:[%s5918_s7 + $0x600] ss:$8 sps:$4 sm:$0xff]  }
 0x138   : > { %3383 = vmatprep.subr.bf16.mxu1 %v5312_v52  ;;  %v5352_v40 = vld [vmem:[%s5918_s7 + $0x700] ss:$8 sps:$4 sm:$0xff]   ;;  %v5357_v52 = vld [vmem:[%s5918_s7 + $0x6f4] ss:$8 sps:$4 sm:$0xff]  }
 0x139   : > { %2573 = vmatmul.mubr.bf16.vlgmr.msra.gmra.mxu0 %v4426_v38  ;;  %v5360_v38 = vld [vmem:[%s5918_s7 + $0x7f4] ss:$8 sps:$4 sm:$0xff]  }
 0x13a   : > { %2646 = vmatmul.mubr.bf16.vlgmr.msra.gmra.mxu1 %v4428_v42  ;;  %3311 = vmatpush1.bf16.msra.mxu0 %v5307_v30  ;;  %v5355_v42 = vld [vmem:[%s5918_s7 + $0x6f0] ss:$8 sps:$4 sm:$0xff]  }
 0x13b   : > { %3384 = vmatpush1.bf16.msra.mxu1 %v5310_v23  ;;  %3312 = vmatprep.subr.bf16.mxu0 %v5315_v54  ;;  %v5358_v30 = vld [vmem:[%s5918_s7 + $0x7f0] ss:$8 sps:$4 sm:$0xff]   ;;  %v5363_v23 = vld [vmem:[%s5918_s7 + $0x6e4] ss:$8 sps:$4 sm:$0xff]  }
 0x13c   : > { %3385 = vmatprep.subr.bf16.mxu1 %v5318_v9  ;;  %2582 = vmatprep.mubr.bf16.mxu0 %v7550_v63  ;;  %v5366_v54 = vld [vmem:[%s5918_s7 + $0x7e4] ss:$8 sps:$4 sm:$0xff]   ;;  %v5361_v9 = vld [vmem:[%s5918_s7 + $0x6e0] ss:$8 sps:$4 sm:$0xff]  }
 0x13d   : > { %4821 = vmatprep.mubr.msk.bf16.mxu1 %vm6695_vm7, %v7551_v25 }
 0x13e   : > { %3313 = vmatpush1.bf16.msra.mxu0 %v5313_v19  ;;  %v5369_v19 = vld [vmem:[%s5918_s7 + $0x6d4] ss:$8 sps:$4 sm:$0xff]  }
 0x13f   : > { %3386 = vmatpush1.bf16.msra.mxu1 %v5316_v32  ;;  %3314 = vmatprep.subr.bf16.mxu0 %v5321_v49  ;;  %v5372_v32 = vld [vmem:[%s5918_s7 + $0x7d4] ss:$8 sps:$4 sm:$0xff]   ;;  %v5367_v49 = vld [vmem:[%s5918_s7 + $0x6d0] ss:$8 sps:$4 sm:$0xff]  }
 0x140   : > { %3387 = vmatprep.subr.bf16.mxu1 %v5324_v4  ;;  %v5370_v4 = vld [vmem:[%s5918_s7 + $0x7d0] ss:$8 sps:$4 sm:$0xff]  }
 0x141   : > { %2583 = vmatmul.mubr.bf16.gmra.mxu0 %v7552_v45 }
 0x142   : > { %4824 = vmatmul.mubr.msk.bf16.gmra.mxu1 %vm6695_vm7, %v7553_v35  ;;  %3315 = vmatpush1.bf16.msra.mxu0 %v5319_v60  ;;  %v5378_v60 = vld [vmem:[%s5918_s7 + $0x7c4] ss:$8 sps:$4 sm:$0xff]  }
 0x143   : > { %3388 = vmatpush1.bf16.msra.mxu1 %v5322_v5  ;;  %3316 = vmatprep.subr.bf16.mxu0 %v5327_v2  ;;  %v5373_v5 = vld [vmem:[%s5918_s7 + $0x6c0] ss:$8 sps:$4 sm:$0xff]  }
 0x144   : > { %3389 = vmatprep.subr.bf16.mxu1 %v5330_v24  ;;  %2592 = vmatprep.mubr.bf16.mxu0 %v7554_v44  ;;  %v5376_v2 = vld [vmem:[%s5918_s7 + $0x7c0] ss:$8 sps:$4 sm:$0xff]   ;;  %v5381_v24 = vld [vmem:[%s5918_s7 + $0x6b4] ss:$8 sps:$4 sm:$0xff]  }
 0x145   : > { %4827 = vmatprep.mubr.msk.bf16.mxu1 %vm6757_vm10, %v7555_v57 }
 0x146   : > { %3317 = vmatpush1.bf16.msra.mxu0 %v5325_v36  ;;  %v5384_v36 = vld [vmem:[%s5918_s7 + $0x7b4] ss:$8 sps:$4 sm:$0xff]  }
 0x147   : > { %3390 = vmatpush1.bf16.msra.mxu1 %v5328_v39  ;;  %3318 = vmatprep.subr.bf16.mxu0 %v5333_v43  ;;  %v5379_v39 = vld [vmem:[%s5918_s7 + $0x6b0] ss:$8 sps:$4 sm:$0xff]  }
 0x148   : > { %3391 = vmatprep.subr.bf16.mxu1 %v5336_v13  ;;  %v5382_v43 = vld [vmem:[%s5918_s7 + $0x7b0] ss:$8 sps:$4 sm:$0xff]   ;;  %v5387_v13 = vld [vmem:[%s5918_s7 + $0x6a4] ss:$8 sps:$4 sm:$0xff]  }
 0x149   : > { %2593 = vmatmul.mubr.bf16.gmra.mxu0 %v7556_v26 }
 0x14a   : > { %4830 = vmatmul.mubr.msk.bf16.gmra.mxu1 %vm6757_vm10, %v7557_v1  ;;  %3319 = vmatpush1.bf16.msra.mxu0 %v5331_v22  ;;  %v5390_v22 = vld [vmem:[%s5918_s7 + $0x7a4] ss:$8 sps:$4 sm:$0xff]  }
 0x14b   : > { %3392 = vmatpush1.bf16.msra.mxu1 %v5334_v7  ;;  %3320 = vmatprep.subr.bf16.mxu0 %v5339_v16  ;;  %v5385_v7 = vld [vmem:[%s5918_s7 + $0x6a0] ss:$8 sps:$4 sm:$0xff]  }
 0x14c   : > { %3393 = vmatprep.subr.bf16.mxu1 %v5342_v55  ;;  %2602 = vmatprep.mubr.bf16.mxu0 %v6480_v3  ;;  %v5388_v16 = vld [vmem:[%s5918_s7 + $0x7a0] ss:$8 sps:$4 sm:$0xff]   ;;  %v5393_v55 = vld [vmem:[%s5918_s7 + $0x694] ss:$8 sps:$4 sm:$0xff]  }
 0x14d   : > { %4833 = vmatprep.mubr.msk.bf16.mxu1 %vm6789_vm14, %v6490_v10 }
 0x14e   : > { %3321 = vmatpush1.bf16.msra.mxu0 %v5337_v62  ;;  %v5396_v62 = vld [vmem:[%s5918_s7 + $0x794] ss:$8 sps:$4 sm:$0xff]  }
 0x14f   : > { %3394 = vmatpush1.bf16.msra.mxu1 %v5340_v34  ;;  %3322 = vmatprep.subr.bf16.mxu0 %v5345_v28  ;;  %v5391_v34 = vld [vmem:[%s5918_s7 + $0x690] ss:$8 sps:$4 sm:$0xff]  }
 0x150   : > { %3395 = vmatprep.subr.bf16.mxu1 %v5348_v33  ;;  %v5394_v28 = vld [vmem:[%s5918_s7 + $0x790] ss:$8 sps:$4 sm:$0xff]   ;;  %v5399_v33 = vld [vmem:[%s5918_s7 + $0x684] ss:$8 sps:$4 sm:$0xff]  }
 0x151   : > { %2603 = vmatmul.mubr.bf16.gmra.mxu0 %v6486_v8 }
 0x152   : > { %4836 = vmatmul.mubr.msk.bf16.gmra.mxu1 %vm6789_vm14, %v6494_v0  ;;  %3323 = vmatpush1.bf16.msra.mxu0 %v5343_v20  ;;  %v5402_v20 = vld [vmem:[%s5918_s7 + $0x784] ss:$8 sps:$4 sm:$0xff]  }
 0x153   : > { %3396 = vmatpush1.bf16.msra.mxu1 %v5346_v27  ;;  %3324 = vmatprep.subr.bf16.mxu0 %v5351_v21  ;;  %v5397_v27 = vld [vmem:[%s5918_s7 + $0x680] ss:$8 sps:$4 sm:$0xff]  }
 0x154   : > { %3397 = vmatprep.subr.bf16.mxu1 %v5354_v6  ;;  %4839 = vmatprep.mubr.msk.bf16.mxu0 %vm6577_vm12, %v6569_v48  ;;  %v5364_v48 = vld [vmem:[%s5918_s7 + $0x7e0] ss:$8 sps:$4 sm:$0xff]   ;;  %v5405_v6 = vld [vmem:[%s5918_s7 + $0x874] ss:$8 sps:$4 sm:$0xff]  }
 0x155   : > { %3415 = vmatprep.mubr.bf16.mxu1 %v7550_v63  ;;  %v5375_v63 = vld [vmem:[%s5918_s7 + $0x6c4] ss:$8 sps:$4 sm:$0xff]   ;;  %v5400_v21 = vld [vmem:[%s5918_s7 + $0x780] ss:$8 sps:$4 sm:$0xff]  }
 0x156   : > { %3325 = vmatpush1.bf16.msra.mxu0 %v5349_v61  ;;  %v5403_v61 = vld [vmem:[%s5918_s7 + $0x870] ss:$8 sps:$4 sm:$0xff]  }
 0x157   : > { %3398 = vmatpush1.bf16.msra.mxu1 %v5352_v40  ;;  %3326 = vmatprep.subr.bf16.mxu0 %v5357_v52  ;;  %v5408_v40 = vld [vmem:[%s5918_s7 + $0x864] ss:$8 sps:$4 sm:$0xff]  }
 0x158   : > { %3399 = vmatprep.subr.bf16.mxu1 %v5360_v38 }
 0x15a   : > { %3327 = vmatpush2.bf16.msra.mxu0 %v5355_v42 }
 0x15b   : > { %3400 = vmatpush2.bf16.msra.mxu1 %v5358_v30  ;;  %3328 = vmatprep.subr.bf16.mxu0 %v5363_v23  ;;  %v5406_v30 = vld [vmem:[%s5918_s7 + $0x860] ss:$8 sps:$4 sm:$0xff]  }
 0x15c   : > { %3401 = vmatprep.subr.bf16.mxu1 %v5366_v54 }
 0x15e   : > { %3329 = vmatpush2.bf16.msra.mxu0 %v5361_v9  ;;  %v5411_v9 = vld [vmem:[%s5918_s7 + $0x854] ss:$8 sps:$4 sm:$0xff]  }
 0x15f   : > { %3402 = vmatpush2.bf16.msra.mxu1 %v5364_v48  ;;  %3330 = vmatprep.subr.bf16.mxu0 %v5369_v19  ;;  %v5409_v19 = vld [vmem:[%s5918_s7 + $0x850] ss:$8 sps:$4 sm:$0xff]  }
 0x160   : > { %3403 = vmatprep.subr.bf16.mxu1 %v5372_v32 }
 0x162   : > { %3331 = vmatpush2.bf16.msra.mxu0 %v5367_v49 }
 0x163   : > { %3404 = vmatpush2.bf16.msra.mxu1 %v5370_v4  ;;  %3332 = vmatprep.subr.bf16.mxu0 %v5375_v63  ;;  %v5414_v4 = vld [vmem:[%s5918_s7 + $0x844] ss:$8 sps:$4 sm:$0xff]  }
 0x164   : > { %3405 = vmatprep.subr.bf16.mxu1 %v5378_v60  ;;  %v7558_v60 = vld [vmem:[#allocation30_spill] sm:$0xff] }
 0x166   : > { %3333 = vmatpush2.bf16.msra.mxu0 %v5373_v5  ;;  %v844_v5 = vsel %vm6292_vm11, %v7558_v60, 0.0 }
 0x167   : > { %3406 = vmatpush2.bf16.msra.mxu1 %v5376_v2  ;;  %3334 = vmatprep.subr.bf16.mxu0 %v5381_v24  ;;  %v5412_v2 = vld [vmem:[%s5918_s7 + $0x840] ss:$8 sps:$4 sm:$0xff]   ;;  %v5417_v24 = vld [vmem:[%s5918_s7 + $0x834] ss:$8 sps:$4 sm:$0xff]  }
 0x168   : > { %3407 = vmatprep.subr.bf16.mxu1 %v5384_v36 }
 0x16a   : > { %3335 = vmatpush2.bf16.msra.mxu0 %v5379_v39 }
 0x16b   : > { %3408 = vmatpush2.bf16.msra.mxu1 %v5382_v43  ;;  %3336 = vmatprep.subr.bf16.mxu0 %v5387_v13  ;;  %v5415_v13 = vld [vmem:[%s5918_s7 + $0x830] ss:$8 sps:$4 sm:$0xff]  }
 0x16c   : > { %3409 = vmatprep.subr.bf16.mxu1 %v5390_v22 }
 0x16e   : > { %3337 = vmatpush2.bf16.msra.mxu0 %v5385_v7  ;;  %v5420_v7 = vld [vmem:[%s5918_s7 + $0x824] ss:$8 sps:$4 sm:$0xff]  }
 0x16f   : > { %3410 = vmatpush2.bf16.msra.mxu1 %v5388_v16  ;;  %3338 = vmatprep.subr.bf16.mxu0 %v5393_v55 }
 0x170   : > { %3411 = vmatprep.subr.bf16.mxu1 %v5396_v62 }
 0x172   : > { %3339 = vmatpush2.bf16.msra.mxu0 %v5391_v34 }
 0x173   : > { %3412 = vmatpush2.bf16.msra.mxu1 %v5394_v28  ;;  %3340 = vmatprep.subr.bf16.mxu0 %v5399_v33  ;;  %v5418_v33 = vld [vmem:[%s5918_s7 + $0x820] ss:$8 sps:$4 sm:$0xff]  }
 0x174   : > { %3413 = vmatprep.subr.bf16.mxu1 %v5402_v20 }
 0x176   : > { %3341 = vmatpush2.bf16.msra.mxu0 %v5397_v27  ;;  %v5423_v27 = vld [vmem:[%s5918_s7 + $0x814] ss:$8 sps:$4 sm:$0xff]  }
 0x177   : > { %3414 = vmatpush2.bf16.msra.mxu1 %v5400_v21  ;;  %3456 = vmatprep.subr.bf16.mxu0 %v5405_v6 }
 0x178   : > { %4873 = vmatprep.subr.bf16.mxu1 %v5405_v6 }
 0x179   : > { %v1745_v52 = vpop.f32.mrf.mxu0  ;;  %4842 = vmatmul.mubr.msk.bf16.vlgmr.msra.gmra.mxu0 %vm6577_vm12, %v6606_v17 }
 0x17a   : > { %v1818_v38 = vpop.f32.mrf.mxu1  ;;  %3416 = vmatmul.mubr.bf16.vlgmr.msra.gmra.mxu1 %v7552_v45  ;;  %3457 = vmatpush1.bf16.msra.mxu0 %v5403_v61 }
 0x17b   : > { %v6928_v42 = vadd.f32 %v1818_v38, %v1745_v52  ;;  %4889 = vmatpush1.bf16.msra.mxu1 %v5403_v61  ;;  %v1747_v23 = vpop.f32.mrf.mxu0  ;;  %3458 = vmatprep.subr.bf16.mxu0 %v5408_v40  ;;  %v5421_v52 = vld [vmem:[%s5918_s7 + $0x810] ss:$8 sps:$4 sm:$0xff]  }
 0x17c   : > { %v1820_v54 = vpop.f32.mrf.mxu1  ;;  %4874 = vmatprep.subr.bf16.mxu1 %v5408_v40  ;;  %4845 = vmatprep.mubr.msk.bf16.mxu0 %vm6646_vm0, %v6631_v12 }
 0x17d   : > { %v6932_v48 = vadd.f32 %v1820_v54, %v1747_v23  ;;  %3425 = vmatprep.mubr.bf16.mxu1 %v7554_v44  ;;  %v1749_v31 = vpop.f32.mrf.mxu0  ;;  %v843_v44 = vsel %vm6292_vm11, %v6420_v58, 0.0 }
 0x17e   : > { %v1822_v17 = vpop.f32.mrf.mxu1  ;;  %3459 = vmatpush1.bf16.msra.mxu0 %v5406_v30  ;;  %v4694_v58 = vpack.c.bf16 %v844_v5, %v843_v44 }
 0x17f   : > { %v6938_v45 = vadd.f32 %v1822_v17, %v1749_v31  ;;  %4890 = vmatpush1.bf16.msra.mxu1 %v5406_v30  ;;  %v1751_v32 = vpop.f32.mrf.mxu0  ;;  %3460 = vmatprep.subr.bf16.mxu0 %v5411_v9  ;;  %v5426_v30 = vld [vmem:[%s5918_s7 + $0x804] ss:$8 sps:$4 sm:$0xff]  }
 0x180   : > { %v1824_v49 = vpop.f32.mrf.mxu1  ;;  %4875 = vmatprep.subr.bf16.mxu1 %v5411_v9  ;;  %v4563_v55 = vcombine.high %v4694_v58, %v7515_v46 }
 0x181   : > { %v6942_v63 = vadd.f32 %v1824_v49, %v1751_v32  ;;  %4848 = vmatmul.mubr.msk.bf16.gmra.mxu0 %vm6646_vm0, %v6673_v18  ;;  %v5429_v49 = vld [vmem:[%s5918_s7 + $0x8f4] ss:$8 sps:$4 sm:$0xff]  }
 0x182   : > { %3426 = vmatmul.mubr.bf16.gmra.mxu1 %v7556_v26  ;;  %v1828_v12 = vpop.f32.mrf.mxu1  ;;  %3461 = vmatpush1.bf16.msra.mxu0 %v5409_v19  ;;  %v5451_v26 = vld [vmem:[#allocation3 + $0x28] sm:$0xff] }
 0x183   : > { %4891 = vmatpush1.bf16.msra.mxu1 %v5409_v19  ;;  %3462 = vmatprep.subr.bf16.mxu0 %v5414_v4  ;;  %v4702_v36 = vpack.c.bf16 %v5451_v26, %v5452_v59  ;;  %v5424_v19 = vld [vmem:[%s5918_s7 + $0x800] ss:$8 sps:$4 sm:$0xff]  }
 0x184   : > { %4876 = vmatprep.subr.bf16.mxu1 %v5414_v4  ;;  %v1830_v47 = vpop.f32.mrf.mxu1  ;;  %v1755_v18 = vpop.f32.mrf.mxu0  ;;  %4851 = vmatprep.mubr.msk.bf16.mxu0 %vm6723_vm15, %v6708_v51 }
 0x185   : > { %3435 = vmatprep.mubr.bf16.mxu1 %v6480_v3  ;;  %v6960_v39 = vadd.f32 %v1828_v12, %v1755_v18  ;;  %v4565_v62 = vcombine.high %v4702_v36, %v7515_v46  ;;  %v4564_v40 = vcombine.low %v4702_v36, %v7515_v46  ;;  %v5435_v36 = vld [vmem:[%s5918_s7 + $0x8d4] ss:$8 sps:$4 sm:$0xff]  }
 0x186   : > { %v1832_v43 = vpop.f32.mrf.mxu1  ;;  %3463 = vmatpush1.bf16.msra.mxu0 %v5412_v2  ;;  %v1757_v22 = vpop.f32.mrf.mxu0 }
 0x187   : > { %4892 = vmatpush1.bf16.msra.mxu1 %v5412_v2  ;;  %3464 = vmatprep.subr.bf16.mxu0 %v5417_v24  ;;  %v6964_v16 = vadd.f32 %v1830_v47, %v1757_v22  ;;  %v5427_v2 = vld [vmem:[%s5918_s7 + $0x8f0] ss:$8 sps:$4 sm:$0xff]   ;;  %v5432_v47 = vld [vmem:[%s5918_s7 + $0x8e4] ss:$8 sps:$4 sm:$0xff]  }
 0x188   : > { %4877 = vmatprep.subr.bf16.mxu1 %v5417_v24  ;;  %v1834_v51 = vpop.f32.mrf.mxu1  ;;  %v1759_v3 = vpop.f32.mrf.mxu0  ;;  %v5438_v22 = vld [vmem:[%s5918_s7 + $0x8c4] ss:$8 sps:$4 sm:$0xff]  }
 0x189   : > { %v6968_v34 = vadd.f32 %v1832_v43, %v1759_v3  ;;  %4854 = vmatmul.mubr.msk.bf16.gmra.mxu0 %vm6723_vm15, %v6766_v15  ;;  %v5439_v3 = vld [vmem:[%s5918_s7 + $0x8b0] ss:$8 sps:$4 sm:$0xff]  }
 0x18a   : > { %3436 = vmatmul.mubr.bf16.gmra.mxu1 %v6486_v8  ;;  %v1838_v28 = vpop.f32.mrf.mxu1  ;;  %3465 = vmatpush1.bf16.msra.mxu0 %v5415_v13  ;;  %v1761_v20 = vpop.f32.mrf.mxu0  ;;  %v4562_v8 = vcombine.low %v4694_v58, %v7515_v46 }
 0x18b   : > { %4893 = vmatpush1.bf16.msra.mxu1 %v5415_v13  ;;  %3466 = vmatprep.subr.bf16.mxu0 %v5420_v7  ;;  %v6976_v21 = vadd.f32 %v1834_v51, %v1761_v20  ;;  %v5433_v13 = vld [vmem:[%s5918_s7 + $0x8d0] ss:$8 sps:$4 sm:$0xff]   ;;  %v5441_v51 = vld [vmem:[%s5918_s7 + $0x8b4] ss:$8 sps:$4 sm:$0xff]   ;;  %v5450_v20 = vld [vmem:[%s5918_s7 + $0x884] ss:$8 sps:$4 sm:$0xff]  }
 0x18c   : > { %4878 = vmatprep.subr.bf16.mxu1 %v5420_v7  ;;  %v1840_v6 = vpop.f32.mrf.mxu1  ;;  %v1765_v61 = vpop.f32.mrf.mxu0  ;;  %3372 = vmatprep.mubr.bf16.mxu0 %v4563_v55  ;;  %v5436_v7 = vld [vmem:[%s5918_s7 + $0x8c0] ss:$8 sps:$4 sm:$0xff]   ;;  %v5444_v55 = vld [vmem:[%s5918_s7 + $0x8a4] ss:$8 sps:$4 sm:$0xff]  }
 0x18d   : > { %3445 = vmatprep.mubr.bf16.mxu1 %v4565_v62  ;;  %v6978_v37 = vadd.f32 %v1838_v28, %v1765_v61  ;;  %v5442_v62 = vld [vmem:[%s5918_s7 + $0x8a0] ss:$8 sps:$4 sm:$0xff]   ;;  %v5447_v28 = vld [vmem:[%s5918_s7 + $0x894] ss:$8 sps:$4 sm:$0xff]  }
 0x18e   : > { %v1842_v15 = vpop.f32.mrf.mxu1  ;;  %3467 = vmatpush1.bf16.msra.mxu0 %v5418_v33  ;;  %v1767_v38 = vpop.f32.mrf.mxu0  ;;  %v5448_v61 = vld [vmem:[%s5918_s7 + $0x880] ss:$8 sps:$4 sm:$0xff]  }
 0x18f   : > { %4894 = vmatpush1.bf16.msra.mxu1 %v5418_v33  ;;  %3468 = vmatprep.subr.bf16.mxu0 %v5423_v27  ;;  %v6984_v23 = vadd.f32 %v1840_v6, %v1767_v38  ;;  %v5445_v33 = vld [vmem:[%s5918_s7 + $0x890] ss:$8 sps:$4 sm:$0xff]   ;;  %v909_v6 = vsel %vm6677_vm8, %v6687_v56, 0.0 }
 0x190   : > { %4879 = vmatprep.subr.bf16.mxu1 %v5423_v27  ;;  %v1844_v54 = vpop.f32.mrf.mxu1  ;;  %v1769_v9 = vpop.f32.mrf.mxu0  ;;  %v908_v27 = vsel %vm6677_vm8, %v6739_v29, 0.0 }
 0x191   : > { %v6986_v31 = vadd.f32 %v1842_v15, %v1769_v9  ;;  %3373 = vmatmul.mubr.bf16.gmra.mxu0 %v4562_v8  ;;  %v4710_v15 = vpack.c.bf16 %v909_v6, %v908_v27 }
 0x192   : > { %3446 = vmatmul.mubr.bf16.gmra.mxu1 %v4564_v40  ;;  %v1848_v17 = vpop.f32.mrf.mxu1  ;;  %3469 = vmatpush1.bf16.msra.mxu0 %v5421_v52  ;;  %v1771_v32 = vpop.f32.mrf.mxu0 }
 0x193   : > { %4895 = vmatpush1.bf16.msra.mxu1 %v5421_v52  ;;  %3470 = vmatprep.subr.bf16.mxu0 %v5426_v30  ;;  %v6990_v4 = vadd.f32 %v1844_v54, %v1771_v32  ;;  %v4567_v8 = vcombine.high %v4710_v15, %v7515_v46 }
 0x194   : > { %4880 = vmatprep.subr.bf16.mxu1 %v5426_v30  ;;  %v1850_v12 = vpop.f32.mrf.mxu1  ;;  %v1775_v44 = vpop.f32.mrf.mxu0  ;;  %4857 = vmatprep.mubr.msk.bf16.mxu0 %vm6695_vm7, %v7551_v25 }
 0x195   : > { %4869 = vmatprep.mubr.msk.bf16.mxu1 %vm6789_vm14, %v6490_v10  ;;  %v6998_v60 = vadd.f32 %v1848_v17, %v1775_v44  ;;  %v5430_v10 = vld [vmem:[%s5918_s7 + $0x8e0] ss:$8 sps:$4 sm:$0xff]  }
 0x196   : > { %v1852_v5 = vpop.f32.mrf.mxu1  ;;  %3471 = vmatpush1.bf16.msra.mxu0 %v5424_v19  ;;  %v1777_v24 = vpop.f32.mrf.mxu0 }
 0x197   : > { %4896 = vmatpush1.bf16.msra.mxu1 %v5424_v19  ;;  %3472 = vmatprep.subr.bf16.mxu0 %v5429_v49  ;;  %v7002_v18 = vadd.f32 %v1850_v12, %v1777_v24 }
 0x198   : > { %4881 = vmatprep.subr.bf16.mxu1 %v5429_v49  ;;  %v1779_v25 = vpop.f32.mrf.mxu0  ;;  %v1854_v58 = vpop.f32.mrf.mxu1 }
 0x199   : > { %v7004_v26 = vadd.f32 %v1852_v5, %v1779_v25 }
 0x19a   : > { %3473 = vmatpush2.bf16.msra.mxu0 %v5427_v2  ;;  %v1781_v59 = vpop.f32.mrf.mxu0 }
 0x19b   : > { %4897 = vmatpush2.bf16.msra.mxu1 %v5427_v2  ;;  %3474 = vmatprep.subr.bf16.mxu0 %v5432_v47  ;;  %v7008_v43 = vadd.f32 %v1854_v58, %v1781_v59 }
 0x19c   : > { %4882 = vmatprep.subr.bf16.mxu1 %v5432_v47 }
 0x19e   : > { %3475 = vmatpush2.bf16.msra.mxu0 %v5430_v10 }
 0x19f   : > { %4898 = vmatpush2.bf16.msra.mxu1 %v5430_v10  ;;  %3476 = vmatprep.subr.bf16.mxu0 %v5435_v36 }
 0x1a0   : > { %4883 = vmatprep.subr.bf16.mxu1 %v5435_v36 }
 0x1a2   : > { %3477 = vmatpush2.bf16.msra.mxu0 %v5433_v13 }
 0x1a3   : > { %4899 = vmatpush2.bf16.msra.mxu1 %v5433_v13  ;;  %3478 = vmatprep.subr.bf16.mxu0 %v5438_v22 }
 0x1a4   : > { %4884 = vmatprep.subr.bf16.mxu1 %v5438_v22 }
 0x1a6   : > { %3479 = vmatpush2.bf16.msra.mxu0 %v5436_v7 }
 0x1a7   : > { %4900 = vmatpush2.bf16.msra.mxu1 %v5436_v7  ;;  %3480 = vmatprep.subr.bf16.mxu0 %v5441_v51 }
 0x1a8   : > { %4885 = vmatprep.subr.bf16.mxu1 %v5441_v51 }
 0x1aa   : > { %3481 = vmatpush2.bf16.msra.mxu0 %v5439_v3 }
 0x1ab   : > { %4901 = vmatpush2.bf16.msra.mxu1 %v5439_v3  ;;  %3482 = vmatprep.subr.bf16.mxu0 %v5444_v55 }
 0x1ac   : > { %4886 = vmatprep.subr.bf16.mxu1 %v5444_v55 }
 0x1ae   : > { %3483 = vmatpush2.bf16.msra.mxu0 %v5442_v62 }
 0x1af   : > { %4902 = vmatpush2.bf16.msra.mxu1 %v5442_v62  ;;  %3484 = vmatprep.subr.bf16.mxu0 %v5447_v28 }
 0x1b0   : > { %4887 = vmatprep.subr.bf16.mxu1 %v5447_v28 }
 0x1b2   : > { %3485 = vmatpush2.bf16.msra.mxu0 %v5445_v33 }
 0x1b3   : > { %4903 = vmatpush2.bf16.msra.mxu1 %v5445_v33  ;;  %3486 = vmatprep.subr.bf16.mxu0 %v5450_v20 }
 0x1b4   : > { %4888 = vmatprep.subr.bf16.mxu1 %v5450_v20 }
 0x1b6   : > { %3487 = vmatpush2.bf16.msra.mxu0 %v5448_v61 }
 0x1b7   : > { %4904 = vmatpush2.bf16.msra.mxu1 %v5448_v61 }
 0x1b9   : > { %v1891_v40 = vpop.f32.mrf.mxu0  ;;  %4860 = vmatmul.mubr.msk.bf16.vlgmr.msra.gmra.mxu0 %vm6695_vm7, %v7553_v35  ;;  %v4566_v35 = vcombine.low %v4710_v15, %v7515_v46 }
 0x1ba   : > { %v2501_v52 = vpop.f32.mrf.mxu1  ;;  %4872 = vmatmul.mubr.msk.bf16.vlgmr.msra.gmra.mxu1 %vm6789_vm14, %v6494_v0  ;;  %v1892_v50 = vadd.f32 %v1891_v40, %v6928_v42  ;;  %4863 = vmatprep.mubr.msk.bf16.mxu0 %vm6757_vm10, %v7555_v57 }
 0x1bb   : > { %3518 = vmatprep.mubr.bf16.mxu1 %v4567_v8  ;;  %v1893_v56 = vpop.f32.mrf.mxu0 }
 0x1bc   : > { %v2503_v29 = vpop.f32.mrf.mxu1  ;;  %v7038_v38 = vadd.f32 %v2501_v52, %v1892_v50  ;;  %v1894_v30 = vadd.f32 %v1893_v56, %v6932_v48 }
 0x1bd   : > { %v1895_v54 = vpop.f32.mrf.mxu0 }
 0x1be   : > { %v2505_v14 = vpop.f32.mrf.mxu1  ;;  %v7042_v9 = vadd.f32 %v2503_v29, %v1894_v30  ;;  %v1896_v0 = vadd.f32 %v1895_v54, %v6938_v45 }
 0x1bf   : > { %v1897_v11 = vpop.f32.mrf.mxu0 }
 0x1c0   : > { %v2507_v42 = vpop.f32.mrf.mxu1  ;;  %v7045_v17 = vadd.f32 %v2505_v14, %v1896_v0  ;;  %v1898_v57 = vadd.f32 %v1897_v11, %v6942_v63 }
 0x1c1   : > { %v1901_v19 = vpop.f32.mrf.mxu0  ;;  %4866 = vmatmul.mubr.msk.bf16.gmra.mxu0 %vm6757_vm10, %v7557_v1 }
 0x1c2   : > { %3519 = vmatmul.mubr.bf16.gmra.mxu1 %v4566_v35  ;;  %v2511_v48 = vpop.f32.mrf.mxu1  ;;  %v2508_v32 = vadd.f32 %v2507_v42, %v1898_v57  ;;  %v1902_v46 = vadd.f32 %v1901_v19, %v6960_v39 }
 0x1c3   : > { %v1903_v49 = vpop.f32.mrf.mxu0 }
 0x1c4   : > { %v2513_v12 = vpop.f32.mrf.mxu1  ;;  %v1904_v45 = vadd.f32 %v1903_v49, %v6964_v16  ;;  %v2512_v44 = vadd.f32 %v2511_v48, %v1902_v46 }
 0x1c5   : > { %v1905_v5 = vpop.f32.mrf.mxu0 }
 0x1c6   : > { %v2515_v2 = vpop.f32.mrf.mxu1  ;;  %v1906_v24 = vadd.f32 %v1905_v5, %v6968_v34  ;;  %v2514_v63 = vadd.f32 %v2513_v12, %v1904_v45 }
 0x1c7   : > { %v1907_v47 = vpop.f32.mrf.mxu0 }
 0x1c8   : > { %v2517_v25 = vpop.f32.mrf.mxu1  ;;  %v1908_v41 = vadd.f32 %v1907_v47, %v6976_v21  ;;  %v2516_v1 = vadd.f32 %v2515_v2, %v1906_v24 }
 0x1c9   : > { %v1911_v58 = vpop.f32.mrf.mxu0 }
 0x1ca   : > { %v2521_v10 = vpop.f32.mrf.mxu1  ;;  %v1912_v59 = vadd.f32 %v1911_v58, %v6978_v37  ;;  %v2518_v39 = vadd.f32 %v2517_v25, %v1908_v41 }
 0x1cb   : > { %v1913_v36 = vpop.f32.mrf.mxu0 }
 0x1cc   : > { %v2523_v13 = vpop.f32.mrf.mxu1  ;;  %v1914_v16 = vadd.f32 %v1913_v36, %v6984_v23  ;;  %v7057_v22 = vadd.f32 %v2521_v10, %v1912_v59 }
 0x1cd   : > { %v1915_v7 = vpop.f32.mrf.mxu0 }
 0x1ce   : > { %v2525_v51 = vpop.f32.mrf.mxu1  ;;  %v1916_v34 = vadd.f32 %v1915_v7, %v6986_v31  ;;  %v7060_v3 = vadd.f32 %v2523_v13, %v1914_v16 }
 0x1cf   : > { %v1917_v55 = vpop.f32.mrf.mxu0 }
 0x1d0   : > { %v2527_v21 = vpop.f32.mrf.mxu1  ;;  %v1918_v62 = vadd.f32 %v1917_v55, %v6990_v4  ;;  %v7063_v28 = vadd.f32 %v2525_v51, %v1916_v34 }
 0x1d1   : > { %v1921_v37 = vpop.f32.mrf.mxu0 }
 0x1d2   : > { %v2531_v33 = vpop.f32.mrf.mxu1  ;;  %v1922_v20 = vadd.f32 %v1921_v37, %v6998_v60  ;;  %v7066_v27 = vadd.f32 %v2527_v21, %v1918_v62 }
 0x1d3   : > { %v1923_v23 = vpop.f32.mrf.mxu0 }
 0x1d4   : > { %v2533_v6 = vpop.f32.mrf.mxu1  ;;  %v1924_v61 = vadd.f32 %v1923_v23, %v7002_v18  ;;  %v7069_v15 = vadd.f32 %v2531_v33, %v1922_v20 }
 0x1d5   : > { %v1925_v31 = vpop.f32.mrf.mxu0 }
 0x1d6   : > { %v2535_v8 = vpop.f32.mrf.mxu1  ;;  %v1926_v40 = vadd.f32 %v1925_v31, %v7004_v26  ;;  %v7072_v52 = vadd.f32 %v2533_v6, %v1924_v61 }
 0x1d7   : > { %v1927_v4 = vpop.f32.mrf.mxu0 }
 0x1d8   : > { %v2537_v50 = vpop.f32.mrf.mxu1  ;;  %v1928_v56 = vadd.f32 %v1927_v4, %v7008_v43  ;;  %v7075_v29 = vadd.f32 %v2535_v8, %v1926_v40 }
 0x1da   : > { %v7077_v60 = vadd.f32 %v2537_v50, %v1928_v56 }
 0x1f9   : > { %v2574_v30 = vpop.f32.mrf.mxu0 }
 0x1fa   : > { %v2647_v54 = vpop.f32.mrf.mxu1  ;;  %v2575_v18 = vadd.f32 %v2574_v30, %v7038_v38 }
 0x1fb   : > { %v2576_v14 = vpop.f32.mrf.mxu0 }
 0x1fc   : > { %v2649_v35 = vpop.f32.mrf.mxu1  ;;  %v7080_v0 = vadd.f32 %v2647_v54, %v2575_v18  ;;  %v2577_v26 = vadd.f32 %v2576_v14, %v7042_v9 }
 0x1fd   : > { %v2578_v11 = vpop.f32.mrf.mxu0 }
 0x1fe   : > { %v2651_v42 = vpop.f32.mrf.mxu1  ;;  %v7083_v57 = vadd.f32 %v2649_v35, %v2577_v26  ;;  %v2579_v43 = vadd.f32 %v2578_v11, %v7045_v17 }
 0x1ff   : > { %v2580_v19 = vpop.f32.mrf.mxu0 }
 0x200   : > { %v2653_v48 = vpop.f32.mrf.mxu1  ;;  %v7086_v46 = vadd.f32 %v2651_v42, %v2579_v43  ;;  %v2581_v49 = vadd.f32 %v2580_v19, %v2508_v32 }
 0x201   : > { %v2584_v12 = vpop.f32.mrf.mxu0 }
 0x202   : > { %v2657_v45 = vpop.f32.mrf.mxu1  ;;  %v7088_v38 = vadd.f32 %v2653_v48, %v2581_v49  ;;  %v2585_v5 = vadd.f32 %v2584_v12, %v2512_v44 }
 0x203   : > { %v2586_v2 = vpop.f32.mrf.mxu0 }
 0x204   : > { %v2659_v24 = vpop.f32.mrf.mxu1  ;;  %v2587_v47 = vadd.f32 %v2586_v2, %v2514_v63  ;;  %v7090_v9 = vadd.f32 %v2657_v45, %v2585_v5 }
 0x205   : > { %v2588_v25 = vpop.f32.mrf.mxu0 }
 0x206   : > { %7559 = vst [vmem:[#allocation24_spill] sm:$0xff] %v7090_v9  ;;  %v2661_v41 = vpop.f32.mrf.mxu1  ;;  %v2589_v58 = vadd.f32 %v2588_v25, %v2516_v1  ;;  %v7092_v10 = vadd.f32 %v2659_v24, %v2587_v47 }
 0x207   : > { %v2590_v17 = vpop.f32.mrf.mxu0 }
 0x208   : > { %7560 = vst [vmem:[#allocation18_spill] sm:$0xff] %v7092_v10  ;;  %v2663_v59 = vpop.f32.mrf.mxu1  ;;  %v2591_v36 = vadd.f32 %v2590_v17, %v2518_v39  ;;  %v7094_v13 = vadd.f32 %v2661_v41, %v2589_v58 }
 0x209   : > { %v2594_v16 = vpop.f32.mrf.mxu0 }
 0x20a   : > { %7561 = vst [vmem:[#allocation25_spill] sm:$0xff] %v7094_v13  ;;  %v7096_v32 = vadd.f32 %v2663_v59, %v2591_v36  ;;  %v2667_v7 = vpop.f32.mrf.mxu1  ;;  %v3549_v36 = vsub.s32 0, %v5993_v53  ;;  %v2595_v13 = vadd.f32 %v2594_v16, %v7057_v22 }
 0x20b   : > { %v2596_v44 = vpop.f32.mrf.mxu0 }
 0x20c   : > { %7562 = vst [vmem:[#allocation19_spill] sm:$0xff] %v7096_v32  ;;  %v2669_v51 = vpop.f32.mrf.mxu1  ;;  %v3553_v32 = vsub.s32 1, %v5993_v53  ;;  %v2597_v10 = vadd.f32 %v2596_v44, %v7060_v3 }
 0x20d   : > { %v2598_v34 = vpop.f32.mrf.mxu0 }
 0x20e   : > { %v2671_v63 = vpop.f32.mrf.mxu1 }
 0x20f   : > { %v2600_v55 = vpop.f32.mrf.mxu0 }
 0x210   : > { %v2673_v21 = vpop.f32.mrf.mxu1 }
 0x211   : > { %v2604_v62 = vpop.f32.mrf.mxu0 }
 0x212   : > { %v7098_v37 = vpop.f32.mrf.mxu1  ;;  %v2605_v9 = vadd.f32 %v2604_v62, %v7069_v15 }
 0x213   : > { %v2606_v1 = vpop.f32.mrf.mxu0 }
 0x214   : > { %v2679_v33 = vpop.f32.mrf.mxu1 }
 0x215   : > { %v2608_v20 = vpop.f32.mrf.mxu0 }
 0x216   : > { %v2681_v23 = vpop.f32.mrf.mxu1 }
 0x217   : > { %v2610_v39 = vpop.f32.mrf.mxu0 }
 0x218   : > { %v7100_v6 = vpop.f32.mrf.mxu1 }
 0x219   : > { %7563 = vst [vmem:[#allocation20_spill] sm:$0xff] %v7100_v6  ;;  %v2599_v6 = vadd.f32 %v2598_v34, %v7063_v28  ;;  %v2668_v28 = vadd.f32 %v2667_v7, %v2595_v13 }
 0x21b   : > { %v2672_v44 = vadd.f32 %v2671_v63, %v2599_v6 }
 0x239   : > { %v3344_v61 = vpop.f32.mrf.mxu0 }
 0x23a   : > { %v3417_v31 = vpop.f32.mrf.mxu1 }
 0x23b   : > { %v3346_v8 = vpop.f32.mrf.mxu0  ;;  %v3418_v53 = vadd.f32 %v3417_v31, %v3344_v61  ;;  %v2611_v61 = vadd.f32 %v2610_v39, %v7077_v60 }
 0x23c   : > { %v3419_v40 = vpop.f32.mrf.mxu1 }
 0x23d   : > { %v3348_v4 = vpop.f32.mrf.mxu0  ;;  %v3420_v62 = vadd.f32 %v3419_v40, %v3346_v8 }
 0x23e   : > { %v3421_v50 = vpop.f32.mrf.mxu1 }
 0x23f   : > { %v3350_v56 = vpop.f32.mrf.mxu0  ;;  %v3422_v63 = vadd.f32 %v3421_v50, %v3348_v4 }
 0x240   : > { %v3423_v30 = vpop.f32.mrf.mxu1 }
 0x241   : > { %v7102_v54 = vpop.f32.mrf.mxu0 }
 0x242   : > { %v7104_v18 = vpop.f32.mrf.mxu1 }
 0x243   : > { %v7106_v14 = vpop.f32.mrf.mxu0 }
 0x244   : > { %v7108_v35 = vpop.f32.mrf.mxu1 }
 0x245   : > { %v7110_v26 = vpop.f32.mrf.mxu0 }
 0x246   : > { %v7112_v11 = vpop.f32.mrf.mxu1 }
 0x247   : > { %v7114_v42 = vpop.f32.mrf.mxu0 }
 0x248   : > { %7564 = vst [vmem:[#allocation22_spill] sm:$0xff] %v7114_v42  ;;  %v7116_v43 = vpop.f32.mrf.mxu1  ;;  %v3545_v42 = vld [vmem:[%s268_s6] sm:$0x3] }
 0x249   : > { %7565 = vst [vmem:[#allocation21_spill] sm:$0xff] %v7116_v43  ;;  %v3364_v19 = vpop.f32.mrf.mxu0  ;;  %v2601_v43 = vadd.f32 %v2600_v55, %v7066_v27  ;;  %v7141_v16 = vrot.slane %v3545_v42, %v3549_v36  ;;  %v7143_v3 = vrot.slane %v3545_v42, %v3553_v32  ;;  %v2670_v27 = vadd.f32 %v2669_v51, %v2597_v10 }
 0x24a   : > { %v3437_v48 = vpop.f32.mrf.mxu1 }
 0x24b   : > { %v3366_v49 = vpop.f32.mrf.mxu0  ;;  %v3438_v22 = vadd.f32 %v3437_v48, %v3364_v19  ;;  %v2674_v34 = vadd.f32 %v2673_v21, %v2601_v43  ;;  %v3424_v21 = vadd.f32 %v3423_v30, %v3350_v56 }
 0x24c   : > { %v3439_v12 = vpop.f32.mrf.mxu1 }
 0x24d   : > { %v3368_v45 = vpop.f32.mrf.mxu0 }
 0x24e   : > { %v3441_v5 = vpop.f32.mrf.mxu1 }
 0x24f   : > { %v3370_v2 = vpop.f32.mrf.mxu0  ;;  %v3442_v6 = vadd.f32 %v3441_v5, %v3368_v45 }
 0x250   : > { %v3443_v24 = vpop.f32.mrf.mxu1 }
 0x251   : > { %v3374_v47 = vpop.f32.mrf.mxu0  ;;  %v3444_v8 = vadd.f32 %v3443_v24, %v3370_v2 }
 0x252   : > { %v3447_v25 = vpop.f32.mrf.mxu1 }
 0x253   : > { %v7118_v41 = vpop.f32.mrf.mxu0 }
 0x254   : > { %7566 = vst [vmem:[#allocation23_spill] sm:$0xff] %v7118_v41  ;;  %v7120_v58 = vpop.f32.mrf.mxu1 }
 0x255   : > { %7567 = vst [vmem:[#allocation26_spill] sm:$0xff] %v7120_v58  ;;  %v7122_v17 = vpop.f32.mrf.mxu0 }
 0x256   : > { %7568 = vst [vmem:[#allocation28_spill] sm:$0xff] %v7122_v17  ;;  %v7124_v59 = vpop.f32.mrf.mxu1  ;;  %v2607_v17 = vadd.f32 %v2606_v1, %v7072_v52  ;;  %v3440_v52 = vadd.f32 %v3439_v12, %v3366_v49  ;;  %v3432_v49 = vadd.f32 %v7112_v11, %v7110_v26 }
 0x257   : > { %7569 = vst [vmem:[#allocation27_spill] sm:$0xff] %v7124_v59  ;;  %v2609_v59 = vadd.f32 %v2608_v20, %v7075_v29  ;;  %v7137_v58 = vpop.f32.mrf.mxu0  ;;  %v2678_v20 = vadd.f32 %v7098_v37, %v2605_v9 }
 0x258   : > { %7570 = vst [vmem:[#allocation29_spill] sm:$0xff] %v7137_v58  ;;  %v7139_v41 = vpop.f32.mrf.mxu1  ;;  %v2680_v58 = vadd.f32 %v2679_v33, %v2607_v17 }
 0x259   : > { %v7147_v31 = vadd.f32 %v2681_v23, %v2609_v59  ;;  %v3448_v23 = vadd.f32 %v3447_v25, %v3374_v47 }
 0x25b   : > { %v7571_v25 = vld [vmem:[#allocation23_spill] sm:$0xff] }
 0x25c   : > { %v7572_v17 = vld [vmem:[#allocation26_spill] sm:$0xff] }
 0x25d   : > { %v3450_v59 = vadd.f32 %v7572_v17, %v7571_v25  ;;  %v7573_v36 = vld [vmem:[#allocation28_spill] sm:$0xff] }
 0x279   : > { %v3490_v55 = vpop.f32.mrf.mxu0 }
 0x27a   : > { %v3510_v15 = vpop.f32.mrf.mxu1  ;;  %v3491_v1 = vadd.f32 %v3490_v55, %v3418_v53  ;;  %v7576_v55 = vld [vmem:[#allocation22_spill] sm:$0xff] }
 0x27b   : > { %v3511_v29 = vadd.f32 %v3510_v15, %v3438_v22  ;;  %v3492_v19 = vpop.f32.mrf.mxu0  ;;  %v7574_v22 = vld [vmem:[#allocation27_spill] sm:$0xff]  ;;  %v7577_v15 = vld [vmem:[#allocation21_spill] sm:$0xff] }
 0x27c   : > { %v3512_v32 = vpop.f32.mrf.mxu1  ;;  %v3529_v13 = vadd.f32 %v3491_v1, %v7080_v0  ;;  %v3493_v7 = vadd.f32 %v3492_v19, %v3420_v62  ;;  %v3428_v0 = vadd.f32 %v7104_v18, %v7102_v54  ;;  %v3434_v62 = vadd.f32 %v7577_v15, %v7576_v55 }
 0x27d   : > { %v3537_v10 = vadd.f32 %v3511_v29, %v2668_v28  ;;  %v3513_v51 = vadd.f32 %v3512_v32, %v3440_v52  ;;  %v3494_v53 = vpop.f32.mrf.mxu0  ;;  %v3452_v28 = vadd.f32 %v7574_v22, %v7573_v36  ;;  %v7578_v52 = vld [vmem:[#allocation29_spill] sm:$0xff] }
 0x27e   : > { %v3514_v40 = vpop.f32.mrf.mxu1  ;;  %v7151_v9 = vadd.f32 %v7141_v16, %v3529_v13  ;;  %v3530_v37 = vadd.f32 %v3493_v7, %v7083_v57  ;;  %v3495_v39 = vadd.f32 %v3494_v53, %v3422_v63  ;;  %v3430_v57 = vadd.f32 %v7108_v35, %v7106_v14 }
 0x27f   : > { %v7154_v60 = vadd.f32 %v7141_v16, %v3537_v10  ;;  %v3538_v33 = vadd.f32 %v3513_v51, %v2670_v27  ;;  %v3515_v4 = vadd.f32 %v3514_v40, %v3442_v6  ;;  %v3496_v50 = vpop.f32.mrf.mxu0  ;;  %v7575_v27 = vld [vmem:[#allocation24_spill] sm:$0xff]  ;;  %v3454_v1 = vadd.f32 %v7139_v41, %v7578_v52  ;;  %v7580_v6 = vld [vmem:[#allocation18_spill] sm:$0xff]  ;;  %v7581_v41 = vld [vmem:[#allocation25_spill] sm:$0xff] }
 0x280   : > { %v3516_v56 = vpop.f32.mrf.mxu1  ;;  %v7160_v30 = vadd.f32 %v7143_v3, %v3530_v37  ;;  %v3497_v43 = vadd.f32 %v3496_v50, %v3424_v21  ;;  %v3531_v54 = vadd.f32 %v3495_v39, %v7086_v46  ;;  %v7579_v21 = vld [vmem:[#allocation20_spill] sm:$0xff] }
 0x281   : > { %v7163_v42 = vadd.f32 %v7143_v3, %v3538_v33  ;;  %v3517_v48 = vadd.f32 %v3516_v56, %v3444_v8  ;;  %v3539_v18 = vadd.f32 %v3515_v4, %v2672_v44  ;;  %v3500_v12 = vpop.f32.mrf.mxu0 }
 0x282   : > { %v3520_v45 = vpop.f32.mrf.mxu1  ;;  %v3532_v5 = vadd.f32 %v3497_v43, %v7088_v38  ;;  %v3501_v24 = vadd.f32 %v3500_v12, %v3428_v0  ;;  %v7176_v14 = vadd.f32 %v7141_v16, %v3531_v54 }
 0x283   : > { %v3540_v2 = vadd.f32 %v3517_v48, %v2674_v34  ;;  %v3521_v47 = vadd.f32 %v3520_v45, %v3448_v23  ;;  %v7179_v35 = vadd.f32 %v7141_v16, %v3539_v18  ;;  %v3502_v46 = vpop.f32.mrf.mxu0 }
 0x284   : > { %v3522_v26 = vpop.f32.mrf.mxu1  ;;  %v7182_v11 = vadd.f32 %v7143_v3, %v3532_v5  ;;  %v3533_v44 = vadd.f32 %v3501_v24, %v7575_v27  ;;  %v3503_v29 = vadd.f32 %v3502_v46, %v3430_v57 }
 0x285   : > { %v7185_v38 = vadd.f32 %v7143_v3, %v3540_v2  ;;  %v3541_v34 = vadd.f32 %v3521_v47, %v2678_v20  ;;  %v3523_v19 = vadd.f32 %v3522_v26, %v3450_v59  ;;  %v3504_v32 = vpop.f32.mrf.mxu0  ;;  %v2684_v20 = vadd.f32 %v7579_v21, %v2611_v61 }
 0x286   : > { %v3524_v13 = vpop.f32.mrf.mxu1  ;;  %v7193_v10 = vadd.f32 %v7141_v16, %v3533_v44  ;;  %v3505_v51 = vadd.f32 %v3504_v32, %v3432_v49  ;;  %v3534_v8 = vadd.f32 %v3503_v29, %v7580_v6 }
 0x287   : > { %v7196_v7 = vadd.f32 %v7141_v16, %v3541_v34  ;;  %v3525_v63 = vadd.f32 %v3524_v13, %v3452_v28  ;;  %v3542_v53 = vadd.f32 %v3523_v19, %v2680_v58  ;;  %v3506_v40 = vpop.f32.mrf.mxu0  ;;  %v7582_v58 = vld [vmem:[#allocation19_spill] sm:$0xff] }
 0x288   : > { %v3526_v37 = vpop.f32.mrf.mxu1  ;;  %v3535_v33 = vadd.f32 %v3505_v51, %v7581_v41  ;;  %v3507_v23 = vadd.f32 %v3506_v40, %v3434_v62  ;;  %v7203_v4 = vadd.f32 %v7143_v3, %v3534_v8 }
 0x289   : > { %v3543_v0 = vadd.f32 %v3525_v63, %v7147_v31  ;;  %v3527_v39 = vadd.f32 %v3526_v37, %v3454_v1  ;;  %v7206_v50 = vadd.f32 %v7143_v3, %v3542_v53  ;;  %3576 = sbr.rel (%p4664_p11) target bundleno = 742 (0x2e6), region = 52 }
 0x28a   : > { %v7209_v56 = vadd.f32 %v7141_v16, %v3535_v33  ;;  %v3536_v43 = vadd.f32 %v3507_v23, %v7582_v58 }
 0x28b   : > { %v7212_v61 = vadd.f32 %v7141_v16, %v3543_v0  ;;  %v3544_v48 = vadd.f32 %v3527_v39, %v2684_v20 }
 0x28c   : > { %v7216_v57 = vadd.f32 %v7143_v3, %v3536_v43 }
 0x28d   : > { %v7219_v31 = vadd.f32 %v7143_v3, %v3544_v48 }
 0x28e   : > { %v3577_v49 = vadd.f32 %v7176_v14, %v7151_v9  ;;  %v3590_v54 = vadd.f32 %v7182_v11, %v7160_v30 }
 0x290   : > { %v3578_v16 = vadd.f32 %v3577_v49, %v7193_v10  ;;  %v3591_v18 = vadd.f32 %v3590_v54, %v7203_v4 }
 0x292   : > { %v3579_v12 = vadd.f32 %v3578_v16, %v7209_v56  ;;  %v3592_v45 = vadd.f32 %v3591_v18, %v7216_v57 }
 0x294   : > { %v3580_v3 = vadd.f32 %v3579_v12, %v7154_v60  ;;  %v3593_v5 = vadd.f32 %v3592_v45, %v7163_v42 }
 0x296   : > { %v3581_v2 = vadd.f32 %v3580_v3, %v7179_v35  ;;  %v3594_v24 = vadd.f32 %v3593_v5, %v7185_v38 }
 0x298   : > { %v3582_v47 = vadd.f32 %v3581_v2, %v7196_v7  ;;  %v3595_v25 = vadd.f32 %v3594_v24, %v7206_v50 }
 0x29a   : > { %v3583_v17 = vadd.f32 %v3582_v47, %v7212_v61  ;;  %v3596_v59 = vadd.f32 %v3595_v25, %v7219_v31 }
 0x29c   : > { %v3584_v36 = vrot.slane %v3583_v17, 4  ;;  %v3597_v22 = vrot.slane %v3596_v59, 4 }
 0x29e   : > { %v3585_v28 = vadd.f32 %v3584_v36, %v3583_v17  ;;  %v3598_v46 = vadd.f32 %v3597_v22, %v3596_v59 }
 0x2a0   : > { %v3586_v26 = vrot.slane %v3585_v28, 2  ;;  %v3599_v27 = vrot.slane %v3598_v46, 2 }
 0x2a2   : > { %v3587_v44 = vadd.f32 %v3586_v26, %v3585_v28  ;;  %v3600_v34 = vadd.f32 %v3599_v27, %v3598_v46 }
 0x2a4   : > { %v3588_v55 = vrot.slane %v3587_v44, 1  ;;  %v3601_v15 = vrot.slane %v3600_v34, 1 }
 0x2a6   : > { %v3589_v62 = vadd.f32 %v3588_v55, %v3587_v44  ;;  %v3602_v52 = vadd.f32 %v3601_v15, %v3600_v34 }
 0x2a8   : > { %v3604_v1 = vmul.f32 0.015625, %v3589_v62  ;;  %v3605_v29 = vmul.f32 0.015625, %v3602_v52 }
 0x2aa   : > { %v7239_v19 = vsub.f32 %v7151_v9, %v3604_v1  ;;  %v7242_v32 = vsub.f32 %v7176_v14, %v3604_v1  ;;  %v7245_v13 = vsub.f32 %v7193_v10, %v3604_v1  ;;  %v7248_v51 = vsub.f32 %v7209_v56, %v3604_v1 }
 0x2ab   : > { %v7251_v63 = vsub.f32 %v7154_v60, %v3604_v1  ;;  %v3616_v8 = vsub.f32 %v7179_v35, %v3604_v1  ;;  %v7263_v37 = vsub.f32 %v7160_v30, %v3605_v29  ;;  %v7266_v41 = vsub.f32 %v7182_v11, %v3605_v29 }
 0x2ac   : > { %v3622_v21 = vmul.f32 %v7239_v19, %v7239_v19  ;;  %v3624_v20 = vmul.f32 %v7242_v32, %v7242_v32  ;;  %v3626_v6 = vmul.f32 %v7245_v13, %v7245_v13  ;;  %v3628_v53 = vmul.f32 %v7248_v51, %v7248_v51 }
 0x2ad   : > { %v7269_v33 = vsub.f32 %v7203_v4, %v3605_v29  ;;  %v3618_v0 = vsub.f32 %v7196_v7, %v3604_v1  ;;  %v3630_v23 = vmul.f32 %v7251_v63, %v7251_v63  ;;  %v7275_v39 = vsub.f32 %v7216_v57, %v3605_v29 }
 0x2ae   : > { %v3638_v40 = vadd.f32 %v3624_v20, %v3622_v21  ;;  %v7278_v43 = vsub.f32 %v7163_v42, %v3605_v29  ;;  %v3623_v48 = vmul.f32 %v7263_v37, %v7263_v37  ;;  %v3625_v49 = vmul.f32 %v7266_v41, %v7266_v41 }
 0x2af   : > { %v3620_v54 = vsub.f32 %v7212_v61, %v3604_v1  ;;  %v3632_v16 = vmul.f32 %v3616_v8, %v3616_v8  ;;  %v3627_v18 = vmul.f32 %v7269_v33, %v7269_v33  ;;  %v7288_v45 = vsub.f32 %v7185_v38, %v3605_v29 }
 0x2b0   : > { %v3639_v58 = vadd.f32 %v3638_v40, %v3626_v6  ;;  %v3629_v3 = vmul.f32 %v7275_v39, %v7275_v39  ;;  %v3651_v5 = vadd.f32 %v3625_v49, %v3623_v48  ;;  %v3634_v2 = vmul.f32 %v3618_v0, %v3618_v0 }
 0x2b1   : > { %v7293_v47 = vsub.f32 %v7206_v50, %v3605_v29  ;;  %v3631_v25 = vmul.f32 %v7278_v43, %v7278_v43  ;;  %v3636_v59 = vmul.f32 %v3620_v54, %v3620_v54  ;;  %v3621_v22 = vsub.f32 %v7219_v31, %v3605_v29 }
 0x2b2   : > { %v3640_v12 = vadd.f32 %v3639_v58, %v3628_v53  ;;  %v3652_v17 = vadd.f32 %v3651_v5, %v3627_v18  ;;  %v3633_v28 = vmul.f32 %v7288_v45, %v7288_v45 }
 0x2b3   : > { %v3635_v27 = vmul.f32 %v7293_v47, %v7293_v47  ;;  %v3637_v55 = vmul.f32 %v3621_v22, %v3621_v22 }
 0x2b4   : > { %v3641_v24 = vadd.f32 %v3640_v12, %v3630_v23  ;;  %v3653_v46 = vadd.f32 %v3652_v17, %v3629_v3 }
 0x2b6   : > { %v3642_v36 = vadd.f32 %v3641_v24, %v3632_v16  ;;  %v3654_v44 = vadd.f32 %v3653_v46, %v3631_v25 }
 0x2b8   : > { %v3643_v26 = vadd.f32 %v3642_v36, %v3634_v2  ;;  %v3655_v15 = vadd.f32 %v3654_v44, %v3633_v28 }
 0x2ba   : > { %v3644_v34 = vadd.f32 %v3643_v26, %v3636_v59  ;;  %v3656_v52 = vadd.f32 %v3655_v15, %v3635_v27 }
 0x2bc   : > { %v3645_v62 = vrot.slane %v3644_v34, 4  ;;  %v3657_v21 = vadd.f32 %v3656_v52, %v3637_v55 }
 0x2be   : > { %v3646_v1 = vadd.f32 %v3645_v62, %v3644_v34  ;;  %v3658_v6 = vrot.slane %v3657_v21, 4 }
 0x2c0   : > { %v3647_v20 = vrot.slane %v3646_v1, 2  ;;  %v3659_v29 = vadd.f32 %v3658_v6, %v3657_v21 }
 0x2c2   : > { %v3648_v53 = vadd.f32 %v3647_v20, %v3646_v1  ;;  %v3660_v23 = vrot.slane %v3659_v29, 2 }
 0x2c4   : > { %v3649_v40 = vrot.slane %v3648_v53, 1  ;;  %v3661_v48 = vadd.f32 %v3660_v23, %v3659_v29 }
 0x2c6   : > { %v3650_v58 = vadd.f32 %v3649_v40, %v3648_v53  ;;  %v3662_v16 = vrot.slane %v3661_v48, 1 }
 0x2c8   : > { %v3664_v49 = vmul.f32 0.015625, %v3650_v58  ;;  %v3663_v12 = vadd.f32 %v3662_v16, %v3661_v48 }
 0x2ca   : > { %v3666_v18 = vadd.f32 1e-05, %v3664_v49  ;;  %v3665_v3 = vmul.f32 0.015625, %v3663_v12 }
 0x2cc   : > { %5453 = vrsqrt.f32 %v3666_v18  ;;  %v3667_v5 = vadd.f32 1e-05, %v3665_v3 }
 0x2ce   : > { %5455 = vrsqrt.f32 %v3667_v5 }
 0x2d9   : > { %v5454_v2 = vpop.eup %5453 }
 0x2da   : > { %v3670_v24 = vmul.f32 %v5454_v2, %v7239_v19  ;;  %v3672_v25 = vmul.f32 %v5454_v2, %v7242_v32  ;;  %v3674_v17 = vmul.f32 %v5454_v2, %v7245_v13  ;;  %v3676_v59 = vmul.f32 %v5454_v2, %v7248_v51 }
 0x2db   : > { %v3678_v36 = vmul.f32 %v5454_v2, %v7251_v63  ;;  %v3680_v28 = vmul.f32 %v5454_v2, %v3616_v8  ;;  %v3682_v46 = vmul.f32 %v5454_v2, %v3618_v0  ;;  %v3684_v26 = vmul.f32 %v5454_v2, %v3620_v54  ;;  %v5456_v15 = vpop.eup %5455 }
 0x2dc   : > { %v3686_v27 = vmax.f32 %v3670_v24, 0.0  ;;  %v3688_v44 = vmax.f32 %v3672_v25, 0.0  ;;  %v3690_v34 = vmax.f32 %v3674_v17, 0.0  ;;  %v3692_v55 = vmax.f32 %v3676_v59, 0.0 }
 0x2dd   : > { %v3694_v62 = vmax.f32 %v3678_v36, 0.0  ;;  %v3696_v52 = vmax.f32 %v3680_v28, 0.0  ;;  %v3698_v1 = vmax.f32 %v3682_v46, 0.0  ;;  %v3700_v19 = vmax.f32 %v3684_v26, 0.0 }
 0x2de   : > { %3702 = vst [vmem:[#allocation3 + $0x30] sm:$0xff] %v3686_v27  ;;  %v3671_v32 = vmul.f32 %v5456_v15, %v7263_v37  ;;  %3704 = vst [vmem:[#allocation3 + $0x58] sm:$0xff] %v3688_v44  ;;  %v3673_v13 = vmul.f32 %v5456_v15, %v7266_v41  ;;  %v3675_v51 = vmul.f32 %v5456_v15, %v7269_v33 }
 0x2df   : > { %3706 = vst [vmem:[#allocation3 + $0x50] sm:$0xff] %v3690_v34  ;;  %3708 = vst [vmem:[#allocation3 + $0x8] sm:$0xff] %v3692_v55  ;;  %v3677_v63 = vmul.f32 %v5456_v15, %v7275_v39  ;;  %v3679_v8 = vmul.f32 %v5456_v15, %v7278_v43  ;;  %v3681_v0 = vmul.f32 %v5456_v15, %v7288_v45 }
 0x2e0   : > { %3710 = vst [vmem:[#allocation3 + $0x40] sm:$0xff] %v3694_v62  ;;  %3712 = vst [vmem:[#allocation3 + $0x10] sm:$0xff] %v3696_v52  ;;  %v3683_v54 = vmul.f32 %v5456_v15, %v7293_v47  ;;  %v3685_v37 = vmul.f32 %v5456_v15, %v3621_v22  ;;  %v3687_v21 = vmax.f32 %v3671_v32, 0.0  ;;  %v3689_v20 = vmax.f32 %v3673_v13, 0.0 }
 0x2e1   : > { %3714 = vst [vmem:[#allocation3 + $0x60] sm:$0xff] %v3698_v1  ;;  %3716 = vst [vmem:[#allocation3 + $0x78] sm:$0xff] %v3700_v19  ;;  %v3691_v41 = vmax.f32 %v3675_v51, 0.0  ;;  %v3693_v6 = vmax.f32 %v3677_v63, 0.0  ;;  %v3695_v53 = vmax.f32 %v3679_v8, 0.0  ;;  %v3697_v33 = vmax.f32 %v3681_v0, 0.0 }
 0x2e2   : > { %v3699_v29 = vmax.f32 %v3683_v54, 0.0  ;;  %v3701_v40 = vmax.f32 %v3685_v37, 0.0  ;;  %3703 = vst [vmem:[#allocation3] sm:$0xff] %v3687_v21  ;;  %3705 = vst [vmem:[#allocation3 + $0x18] sm:$0xff] %v3689_v20 }
 0x2e3   : > { %3707 = vst [vmem:[#allocation3 + $0x68] sm:$0xff] %v3691_v41  ;;  %3709 = vst [vmem:[#allocation3 + $0x48] sm:$0xff] %v3693_v6 }
 0x2e4   : > { %3711 = vst [vmem:[#allocation3 + $0x20] sm:$0xff] %v3695_v53  ;;  %3713 = vst [vmem:[#allocation3 + $0x38] sm:$0xff] %v3697_v33 }
 0x2e5   : > { %3715 = vst [vmem:[#allocation3 + $0x70] sm:$0xff] %v3699_v29  ;;  %3717 = vst [vmem:[#allocation3 + $0x28] sm:$0xff] %v3701_v40 }
 0x2e6 PF: > { %s7584_s4 = sld [smem:[#allocation11_spill]] }
 0x2ec   : > { %p4665_p12 = scmp.ne.s32.totalorder %s7584_s4, 3 }
 0x2ee   : > { %3721 = sbr.rel (%p4665_p12) target bundleno = 828 (0x33c), region = 56 }
 0x2f3   : > { %v4666_v39 = vmul.f32 -1.442695, %v7151_v9  ;;  %v4667_v43 = vmul.f32 -1.442695, %v7160_v30  ;;  %v4668_v45 = vmul.f32 -1.442695, %v7176_v14 }
 0x2f4   : > { %v4669_v47 = vmul.f32 -1.442695, %v7182_v11  ;;  %v4670_v22 = vmul.f32 -1.442695, %v7193_v10  ;;  %v4671_v23 = vmul.f32 -1.442695, %v7203_v4 }
 0x2f5   : > { %5457 = vpow2.f32 %v4666_v39  ;;  %v4672_v58 = vmul.f32 -1.442695, %v7209_v56  ;;  %v4673_v48 = vmul.f32 -1.442695, %v7216_v57  ;;  %v4674_v9 = vmul.f32 -1.442695, %v7154_v60 }
 0x2f6   : > { %5459 = vpow2.f32 %v4667_v43  ;;  %v4675_v30 = vmul.f32 -1.442695, %v7163_v42  ;;  %v4676_v14 = vmul.f32 -1.442695, %v7179_v35  ;;  %v4677_v11 = vmul.f32 -1.442695, %v7185_v38 }
 0x2f7   : > { %5461 = vpow2.f32 %v4668_v45  ;;  %v4678_v10 = vmul.f32 -1.442695, %v7196_v7  ;;  %v4679_v4 = vmul.f32 -1.442695, %v7206_v50  ;;  %v4680_v56 = vmul.f32 -1.442695, %v7212_v61 }
 0x2f8   : > { %5463 = vpow2.f32 %v4669_v47  ;;  %v4681_v60 = vmul.f32 -1.442695, %v7219_v31 }
 0x2f9   : > { %5465 = vpow2.f32 %v4670_v22 }
 0x2fa   : > { %5467 = vpow2.f32 %v4671_v23 }
 0x2fb   : > { %5469 = vpow2.f32 %v4672_v58 }
 0x2fc   : > { %5471 = vpow2.f32 %v4673_v48 }
 0x2fd   : > { %5473 = vpow2.f32 %v4674_v9 }
 0x2fe   : > { %5475 = vpow2.f32 %v4675_v30 }
 0x2ff   : > { %5477 = vpow2.f32 %v4676_v14 }
 0x300   : > { %5479 = vpow2.f32 %v4677_v11 }
 0x301   : > { %5481 = vpow2.f32 %v4678_v10 }
 0x302   : > { %v5458_v42 = vpop.eup %5457  ;;  %5483 = vpow2.f32 %v4679_v4 }
 0x303   : > { %v5460_v57 = vpop.eup %5459  ;;  %5485 = vpow2.f32 %v4680_v56  ;;  %v3770_v35 = vadd.f32 1.0, %v5458_v42 }
 0x304   : > { %v5462_v49 = vpop.eup %5461  ;;  %5487 = vpow2.f32 %v4681_v60  ;;  %v3771_v38 = vadd.f32 1.0, %v5460_v57 }
 0x305   : > { %v5464_v16 = vpop.eup %5463  ;;  %v3772_v7 = vadd.f32 1.0, %v5462_v49  ;;  %5489 = vrcp.f32 %v3770_v35 }
 0x306   : > { %v5466_v18 = vpop.eup %5465  ;;  %v3773_v50 = vadd.f32 1.0, %v5464_v16  ;;  %5491 = vrcp.f32 %v3771_v38  ;;  %v5709_v38 = vmov 1966171168  }
 0x307   : > { %v5468_v12 = vpop.eup %5467  ;;  %v3774_v61 = vadd.f32 1.0, %v5466_v18  ;;  %5493 = vrcp.f32 %v3772_v7  ;;  %v3851_v16 = vunpack.c.l.s4 %v5709_v38 }
 0x308   : > { %v5470_v3 = vpop.eup %5469  ;;  %v3775_v31 = vadd.f32 1.0, %v5468_v12  ;;  %5495 = vrcp.f32 %v3773_v50 }
 0x309   : > { %v5472_v5 = vpop.eup %5471  ;;  %v3776_v2 = vadd.f32 1.0, %v5470_v3  ;;  %5497 = vrcp.f32 %v3774_v61  ;;  %v3852_v61 = vunpack.c.0.s8 %v3851_v16 }
 0x30a   : > { %v5474_v24 = vpop.eup %5473  ;;  %v3777_v25 = vadd.f32 1.0, %v5472_v5  ;;  %5499 = vrcp.f32 %v3775_v31  ;;  %v3870_v31 = vld [vmem:[%s5909_s27] sm:$0xff]  ;;  %v3871_v5 = vld [vmem:[%s5909_s27 + $0x8] sm:$0xff] }
 0x30b   : > { %v5476_v17 = vpop.eup %5475  ;;  %v3778_v59 = vadd.f32 1.0, %v5474_v24  ;;  %5501 = vrcp.f32 %v3776_v2  ;;  %v3872_v24 = vld [vmem:[%s5909_s27 + $0x10] sm:$0xff] }
 0x30c   : > { %v5478_v36 = vpop.eup %5477  ;;  %v3779_v28 = vadd.f32 1.0, %v5476_v17  ;;  %5503 = vrcp.f32 %v3777_v25  ;;  %v3874_v25 = vld [vmem:[%s5909_s27 + $0x20] sm:$0xff]  ;;  %v3876_v17 = vld [vmem:[%s5909_s27 + $0x30] sm:$0xff] }
 0x30d   : > { %v5480_v46 = vpop.eup %5479  ;;  %v3780_v26 = vadd.f32 1.0, %v5478_v36  ;;  %5505 = vrcp.f32 %v3778_v59  ;;  %v3873_v36 = vld [vmem:[%s5909_s27 + $0x18] sm:$0xff] }
 0x30e   : > { %v5482_v27 = vpop.eup %5481  ;;  %v3781_v44 = vadd.f32 1.0, %v5480_v46  ;;  %5507 = vrcp.f32 %v3779_v28  ;;  %v3875_v28 = vld [vmem:[%s5909_s27 + $0x28] sm:$0xff]  ;;  %v3877_v46 = vld [vmem:[%s5909_s27 + $0x38] sm:$0xff] }
 0x30f   : > { %v5484_v34 = vpop.eup %5483  ;;  %v3782_v55 = vadd.f32 1.0, %v5482_v27  ;;  %5509 = vrcp.f32 %v3780_v26  ;;  %v7585_v27 = vld [vmem:[#allocation17_spill] sm:$0xff] }
 0x310   : > { %v5486_v15 = vpop.eup %5485  ;;  %v3783_v62 = vadd.f32 1.0, %v5484_v34  ;;  %5511 = vrcp.f32 %v3781_v44  ;;  %v3855_v44 = vsub.s32 %v3852_v61, %v7585_v27  ;;  %v3878_v34 = vld [vmem:[%s5909_s27 + $0x40] sm:$0xff] }
 0x311   : > { %v5488_v52 = vpop.eup %5487  ;;  %v3784_v1 = vadd.f32 1.0, %v5486_v15  ;;  %5513 = vrcp.f32 %v3782_v55  ;;  %v3879_v55 = vld [vmem:[%s5909_s27 + $0x48] sm:$0xff]  ;;  %v3880_v15 = vld [vmem:[%s5909_s27 + $0x50] sm:$0xff] }
 0x312   : > { %v5490_v19 = vpop.eup %5489  ;;  %v3785_v32 = vadd.f32 1.0, %v5488_v52  ;;  %5515 = vrcp.f32 %v3783_v62 }
 0x313   : > { %v5492_v13 = vpop.eup %5491  ;;  %5517 = vrcp.f32 %v3784_v1 }
 0x314   : > { %v5494_v51 = vpop.eup %5493  ;;  %5519 = vrcp.f32 %v3785_v32  ;;  %v3881_v32 = vld [vmem:[%s5909_s27 + $0x58] sm:$0xff] }
 0x315   : > { %v5496_v63 = vpop.eup %5495  ;;  %v3818_v8 = vadd.f32 %v5494_v51, %v5490_v19  ;;  %v3883_v51 = vld [vmem:[%s5909_s27 + $0x68] sm:$0xff] }
 0x316   : > { %v5498_v0 = vpop.eup %5497  ;;  %v3831_v54 = vadd.f32 %v5496_v63, %v5492_v13  ;;  %v3882_v13 = vld [vmem:[%s5909_s27 + $0x60] sm:$0xff] }
 0x317   : > { %v5500_v37 = vpop.eup %5499  ;;  %v3819_v21 = vadd.f32 %v5498_v0, %v3818_v8 }
 0x318   : > { %v5502_v20 = vpop.eup %5501  ;;  %v3832_v41 = vadd.f32 %v5500_v37, %v3831_v54  ;;  %v3884_v37 = vld [vmem:[%s5909_s27 + $0x70] sm:$0xff] }
 0x319   : > { %v5504_v6 = vpop.eup %5503  ;;  %v3820_v53 = vadd.f32 %v5502_v20, %v3819_v21  ;;  %v3885_v21 = vld [vmem:[%s5909_s27 + $0x78] sm:$0xff] }
 0x31a   : > { %v5506_v33 = vpop.eup %5505  ;;  %v3833_v29 = vadd.f32 %v5504_v6, %v3832_v41 }
 0x31b   : > { %v5508_v40 = vpop.eup %5507  ;;  %v3821_v39 = vadd.f32 %v5506_v33, %v3820_v53 }
 0x31c   : > { %v5510_v43 = vpop.eup %5509  ;;  %v3834_v45 = vadd.f32 %v5508_v40, %v3833_v29 }
 0x31d   : > { %v5512_v47 = vpop.eup %5511  ;;  %v3822_v22 = vadd.f32 %v5510_v43, %v3821_v39  ;;  %v7586_v43 = vlaneseq }
 0x31e   : > { %v5514_v23 = vpop.eup %5513  ;;  %v3835_v58 = vadd.f32 %v5512_v47, %v3834_v45 }
 0x31f   : > { %v5516_v48 = vpop.eup %5515  ;;  %v3823_v9 = vadd.f32 %v5514_v23, %v3822_v22  ;;  %vm3867_vm3 = vcmp.lt.s32.totalorder %v7586_v43, 256 }
 0x320   : > { %v5518_v30 = vpop.eup %5517  ;;  %v3836_v14 = vadd.f32 %v5516_v48, %v3835_v58 }
 0x321   : > { %v5520_v11 = vpop.eup %5519  ;;  %v3824_v10 = vadd.f32 %v5518_v30, %v3823_v9 }
 0x322   : > { %v3837_v4 = vadd.f32 %v5520_v11, %v3836_v14 }
 0x323   : > { %v3825_v56 = vrot.slane %v3824_v10, 4 }
 0x324   : > { %v3838_v60 = vrot.slane %v3837_v4, 4 }
 0x325   : > { %v3826_v42 = vadd.f32 %v3825_v56, %v3824_v10 }
 0x326   : > { %v3839_v57 = vadd.f32 %v3838_v60, %v3837_v4 }
 0x327   : > { %v3827_v35 = vrot.slane %v3826_v42, 2 }
 0x328   : > { %v3840_v49 = vrot.slane %v3839_v57, 2 }
 0x329   : > { %v3828_v7 = vadd.f32 %v3827_v35, %v3826_v42 }
 0x32a   : > { %v3841_v18 = vadd.f32 %v3840_v49, %v3839_v57 }
 0x32b   : > { %v3829_v50 = vrot.slane %v3828_v7, 1 }
 0x32c   : > { %v3842_v12 = vrot.slane %v3841_v18, 1 }
 0x32d   : > { %v3830_v3 = vadd.f32 %v3829_v50, %v3828_v7 }
 0x32e   : > { %v3843_v2 = vadd.f32 %v3842_v12, %v3841_v18 }
 0x32f   : > { %v3845_v59 = vmul.f32 0.015625, %v3830_v3 }
 0x330   : > { %v3846_v26 = vmul.f32 0.015625, %v3843_v2 }
 0x331   : > { %v3886_v62 = vmul.f32 %v3870_v31, %v3845_v59  ;;  %v3888_v52 = vmul.f32 %v3872_v24, %v3845_v59  ;;  %v3890_v1 = vmul.f32 %v3874_v25, %v3845_v59  ;;  %v3892_v19 = vmul.f32 %v3876_v17, %v3845_v59 }
 0x332   : > { %v3849_v63 = vcombine.low %v3845_v59, %v3846_v26  ;;  %v3887_v8 = vmul.f32 %v3871_v5, %v3846_v26  ;;  %v3889_v0 = vmul.f32 %v3873_v36, %v3846_v26  ;;  %v3891_v54 = vmul.f32 %v3875_v28, %v3846_v26 }
 0x333   : > { %3902 = vst [vmem:[%s5936_s28] sm:$0xff] %v3886_v62  ;;  %3904 = vst [vmem:[%s5936_s28 + $0x10] sm:$0xff] %v3888_v52  ;;  %v3893_v20 = vmul.f32 %v3877_v46, %v3846_v26  ;;  %v3894_v41 = vmul.f32 %v3878_v34, %v3845_v59  ;;  %v3895_v6 = vmul.f32 %v3879_v55, %v3846_v26 }
 0x334   : > { %3906 = vst [vmem:[%s5936_s28 + $0x20] sm:$0xff] %v3890_v1  ;;  %3908 = vst [vmem:[%s5936_s28 + $0x30] sm:$0xff] %v3892_v19  ;;  %v3896_v53 = vmul.f32 %v3880_v15, %v3845_v59  ;;  %v3856_v33 = vrot.slane %v3849_v63, %v3855_v44  ;;  %v3897_v29 = vmul.f32 %v3881_v32, %v3846_v26 }
 0x335   : > { %3903 = vst [vmem:[%s5936_s28 + $0x8] sm:$0xff] %v3887_v8  ;;  %3905 = vst [vmem:[%s5936_s28 + $0x18] sm:$0xff] %v3889_v0  ;;  %v3898_v40 = vmul.f32 %v3882_v13, %v3845_v59  ;;  %v3899_v39 = vmul.f32 %v3883_v51, %v3846_v26  ;;  %v3900_v45 = vmul.f32 %v3884_v37, %v3845_v59 }
 0x336   : > { %3907 = vst [vmem:[%s5936_s28 + $0x28] sm:$0xff] %v3891_v54  ;;  %3909 = vst [vmem:[%s5936_s28 + $0x38] sm:$0xff] %v3893_v20  ;;  %v3901_v47 = vmul.f32 %v3885_v21, %v3846_v26  ;;  %v3863_v22 = vrot.slane %v3856_v33, %v3855_v44 }
 0x337   : > { %3910 = vst [vmem:[%s5936_s28 + $0x40] sm:$0xff] %v3894_v41  ;;  %3911 = vst [vmem:[%s5936_s28 + $0x48] sm:$0xff] %v3895_v6 }
 0x338   : > { %3912 = vst [vmem:[%s5936_s28 + $0x50] sm:$0xff] %v3896_v53  ;;  %3913 = vst [vmem:[%s5936_s28 + $0x58] sm:$0xff] %v3897_v29 }
 0x339   : > { %3914 = vst [vmem:[%s5936_s28 + $0x60] sm:$0xff] %v3898_v40  ;;  %3915 = vst [vmem:[%s5936_s28 + $0x68] sm:$0xff] %v3899_v39 }
 0x33a   : > { %3916 = vst [vmem:[%s5936_s28 + $0x70] sm:$0xff] %v3900_v45  ;;  %3917 = vst [vmem:[%s5936_s28 + $0x78] sm:$0xff] %v3901_v47 }
 0x33b   : > { %3869 = vst.msk [vmem:[%s5931_s13] sm:$0x3] %vm3867_vm3, %v3863_v22 }
 0x33c PF: > { %s21_s25 = sadd.s32 1, %s5699_s25   ;;  %s7587_s8 = sld [smem:[#allocation14_spill]] }
 0x33d   : > { %p18_p6 = scmp.ge.s32.totalorder %s21_s25, 10   ;;  %s7588_s27 = sld [smem:[#allocation16_spill]] }
 0x33e   : > { %s7589_s22 = sld [smem:[#allocation12_spill]]  ;;  %s7592_s15 = smov %s5663_s16 }
 0x33f   : > { %s7590_s1 = sld [smem:[#allocation13_spill]]  ;;  %s7593_s16 = smov %s5667_s17 }
 0x340   : > { %s7591_s24 = sld [smem:[#allocation15_spill]]  ;;  %s7595_s18 = smov %s5675_s19 }
 0x341   : > { %s7596_s19 = smov %s5679_s20  ;;  %s7598_s21 = smov %s5691_s23 }
 0x342   : > { %s7594_s17 = smov %s7587_s8  ;;  %20 = sbr.rel (!%p18_p6) target bundleno = 13 (0xd), region = 122 }
 0x343   : > { %s7597_s20 = smov %s7588_s27 }
 0x345   : > { %s7599_s23 = smov %s7590_s1 }
 0x347   :  { %3953 = vsyncpa [#allocation5], 1 }
 0x348   :  { %3955 = vsyncpa [#allocation5 + $0x1], 1 }
 0x349   :  { %3956 = vsyncpa [#allocation7], 1 }
 0x34a   :  { %3958 = vsyncpa [#allocation7 + $0x1], 1 }

// kernel: _forward.6
= control target key start
LH: loop header
LB: loop body
LE: loop exit
PB: predicated region body
PF: predicated region fallthrough
CT: control target
= control target key end

     0   :  { %s4494_s15 = smov 0   ;;  %s4496_s16 = smov 0   ;;  %s5363_s0 = inlined_call_operand.vmem [shape: f32[2,32,256], index: 0, kind: input, shape index: {}]   ;;  %s5364_s1 = inlined_call_operand.vmem [shape: bf16[4,3,768,256], index: 1, kind: input, shape index: {}]   ;;  %s5365_s2 = inlined_call_operand.vmem [shape: f32[4,1,256], index: 2, kind: input, shape index: {}]   ;;  %s5366_s3 = inlined_call_operand.vmem [shape: f32[2,1,256], index: 3, kind: output, shape index: {0}]   ;;  %s5367_s4 = inlined_call_operand.vmem [shape: f32[2,32,256], index: 4, kind: output, shape index: {1}]  }
   0x1   :  { %s4498_s17 = smov 0   ;;  %s4500_s18 = smov 0  }
   0x2   :  { %s4502_s19 = smov 0  }
   0x3 LB: > { %s24_s20 = sadd.s32 1, %s4457_s17  ;;  %s27_s21 = sadd.s32 1, %s4461_s18  ;;  %s4465_s19 = sphi %s4502_s19, %s15_s19   ;;  %s4461_s18 = sphi %s4500_s18, %s5424_s18   ;;  %s4457_s17 = sphi %s4498_s17, %s5423_s17   ;;  %s4453_s16 = sphi %s4496_s16, %s5422_s16   ;;  %s4449_s15 = sphi %s4494_s15, %s5421_s15  }
   0x4   : > { %p25_p0 = scmp.ge.s32.totalorder %s24_s20, 4  ;;  %p3253_p1 = scmp.ge.s32.totalorder %s4465_s19, 1 }
   0x5   : > { %p196_p2 = scmp.lt.s32.totalorder %s4465_s19, 9 }
   0x6   : > { %s5426_s20 = smov (%p25_p0, %s24_s20), 0  ;;  %s5428_s21 = smov (!%p25_p0, %s27_s21), %s4461_s18 }
   0x7   : > { %p197_p3 = pnand %p3253_p1, %p196_p2  ;;  %p29_p4 = scmp.ge.s32.totalorder %s5428_s21, 2 }
   0x9   : > { %s5430_s21 = smov (%p29_p4, %s5428_s21), 0  ;;  %200 = sbr.rel (%p197_p3) target bundleno = 695 (0x2b7), region = 32 }
   0xe   : > { %p235_p5 = scmp.lt.s32.totalorder %s4453_s16, 1  ;;  %p240_p6 = scmp.lt.s32.totalorder %s4449_s15, 3 }
   0xf   : > { %p3261_p7 = scmp.ne.s32.totalorder %s4449_s15, 0 }
  0x10   : > { %s5432_s16 = smov (!%p235_p5, %s4453_s16), 1 }
  0x11   : > { %s241_s22 = scalar_select %p240_p6, %s4449_s15, 3 }
  0x12   : > { %s3802_s23 = sshll.u32 %s5432_s16, 6  ;;  %s3258_s24 = sshll.u32 %s5432_s16, 1 }
  0x13   : > { %s4531_s27 = scalar_lea.vmem %s5363_s0, %s3802_s23  ;;  %s3914_s28 = smul.u32 2304, %s241_s22 }
  0x14   : > { %s3257_s29 = sshll.u32 %s241_s22, 1  ;;  %s4536_s6 = scalar_lea.vmem %s5366_s3, %s3258_s24 }
  0x15   : > { %s4541_s9 = scalar_lea.vmem %s5364_s1, %s3914_s28  ;;  %s4546_s12 = scalar_lea.vmem %s5365_s2, %s3257_s29 }
  0x16   : > { %s4551_s16 = scalar_lea.vmem %s5367_s4, %s3802_s23  ;;  %262 = sbr.rel (%p3261_p7) target bundleno = 32 (0x20), region = 36 }
  0x1b   : > { %v263_v0 = vld [vmem:[%s4531_s27] sm:$0xff]  ;;  %v264_v1 = vld [vmem:[%s4531_s27 + $0x8] sm:$0xff]  ;;  %v265_v2 = vld [vmem:[%s4531_s27 + $0x10] sm:$0xff] }
  0x1c   : > { %271 = vst [vmem:[#allocation3 + $0x30] sm:$0xff] %v263_v0  ;;  %272 = vst [vmem:[#allocation3] sm:$0xff] %v264_v1  ;;  %v266_v3 = vld [vmem:[%s4531_s27 + $0x18] sm:$0xff]  ;;  %v267_v4 = vld [vmem:[%s4531_s27 + $0x20] sm:$0xff] }
  0x1d   : > { %273 = vst [vmem:[#allocation3 + $0x18] sm:$0xff] %v265_v2  ;;  %v268_v5 = vld [vmem:[%s4531_s27 + $0x28] sm:$0xff]  ;;  %274 = vst [vmem:[#allocation3 + $0x10] sm:$0xff] %v266_v3  ;;  %v269_v6 = vld [vmem:[%s4531_s27 + $0x30] sm:$0xff] }
  0x1e   : > { %275 = vst [vmem:[#allocation3 + $0x8] sm:$0xff] %v267_v4  ;;  %276 = vst [vmem:[#allocation3 + $0x20] sm:$0xff] %v268_v5  ;;  %v270_v7 = vld [vmem:[%s4531_s27 + $0x38] sm:$0xff] }
  0x1f   : > { %277 = vst [vmem:[#allocation3 + $0x28] sm:$0xff] %v269_v6  ;;  %278 = vst [vmem:[#allocation3 + $0x38] sm:$0xff] %v270_v7 }
  0x20 PF: > { %v3957_v8 = vld [vmem:[%s4541_s9 + $0x374] ss:$8 sps:$4 sm:$0xff]   ;;  %v3961_v10 = vld [vmem:[%s4541_s9 + $0x370] ss:$8 sps:$4 sm:$0xff]   ;;  %v3963_v12 = vld [vmem:[%s4541_s9 + $0x364] ss:$8 sps:$4 sm:$0xff]   ;;  %v5368_v39 = vlaneseq }
  0x21   : > { %v3959_v9 = vld [vmem:[%s4541_s9 + $0x474] ss:$8 sps:$4 sm:$0xff]   ;;  %1349 = vmatprep.subr.bf16.mxu0 %v3957_v8  ;;  %v3962_v11 = vld [vmem:[%s4541_s9 + $0x470] ss:$8 sps:$4 sm:$0xff]   ;;  %v3965_v13 = vld [vmem:[%s4541_s9 + $0x464] ss:$8 sps:$4 sm:$0xff]  }
  0x22   : > { %1402 = vmatprep.subr.bf16.mxu1 %v3959_v9  ;;  %1350 = vmatpush1.bf16.msra.mxu0 %v3961_v10  ;;  %v3967_v14 = vld [vmem:[%s4541_s9 + $0x360] ss:$8 sps:$4 sm:$0xff]   ;;  %v3969_v16 = vld [vmem:[%s4541_s9 + $0x354] ss:$8 sps:$4 sm:$0xff]   ;;  %v3973_v18 = vld [vmem:[%s4541_s9 + $0x350] ss:$8 sps:$4 sm:$0xff]  }
  0x23   : > { %1403 = vmatpush1.bf16.msra.mxu1 %v3962_v11  ;;  %1351 = vmatprep.subr.bf16.mxu0 %v3963_v12  ;;  %v3968_v15 = vld [vmem:[%s4541_s9 + $0x460] ss:$8 sps:$4 sm:$0xff]   ;;  %v3971_v17 = vld [vmem:[%s4541_s9 + $0x454] ss:$8 sps:$4 sm:$0xff]   ;;  %v3974_v19 = vld [vmem:[%s4541_s9 + $0x450] ss:$8 sps:$4 sm:$0xff]  }
  0x24   : > { %1404 = vmatprep.subr.bf16.mxu1 %v3965_v13  ;;  %v3975_v20 = vld [vmem:[%s4541_s9 + $0x344] ss:$8 sps:$4 sm:$0xff]   ;;  %v3979_v22 = vld [vmem:[%s4541_s9 + $0x340] ss:$8 sps:$4 sm:$0xff]   ;;  %v3981_v24 = vld [vmem:[%s4541_s9 + $0x334] ss:$8 sps:$4 sm:$0xff]  }
  0x25   : > { %v3977_v21 = vld [vmem:[%s4541_s9 + $0x444] ss:$8 sps:$4 sm:$0xff]   ;;  %v3980_v23 = vld [vmem:[%s4541_s9 + $0x440] ss:$8 sps:$4 sm:$0xff]   ;;  %v3983_v25 = vld [vmem:[%s4541_s9 + $0x434] ss:$8 sps:$4 sm:$0xff]  }
  0x26   : > { %1352 = vmatpush1.bf16.msra.mxu0 %v3967_v14  ;;  %v3985_v26 = vld [vmem:[%s4541_s9 + $0x330] ss:$8 sps:$4 sm:$0xff]   ;;  %v3987_v28 = vld [vmem:[%s4541_s9 + $0x324] ss:$8 sps:$4 sm:$0xff]   ;;  %v3991_v30 = vld [vmem:[%s4541_s9 + $0x320] ss:$8 sps:$4 sm:$0xff]  }
  0x27   : > { %1405 = vmatpush1.bf16.msra.mxu1 %v3968_v15  ;;  %1353 = vmatprep.subr.bf16.mxu0 %v3969_v16  ;;  %v3986_v27 = vld [vmem:[%s4541_s9 + $0x430] ss:$8 sps:$4 sm:$0xff]   ;;  %v3989_v29 = vld [vmem:[%s4541_s9 + $0x424] ss:$8 sps:$4 sm:$0xff]   ;;  %v3992_v31 = vld [vmem:[%s4541_s9 + $0x420] ss:$8 sps:$4 sm:$0xff]  }
  0x28   : > { %1406 = vmatprep.subr.bf16.mxu1 %v3971_v17  ;;  %v3993_v32 = vld [vmem:[%s4541_s9 + $0x314] ss:$8 sps:$4 sm:$0xff]   ;;  %v3997_v34 = vld [vmem:[%s4541_s9 + $0x310] ss:$8 sps:$4 sm:$0xff]   ;;  %v3999_v36 = vld [vmem:[%s4541_s9 + $0x304] ss:$8 sps:$4 sm:$0xff]  }
  0x29   : > { %v3995_v33 = vld [vmem:[%s4541_s9 + $0x414] ss:$8 sps:$4 sm:$0xff]   ;;  %v3998_v35 = vld [vmem:[%s4541_s9 + $0x410] ss:$8 sps:$4 sm:$0xff]   ;;  %v4001_v37 = vld [vmem:[%s4541_s9 + $0x404] ss:$8 sps:$4 sm:$0xff]  }
  0x2a   : > { %1354 = vmatpush1.bf16.msra.mxu0 %v3973_v18  ;;  %v4003_v38 = vld [vmem:[%s4541_s9 + $0x300] ss:$8 sps:$4 sm:$0xff]   ;;  %v4005_v41 = vld [vmem:[%s4541_s9 + $0x3f4] ss:$8 sps:$4 sm:$0xff]   ;;  %v4009_v43 = vld [vmem:[%s4541_s9 + $0x3f0] ss:$8 sps:$4 sm:$0xff]  }
  0x2b   : > { %1407 = vmatpush1.bf16.msra.mxu1 %v3974_v19  ;;  %1355 = vmatprep.subr.bf16.mxu0 %v3975_v20  ;;  %v4004_v40 = vld [vmem:[%s4541_s9 + $0x400] ss:$8 sps:$4 sm:$0xff]   ;;  %v4007_v42 = vld [vmem:[%s4541_s9 + $0x4f4] ss:$8 sps:$4 sm:$0xff]   ;;  %v4010_v44 = vld [vmem:[%s4541_s9 + $0x4f0] ss:$8 sps:$4 sm:$0xff]  }
  0x2c   : > { %1408 = vmatprep.subr.bf16.mxu1 %v3977_v21  ;;  %v4599_v45 = vshrl.u32 %v5368_v39, 7  ;;  %v4011_v46 = vld [vmem:[%s4541_s9 + $0x3e4] ss:$8 sps:$4 sm:$0xff]   ;;  %v4015_v48 = vld [vmem:[%s4541_s9 + $0x3e0] ss:$8 sps:$4 sm:$0xff]   ;;  %v4634_v1 = vld [vmem:[#allocation3 + $0x10] sm:$0xff] }
  0x2d   : > { %v4013_v47 = vld [vmem:[%s4541_s9 + $0x4e4] ss:$8 sps:$4 sm:$0xff]   ;;  %v4016_v50 = vld [vmem:[%s4541_s9 + $0x4e0] ss:$8 sps:$4 sm:$0xff]   ;;  %v4017_v51 = vld [vmem:[%s4541_s9 + $0x3d4] ss:$8 sps:$4 sm:$0xff]  }
  0x2e   : > { %1356 = vmatpush1.bf16.msra.mxu0 %v3979_v22  ;;  %5371 = vst [vmem:[#allocation4_spill] sm:$0xff] %v4599_v45  ;;  %v4605_v49 = vadd.s32 8, %v4599_v45  ;;  %v4019_v52 = vld [vmem:[%s4541_s9 + $0x4d4] ss:$8 sps:$4 sm:$0xff]   ;;  %v4021_v53 = vld [vmem:[%s4541_s9 + $0x3d0] ss:$8 sps:$4 sm:$0xff]  }
  0x2f   : > { %1409 = vmatpush1.bf16.msra.mxu1 %v3980_v23  ;;  %1357 = vmatprep.subr.bf16.mxu0 %v3981_v24  ;;  %v4022_v54 = vld [vmem:[%s4541_s9 + $0x4d0] ss:$8 sps:$4 sm:$0xff]   ;;  %v288_v55 = vand.u32 7, %v4599_v45  ;;  %v4023_v57 = vld [vmem:[%s4541_s9 + $0x3c4] ss:$8 sps:$4 sm:$0xff]   ;;  %vm646_vm0 = vcmp.lt.s32.totalorder %v4599_v45, 1 }
  0x30   : > { %1410 = vmatprep.subr.bf16.mxu1 %v3983_v25  ;;  %v295_v56 = vand.u32 7, %v4605_v49  ;;  %v4025_v58 = vld [vmem:[%s4541_s9 + $0x4c4] ss:$8 sps:$4 sm:$0xff]   ;;  %v4027_v59 = vld [vmem:[%s4541_s9 + $0x3c0] ss:$8 sps:$4 sm:$0xff]   ;;  %v4637_v3 = vld [vmem:[#allocation3 + $0x30] sm:$0xff] }
  0x31   : > { %v4028_v60 = vld [vmem:[%s4541_s9 + $0x4c0] ss:$8 sps:$4 sm:$0xff]   ;;  %v4029_v61 = vld [vmem:[%s4541_s9 + $0x3b4] ss:$8 sps:$4 sm:$0xff]   ;;  %vm4622_vm1 = vcmp.ge.s32.totalorder %v288_v55, 1  ;;  %v641_v6 = vrot.slane %v4634_v1, 7 }
  0x32   : > { %1358 = vmatpush1.bf16.msra.mxu0 %v3985_v26  ;;  %vm4628_vm2 = vcmp.ge.s32.totalorder %v295_v56, 1  ;;  %v4632_v0 = vld [vmem:[#allocation3] sm:$0xff]  ;;  %v4031_v2 = vld [vmem:[%s4541_s9 + $0x4b4] ss:$8 sps:$4 sm:$0xff]   ;;  %v4033_v10 = vld [vmem:[%s4541_s9 + $0x3b0] ss:$8 sps:$4 sm:$0xff]  }
  0x33   : > { %1411 = vmatpush1.bf16.msra.mxu1 %v3986_v27  ;;  %1359 = vmatprep.subr.bf16.mxu0 %v3987_v28  ;;  %v4639_v4 = vld [vmem:[#allocation3 + $0x38] sm:$0xff]  ;;  %v639_v5 = vrot.slane %v4632_v0, 7  ;;  %v3819_v7 = vpack.c.bf16 %v4634_v1, %v4632_v0  ;;  %v671_v12 = vrot.slane %v4637_v3, 1  ;;  %vm3828_vm3 = vmpackc.low %vm4628_vm2, %vm4622_vm1  ;;  %vm679_vm4 = vcmp.lt.s32.totalorder %v4599_v45, 7  ;;  %v4035_v17 = vld [vmem:[%s4541_s9 + $0x3a4] ss:$8 sps:$4 sm:$0xff]  }
  0x34   : > { %1412 = vmatprep.subr.bf16.mxu1 %v3989_v29  ;;  %v4645_v8 = vld [vmem:[#allocation3 + $0x18] sm:$0xff]  ;;  %v645_v9 = vrot.slane %v4639_v4, 7  ;;  %v4037_v18 = vld [vmem:[%s4541_s9 + $0x4a4] ss:$8 sps:$4 sm:$0xff]   ;;  %v4039_v19 = vld [vmem:[%s4541_s9 + $0x3a0] ss:$8 sps:$4 sm:$0xff]  }
  0x35   : > { %v4653_v11 = vsel %vm646_vm0, %v639_v5, %v641_v6  ;;  %v673_v13 = vrot.slane %v4645_v8, 1  ;;  %1434 = vmatprep.mubr.bf16.mxu1 %v3819_v7  ;;  %v4034_v15 = vld [vmem:[%s4541_s9 + $0x4b0] ss:$8 sps:$4 sm:$0xff]   ;;  %v4040_v21 = vld [vmem:[%s4541_s9 + $0x4a0] ss:$8 sps:$4 sm:$0xff]   ;;  %v638_v27 = vrot.slane %v4637_v3, 7 }
  0x36   : > { %1360 = vmatpush1.bf16.msra.mxu0 %v3991_v30  ;;  %v4661_v14 = vsel %vm646_vm0, %v645_v9, %v639_v5  ;;  %v4041_v22 = vld [vmem:[%s4541_s9 + $0x394] ss:$8 sps:$4 sm:$0xff]   ;;  %v4690_v24 = vld [vmem:[#allocation3 + $0x28] sm:$0xff]  ;;  %v4045_v25 = vld [vmem:[%s4541_s9 + $0x390] ss:$8 sps:$4 sm:$0xff]   ;;  %v640_v28 = vrot.slane %v4645_v8, 7 }
  0x37   : > { %1413 = vmatpush1.bf16.msra.mxu1 %v3992_v31  ;;  %1361 = vmatprep.subr.bf16.mxu0 %v3993_v32  ;;  %v3829_v16 = vpack.c.bf16 %v4653_v11, %v4661_v14  ;;  %v4685_v20 = vsel %vm679_vm4, %v671_v12, %v673_v13  ;;  %v4043_v23 = vld [vmem:[%s4541_s9 + $0x494] ss:$8 sps:$4 sm:$0xff]   ;;  %v4046_v26 = vld [vmem:[%s4541_s9 + $0x490] ss:$8 sps:$4 sm:$0xff]   ;;  %v644_v29 = vrot.slane %v4690_v24, 7  ;;  %vm4880_vm8 = vcmp.lt.s32.totalorder %v288_v55, 7 }
  0x38   : > { %1414 = vmatprep.subr.bf16.mxu1 %v3995_v33  ;;  %v4047_v30 = vld [vmem:[%s4541_s9 + $0x384] ss:$8 sps:$4 sm:$0xff]   ;;  %v4051_v32 = vld [vmem:[%s4541_s9 + $0x380] ss:$8 sps:$4 sm:$0xff]   ;;  %v4068_v7 = vld [vmem:[%s4541_s9 + $0x50] ss:$8 sps:$4 sm:$0xff]  }
  0x39   : > { %3830 = vmatprep.mubr.msk.bf16.mxu0 %vm3828_vm3, %v3829_v16  ;;  %v4049_v31 = vld [vmem:[%s4541_s9 + $0x484] ss:$8 sps:$4 sm:$0xff]   ;;  %v4052_v33 = vld [vmem:[%s4541_s9 + $0x480] ss:$8 sps:$4 sm:$0xff]   ;;  %vm4886_vm9 = vcmp.lt.s32.totalorder %v295_v56, 7  ;;  %v696_v63 = vsel %vm4880_vm8, %v4685_v20, 0.0 }
  0x3a   : > { %1362 = vmatpush1.bf16.msra.mxu0 %v3997_v34  ;;  %v4705_v34 = vsel %vm646_vm0, %v638_v27, %v640_v28  ;;  %v4076_v16 = vld [vmem:[%s4541_s9 + $0x44] ss:$8 sps:$4 sm:$0xff]   ;;  %vm3840_vm10 = vmpackc.low %vm4886_vm9, %vm4880_vm8  ;;  %v4095_v49 = vld [vmem:[%s4541_s9 + $0x500] ss:$8 sps:$4 sm:$0xff]   ;;  %p3790_p8 = scmp.ge.s32.totalorder %s4449_s15, 3 }
  0x3b   : > { %1415 = vmatpush1.bf16.msra.mxu1 %v3998_v35  ;;  %1363 = vmatprep.subr.bf16.mxu0 %v3999_v36  ;;  %v4711_v35 = vsel %vm646_vm0, %v644_v29, %v638_v27  ;;  %v4055_v36 = vld [vmem:[%s4541_s9 + $0x574] ss:$8 sps:$4 sm:$0xff]   ;;  %v4071_v27 = vld [vmem:[%s4541_s9 + $0x540] ss:$8 sps:$4 sm:$0xff]   ;;  %v4097_v55 = vld [vmem:[%s4541_s9 + $0x504] ss:$8 sps:$4 sm:$0xff]  }
  0x3c   : > { %1416 = vmatprep.subr.bf16.mxu1 %v4001_v37  ;;  %v4058_v37 = vld [vmem:[%s4541_s9 + $0x74] ss:$8 sps:$4 sm:$0xff]   ;;  %v4098_v56 = vld [vmem:[%s4541_s9] ss:$8 sps:$4 sm:$0xff]  }
  0x3e   : > { %1364 = vmatpush1.bf16.msra.mxu0 %v4003_v38  ;;  %v4717_v38 = vpack.c.bf16 %v4632_v0, %v4637_v3 }
  0x3f   : > { %1417 = vmatpush1.bf16.msra.mxu1 %v4004_v40  ;;  %1365 = vmatprep.subr.bf16.mxu0 %v4005_v41  ;;  %v635_v40 = vld [vmem:[#allocation3 + $0x20] sm:$0xff]  ;;  %v3832_v41 = vpack.c.bf16 %v4705_v34, %v4711_v35 }
  0x40   : > { %1418 = vmatprep.subr.bf16.mxu1 %v4007_v42  ;;  %v3818_v42 = vpack.c.bf16 %v4645_v8, %v4637_v3 }
  0x42   : > { %1366 = vmatpush2.bf16.msra.mxu0 %v4009_v43  ;;  %v4053_v43 = vld [vmem:[%s4541_s9 + $0x570] ss:$8 sps:$4 sm:$0xff]  }
  0x43   : > { %1419 = vmatpush2.bf16.msra.mxu1 %v4010_v44  ;;  %1367 = vmatprep.subr.bf16.mxu0 %v4011_v46  ;;  %v4056_v44 = vld [vmem:[%s4541_s9 + $0x70] ss:$8 sps:$4 sm:$0xff]   ;;  %v4061_v46 = vld [vmem:[%s4541_s9 + $0x564] ss:$8 sps:$4 sm:$0xff]  }
  0x44   : > { %1420 = vmatprep.subr.bf16.mxu1 %v4013_v47  ;;  %v4064_v47 = vld [vmem:[%s4541_s9 + $0x64] ss:$8 sps:$4 sm:$0xff]  }
  0x46   : > { %1368 = vmatpush2.bf16.msra.mxu0 %v4015_v48  ;;  %v3825_v48 = vpack.c.bf16 %v4639_v4, %v635_v40 }
  0x47   : > { %1421 = vmatpush2.bf16.msra.mxu1 %v4016_v50  ;;  %1369 = vmatprep.subr.bf16.mxu0 %v4017_v51  ;;  %v4729_v50 = vadd.s32 16, %v4599_v45  ;;  %v4059_v51 = vld [vmem:[%s4541_s9 + $0x560] ss:$8 sps:$4 sm:$0xff]  }
  0x48   : > { %1422 = vmatprep.subr.bf16.mxu1 %v4019_v52  ;;  %v4738_v52 = vadd.s32 24, %v4599_v45 }
  0x49   : > { %v302_v5 = vand.u32 7, %v4729_v50 }
  0x4a   : > { %1370 = vmatpush2.bf16.msra.mxu0 %v4021_v53  ;;  %v4062_v53 = vld [vmem:[%s4541_s9 + $0x60] ss:$8 sps:$4 sm:$0xff]  }
  0x4b   : > { %1423 = vmatpush2.bf16.msra.mxu1 %v4022_v54  ;;  %1371 = vmatprep.subr.bf16.mxu0 %v4023_v57  ;;  %v674_v54 = vrot.slane %v4634_v1, 1  ;;  %v676_v57 = vrot.slane %v635_v40, 1  ;;  %vm4791_vm5 = vcmp.ge.s32.totalorder %v302_v5, 1  ;;  %vm4955_vm11 = vcmp.lt.s32.totalorder %v302_v5, 7 }
  0x4c   : > { %1424 = vmatprep.subr.bf16.mxu1 %v4025_v58  ;;  %v4067_v58 = vld [vmem:[%s4541_s9 + $0x554] ss:$8 sps:$4 sm:$0xff]   ;;  %vm4971_vm13 = vmpackc.low %vm4791_vm5, %vm4628_vm2 }
  0x4d   : > { %vm5049_vm15 = vmpackc.low %vm4955_vm11, %vm4886_vm9 }
  0x4e   : > { %1372 = vmatpush2.bf16.msra.mxu0 %v4027_v59  ;;  %v4070_v59 = vld [vmem:[%s4541_s9 + $0x54] ss:$8 sps:$4 sm:$0xff]  }
  0x4f   : > { %1425 = vmatpush2.bf16.msra.mxu1 %v4028_v60  ;;  %1373 = vmatprep.subr.bf16.mxu0 %v4029_v61  ;;  %v678_v60 = vrot.slane %v4639_v4, 1  ;;  %v643_v61 = vrot.slane %v635_v40, 7  ;;  %v4160_v4 = vld [vmem:[%s4541_s9 + $0x264] ss:$8 sps:$4 sm:$0xff]  }
  0x50   : > { %1426 = vmatprep.subr.bf16.mxu1 %v4031_v2  ;;  %v4065_v2 = vld [vmem:[%s4541_s9 + $0x550] ss:$8 sps:$4 sm:$0xff]  }
  0x52   : > { %1374 = vmatpush2.bf16.msra.mxu0 %v4033_v10  ;;  %v4749_v10 = vpack.c.bf16 %v635_v40, %v4634_v1  ;;  %v634_v40 = vld [vmem:[#allocation3 + $0x8] sm:$0xff] }
  0x53   : > { %1427 = vmatpush2.bf16.msra.mxu1 %v4034_v15  ;;  %1375 = vmatprep.subr.bf16.mxu0 %v4035_v17  ;;  %v4073_v15 = vld [vmem:[%s4541_s9 + $0x544] ss:$8 sps:$4 sm:$0xff]   ;;  %v309_v17 = vand.u32 7, %v4738_v52 }
  0x54   : > { %1428 = vmatprep.subr.bf16.mxu1 %v4037_v18  ;;  %v4758_v18 = vsel %vm679_vm4, %v674_v54, %v676_v57 }
  0x55   : > { %vm4800_vm6 = vcmp.ge.s32.totalorder %v309_v17, 1  ;;  %vm4961_vm12 = vcmp.lt.s32.totalorder %v309_v17, 7  ;;  %v4158_v17 = vld [vmem:[%s4541_s9 + $0x260] ss:$8 sps:$4 sm:$0xff]  }
  0x56   : > { %1376 = vmatpush2.bf16.msra.mxu0 %v4039_v19  ;;  %v4764_v19 = vsel %vm679_vm4, %v676_v57, %v678_v60  ;;  %vm3834_vm7 = vmpackc.low %vm4800_vm6, %vm4791_vm5 }
  0x57   : > { %1429 = vmatpush2.bf16.msra.mxu1 %v4040_v21  ;;  %1377 = vmatprep.subr.bf16.mxu0 %v4041_v22  ;;  %v4768_v21 = vpack.c.bf16 %v4764_v19, %v4758_v18  ;;  %v4774_v22 = vsel %vm646_vm0, %v643_v61, %v645_v9  ;;  %vm3846_vm14 = vmpackc.low %vm4961_vm12, %vm4955_vm11 }
  0x58   : > { %1430 = vmatprep.subr.bf16.mxu1 %v4043_v23  ;;  %v4780_v23 = vsel %vm646_vm0, %v641_v6, %v643_v61  ;;  %v4074_v6 = vld [vmem:[%s4541_s9 + $0x40] ss:$8 sps:$4 sm:$0xff]   ;;  %v4091_v61 = vld [vmem:[%s4541_s9 + $0x514] ss:$8 sps:$4 sm:$0xff]  }
  0x59   : > { %v4977_v52 = vpack.c.bf16 %v4780_v23, %v4653_v11 }
  0x5a   : > { %1378 = vmatpush2.bf16.msra.mxu0 %v4045_v25  ;;  %v663_v25 = vsel %vm4622_vm1, %v4711_v35, 0.0  ;;  %v4080_v35 = vld [vmem:[%s4541_s9 + $0x30] ss:$8 sps:$4 sm:$0xff]  }
  0x5b   : > { %1431 = vmatpush2.bf16.msra.mxu1 %v4046_v26  ;;  %1379 = vmatprep.subr.bf16.mxu0 %v4047_v30  ;;  %v664_v26 = vsel %vm4622_vm1, %v4661_v14, 0.0  ;;  %v4079_v30 = vld [vmem:[%s4541_s9 + $0x534] ss:$8 sps:$4 sm:$0xff]  }
  0x5c   : > { %1432 = vmatprep.subr.bf16.mxu1 %v4049_v31  ;;  %v4082_v31 = vld [vmem:[%s4541_s9 + $0x34] ss:$8 sps:$4 sm:$0xff]   ;;  %v4804_v14 = vpack.c.bf16 %v664_v26, %v663_v25  ;;  %v4089_v25 = vld [vmem:[%s4541_s9 + $0x510] ss:$8 sps:$4 sm:$0xff]  }
  0x5d   : > { %v4092_v26 = vld [vmem:[%s4541_s9 + $0x10] ss:$8 sps:$4 sm:$0xff]  }
  0x5e   : > { %1380 = vmatpush2.bf16.msra.mxu0 %v4051_v32  ;;  %v3835_v32 = vpack.c.bf16 %v4774_v22, %v4780_v23  ;;  %v4166_v23 = vld [vmem:[%s4541_s9 + $0x254] ss:$8 sps:$4 sm:$0xff]  }
  0x5f   : > { %1433 = vmatpush2.bf16.msra.mxu1 %v4052_v33  ;;  %1455 = vmatprep.subr.bf16.mxu0 %v4055_v36  ;;  %v4077_v33 = vld [vmem:[%s4541_s9 + $0x530] ss:$8 sps:$4 sm:$0xff]   ;;  %v672_v36 = vrot.slane %v4632_v0, 1  ;;  %v4157_v0 = vld [vmem:[%s4541_s9 + $0x164] ss:$8 sps:$4 sm:$0xff]  }
  0x60   : > { %2021 = vmatprep.subr.bf16.mxu1 %v4058_v37  ;;  %v4085_v37 = vld [vmem:[%s4541_s9 + $0x524] ss:$8 sps:$4 sm:$0xff]  }
  0x61   : > { %3833 = vmatmul.mubr.msk.bf16.vlgmr.msra.gmra.mxu0 %vm3828_vm3, %v3832_v41  ;;  %v677_v41 = vrot.slane %v4690_v24, 1 }
  0x62   : > { %1435 = vmatmul.mubr.bf16.vlgmr.msra.gmra.mxu1 %v3818_v42  ;;  %1456 = vmatpush1.bf16.msra.mxu0 %v4053_v43  ;;  %v4088_v42 = vld [vmem:[%s4541_s9 + $0x24] ss:$8 sps:$4 sm:$0xff]   ;;  %v642_v43 = vrot.slane %v634_v40, 7 }
  0x63   : > { %2022 = vmatpush1.bf16.msra.mxu1 %v4056_v44  ;;  %1457 = vmatprep.subr.bf16.mxu0 %v4061_v46  ;;  %v675_v44 = vrot.slane %v634_v40, 1  ;;  %v3824_v46 = vpack.c.bf16 %v4690_v24, %v634_v40  ;;  %v4161_v24 = vld [vmem:[%s4541_s9 + $0x150] ss:$8 sps:$4 sm:$0xff]  }
  0x64   : > { %2023 = vmatprep.subr.bf16.mxu1 %v4064_v47  ;;  %1444 = vmatprep.mubr.bf16.mxu1 %v3825_v48  ;;  %v4820_v47 = vpack.c.bf16 %v634_v40, %v4645_v8  ;;  %v4467_v48 = vmov 0   ;;  %v4834_v57 = vsel %vm646_vm0, %v642_v43, %v644_v29  ;;  %v4115_v40 = vld [vmem:[%s4541_s9 + $0x5d4] ss:$8 sps:$4 sm:$0xff]  }
  0x65   : > { %3836 = vmatprep.mubr.msk.bf16.mxu0 %vm3834_vm7, %v3835_v32  ;;  %v4854_v29 = vsel %vm679_vm4, %v673_v13, %v675_v44  ;;  %v4866_v8 = vsel %vm679_vm4, %v675_v44, %v677_v41  ;;  %v4094_v13 = vld [vmem:[%s4541_s9 + $0x14] ss:$8 sps:$4 sm:$0xff]   ;;  %v4109_v32 = vld [vmem:[%s4541_s9 + $0x5e4] ss:$8 sps:$4 sm:$0xff]   ;;  %v4116_v44 = vld [vmem:[%s4541_s9 + $0xd0] ss:$8 sps:$4 sm:$0xff]  }
  0x66   : > { %1458 = vmatpush1.bf16.msra.mxu0 %v4059_v51  ;;  %v3575_v51 = vcombine.high %v4467_v48, %v4804_v14 }
  0x67   : > { %2024 = vmatpush1.bf16.msra.mxu1 %v4062_v53  ;;  %1459 = vmatprep.subr.bf16.mxu0 %v4067_v58  ;;  %v4083_v53 = vld [vmem:[%s4541_s9 + $0x520] ss:$8 sps:$4 sm:$0xff]   ;;  %v4840_v58 = vsel %vm646_vm0, %v640_v28, %v642_v43  ;;  %v4113_v43 = vld [vmem:[%s4541_s9 + $0x5d0] ss:$8 sps:$4 sm:$0xff]  }
  0x68   : > { %2025 = vmatprep.subr.bf16.mxu1 %v4070_v59  ;;  %v4848_v59 = vsel %vm679_vm4, %v672_v36, %v674_v54  ;;  %v4086_v28 = vld [vmem:[%s4541_s9 + $0x20] ss:$8 sps:$4 sm:$0xff]   ;;  %v3838_v1 = vpack.c.bf16 %v4834_v57, %v4840_v58  ;;  %v3844_v54 = vpack.c.bf16 %v4854_v29, %v4685_v20  ;;  %v4163_v20 = vld [vmem:[%s4541_s9 + $0x154] ss:$8 sps:$4 sm:$0xff]   ;;  %v5026_v9 = vpack.c.bf16 %v4840_v58, %v4705_v34 }
  0x69   : > { %v697_v11 = vsel %vm4880_vm8, %v4848_v59, 0.0  ;;  %v4167_v34 = vld [vmem:[%s4541_s9 + $0x140] ss:$8 sps:$4 sm:$0xff]  }
  0x6a   : > { %1460 = vmatpush1.bf16.msra.mxu0 %v4065_v2  ;;  %1445 = vmatmul.mubr.bf16.gmra.mxu1 %v3824_v46  ;;  %v4871_v2 = vpack.c.bf16 %v4866_v8, %v4854_v29  ;;  %v4121_v46 = vld [vmem:[%s4541_s9 + $0x5c4] ss:$8 sps:$4 sm:$0xff]   ;;  %v5019_v3 = vpack.c.bf16 %v697_v11, %v696_v63  ;;  %v3577_v29 = vcombine.high %v4467_v48, %v4717_v38  ;;  %v4170_v58 = vld [vmem:[%s4541_s9 + $0x240] ss:$8 sps:$4 sm:$0xff]   ;;  %v4223_v11 = vld [vmem:[%s4541_s9 + $0x1b4] ss:$8 sps:$4 sm:$0xff]  }
  0x6b   : > { %2026 = vmatpush1.bf16.msra.mxu1 %v4068_v7  ;;  %1461 = vmatprep.subr.bf16.mxu0 %v4073_v15  ;;  %v4175_v7 = vld [vmem:[%s4541_s9 + $0x134] ss:$8 sps:$4 sm:$0xff]   ;;  %v4176_v15 = vld [vmem:[%s4541_s9 + $0x230] ss:$8 sps:$4 sm:$0xff]   ;;  %v4218_v63 = vld [vmem:[%s4541_s9 + $0x2c0] ss:$8 sps:$4 sm:$0xff]  }
  0x6c   : > { %2027 = vmatprep.subr.bf16.mxu1 %v4076_v16  ;;  %3839 = vmatmul.mubr.msk.bf16.gmra.mxu0 %vm3834_vm7, %v3838_v1  ;;  %v3841_v16 = vpack.c.bf16 %v4758_v18, %v4848_v59  ;;  %v4103_v18 = vld [vmem:[%s4541_s9 + $0x5f4] ss:$8 sps:$4 sm:$0xff]   ;;  %v4172_v59 = vld [vmem:[%s4541_s9 + $0x244] ss:$8 sps:$4 sm:$0xff]  }
  0x6d   : > { %2053 = vmatprep.mubr.bf16.mxu1 %v3575_v51  ;;  %v4124_v51 = vld [vmem:[%s4541_s9 + $0xc4] ss:$8 sps:$4 sm:$0xff]   ;;  %v4130_v1 = vld [vmem:[%s4541_s9 + $0xb4] ss:$8 sps:$4 sm:$0xff]  }
  0x6e   : > { %1462 = vmatpush1.bf16.msra.mxu0 %v4071_v27  ;;  %v4100_v27 = vld [vmem:[%s4541_s9 + $0x4] ss:$8 sps:$4 sm:$0xff]   ;;  %3842 = vmatprep.mubr.msk.bf16.mxu0 %vm3840_vm10, %v3841_v16  ;;  %v4128_v16 = vld [vmem:[%s4541_s9 + $0xb0] ss:$8 sps:$4 sm:$0xff]  }
  0x6f   : > { %2028 = vmatpush1.bf16.msra.mxu1 %v4074_v6  ;;  %1463 = vmatprep.subr.bf16.mxu0 %v4079_v30  ;;  %v4106_v6 = vld [vmem:[%s4541_s9 + $0xf4] ss:$8 sps:$4 sm:$0xff]   ;;  %v4101_v30 = vld [vmem:[%s4541_s9 + $0x5f0] ss:$8 sps:$4 sm:$0xff]  }
  0x70   : > { %2029 = vmatprep.subr.bf16.mxu1 %v4082_v31  ;;  %v4104_v31 = vld [vmem:[%s4541_s9 + $0xf0] ss:$8 sps:$4 sm:$0xff]  }
  0x72   : > { %1464 = vmatpush1.bf16.msra.mxu0 %v4077_v33  ;;  %v4112_v33 = vld [vmem:[%s4541_s9 + $0xe4] ss:$8 sps:$4 sm:$0xff]  }
  0x73   : > { %2030 = vmatpush1.bf16.msra.mxu1 %v4080_v35  ;;  %1465 = vmatprep.subr.bf16.mxu0 %v4085_v37  ;;  %v4107_v35 = vld [vmem:[%s4541_s9 + $0x5e0] ss:$8 sps:$4 sm:$0xff]  }
  0x74   : > { %2031 = vmatprep.subr.bf16.mxu1 %v4088_v42  ;;  %v4110_v37 = vld [vmem:[%s4541_s9 + $0xe0] ss:$8 sps:$4 sm:$0xff]   ;;  %v4118_v42 = vld [vmem:[%s4541_s9 + $0xd4] ss:$8 sps:$4 sm:$0xff]  }
  0x76   : > { %1466 = vmatpush1.bf16.msra.mxu0 %v4083_v53  ;;  %v4119_v53 = vld [vmem:[%s4541_s9 + $0x5c0] ss:$8 sps:$4 sm:$0xff]  }
  0x77   : > { %2032 = vmatpush1.bf16.msra.mxu1 %v4086_v28  ;;  %1467 = vmatprep.subr.bf16.mxu0 %v4091_v61  ;;  %v4122_v28 = vld [vmem:[%s4541_s9 + $0xc0] ss:$8 sps:$4 sm:$0xff]   ;;  %v4127_v61 = vld [vmem:[%s4541_s9 + $0x5b4] ss:$8 sps:$4 sm:$0xff]  }
  0x78   : > { %2033 = vmatprep.subr.bf16.mxu1 %v4094_v13  ;;  %v4125_v13 = vld [vmem:[%s4541_s9 + $0x5b0] ss:$8 sps:$4 sm:$0xff]  }
  0x7a   : > { %1468 = vmatpush1.bf16.msra.mxu0 %v4089_v25  ;;  %v4133_v25 = vld [vmem:[%s4541_s9 + $0x5a4] ss:$8 sps:$4 sm:$0xff]  }
  0x7b   : > { %2034 = vmatpush1.bf16.msra.mxu1 %v4092_v26  ;;  %1469 = vmatprep.subr.bf16.mxu0 %v4097_v55  ;;  %v4136_v26 = vld [vmem:[%s4541_s9 + $0xa4] ss:$8 sps:$4 sm:$0xff]   ;;  %v4131_v55 = vld [vmem:[%s4541_s9 + $0x5a0] ss:$8 sps:$4 sm:$0xff]  }
  0x7c   : > { %2035 = vmatprep.subr.bf16.mxu1 %v4100_v27  ;;  %v4134_v27 = vld [vmem:[%s4541_s9 + $0xa0] ss:$8 sps:$4 sm:$0xff]  }
  0x7e   : > { %1470 = vmatpush1.bf16.msra.mxu0 %v4095_v49  ;;  %v4139_v49 = vld [vmem:[%s4541_s9 + $0x594] ss:$8 sps:$4 sm:$0xff]  }
  0x7f   : > { %2036 = vmatpush1.bf16.msra.mxu1 %v4098_v56  ;;  %1471 = vmatprep.subr.bf16.mxu0 %v4103_v18  ;;  %v4142_v56 = vld [vmem:[%s4541_s9 + $0x94] ss:$8 sps:$4 sm:$0xff]   ;;  %v4137_v18 = vld [vmem:[%s4541_s9 + $0x590] ss:$8 sps:$4 sm:$0xff]  }
  0x80   : > { %2037 = vmatprep.subr.bf16.mxu1 %v4106_v6  ;;  %v4140_v6 = vld [vmem:[%s4541_s9 + $0x90] ss:$8 sps:$4 sm:$0xff]  }
  0x82   : > { %1472 = vmatpush2.bf16.msra.mxu0 %v4101_v30  ;;  %v4145_v30 = vld [vmem:[%s4541_s9 + $0x584] ss:$8 sps:$4 sm:$0xff]  }
  0x83   : > { %2038 = vmatpush2.bf16.msra.mxu1 %v4104_v31  ;;  %1473 = vmatprep.subr.bf16.mxu0 %v4109_v32  ;;  %v4148_v31 = vld [vmem:[%s4541_s9 + $0x84] ss:$8 sps:$4 sm:$0xff]   ;;  %v4143_v32 = vld [vmem:[%s4541_s9 + $0x580] ss:$8 sps:$4 sm:$0xff]  }
  0x84   : > { %2039 = vmatprep.subr.bf16.mxu1 %v4112_v33  ;;  %v4146_v33 = vld [vmem:[%s4541_s9 + $0x80] ss:$8 sps:$4 sm:$0xff]  }
  0x86   : > { %1474 = vmatpush2.bf16.msra.mxu0 %v4107_v35  ;;  %v4151_v35 = vld [vmem:[%s4541_s9 + $0x174] ss:$8 sps:$4 sm:$0xff]  }
  0x87   : > { %2040 = vmatpush2.bf16.msra.mxu1 %v4110_v37  ;;  %1475 = vmatprep.subr.bf16.mxu0 %v4115_v40  ;;  %v4154_v37 = vld [vmem:[%s4541_s9 + $0x274] ss:$8 sps:$4 sm:$0xff]   ;;  %v3574_v40 = vcombine.low %v4467_v48, %v4804_v14  ;;  %v4352_v14 = vld [vmem:[%s4541_s9 + $0x844] ss:$8 sps:$4 sm:$0xff]  }
  0x88   : > { %2041 = vmatprep.subr.bf16.mxu1 %v4118_v42  ;;  %v4149_v42 = vld [vmem:[%s4541_s9 + $0x170] ss:$8 sps:$4 sm:$0xff]  }
  0x8a   : > { %1476 = vmatpush2.bf16.msra.mxu0 %v4113_v43  ;;  %v4950_v43 = vsel %vm679_vm4, %v678_v60, %v672_v36  ;;  %v4155_v60 = vld [vmem:[%s4541_s9 + $0x160] ss:$8 sps:$4 sm:$0xff]   ;;  %v4164_v36 = vld [vmem:[%s4541_s9 + $0x250] ss:$8 sps:$4 sm:$0xff]  }
  0x8b   : > { %2042 = vmatpush2.bf16.msra.mxu1 %v4116_v44  ;;  %1477 = vmatprep.subr.bf16.mxu0 %v4121_v46  ;;  %v4152_v44 = vld [vmem:[%s4541_s9 + $0x270] ss:$8 sps:$4 sm:$0xff]   ;;  %v3847_v5 = vpack.c.bf16 %v4950_v43, %v4764_v19  ;;  %v5007_v19 = vsel %vm679_vm4, %v677_v41, %v671_v12  ;;  %v4169_v41 = vld [vmem:[%s4541_s9 + $0x144] ss:$8 sps:$4 sm:$0xff]  }
  0x8c   : > { %2043 = vmatprep.subr.bf16.mxu1 %v4124_v51  ;;  %v3850_v12 = vpack.c.bf16 %v5007_v19, %v4866_v8  ;;  %v4178_v51 = vld [vmem:[%s4541_s9 + $0x234] ss:$8 sps:$4 sm:$0xff]   ;;  %v4209_v46 = vld [vmem:[%s4541_s9 + $0x1d0] ss:$8 sps:$4 sm:$0xff]  }
  0x8e   : > { %1478 = vmatpush2.bf16.msra.mxu0 %v4119_v53  ;;  %v4173_v53 = vld [vmem:[%s4541_s9 + $0x130] ss:$8 sps:$4 sm:$0xff]  }
  0x8f   : > { %2044 = vmatpush2.bf16.msra.mxu1 %v4122_v28  ;;  %1479 = vmatprep.subr.bf16.mxu0 %v4127_v61  ;;  %v4181_v28 = vld [vmem:[%s4541_s9 + $0x124] ss:$8 sps:$4 sm:$0xff]  }
  0x90   : > { %2045 = vmatprep.subr.bf16.mxu1 %v4130_v1  ;;  %v4184_v61 = vld [vmem:[%s4541_s9 + $0x224] ss:$8 sps:$4 sm:$0xff]   ;;  %v4179_v1 = vld [vmem:[%s4541_s9 + $0x120] ss:$8 sps:$4 sm:$0xff]  }
  0x92   : > { %1480 = vmatpush2.bf16.msra.mxu0 %v4125_v13  ;;  %v4182_v13 = vld [vmem:[%s4541_s9 + $0x220] ss:$8 sps:$4 sm:$0xff]  }
  0x93   : > { %2046 = vmatpush2.bf16.msra.mxu1 %v4128_v16  ;;  %1481 = vmatprep.subr.bf16.mxu0 %v4133_v25  ;;  %v4187_v16 = vld [vmem:[%s4541_s9 + $0x114] ss:$8 sps:$4 sm:$0xff]  }
  0x94   : > { %2047 = vmatprep.subr.bf16.mxu1 %v4136_v26  ;;  %v4190_v25 = vld [vmem:[%s4541_s9 + $0x214] ss:$8 sps:$4 sm:$0xff]   ;;  %v4185_v26 = vld [vmem:[%s4541_s9 + $0x110] ss:$8 sps:$4 sm:$0xff]  }
  0x96   : > { %1482 = vmatpush2.bf16.msra.mxu0 %v4131_v55  ;;  %v4188_v55 = vld [vmem:[%s4541_s9 + $0x210] ss:$8 sps:$4 sm:$0xff]  }
  0x97   : > { %2048 = vmatpush2.bf16.msra.mxu1 %v4134_v27  ;;  %1483 = vmatprep.subr.bf16.mxu0 %v4139_v49  ;;  %v4193_v27 = vld [vmem:[%s4541_s9 + $0x104] ss:$8 sps:$4 sm:$0xff]  }
  0x98   : > { %2049 = vmatprep.subr.bf16.mxu1 %v4142_v56  ;;  %v4196_v49 = vld [vmem:[%s4541_s9 + $0x204] ss:$8 sps:$4 sm:$0xff]   ;;  %v4191_v56 = vld [vmem:[%s4541_s9 + $0x100] ss:$8 sps:$4 sm:$0xff]  }
  0x9a   : > { %1484 = vmatpush2.bf16.msra.mxu0 %v4137_v18  ;;  %v4194_v18 = vld [vmem:[%s4541_s9 + $0x200] ss:$8 sps:$4 sm:$0xff]  }
  0x9b   : > { %2050 = vmatpush2.bf16.msra.mxu1 %v4140_v6  ;;  %1485 = vmatprep.subr.bf16.mxu0 %v4145_v30  ;;  %v4199_v6 = vld [vmem:[%s4541_s9 + $0x1f4] ss:$8 sps:$4 sm:$0xff]  }
  0x9c   : > { %2051 = vmatprep.subr.bf16.mxu1 %v4148_v31  ;;  %v4202_v30 = vld [vmem:[%s4541_s9 + $0x2f4] ss:$8 sps:$4 sm:$0xff]   ;;  %v4197_v31 = vld [vmem:[%s4541_s9 + $0x1f0] ss:$8 sps:$4 sm:$0xff]  }
  0x9e   : > { %1486 = vmatpush2.bf16.msra.mxu0 %v4143_v32  ;;  %v4200_v32 = vld [vmem:[%s4541_s9 + $0x2f0] ss:$8 sps:$4 sm:$0xff]  }
  0x9f   : > { %2052 = vmatpush2.bf16.msra.mxu1 %v4146_v33  ;;  %2074 = vmatprep.subr.bf16.mxu0 %v4151_v35  ;;  %v4205_v33 = vld [vmem:[%s4541_s9 + $0x1e4] ss:$8 sps:$4 sm:$0xff]  }
  0xa0   : > { %2127 = vmatprep.subr.bf16.mxu1 %v4154_v37  ;;  %v4208_v35 = vld [vmem:[%s4541_s9 + $0x2e4] ss:$8 sps:$4 sm:$0xff]   ;;  %v4203_v37 = vld [vmem:[%s4541_s9 + $0x1e0] ss:$8 sps:$4 sm:$0xff]  }
  0xa1   : > { %3845 = vmatmul.mubr.msk.bf16.vlgmr.msra.gmra.mxu0 %vm3840_vm10, %v3844_v54  ;;  %v3579_v54 = vcombine.high %v4467_v48, %v5019_v3 }
  0xa2   : > { %2054 = vmatmul.mubr.bf16.vlgmr.msra.gmra.mxu1 %v3574_v40  ;;  %2075 = vmatpush1.bf16.msra.mxu0 %v4149_v42  ;;  %v4206_v40 = vld [vmem:[%s4541_s9 + $0x2e0] ss:$8 sps:$4 sm:$0xff]   ;;  %v4211_v42 = vld [vmem:[%s4541_s9 + $0x1d4] ss:$8 sps:$4 sm:$0xff]  }
  0xa3   : > { %2128 = vmatpush1.bf16.msra.mxu1 %v4152_v44  ;;  %2076 = vmatprep.subr.bf16.mxu0 %v4157_v0  ;;  %v4214_v44 = vld [vmem:[%s4541_s9 + $0x2d4] ss:$8 sps:$4 sm:$0xff]   ;;  %v4212_v0 = vld [vmem:[%s4541_s9 + $0x2d0] ss:$8 sps:$4 sm:$0xff]  }
  0xa4   : > { %2129 = vmatprep.subr.bf16.mxu1 %v4160_v4  ;;  %3848 = vmatprep.mubr.msk.bf16.mxu0 %vm3846_vm14, %v3847_v5  ;;  %v4217_v4 = vld [vmem:[%s4541_s9 + $0x1c4] ss:$8 sps:$4 sm:$0xff]   ;;  %v4215_v5 = vld [vmem:[%s4541_s9 + $0x1c0] ss:$8 sps:$4 sm:$0xff]  }
  0xa5   : > { %3860 = vmatprep.mubr.msk.bf16.mxu1 %vm4971_vm13, %v4977_v52 }
  0xa6   : > { %2077 = vmatpush1.bf16.msra.mxu0 %v4155_v60  ;;  %v4220_v60 = vld [vmem:[%s4541_s9 + $0x2c4] ss:$8 sps:$4 sm:$0xff]  }
  0xa7   : > { %2130 = vmatpush1.bf16.msra.mxu1 %v4158_v17  ;;  %2078 = vmatprep.subr.bf16.mxu0 %v4163_v20  ;;  %v4226_v17 = vld [vmem:[%s4541_s9 + $0x2b4] ss:$8 sps:$4 sm:$0xff]   ;;  %v4221_v20 = vld [vmem:[%s4541_s9 + $0x1b0] ss:$8 sps:$4 sm:$0xff]  }
  0xa8   : > { %2131 = vmatprep.subr.bf16.mxu1 %v4166_v23  ;;  %v4224_v23 = vld [vmem:[%s4541_s9 + $0x2b0] ss:$8 sps:$4 sm:$0xff]  }
  0xa9   : > { %3851 = vmatmul.mubr.msk.bf16.gmra.mxu0 %vm3846_vm14, %v3850_v12  ;;  %v4229_v12 = vld [vmem:[%s4541_s9 + $0x1a4] ss:$8 sps:$4 sm:$0xff]  }
  0xaa   : > { %3863 = vmatmul.mubr.msk.bf16.gmra.mxu1 %vm4971_vm13, %v5026_v9  ;;  %2079 = vmatpush1.bf16.msra.mxu0 %v4161_v24  ;;  %v4232_v24 = vld [vmem:[%s4541_s9 + $0x2a4] ss:$8 sps:$4 sm:$0xff]  }
  0xab   : > { %2132 = vmatpush1.bf16.msra.mxu1 %v4164_v36  ;;  %2080 = vmatprep.subr.bf16.mxu0 %v4169_v41  ;;  %v4227_v36 = vld [vmem:[%s4541_s9 + $0x1a0] ss:$8 sps:$4 sm:$0xff]  }
  0xac   : > { %2133 = vmatprep.subr.bf16.mxu1 %v4172_v59  ;;  %2106 = vmatprep.mubr.bf16.mxu0 %v3577_v29  ;;  %v4230_v41 = vld [vmem:[%s4541_s9 + $0x2a0] ss:$8 sps:$4 sm:$0xff]   ;;  %v4235_v59 = vld [vmem:[%s4541_s9 + $0x194] ss:$8 sps:$4 sm:$0xff]  }
  0xad   : > { %2159 = vmatprep.mubr.bf16.mxu1 %v3579_v54  ;;  %v4238_v29 = vld [vmem:[%s4541_s9 + $0x294] ss:$8 sps:$4 sm:$0xff]   ;;  %v4233_v54 = vld [vmem:[%s4541_s9 + $0x190] ss:$8 sps:$4 sm:$0xff]  }
  0xae   : > { %2081 = vmatpush1.bf16.msra.mxu0 %v4167_v34  ;;  %v4236_v34 = vld [vmem:[%s4541_s9 + $0x290] ss:$8 sps:$4 sm:$0xff]  }
  0xaf   : > { %2134 = vmatpush1.bf16.msra.mxu1 %v4170_v58  ;;  %2082 = vmatprep.subr.bf16.mxu0 %v4175_v7  ;;  %v4241_v58 = vld [vmem:[%s4541_s9 + $0x184] ss:$8 sps:$4 sm:$0xff]  }
  0xb0   : > { %2135 = vmatprep.subr.bf16.mxu1 %v4178_v51  ;;  %v4244_v7 = vld [vmem:[%s4541_s9 + $0x284] ss:$8 sps:$4 sm:$0xff]   ;;  %v4239_v51 = vld [vmem:[%s4541_s9 + $0x180] ss:$8 sps:$4 sm:$0xff]  }
  0xb2   : > { %2083 = vmatpush1.bf16.msra.mxu0 %v4173_v53  ;;  %v4242_v53 = vld [vmem:[%s4541_s9 + $0x280] ss:$8 sps:$4 sm:$0xff]  }
  0xb3   : > { %2136 = vmatpush1.bf16.msra.mxu1 %v4176_v15  ;;  %2084 = vmatprep.subr.bf16.mxu0 %v4181_v28  ;;  %v4247_v15 = vld [vmem:[%s4541_s9 + $0x674] ss:$8 sps:$4 sm:$0xff]  }
  0xb4   : > { %2137 = vmatprep.subr.bf16.mxu1 %v4184_v61  ;;  %v4250_v28 = vld [vmem:[%s4541_s9 + $0x774] ss:$8 sps:$4 sm:$0xff]   ;;  %v3576_v61 = vcombine.low %v4467_v48, %v4717_v38  ;;  %v4251_v38 = vld [vmem:[%s4541_s9 + $0x660] ss:$8 sps:$4 sm:$0xff]  }
  0xb6   : > { %2085 = vmatpush1.bf16.msra.mxu0 %v4179_v1  ;;  %v3578_v1 = vcombine.low %v4467_v48, %v5019_v3  ;;  %v4254_v3 = vld [vmem:[%s4541_s9 + $0x760] ss:$8 sps:$4 sm:$0xff]  }
  0xb7   : > { %2138 = vmatpush1.bf16.msra.mxu1 %v4182_v13  ;;  %2086 = vmatprep.subr.bf16.mxu0 %v4187_v16  ;;  %v4245_v13 = vld [vmem:[%s4541_s9 + $0x670] ss:$8 sps:$4 sm:$0xff]  }
  0xb8   : > { %2139 = vmatprep.subr.bf16.mxu1 %v4190_v25  ;;  %v4248_v16 = vld [vmem:[%s4541_s9 + $0x770] ss:$8 sps:$4 sm:$0xff]   ;;  %v4253_v25 = vld [vmem:[%s4541_s9 + $0x664] ss:$8 sps:$4 sm:$0xff]  }
  0xba   : > { %2087 = vmatpush1.bf16.msra.mxu0 %v4185_v26  ;;  %v4256_v26 = vld [vmem:[%s4541_s9 + $0x764] ss:$8 sps:$4 sm:$0xff]  }
  0xbb   : > { %2140 = vmatpush1.bf16.msra.mxu1 %v4188_v55  ;;  %2088 = vmatprep.subr.bf16.mxu0 %v4193_v27  ;;  %v4259_v55 = vld [vmem:[%s4541_s9 + $0x654] ss:$8 sps:$4 sm:$0xff]  }
  0xbc   : > { %2141 = vmatprep.subr.bf16.mxu1 %v4196_v49  ;;  %v4262_v27 = vld [vmem:[%s4541_s9 + $0x754] ss:$8 sps:$4 sm:$0xff]   ;;  %v4257_v49 = vld [vmem:[%s4541_s9 + $0x650] ss:$8 sps:$4 sm:$0xff]  }
  0xbe   : > { %2089 = vmatpush1.bf16.msra.mxu0 %v4191_v56  ;;  %v4260_v56 = vld [vmem:[%s4541_s9 + $0x750] ss:$8 sps:$4 sm:$0xff]  }
  0xbf   : > { %2142 = vmatpush1.bf16.msra.mxu1 %v4194_v18  ;;  %2090 = vmatprep.subr.bf16.mxu0 %v4199_v6  ;;  %v4265_v18 = vld [vmem:[%s4541_s9 + $0x644] ss:$8 sps:$4 sm:$0xff]  }
  0xc0   : > { %2143 = vmatprep.subr.bf16.mxu1 %v4202_v30  ;;  %v4268_v6 = vld [vmem:[%s4541_s9 + $0x744] ss:$8 sps:$4 sm:$0xff]   ;;  %v4263_v30 = vld [vmem:[%s4541_s9 + $0x640] ss:$8 sps:$4 sm:$0xff]  }
  0xc2   : > { %2091 = vmatpush2.bf16.msra.mxu0 %v4197_v31  ;;  %v4266_v31 = vld [vmem:[%s4541_s9 + $0x740] ss:$8 sps:$4 sm:$0xff]  }
  0xc3   : > { %2144 = vmatpush2.bf16.msra.mxu1 %v4200_v32  ;;  %2092 = vmatprep.subr.bf16.mxu0 %v4205_v33  ;;  %v4271_v32 = vld [vmem:[%s4541_s9 + $0x634] ss:$8 sps:$4 sm:$0xff]  }
  0xc4   : > { %2145 = vmatprep.subr.bf16.mxu1 %v4208_v35  ;;  %v4274_v33 = vld [vmem:[%s4541_s9 + $0x734] ss:$8 sps:$4 sm:$0xff]   ;;  %v4269_v35 = vld [vmem:[%s4541_s9 + $0x630] ss:$8 sps:$4 sm:$0xff]  }
  0xc6   : > { %2093 = vmatpush2.bf16.msra.mxu0 %v4203_v37  ;;  %v4272_v37 = vld [vmem:[%s4541_s9 + $0x730] ss:$8 sps:$4 sm:$0xff]  }
  0xc7   : > { %2146 = vmatpush2.bf16.msra.mxu1 %v4206_v40  ;;  %2094 = vmatprep.subr.bf16.mxu0 %v4211_v42  ;;  %v4277_v40 = vld [vmem:[%s4541_s9 + $0x624] ss:$8 sps:$4 sm:$0xff]  }
  0xc8   : > { %2147 = vmatprep.subr.bf16.mxu1 %v4214_v44  ;;  %v4280_v42 = vld [vmem:[%s4541_s9 + $0x724] ss:$8 sps:$4 sm:$0xff]   ;;  %v4275_v44 = vld [vmem:[%s4541_s9 + $0x620] ss:$8 sps:$4 sm:$0xff]  }
  0xca   : > { %2095 = vmatpush2.bf16.msra.mxu0 %v4209_v46  ;;  %v4286_v46 = vld [vmem:[%s4541_s9 + $0x714] ss:$8 sps:$4 sm:$0xff]  }
  0xcb   : > { %2148 = vmatpush2.bf16.msra.mxu1 %v4212_v0  ;;  %2096 = vmatprep.subr.bf16.mxu0 %v4217_v4  ;;  %v4281_v0 = vld [vmem:[%s4541_s9 + $0x610] ss:$8 sps:$4 sm:$0xff]  }
  0xcc   : > { %2149 = vmatprep.subr.bf16.mxu1 %v4220_v60  ;;  %v4284_v4 = vld [vmem:[%s4541_s9 + $0x710] ss:$8 sps:$4 sm:$0xff]   ;;  %v4289_v60 = vld [vmem:[%s4541_s9 + $0x604] ss:$8 sps:$4 sm:$0xff]  }
  0xce   : > { %2097 = vmatpush2.bf16.msra.mxu0 %v4215_v5  ;;  %v4292_v5 = vld [vmem:[%s4541_s9 + $0x704] ss:$8 sps:$4 sm:$0xff]  }
  0xcf   : > { %2150 = vmatpush2.bf16.msra.mxu1 %v4218_v63  ;;  %2098 = vmatprep.subr.bf16.mxu0 %v4223_v11  ;;  %v4287_v63 = vld [vmem:[%s4541_s9 + $0x600] ss:$8 sps:$4 sm:$0xff]  }
  0xd0   : > { %2151 = vmatprep.subr.bf16.mxu1 %v4226_v17  ;;  %v4290_v11 = vld [vmem:[%s4541_s9 + $0x700] ss:$8 sps:$4 sm:$0xff]   ;;  %v4295_v17 = vld [vmem:[%s4541_s9 + $0x6f4] ss:$8 sps:$4 sm:$0xff]  }
  0xd2   : > { %2099 = vmatpush2.bf16.msra.mxu0 %v4221_v20  ;;  %v4298_v20 = vld [vmem:[%s4541_s9 + $0x7f4] ss:$8 sps:$4 sm:$0xff]  }
  0xd3   : > { %2152 = vmatpush2.bf16.msra.mxu1 %v4224_v23  ;;  %2100 = vmatprep.subr.bf16.mxu0 %v4229_v12  ;;  %v4293_v23 = vld [vmem:[%s4541_s9 + $0x6f0] ss:$8 sps:$4 sm:$0xff]  }
  0xd4   : > { %2153 = vmatprep.subr.bf16.mxu1 %v4232_v24  ;;  %v4296_v12 = vld [vmem:[%s4541_s9 + $0x7f0] ss:$8 sps:$4 sm:$0xff]   ;;  %v4301_v24 = vld [vmem:[%s4541_s9 + $0x6e4] ss:$8 sps:$4 sm:$0xff]  }
  0xd6   : > { %2101 = vmatpush2.bf16.msra.mxu0 %v4227_v36  ;;  %v4304_v36 = vld [vmem:[%s4541_s9 + $0x7e4] ss:$8 sps:$4 sm:$0xff]  }
  0xd7   : > { %2154 = vmatpush2.bf16.msra.mxu1 %v4230_v41  ;;  %2102 = vmatprep.subr.bf16.mxu0 %v4235_v59  ;;  %v4299_v41 = vld [vmem:[%s4541_s9 + $0x6e0] ss:$8 sps:$4 sm:$0xff]  }
  0xd8   : > { %2155 = vmatprep.subr.bf16.mxu1 %v4238_v29  ;;  %v4302_v59 = vld [vmem:[%s4541_s9 + $0x7e0] ss:$8 sps:$4 sm:$0xff]   ;;  %v4307_v29 = vld [vmem:[%s4541_s9 + $0x6d4] ss:$8 sps:$4 sm:$0xff]  }
  0xda   : > { %2103 = vmatpush2.bf16.msra.mxu0 %v4233_v54  ;;  %v4310_v54 = vld [vmem:[%s4541_s9 + $0x7d4] ss:$8 sps:$4 sm:$0xff]  }
  0xdb   : > { %2156 = vmatpush2.bf16.msra.mxu1 %v4236_v34  ;;  %2104 = vmatprep.subr.bf16.mxu0 %v4241_v58  ;;  %v4305_v34 = vld [vmem:[%s4541_s9 + $0x6d0] ss:$8 sps:$4 sm:$0xff]  }
  0xdc   : > { %2157 = vmatprep.subr.bf16.mxu1 %v4244_v7  ;;  %v4308_v58 = vld [vmem:[%s4541_s9 + $0x7d0] ss:$8 sps:$4 sm:$0xff]   ;;  %v4313_v7 = vld [vmem:[%s4541_s9 + $0x6c4] ss:$8 sps:$4 sm:$0xff]  }
  0xde   : > { %2105 = vmatpush2.bf16.msra.mxu0 %v4239_v51  ;;  %v4316_v51 = vld [vmem:[%s4541_s9 + $0x7c4] ss:$8 sps:$4 sm:$0xff]  }
  0xdf   : > { %2158 = vmatpush2.bf16.msra.mxu1 %v4242_v53  ;;  %2732 = vmatprep.subr.bf16.mxu0 %v4247_v15  ;;  %v4311_v53 = vld [vmem:[%s4541_s9 + $0x6c0] ss:$8 sps:$4 sm:$0xff]  }
  0xe0   : > { %2785 = vmatprep.subr.bf16.mxu1 %v4250_v28  ;;  %v4314_v15 = vld [vmem:[%s4541_s9 + $0x7c0] ss:$8 sps:$4 sm:$0xff]   ;;  %v4319_v28 = vld [vmem:[%s4541_s9 + $0x6b4] ss:$8 sps:$4 sm:$0xff]  }
  0xe1   : > { %2107 = vmatmul.mubr.bf16.vlgmr.msra.gmra.mxu0 %v3576_v61  ;;  %v4322_v61 = vld [vmem:[%s4541_s9 + $0x7b4] ss:$8 sps:$4 sm:$0xff]  }
  0xe2   : > { %2160 = vmatmul.mubr.bf16.vlgmr.msra.gmra.mxu1 %v3578_v1  ;;  %2733 = vmatpush1.bf16.msra.mxu0 %v4245_v13  ;;  %v4317_v1 = vld [vmem:[%s4541_s9 + $0x6b0] ss:$8 sps:$4 sm:$0xff]  }
  0xe3   : > { %2786 = vmatpush1.bf16.msra.mxu1 %v4248_v16  ;;  %2734 = vmatprep.subr.bf16.mxu0 %v4253_v25  ;;  %v4320_v13 = vld [vmem:[%s4541_s9 + $0x7b0] ss:$8 sps:$4 sm:$0xff]   ;;  %v4325_v16 = vld [vmem:[%s4541_s9 + $0x6a4] ss:$8 sps:$4 sm:$0xff]  }
  0xe4   : > { %2787 = vmatprep.subr.bf16.mxu1 %v4256_v26  ;;  %2116 = vmatprep.mubr.bf16.mxu0 %v4749_v10  ;;  %v4328_v25 = vld [vmem:[%s4541_s9 + $0x7a4] ss:$8 sps:$4 sm:$0xff]   ;;  %v4323_v26 = vld [vmem:[%s4541_s9 + $0x6a0] ss:$8 sps:$4 sm:$0xff]  }
  0xe5   : > { %3866 = vmatprep.mubr.msk.bf16.mxu1 %vm5049_vm15, %v4768_v21 }
  0xe6   : > { %2735 = vmatpush1.bf16.msra.mxu0 %v4251_v38  ;;  %v4326_v38 = vld [vmem:[%s4541_s9 + $0x7a0] ss:$8 sps:$4 sm:$0xff]  }
  0xe7   : > { %2788 = vmatpush1.bf16.msra.mxu1 %v4254_v3  ;;  %2736 = vmatprep.subr.bf16.mxu0 %v4259_v55  ;;  %v4331_v3 = vld [vmem:[%s4541_s9 + $0x694] ss:$8 sps:$4 sm:$0xff]  }
  0xe8   : > { %2789 = vmatprep.subr.bf16.mxu1 %v4262_v27  ;;  %v4334_v55 = vld [vmem:[%s4541_s9 + $0x794] ss:$8 sps:$4 sm:$0xff]   ;;  %v4329_v27 = vld [vmem:[%s4541_s9 + $0x690] ss:$8 sps:$4 sm:$0xff]  }
  0xe9   : > { %2117 = vmatmul.mubr.bf16.gmra.mxu0 %v4820_v47 }
  0xea   : > { %3869 = vmatmul.mubr.msk.bf16.gmra.mxu1 %vm5049_vm15, %v4871_v2  ;;  %2737 = vmatpush1.bf16.msra.mxu0 %v4257_v49  ;;  %v4332_v49 = vld [vmem:[%s4541_s9 + $0x790] ss:$8 sps:$4 sm:$0xff]  }
  0xeb   : > { %2790 = vmatpush1.bf16.msra.mxu1 %v4260_v56  ;;  %2738 = vmatprep.subr.bf16.mxu0 %v4265_v18  ;;  %v4337_v56 = vld [vmem:[%s4541_s9 + $0x684] ss:$8 sps:$4 sm:$0xff]  }
  0xec   : > { %2791 = vmatprep.subr.bf16.mxu1 %v4268_v6  ;;  %3872 = vmatprep.mubr.msk.bf16.mxu0 %vm4971_vm13, %v4977_v52  ;;  %v4278_v52 = vld [vmem:[%s4541_s9 + $0x720] ss:$8 sps:$4 sm:$0xff]   ;;  %v4340_v18 = vld [vmem:[%s4541_s9 + $0x784] ss:$8 sps:$4 sm:$0xff]   ;;  %v669_v6 = vsel %vm4800_vm6, %v4834_v57, 0.0 }
  0xed   : > { %2817 = vmatprep.mubr.bf16.mxu1 %v4749_v10  ;;  %v4283_v10 = vld [vmem:[%s4541_s9 + $0x614] ss:$8 sps:$4 sm:$0xff]   ;;  %v4341_v57 = vld [vmem:[%s4541_s9 + $0x870] ss:$8 sps:$4 sm:$0xff]  }
  0xee   : > { %2739 = vmatpush1.bf16.msra.mxu0 %v4263_v30  ;;  %v670_v30 = vsel %vm4800_vm6, %v4774_v22, 0.0  ;;  %v4346_v22 = vld [vmem:[%s4541_s9 + $0x864] ss:$8 sps:$4 sm:$0xff]  }
  0xef   : > { %2792 = vmatpush1.bf16.msra.mxu1 %v4266_v31  ;;  %2740 = vmatprep.subr.bf16.mxu0 %v4271_v32  ;;  %v4335_v31 = vld [vmem:[%s4541_s9 + $0x680] ss:$8 sps:$4 sm:$0xff]  }
  0xf0   : > { %2793 = vmatprep.subr.bf16.mxu1 %v4274_v33  ;;  %v4338_v32 = vld [vmem:[%s4541_s9 + $0x780] ss:$8 sps:$4 sm:$0xff]   ;;  %v4343_v33 = vld [vmem:[%s4541_s9 + $0x874] ss:$8 sps:$4 sm:$0xff]  }
  0xf2   : > { %2741 = vmatpush1.bf16.msra.mxu0 %v4269_v35  ;;  %v3807_v35 = vpack.c.bf16 %v670_v30, %v669_v6 }
  0xf3   : > { %2794 = vmatpush1.bf16.msra.mxu1 %v4272_v37  ;;  %2742 = vmatprep.subr.bf16.mxu0 %v4277_v40  ;;  %v4389_v37 = vld [vmem:[#allocation3 + $0x38] sm:$0xff]  ;;  %v4390_v40 = vld [vmem:[#allocation3 + $0x28] sm:$0xff] }
  0xf4   : > { %2795 = vmatprep.subr.bf16.mxu1 %v4280_v42  ;;  %v3811_v42 = vpack.c.bf16 %v4389_v37, %v4390_v40  ;;  %v3689_v62 = vcombine.high %v3807_v35, %v4467_v48  ;;  %v3688_v50 = vcombine.low %v3807_v35, %v4467_v48 }
  0xf6   : > { %2743 = vmatpush1.bf16.msra.mxu0 %v4275_v44  ;;  %v3691_v44 = vcombine.high %v3811_v42, %v4467_v48 }
  0xf7   : > { %2796 = vmatpush1.bf16.msra.mxu1 %v4278_v52  ;;  %2744 = vmatprep.subr.bf16.mxu0 %v4283_v10  ;;  %v702_v52 = vsel %vm4961_vm12, %v5007_v19, 0.0  ;;  %v703_v10 = vsel %vm4961_vm12, %v4950_v43, 0.0  ;;  %v3690_v19 = vcombine.low %v3811_v42, %v4467_v48  ;;  %v4347_v43 = vld [vmem:[%s4541_s9 + $0x850] ss:$8 sps:$4 sm:$0xff]  }
  0xf8   : > { %2797 = vmatprep.subr.bf16.mxu1 %v4286_v46  ;;  %v4344_v46 = vld [vmem:[%s4541_s9 + $0x860] ss:$8 sps:$4 sm:$0xff]  }
  0xfa   : > { %2745 = vmatpush1.bf16.msra.mxu0 %v4281_v0  ;;  %v4349_v0 = vld [vmem:[%s4541_s9 + $0x854] ss:$8 sps:$4 sm:$0xff]  }
  0xfb   : > { %2798 = vmatpush1.bf16.msra.mxu1 %v4284_v4  ;;  %2746 = vmatprep.subr.bf16.mxu0 %v4289_v60  ;;  %v4350_v4 = vld [vmem:[%s4541_s9 + $0x840] ss:$8 sps:$4 sm:$0xff]   ;;  %v4355_v60 = vld [vmem:[%s4541_s9 + $0x834] ss:$8 sps:$4 sm:$0xff]  }
  0xfc   : > { %2799 = vmatprep.subr.bf16.mxu1 %v4292_v5  ;;  %v4353_v5 = vld [vmem:[%s4541_s9 + $0x830] ss:$8 sps:$4 sm:$0xff]  }
  0xfe   : > { %2747 = vmatpush1.bf16.msra.mxu0 %v4287_v63  ;;  %v4358_v63 = vld [vmem:[%s4541_s9 + $0x824] ss:$8 sps:$4 sm:$0xff]  }
  0xff   : > { %2800 = vmatpush1.bf16.msra.mxu1 %v4290_v11  ;;  %2748 = vmatprep.subr.bf16.mxu0 %v4295_v17  ;;  %v4356_v11 = vld [vmem:[%s4541_s9 + $0x820] ss:$8 sps:$4 sm:$0xff]   ;;  %v4361_v17 = vld [vmem:[%s4541_s9 + $0x814] ss:$8 sps:$4 sm:$0xff]  }
 0x100   : > { %2801 = vmatprep.subr.bf16.mxu1 %v4298_v20  ;;  %v4364_v20 = vld [vmem:[%s4541_s9 + $0x804] ss:$8 sps:$4 sm:$0xff]  }
 0x102   : > { %2749 = vmatpush2.bf16.msra.mxu0 %v4293_v23  ;;  %v4362_v23 = vld [vmem:[%s4541_s9 + $0x800] ss:$8 sps:$4 sm:$0xff]  }
 0x103   : > { %2802 = vmatpush2.bf16.msra.mxu1 %v4296_v12  ;;  %2750 = vmatprep.subr.bf16.mxu0 %v4301_v24  ;;  %v4367_v12 = vld [vmem:[%s4541_s9 + $0x8f4] ss:$8 sps:$4 sm:$0xff]   ;;  %v4365_v24 = vld [vmem:[%s4541_s9 + $0x8f0] ss:$8 sps:$4 sm:$0xff]  }
 0x104   : > { %2803 = vmatprep.subr.bf16.mxu1 %v4304_v36  ;;  %v4370_v36 = vld [vmem:[%s4541_s9 + $0x8e4] ss:$8 sps:$4 sm:$0xff]  }
 0x106   : > { %2751 = vmatpush2.bf16.msra.mxu0 %v4299_v41  ;;  %v4368_v41 = vld [vmem:[%s4541_s9 + $0x8e0] ss:$8 sps:$4 sm:$0xff]  }
 0x107   : > { %2804 = vmatpush2.bf16.msra.mxu1 %v4302_v59  ;;  %2752 = vmatprep.subr.bf16.mxu0 %v4307_v29  ;;  %v4373_v59 = vld [vmem:[%s4541_s9 + $0x8d4] ss:$8 sps:$4 sm:$0xff]   ;;  %v4371_v29 = vld [vmem:[%s4541_s9 + $0x8d0] ss:$8 sps:$4 sm:$0xff]  }
 0x108   : > { %2805 = vmatprep.subr.bf16.mxu1 %v4310_v54  ;;  %v4376_v54 = vld [vmem:[%s4541_s9 + $0x8c4] ss:$8 sps:$4 sm:$0xff]  }
 0x10a   : > { %2753 = vmatpush2.bf16.msra.mxu0 %v4305_v34  ;;  %v4374_v34 = vld [vmem:[%s4541_s9 + $0x8c0] ss:$8 sps:$4 sm:$0xff]  }
 0x10b   : > { %2806 = vmatpush2.bf16.msra.mxu1 %v4308_v58  ;;  %2754 = vmatprep.subr.bf16.mxu0 %v4313_v7  ;;  %v4379_v58 = vld [vmem:[%s4541_s9 + $0x8b4] ss:$8 sps:$4 sm:$0xff]   ;;  %v4377_v7 = vld [vmem:[%s4541_s9 + $0x8b0] ss:$8 sps:$4 sm:$0xff]  }
 0x10c   : > { %2807 = vmatprep.subr.bf16.mxu1 %v4316_v51  ;;  %v4382_v51 = vld [vmem:[%s4541_s9 + $0x8a4] ss:$8 sps:$4 sm:$0xff]  }
 0x10e   : > { %2755 = vmatpush2.bf16.msra.mxu0 %v4311_v53  ;;  %v4380_v53 = vld [vmem:[%s4541_s9 + $0x8a0] ss:$8 sps:$4 sm:$0xff]  }
 0x10f   : > { %2808 = vmatpush2.bf16.msra.mxu1 %v4314_v15  ;;  %2756 = vmatprep.subr.bf16.mxu0 %v4319_v28  ;;  %v4385_v15 = vld [vmem:[%s4541_s9 + $0x894] ss:$8 sps:$4 sm:$0xff]   ;;  %v4383_v28 = vld [vmem:[%s4541_s9 + $0x890] ss:$8 sps:$4 sm:$0xff]  }
 0x110   : > { %2809 = vmatprep.subr.bf16.mxu1 %v4322_v61  ;;  %v4388_v61 = vld [vmem:[%s4541_s9 + $0x884] ss:$8 sps:$4 sm:$0xff]  }
 0x112   : > { %2757 = vmatpush2.bf16.msra.mxu0 %v4317_v1  ;;  %v4386_v1 = vld [vmem:[%s4541_s9 + $0x880] ss:$8 sps:$4 sm:$0xff]  }
 0x113   : > { %2810 = vmatpush2.bf16.msra.mxu1 %v4320_v13  ;;  %2758 = vmatprep.subr.bf16.mxu0 %v4325_v16 }
 0x114   : > { %2811 = vmatprep.subr.bf16.mxu1 %v4328_v25 }
 0x116   : > { %2759 = vmatpush2.bf16.msra.mxu0 %v4323_v26 }
 0x117   : > { %2812 = vmatpush2.bf16.msra.mxu1 %v4326_v38  ;;  %2760 = vmatprep.subr.bf16.mxu0 %v4331_v3 }
 0x118   : > { %2813 = vmatprep.subr.bf16.mxu1 %v4334_v55 }
 0x11a   : > { %2761 = vmatpush2.bf16.msra.mxu0 %v4329_v27 }
 0x11b   : > { %2814 = vmatpush2.bf16.msra.mxu1 %v4332_v49  ;;  %2762 = vmatprep.subr.bf16.mxu0 %v4337_v56 }
 0x11c   : > { %2815 = vmatprep.subr.bf16.mxu1 %v4340_v18 }
 0x11e   : > { %2763 = vmatpush2.bf16.msra.mxu0 %v4335_v31 }
 0x11f   : > { %2816 = vmatpush2.bf16.msra.mxu1 %v4338_v32  ;;  %2838 = vmatprep.subr.bf16.mxu0 %v4343_v33 }
 0x120   : > { %3882 = vmatprep.subr.bf16.mxu1 %v4343_v33 }
 0x121   : > { %3875 = vmatmul.mubr.msk.bf16.vlgmr.msra.gmra.mxu0 %vm4971_vm13, %v5026_v9  ;;  %v1383_v16 = vpop.f32.mrf.mxu0 }
 0x122   : > { %2818 = vmatmul.mubr.bf16.vlgmr.msra.gmra.mxu1 %v4820_v47  ;;  %2839 = vmatpush1.bf16.msra.mxu0 %v4341_v57  ;;  %v5204_v47 = vpack.c.bf16 %v703_v10, %v702_v52  ;;  %v1436_v25 = vpop.f32.mrf.mxu1 }
 0x123   : > { %3898 = vmatpush1.bf16.msra.mxu1 %v4341_v57  ;;  %2840 = vmatprep.subr.bf16.mxu0 %v4346_v22  ;;  %v1385_v26 = vpop.f32.mrf.mxu0 }
 0x124   : > { %3883 = vmatprep.subr.bf16.mxu1 %v4346_v22  ;;  %2774 = vmatprep.mubr.bf16.mxu0 %v3689_v62  ;;  %v3693_v9 = vcombine.high %v5204_v47, %v4467_v48  ;;  %v3692_v13 = vcombine.low %v5204_v47, %v4467_v48  ;;  %v1438_v38 = vpop.f32.mrf.mxu1 }
 0x125   : > { %2827 = vmatprep.mubr.bf16.mxu1 %v3691_v44  ;;  %v1387_v3 = vpop.f32.mrf.mxu0 }
 0x126   : > { %2841 = vmatpush1.bf16.msra.mxu0 %v4344_v46  ;;  %v1440_v55 = vpop.f32.mrf.mxu1 }
 0x127   : > { %3899 = vmatpush1.bf16.msra.mxu1 %v4344_v46  ;;  %2842 = vmatprep.subr.bf16.mxu0 %v4349_v0  ;;  %v1389_v27 = vpop.f32.mrf.mxu0 }
 0x128   : > { %3884 = vmatprep.subr.bf16.mxu1 %v4349_v0  ;;  %v1442_v56 = vpop.f32.mrf.mxu1 }
 0x129   : > { %2775 = vmatmul.mubr.bf16.gmra.mxu0 %v3688_v50  ;;  %v1443_v39 = vadd.f32 %v1442_v56, %v1389_v27  ;;  %v5405_v56 = vld [vmem:[#allocation4_spill] sm:$0xff] }
 0x12a   : > { %2828 = vmatmul.mubr.bf16.gmra.mxu1 %v3690_v19  ;;  %2843 = vmatpush1.bf16.msra.mxu0 %v4347_v43  ;;  %v1446_v18 = vpop.f32.mrf.mxu1 }
 0x12b   : > { %3900 = vmatpush1.bf16.msra.mxu1 %v4347_v43  ;;  %2844 = vmatprep.subr.bf16.mxu0 %v4352_v14 }
 0x12c   : > { %3885 = vmatprep.subr.bf16.mxu1 %v4352_v14  ;;  %3878 = vmatprep.mubr.msk.bf16.mxu0 %vm5049_vm15, %v4768_v21  ;;  %v4359_v21 = vld [vmem:[%s4541_s9 + $0x810] ss:$8 sps:$4 sm:$0xff]   ;;  %v1393_v49 = vpop.f32.mrf.mxu0  ;;  %v1448_v30 = vpop.f32.mrf.mxu1 }
 0x12d   : > { %2880 = vmatprep.mubr.bf16.mxu1 %v3693_v9 }
 0x12e   : > { %2845 = vmatpush1.bf16.msra.mxu0 %v4350_v4  ;;  %v1395_v6 = vpop.f32.mrf.mxu0  ;;  %v1450_v31 = vpop.f32.mrf.mxu1 }
 0x12f   : > { %3901 = vmatpush1.bf16.msra.mxu1 %v4350_v4  ;;  %2846 = vmatprep.subr.bf16.mxu0 %v4355_v60 }
 0x130   : > { %3886 = vmatprep.subr.bf16.mxu1 %v4355_v60  ;;  %v1397_v48 = vpop.f32.mrf.mxu0  ;;  %v1452_v35 = vpop.f32.mrf.mxu1 }
 0x132   : > { %2847 = vmatpush1.bf16.msra.mxu0 %v4353_v5  ;;  %v1399_v32 = vpop.f32.mrf.mxu0 }
 0x133   : > { %3902 = vmatpush1.bf16.msra.mxu1 %v4353_v5  ;;  %2848 = vmatprep.subr.bf16.mxu0 %v4358_v63 }
 0x134   : > { %3887 = vmatprep.subr.bf16.mxu1 %v4358_v63 }
 0x136   : > { %2849 = vmatpush1.bf16.msra.mxu0 %v4356_v11 }
 0x137   : > { %3903 = vmatpush1.bf16.msra.mxu1 %v4356_v11  ;;  %2850 = vmatprep.subr.bf16.mxu0 %v4361_v17 }
 0x138   : > { %3888 = vmatprep.subr.bf16.mxu1 %v4361_v17 }
 0x13a   : > { %2851 = vmatpush1.bf16.msra.mxu0 %v4359_v21 }
 0x13b   : > { %3904 = vmatpush1.bf16.msra.mxu1 %v4359_v21  ;;  %2852 = vmatprep.subr.bf16.mxu0 %v4364_v20 }
 0x13c   : > { %3889 = vmatprep.subr.bf16.mxu1 %v4364_v20 }
 0x13e   : > { %2853 = vmatpush1.bf16.msra.mxu0 %v4362_v23 }
 0x13f   : > { %3905 = vmatpush1.bf16.msra.mxu1 %v4362_v23  ;;  %2854 = vmatprep.subr.bf16.mxu0 %v4367_v12 }
 0x140   : > { %3890 = vmatprep.subr.bf16.mxu1 %v4367_v12 }
 0x142   : > { %2855 = vmatpush2.bf16.msra.mxu0 %v4365_v24 }
 0x143   : > { %3906 = vmatpush2.bf16.msra.mxu1 %v4365_v24  ;;  %2856 = vmatprep.subr.bf16.mxu0 %v4370_v36 }
 0x144   : > { %3891 = vmatprep.subr.bf16.mxu1 %v4370_v36 }
 0x146   : > { %2857 = vmatpush2.bf16.msra.mxu0 %v4368_v41 }
 0x147   : > { %3907 = vmatpush2.bf16.msra.mxu1 %v4368_v41  ;;  %2858 = vmatprep.subr.bf16.mxu0 %v4373_v59 }
 0x148   : > { %3892 = vmatprep.subr.bf16.mxu1 %v4373_v59 }
 0x14a   : > { %2859 = vmatpush2.bf16.msra.mxu0 %v4371_v29 }
 0x14b   : > { %3908 = vmatpush2.bf16.msra.mxu1 %v4371_v29  ;;  %2860 = vmatprep.subr.bf16.mxu0 %v4376_v54 }
 0x14c   : > { %3893 = vmatprep.subr.bf16.mxu1 %v4376_v54 }
 0x14e   : > { %2861 = vmatpush2.bf16.msra.mxu0 %v4374_v34 }
 0x14f   : > { %3909 = vmatpush2.bf16.msra.mxu1 %v4374_v34  ;;  %2862 = vmatprep.subr.bf16.mxu0 %v4379_v58 }
 0x150   : > { %3894 = vmatprep.subr.bf16.mxu1 %v4379_v58 }
 0x152   : > { %2863 = vmatpush2.bf16.msra.mxu0 %v4377_v7 }
 0x153   : > { %3910 = vmatpush2.bf16.msra.mxu1 %v4377_v7  ;;  %2864 = vmatprep.subr.bf16.mxu0 %v4382_v51 }
 0x154   : > { %3895 = vmatprep.subr.bf16.mxu1 %v4382_v51 }
 0x156   : > { %2865 = vmatpush2.bf16.msra.mxu0 %v4380_v53 }
 0x157   : > { %3911 = vmatpush2.bf16.msra.mxu1 %v4380_v53  ;;  %2866 = vmatprep.subr.bf16.mxu0 %v4385_v15 }
 0x158   : > { %3896 = vmatprep.subr.bf16.mxu1 %v4385_v15 }
 0x15a   : > { %2867 = vmatpush2.bf16.msra.mxu0 %v4383_v28 }
 0x15b   : > { %3912 = vmatpush2.bf16.msra.mxu1 %v4383_v28  ;;  %2868 = vmatprep.subr.bf16.mxu0 %v4388_v61  ;;  %v1437_v28 = vadd.f32 %v1436_v25, %v1383_v16 }
 0x15c   : > { %3897 = vmatprep.subr.bf16.mxu1 %v4388_v61  ;;  %v1439_v61 = vadd.f32 %v1438_v38, %v1385_v26 }
 0x15e   : > { %2869 = vmatpush2.bf16.msra.mxu0 %v4386_v1 }
 0x15f   : > { %3913 = vmatpush2.bf16.msra.mxu1 %v4386_v1  ;;  %v1441_v1 = vadd.f32 %v1440_v55, %v1387_v3 }
 0x161   : > { %3881 = vmatmul.mubr.msk.bf16.vlgmr.msra.gmra.mxu0 %vm5049_vm15, %v4871_v2  ;;  %v1489_v33 = vpop.f32.mrf.mxu0 }
 0x162   : > { %2881 = vmatmul.mubr.bf16.vlgmr.msra.gmra.mxu1 %v3692_v13  ;;  %v2055_v8 = vpop.f32.mrf.mxu1  ;;  %v1447_v13 = vadd.f32 %v1446_v18, %v1393_v49  ;;  %v2903_v18 = vsub.s32 0, %v5405_v56 }
 0x163   : > { %v1491_v2 = vpop.f32.mrf.mxu0 }
 0x164   : > { %v2057_v37 = vpop.f32.mrf.mxu1 }
 0x165   : > { %v1493_v40 = vpop.f32.mrf.mxu0 }
 0x166   : > { %v2059_v42 = vpop.f32.mrf.mxu1 }
 0x167   : > { %v1495_v57 = vpop.f32.mrf.mxu0 }
 0x168   : > { %v2061_v22 = vpop.f32.mrf.mxu1 }
 0x169   : > { %v1499_v62 = vpop.f32.mrf.mxu0 }
 0x16a   : > { %v2065_v44 = vpop.f32.mrf.mxu1 }
 0x16b   : > { %v1501_v52 = vpop.f32.mrf.mxu0 }
 0x16c   : > { %v2067_v10 = vpop.f32.mrf.mxu1 }
 0x16d   : > { %v1503_v46 = vpop.f32.mrf.mxu0 }
 0x16e   : > { %v2069_v0 = vpop.f32.mrf.mxu1 }
 0x16f   : > { %v1505_v47 = vpop.f32.mrf.mxu0 }
 0x170   : > { %v2071_v50 = vpop.f32.mrf.mxu1 }
 0x1a1   : > { %v2108_v19 = vpop.f32.mrf.mxu0 }
 0x1a2   : > { %v5245_v43 = vpop.f32.mrf.mxu1 }
 0x1a3   : > { %5392 = vst [vmem:[#allocation5_spill] sm:$0xff] %v5245_v43  ;;  %v2110_v14 = vpop.f32.mrf.mxu0 }
 0x1a4   : > { %v5247_v9 = vpop.f32.mrf.mxu1 }
 0x1a5   : > { %5393 = vst [vmem:[#allocation6_spill] sm:$0xff] %v5247_v9  ;;  %v2112_v4 = vpop.f32.mrf.mxu0  ;;  %v1451_v9 = vadd.f32 %v1450_v31, %v1397_v48  ;;  %v2907_v48 = vsub.s32 1, %v5405_v56 }
 0x1a6   : > { %v5249_v60 = vpop.f32.mrf.mxu1 }
 0x1a7   : > { %5394 = vst [vmem:[#allocation7_spill] sm:$0xff] %v5249_v60  ;;  %v2114_v5 = vpop.f32.mrf.mxu0  ;;  %v1496_v60 = vadd.f32 %v1495_v57, %v1443_v39  ;;  %v1504_v25 = vadd.f32 %v1503_v46, %v1451_v9 }
 0x1a8   : > { %v5251_v63 = vpop.f32.mrf.mxu1 }
 0x1a9   : > { %5395 = vst [vmem:[#allocation8_spill] sm:$0xff] %v5251_v63  ;;  %v2118_v11 = vpop.f32.mrf.mxu0  ;;  %v2062_v55 = vadd.f32 %v2061_v22, %v1496_v60  ;;  %v2070_v31 = vadd.f32 %v2069_v0, %v1504_v25 }
 0x1aa   : > { %v2171_v17 = vpop.f32.mrf.mxu1 }
 0x1ab   : > { %v2120_v21 = vpop.f32.mrf.mxu0 }
 0x1ac   : > { %v5253_v20 = vpop.f32.mrf.mxu1 }
 0x1ad   : > { %5396 = vst [vmem:[#allocation9_spill] sm:$0xff] %v5253_v20  ;;  %v5255_v23 = vpop.f32.mrf.mxu0  ;;  %v1494_v20 = vadd.f32 %v1493_v40, %v1441_v1  ;;  %v5406_v40 = vld [vmem:[#allocation5_spill] sm:$0xff] }
 0x1ae   : > { %5397 = vst [vmem:[#allocation10_spill] sm:$0xff] %v5255_v23  ;;  %v5257_v12 = vpop.f32.mrf.mxu1  ;;  %v1500_v23 = vadd.f32 %v1499_v62, %v1447_v13 }
 0x1af   : > { %5398 = vst [vmem:[#allocation11_spill] sm:$0xff] %v5257_v12  ;;  %v5259_v24 = vpop.f32.mrf.mxu0  ;;  %v1490_v12 = vadd.f32 %v1489_v33, %v1437_v28  ;;  %v2060_v45 = vadd.f32 %v2059_v42, %v1494_v20  ;;  %v2899_v33 = vld [vmem:[%s4546_s12] sm:$0x3] }
 0x1b0   : > { %5399 = vst [vmem:[#allocation12_spill] sm:$0xff] %v5259_v24  ;;  %v5261_v36 = vpop.f32.mrf.mxu1  ;;  %v1492_v24 = vadd.f32 %v1491_v2, %v1439_v61  ;;  %v2066_v16 = vadd.f32 %v2065_v44, %v1500_v23  ;;  %v2904_v62 = vrot.slane %v2899_v33, %v2903_v18  ;;  %v5407_v44 = vld [vmem:[#allocation6_spill] sm:$0xff] }
 0x1b1   : > { %5400 = vst [vmem:[#allocation13_spill] sm:$0xff] %v5261_v36  ;;  %v1449_v36 = vadd.f32 %v1448_v30, %v1395_v6  ;;  %v2113_v30 = vadd.f32 %v2112_v4, %v2060_v45  ;;  %v5409_v4 = vld [vmem:[#allocation8_spill] sm:$0xff] }
 0x1b2   : > { %v2058_v43 = vadd.f32 %v2057_v37, %v1492_v24  ;;  %v2119_v39 = vadd.f32 %v2118_v11, %v2066_v16 }
 0x1b4   : > { %v2111_v6 = vadd.f32 %v2110_v14, %v2058_v43  ;;  %v2172_v45 = vadd.f32 %v2171_v17, %v2119_v39  ;;  %v2908_v43 = vrot.slane %v2899_v33, %v2907_v48 }
 0x1b7   : > { %v5412_v23 = vld [vmem:[#allocation12_spill] sm:$0xff] }
 0x1e1   : > { %v2766_v41 = vpop.f32.mrf.mxu0 }
 0x1e2   : > { %v2819_v59 = vpop.f32.mrf.mxu1 }
 0x1e3   : > { %v2768_v29 = vpop.f32.mrf.mxu0  ;;  %v2820_v57 = vadd.f32 %v2819_v59, %v2766_v41 }
 0x1e4   : > { %v2821_v54 = vpop.f32.mrf.mxu1 }
 0x1e5   : > { %v5263_v34 = vpop.f32.mrf.mxu0  ;;  %v2822_v14 = vadd.f32 %v2821_v54, %v2768_v29 }
 0x1e6   : > { %5401 = vst [vmem:[#allocation14_spill] sm:$0xff] %v5263_v34  ;;  %v5265_v58 = vpop.f32.mrf.mxu1 }
 0x1e7   : > { %5402 = vst [vmem:[#allocation15_spill] sm:$0xff] %v5265_v58  ;;  %v5267_v7 = vpop.f32.mrf.mxu0  ;;  %v1502_v58 = vadd.f32 %v1501_v52, %v1449_v36  ;;  %v2164_v52 = vadd.f32 %v5407_v44, %v2111_v6 }
 0x1e8   : > { %5403 = vst [vmem:[#allocation16_spill] sm:$0xff] %v5267_v7  ;;  %v5269_v51 = vpop.f32.mrf.mxu1  ;;  %v1453_v7 = vadd.f32 %v1452_v35, %v1399_v32  ;;  %v2115_v35 = vadd.f32 %v2114_v5, %v2062_v55  ;;  %v5410_v5 = vld [vmem:[#allocation10_spill] sm:$0xff] }
 0x1e9   : > { %5404 = vst [vmem:[#allocation17_spill] sm:$0xff] %v5269_v51  ;;  %v2776_v53 = vpop.f32.mrf.mxu0  ;;  %v2056_v51 = vadd.f32 %v2055_v8, %v1490_v12  ;;  %v2068_v27 = vadd.f32 %v2067_v10, %v1502_v58  ;;  %v5408_v10 = vld [vmem:[#allocation7_spill] sm:$0xff]  ;;  %v2123_v11 = vadd.f32 %v5410_v5, %v2070_v31 }
 0x1ea   : > { %v2829_v15 = vpop.f32.mrf.mxu1  ;;  %v1506_v26 = vadd.f32 %v1505_v47, %v1453_v7  ;;  %v2166_v46 = vadd.f32 %v5408_v10, %v2113_v30  ;;  %v2168_v60 = vadd.f32 %v5409_v4, %v2115_v35 }
 0x1eb   : > { %v2778_v63 = vpop.f32.mrf.mxu0  ;;  %v2109_v49 = vadd.f32 %v2108_v19, %v2056_v51  ;;  %v2121_v8 = vadd.f32 %v2120_v21, %v2068_v27  ;;  %v2830_v22 = vadd.f32 %v2829_v15, %v2776_v53  ;;  %v5411_v21 = vld [vmem:[#allocation9_spill] sm:$0xff] }
 0x1ec   : > { %v2831_v34 = vpop.f32.mrf.mxu1  ;;  %v2072_v32 = vadd.f32 %v2071_v50, %v1506_v26  ;;  %v5417_v26 = vld [vmem:[#allocation11_spill] sm:$0xff]  ;;  %v5418_v27 = vld [vmem:[#allocation13_spill] sm:$0xff] }
 0x1ed   : > { %v2780_v38 = vpop.f32.mrf.mxu0  ;;  %v2162_v42 = vadd.f32 %v5406_v40, %v2109_v49  ;;  %v2832_v0 = vadd.f32 %v2831_v34, %v2778_v63  ;;  %v2174_v20 = vadd.f32 %v5411_v21, %v2121_v8  ;;  %v5413_v7 = vld [vmem:[#allocation14_spill] sm:$0xff]  ;;  %v2176_v55 = vadd.f32 %v5417_v26, %v2123_v11 }
 0x1ee   : > { %v2833_v3 = vpop.f32.mrf.mxu1  ;;  %v2125_v12 = vadd.f32 %v5412_v23, %v2072_v32  ;;  %v5414_v51 = vld [vmem:[#allocation15_spill] sm:$0xff] }
 0x1ef   : > { %v2782_v2 = vpop.f32.mrf.mxu0  ;;  %v2824_v29 = vadd.f32 %v5414_v51, %v5413_v7  ;;  %v5415_v63 = vld [vmem:[#allocation16_spill] sm:$0xff]  ;;  %v2834_v53 = vadd.f32 %v2833_v3, %v2780_v38 }
 0x1f0   : > { %v2835_v37 = vpop.f32.mrf.mxu1  ;;  %v5416_v54 = vld [vmem:[#allocation17_spill] sm:$0xff]  ;;  %v2178_v49 = vadd.f32 %v5418_v27, %v2125_v12 }
 0x1f1   : > { %v2826_v34 = vadd.f32 %v5416_v54, %v5415_v63  ;;  %v2836_v15 = vadd.f32 %v2835_v37, %v2782_v2 }
 0x221   : > { %v2872_v47 = vpop.f32.mrf.mxu0 }
 0x222   : > { %v2882_v19 = vpop.f32.mrf.mxu1  ;;  %v2873_v50 = vadd.f32 %v2872_v47, %v2820_v57 }
 0x223   : > { %v2883_v9 = vadd.f32 %v2882_v19, %v2830_v22  ;;  %v2874_v24 = vpop.f32.mrf.mxu0 }
 0x224   : > { %v2884_v36 = vpop.f32.mrf.mxu1  ;;  %v2891_v41 = vadd.f32 %v2873_v50, %v2162_v42  ;;  %v2875_v17 = vadd.f32 %v2874_v24, %v2822_v14 }
 0x225   : > { %v2895_v59 = vadd.f32 %v2883_v9, %v2172_v45  ;;  %v2885_v58 = vadd.f32 %v2884_v36, %v2832_v0  ;;  %v2876_v28 = vpop.f32.mrf.mxu0 }
 0x226   : > { %v2886_v61 = vpop.f32.mrf.mxu1  ;;  %v5285_v1 = vadd.f32 %v2904_v62, %v2891_v41  ;;  %v2892_v16 = vadd.f32 %v2875_v17, %v2164_v52  ;;  %v2877_v56 = vadd.f32 %v2876_v28, %v2824_v29 }
 0x227   : > { %v5287_v13 = vadd.f32 %v2904_v62, %v2895_v59  ;;  %v2896_v25 = vadd.f32 %v2885_v58, %v2174_v20  ;;  %v2887_v18 = vadd.f32 %v2886_v61, %v2834_v53  ;;  %v2878_v6 = vpop.f32.mrf.mxu0 }
 0x228   : > { %v2888_v30 = vpop.f32.mrf.mxu1  ;;  %v5291_v39 = vadd.f32 %v2908_v43, %v2892_v16  ;;  %v2879_v3 = vadd.f32 %v2878_v6, %v2826_v34  ;;  %v2893_v48 = vadd.f32 %v2877_v56, %v2166_v46 }
 0x229   : > { %v5293_v38 = vadd.f32 %v2908_v43, %v2896_v25  ;;  %v2889_v33 = vadd.f32 %v2888_v30, %v2836_v15  ;;  %v2897_v31 = vadd.f32 %v2887_v18, %v2176_v55  ;;  %2922 = sbr.rel (%p3790_p8) target bundleno = 626 (0x272), region = 40 }
 0x22a   : > { %v2894_v32 = vadd.f32 %v2879_v3, %v2168_v60  ;;  %v5295_v8 = vadd.f32 %v2904_v62, %v2893_v48 }
 0x22b   : > { %v2898_v35 = vadd.f32 %v2889_v33, %v2178_v49  ;;  %v5297_v2 = vadd.f32 %v2904_v62, %v2897_v31 }
 0x22c   : > { %v5299_v37 = vadd.f32 %v2908_v43, %v2894_v32 }
 0x22d   : > { %v5301_v40 = vadd.f32 %v2908_v43, %v2898_v35 }
 0x22e   : > { %v2923_v42 = vadd.f32 %v5295_v8, %v5285_v1  ;;  %v2932_v57 = vadd.f32 %v5299_v37, %v5291_v39 }
 0x230   : > { %v2924_v22 = vadd.f32 %v2923_v42, %v5287_v13  ;;  %v2933_v44 = vadd.f32 %v2932_v57, %v5293_v38 }
 0x232   : > { %v2925_v62 = vadd.f32 %v2924_v22, %v5297_v2  ;;  %v2934_v52 = vadd.f32 %v2933_v44, %v5301_v40 }
 0x234   : > { %v2926_v10 = vrot.slane %v2925_v62, 4  ;;  %v2935_v46 = vrot.slane %v2934_v52, 4 }
 0x236   : > { %v2927_v45 = vadd.f32 %v2926_v10, %v2925_v62  ;;  %v2936_v47 = vadd.f32 %v2935_v46, %v2934_v52 }
 0x238   : > { %v2928_v19 = vrot.slane %v2927_v45, 2  ;;  %v2937_v43 = vrot.slane %v2936_v47, 2 }
 0x23a   : > { %v2929_v14 = vadd.f32 %v2928_v19, %v2927_v45  ;;  %v2938_v0 = vadd.f32 %v2937_v43, %v2936_v47 }
 0x23c   : > { %v2930_v50 = vrot.slane %v2929_v14, 1  ;;  %v2939_v9 = vrot.slane %v2938_v0, 1 }
 0x23e   : > { %v2931_v4 = vadd.f32 %v2930_v50, %v2929_v14  ;;  %v2940_v60 = vadd.f32 %v2939_v9, %v2938_v0 }
 0x240   : > { %v2942_v5 = vmul.f32 0.03125, %v2931_v4  ;;  %v2943_v11 = vmul.f32 0.03125, %v2940_v60 }
 0x242   : > { %v2944_v21 = vsub.f32 %v5285_v1, %v2942_v5  ;;  %v2946_v20 = vsub.f32 %v5295_v8, %v2942_v5  ;;  %v2948_v23 = vsub.f32 %v5287_v13, %v2942_v5  ;;  %v2950_v12 = vsub.f32 %v5297_v2, %v2942_v5 }
 0x243   : > { %v2945_v24 = vsub.f32 %v5291_v39, %v2943_v11  ;;  %v2947_v36 = vsub.f32 %v5299_v37, %v2943_v11  ;;  %v2949_v41 = vsub.f32 %v5293_v38, %v2943_v11  ;;  %v2951_v59 = vsub.f32 %v5301_v40, %v2943_v11 }
 0x244   : > { %v2952_v17 = vmul.f32 %v2944_v21, %v2944_v21  ;;  %v2954_v58 = vmul.f32 %v2946_v20, %v2946_v20  ;;  %v2956_v7 = vmul.f32 %v2948_v23, %v2948_v23  ;;  %v2958_v54 = vmul.f32 %v2950_v12, %v2950_v12 }
 0x245   : > { %v2953_v51 = vmul.f32 %v2945_v24, %v2945_v24  ;;  %v2955_v29 = vmul.f32 %v2947_v36, %v2947_v36  ;;  %v2957_v63 = vmul.f32 %v2949_v41, %v2949_v41  ;;  %v2959_v53 = vmul.f32 %v2951_v59, %v2951_v59 }
 0x246   : > { %v2960_v34 = vadd.f32 %v2954_v58, %v2952_v17 }
 0x247   : > { %v2969_v15 = vadd.f32 %v2955_v29, %v2953_v51 }
 0x248   : > { %v2961_v28 = vadd.f32 %v2960_v34, %v2956_v7 }
 0x249   : > { %v2970_v61 = vadd.f32 %v2969_v15, %v2957_v63 }
 0x24a   : > { %v2962_v16 = vadd.f32 %v2961_v28, %v2958_v54 }
 0x24b   : > { %v2971_v25 = vadd.f32 %v2970_v61, %v2959_v53 }
 0x24c   : > { %v2963_v26 = vrot.slane %v2962_v16, 4 }
 0x24d   : > { %v2972_v55 = vrot.slane %v2971_v25, 4 }
 0x24e   : > { %v2964_v27 = vadd.f32 %v2963_v26, %v2962_v16 }
 0x24f   : > { %v2973_v49 = vadd.f32 %v2972_v55, %v2971_v25 }
 0x250   : > { %v2965_v56 = vrot.slane %v2964_v27, 2 }
 0x251   : > { %v2974_v18 = vrot.slane %v2973_v49, 2 }
 0x252   : > { %v2966_v6 = vadd.f32 %v2965_v56, %v2964_v27 }
 0x253   : > { %v2975_v30 = vadd.f32 %v2974_v18, %v2973_v49 }
 0x254   : > { %v2967_v3 = vrot.slane %v2966_v6, 1 }
 0x255   : > { %v2976_v33 = vrot.slane %v2975_v30, 1 }
 0x256   : > { %v2968_v48 = vadd.f32 %v2967_v3, %v2966_v6 }
 0x257   : > { %v2977_v31 = vadd.f32 %v2976_v33, %v2975_v30 }
 0x258   : > { %v2978_v32 = vmul.f32 0.03125, %v2968_v48 }
 0x259   : > { %v2979_v35 = vmul.f32 0.03125, %v2977_v31 }
 0x25a   : > { %v2980_v42 = vadd.f32 1e-05, %v2978_v32 }
 0x25b   : > { %v2981_v57 = vadd.f32 1e-05, %v2979_v35 }
 0x25c   : > { %4391 = vrsqrt.f32 %v2980_v42 }
 0x25d   : > { %4393 = vrsqrt.f32 %v2981_v57 }
 0x269   : > { %v4392_v22 = vpop.eup %4391 }
 0x26a   : > { %v4394_v44 = vpop.eup %4393  ;;  %v2984_v62 = vmul.f32 %v4392_v22, %v2944_v21  ;;  %v2986_v52 = vmul.f32 %v4392_v22, %v2946_v20  ;;  %v2988_v10 = vmul.f32 %v4392_v22, %v2948_v23  ;;  %v2990_v46 = vmul.f32 %v4392_v22, %v2950_v12 }
 0x26b   : > { %v2985_v45 = vmul.f32 %v4394_v44, %v2945_v24  ;;  %v2987_v47 = vmul.f32 %v4394_v44, %v2947_v36  ;;  %v2989_v19 = vmul.f32 %v4394_v44, %v2949_v41  ;;  %v2991_v43 = vmul.f32 %v4394_v44, %v2951_v59 }
 0x26c   : > { %v2992_v14 = vmax.f32 %v2984_v62, 0.0  ;;  %v2994_v0 = vmax.f32 %v2986_v52, 0.0  ;;  %v2996_v50 = vmax.f32 %v2988_v10, 0.0  ;;  %v2998_v9 = vmax.f32 %v2990_v46, 0.0 }
 0x26d   : > { %v2993_v4 = vmax.f32 %v2985_v45, 0.0  ;;  %v2995_v60 = vmax.f32 %v2987_v47, 0.0  ;;  %v2997_v5 = vmax.f32 %v2989_v19, 0.0  ;;  %v2999_v11 = vmax.f32 %v2991_v43, 0.0 }
 0x26e   : > { %3000 = vst [vmem:[#allocation3 + $0x30] sm:$0xff] %v2992_v14  ;;  %3002 = vst [vmem:[#allocation3 + $0x18] sm:$0xff] %v2994_v0 }
 0x26f   : > { %3004 = vst [vmem:[#allocation3 + $0x8] sm:$0xff] %v2996_v50  ;;  %3006 = vst [vmem:[#allocation3 + $0x28] sm:$0xff] %v2998_v9 }
 0x270   : > { %3001 = vst [vmem:[#allocation3] sm:$0xff] %v2993_v4  ;;  %3003 = vst [vmem:[#allocation3 + $0x10] sm:$0xff] %v2995_v60 }
 0x271   : > { %3005 = vst [vmem:[#allocation3 + $0x20] sm:$0xff] %v2997_v5  ;;  %3007 = vst [vmem:[#allocation3 + $0x38] sm:$0xff] %v2999_v11 }
 0x272 PF: > { %p3791_p9 = scmp.ne.s32.totalorder %s4449_s15, 3 }
 0x274   : > { %3011 = sbr.rel (%p3791_p9) target bundleno = 695 (0x2b7), region = 44 }
 0x279   : > { %v3792_v21 = vmul.f32 -1.442695, %v5285_v1  ;;  %v3793_v20 = vmul.f32 -1.442695, %v5291_v39  ;;  %v3794_v23 = vmul.f32 -1.442695, %v5295_v8 }
 0x27a   : > { %v3795_v12 = vmul.f32 -1.442695, %v5299_v37  ;;  %v3796_v24 = vmul.f32 -1.442695, %v5287_v13  ;;  %v3797_v36 = vmul.f32 -1.442695, %v5293_v38 }
 0x27b   : > { %4395 = vpow2.f32 %v3792_v21  ;;  %v3798_v41 = vmul.f32 -1.442695, %v5297_v2  ;;  %v3799_v59 = vmul.f32 -1.442695, %v5301_v40  ;;  %v4468_v42 = vmov 1966171168  }
 0x27c   : > { %4397 = vpow2.f32 %v3793_v20  ;;  %v3085_v57 = vunpack.c.l.s4 %v4468_v42  ;;  %v3104_v45 = vld [vmem:[%s4531_s27] sm:$0xff]  ;;  %v3106_v19 = vld [vmem:[%s4531_s27 + $0x10] sm:$0xff]  ;;  %v3105_v50 = vld [vmem:[%s4531_s27 + $0x8] sm:$0xff] }
 0x27d   : > { %4399 = vpow2.f32 %v3794_v23  ;;  %v3108_v43 = vld [vmem:[%s4531_s27 + $0x20] sm:$0xff]  ;;  %v3110_v14 = vld [vmem:[%s4531_s27 + $0x30] sm:$0xff]  ;;  %v3107_v9 = vld [vmem:[%s4531_s27 + $0x18] sm:$0xff] }
 0x27e   : > { %4401 = vpow2.f32 %v3795_v12  ;;  %v3086_v10 = vunpack.c.0.s8 %v3085_v57  ;;  %v3109_v4 = vld [vmem:[%s4531_s27 + $0x28] sm:$0xff]  ;;  %v5419_v5 = vld [vmem:[#allocation4_spill] sm:$0xff]  ;;  %v3111_v21 = vld [vmem:[%s4531_s27 + $0x38] sm:$0xff] }
 0x27f   : > { %4403 = vpow2.f32 %v3796_v24 }
 0x280   : > { %4405 = vpow2.f32 %v3797_v36  ;;  %v3089_v11 = vsub.s32 %v3086_v10, %v5419_v5 }
 0x281   : > { %4407 = vpow2.f32 %v3798_v41 }
 0x282   : > { %4409 = vpow2.f32 %v3799_v59 }
 0x288   : > { %v4396_v1 = vpop.eup %4395 }
 0x289   : > { %v4398_v39 = vpop.eup %4397  ;;  %v3036_v8 = vadd.f32 1.0, %v4396_v1 }
 0x28a   : > { %v4400_v37 = vpop.eup %4399  ;;  %v3037_v17 = vadd.f32 1.0, %v4398_v39 }
 0x28b   : > { %v4402_v58 = vpop.eup %4401  ;;  %v3038_v13 = vadd.f32 1.0, %v4400_v37  ;;  %4411 = vrcp.f32 %v3036_v8  ;;  %v5420_v37 = vlaneseq }
 0x28c   : > { %v4404_v7 = vpop.eup %4403  ;;  %v3039_v38 = vadd.f32 1.0, %v4402_v58  ;;  %4413 = vrcp.f32 %v3037_v17 }
 0x28d   : > { %v4406_v51 = vpop.eup %4405  ;;  %v3040_v2 = vadd.f32 1.0, %v4404_v7  ;;  %4415 = vrcp.f32 %v3038_v13  ;;  %vm3101_vm0 = vcmp.lt.s32.totalorder %v5420_v37, 256 }
 0x28e   : > { %v4408_v29 = vpop.eup %4407  ;;  %v3041_v40 = vadd.f32 1.0, %v4406_v51  ;;  %4417 = vrcp.f32 %v3039_v38 }
 0x28f   : > { %v4410_v63 = vpop.eup %4409  ;;  %v3042_v54 = vadd.f32 1.0, %v4408_v29  ;;  %4419 = vrcp.f32 %v3040_v2 }
 0x290   : > { %v3043_v34 = vadd.f32 1.0, %v4410_v63  ;;  %4421 = vrcp.f32 %v3041_v40 }
 0x291   : > { %4423 = vrcp.f32 %v3042_v54 }
 0x292   : > { %4425 = vrcp.f32 %v3043_v34 }
 0x298   : > { %v4412_v53 = vpop.eup %4411 }
 0x299   : > { %v4414_v15 = vpop.eup %4413 }
 0x29a   : > { %v4416_v28 = vpop.eup %4415 }
 0x29b   : > { %v4418_v61 = vpop.eup %4417  ;;  %v3060_v16 = vadd.f32 %v4416_v28, %v4412_v53 }
 0x29c   : > { %v4420_v25 = vpop.eup %4419  ;;  %v3069_v26 = vadd.f32 %v4418_v61, %v4414_v15 }
 0x29d   : > { %v4422_v55 = vpop.eup %4421  ;;  %v3061_v27 = vadd.f32 %v4420_v25, %v3060_v16 }
 0x29e   : > { %v4424_v49 = vpop.eup %4423  ;;  %v3070_v56 = vadd.f32 %v4422_v55, %v3069_v26 }
 0x29f   : > { %v4426_v18 = vpop.eup %4425  ;;  %v3062_v6 = vadd.f32 %v4424_v49, %v3061_v27 }
 0x2a0   : > { %v3071_v30 = vadd.f32 %v4426_v18, %v3070_v56 }
 0x2a1   : > { %v3063_v3 = vrot.slane %v3062_v6, 4 }
 0x2a2   : > { %v3072_v33 = vrot.slane %v3071_v30, 4 }
 0x2a3   : > { %v3064_v48 = vadd.f32 %v3063_v3, %v3062_v6 }
 0x2a4   : > { %v3073_v31 = vadd.f32 %v3072_v33, %v3071_v30 }
 0x2a5   : > { %v3065_v32 = vrot.slane %v3064_v48, 2 }
 0x2a6   : > { %v3074_v35 = vrot.slane %v3073_v31, 2 }
 0x2a7   : > { %v3066_v22 = vadd.f32 %v3065_v32, %v3064_v48 }
 0x2a8   : > { %v3075_v44 = vadd.f32 %v3074_v35, %v3073_v31 }
 0x2a9   : > { %v3067_v62 = vrot.slane %v3066_v22, 1 }
 0x2aa   : > { %v3076_v52 = vrot.slane %v3075_v44, 1 }
 0x2ab   : > { %v3068_v46 = vadd.f32 %v3067_v62, %v3066_v22 }
 0x2ac   : > { %v3077_v47 = vadd.f32 %v3076_v52, %v3075_v44 }
 0x2ad   : > { %v3079_v0 = vmul.f32 0.03125, %v3068_v46 }
 0x2ae   : > { %v3080_v60 = vmul.f32 0.03125, %v3077_v47 }
 0x2af   : > { %v3112_v20 = vmul.f32 %v3104_v45, %v3079_v0  ;;  %v3114_v23 = vmul.f32 %v3106_v19, %v3079_v0  ;;  %v3116_v12 = vmul.f32 %v3108_v43, %v3079_v0  ;;  %v3118_v24 = vmul.f32 %v3110_v14, %v3079_v0 }
 0x2b0   : > { %v3083_v36 = vcombine.low %v3079_v0, %v3080_v60  ;;  %v3113_v41 = vmul.f32 %v3105_v50, %v3080_v60  ;;  %v3115_v59 = vmul.f32 %v3107_v9, %v3080_v60  ;;  %v3117_v1 = vmul.f32 %v3109_v4, %v3080_v60 }
 0x2b1   : > { %3120 = vst [vmem:[%s4551_s16] sm:$0xff] %v3112_v20  ;;  %3122 = vst [vmem:[%s4551_s16 + $0x10] sm:$0xff] %v3114_v23  ;;  %v3119_v39 = vmul.f32 %v3111_v21, %v3080_v60 }
 0x2b2   : > { %3124 = vst [vmem:[%s4551_s16 + $0x20] sm:$0xff] %v3116_v12  ;;  %3126 = vst [vmem:[%s4551_s16 + $0x30] sm:$0xff] %v3118_v24  ;;  %v3090_v8 = vrot.slane %v3083_v36, %v3089_v11 }
 0x2b3   : > { %3121 = vst [vmem:[%s4551_s16 + $0x8] sm:$0xff] %v3113_v41  ;;  %3123 = vst [vmem:[%s4551_s16 + $0x18] sm:$0xff] %v3115_v59 }
 0x2b4   : > { %3125 = vst [vmem:[%s4551_s16 + $0x28] sm:$0xff] %v3117_v1  ;;  %3127 = vst [vmem:[%s4551_s16 + $0x38] sm:$0xff] %v3119_v39  ;;  %v3097_v17 = vrot.slane %v3090_v8, %v3089_v11 }
 0x2b6   : > { %3103 = vst.msk [vmem:[%s4536_s6] sm:$0x3] %vm3101_vm0, %v3097_v17 }
 0x2b7 PF: > { %s15_s19 = sadd.s32 1, %s4465_s19   ;;  %s5421_s15 = smov %s4457_s17 }
 0x2b8   : > { %p12_p10 = scmp.ge.s32.totalorder %s15_s19, 10   ;;  %s5422_s16 = smov %s4461_s18 }
 0x2b9   : > { %s5423_s17 = smov %s5426_s20  ;;  %s5424_s18 = smov %s5430_s21 }
 0x2ba   :  { %14 = sbr.rel (!%p12_p10) target bundleno = 3 (0x3), region = 94 }

// kernel: _forward.5
= control target key start
LH: loop header
LB: loop body
LE: loop exit
PB: predicated region body
PF: predicated region fallthrough
CT: control target
= control target key end

     0   :  { %s7232_s0 = inlined_call_operand.vmem [shape: s32[2], index: 0, kind: input, shape index: {}]   ;;  %s7233_s1 = inlined_call_operand.vmem [shape: f32[2,64,256], index: 1, kind: input, shape index: {}]   ;;  %s7234_s2 = inlined_call_operand.hbm [shape: bf16[2,3,768,128], index: 2, kind: input, shape index: {}]   ;;  %s7235_s3 = inlined_call_operand.vmem [shape: f32[2,1,128], index: 3, kind: input, shape index: {}, may-alias: {3,5}]   ;;  %s7236_s4 = inlined_call_operand.vmem [shape: f32[2,1,128], index: 4, kind: input, shape index: {}]   ;;  %s7237_s5 = inlined_call_operand.vmem [shape: f32[2,1,128], index: 5, kind: input, shape index: {}, may-alias: {3,5}]   ;;  %s7238_s6 = inlined_call_operand.vmem [shape: f32[2,128,128], index: 6, kind: input, shape index: {}]   ;;  %s7239_s7 = inlined_call_operand.vmem [shape: f32[2,1,128], index: 7, kind: input, shape index: {}]   ;;  %s7240_s8 = inlined_call_operand.vmem [shape: f32[2,1,128], index: 8, kind: output, shape index: {}]  }
   0x1   :  { %7272 = sst [smem:[#allocation32_spill]] %s7234_s2  ;;  %s13_s29 = sshll.u32 %s7232_s0, 4  ;;  %s14_s29 = int_to_ptr.vmem [resolvable:$true] %s13_s29 }
   0x2   :  { %s5553_s30 = scalar_lea.vmem %s14_s29, 16  ;;  %p5558_p1 = scmp.lt.s32.totalorder %s14_s29, %s14_s29 }
   0x3   :  { %p5554_p0 = scmp.ne.s32.totalorder %s14_s29, %s5553_s30  ;;  %p5559_p2 = scmp.lt.s32.totalorder %s5553_s30, %s5553_s30 }
   0x5   :  { %p5560_p3 = por %p5559_p2, %p5558_p1 }
   0x7   :  { %p5561_p4 = pnand %p5560_p3, %p5554_p0 }
   0x9   :  { %5564 = shalt.err (!%p5561_p4)  }
   0xa   :  { %s5663_s9 = smov [#allocation7]  }
   0xb   :  { %16 = dma.vmem_to_smem %s14_s29, 16, %s5663_s9, [#allocation6] }
   0xc   :  { %5625 = dma.done.wait [#allocation6], 16 }
   0xd   :  { %5626 = vsyncadd [#allocation6], 4294967280 }
   0xe   :  { %18 = sfence }
   0xf   :  { %19 = vsyncpa [#allocation9], 0 }
  0x10   :  { %21 = vsyncpa [#allocation9 + $0x1], 0  ;;  %s5719_s10 = smov 0   ;;  %s5721_s11 = smov 0  }
  0x11   :  { %s5723_s0 = smov 0   ;;  %s5725_s12 = smov 0  }
  0x12   :  { %s5727_s13 = smov 0   ;;  %s5729_s14 = smov 0  }
  0x13   :  { %s5731_s15 = smov 0   ;;  %s5733_s16 = smov 0  }
  0x14 LB: > { %7273 = sst [smem:[#allocation12_spill]] %s5653_s14  ;;  %s3964_s17 = sadd.s32 4294967295, %s5661_s16   ;;  %s5661_s16 = sphi %s5733_s16, %s27_s16   ;;  %s5657_s15 = sphi %s5731_s15, %s7392_s15   ;;  %s5653_s14 = sphi %s5729_s14, %s7391_s14   ;;  %s5649_s13 = sphi %s5727_s13, %s7390_s13   ;;  %s5645_s12 = sphi %s5725_s12, %s7389_s12   ;;  %s5641_s0 = sphi %s5723_s0, %s7395_s0   ;;  %s5637_s11 = sphi %s5721_s11, %s7394_s11   ;;  %s5633_s10 = sphi %s5719_s10, %s7393_s10  }
  0x15   : > { %7274 = sst [smem:[#allocation13_spill]] %s5657_s15  ;;  %s36_s18 = sadd.s32 1, %s5653_s14 }
  0x16   : > { %p37_p5 = scmp.ge.s32.totalorder %s36_s18, 2  ;;  %s39_s19 = sadd.s32 1, %s5657_s15 }
  0x17   : > { %s72_s20 = sadd.s32 1, %s5641_s0  ;;  %p79_p6 = scmp.ne.s32.totalorder %s5641_s0, %s5637_s11 }
  0x18   : > { %s7397_s18 = smov (%p37_p5, %s36_s18), 0  ;;  %s7399_s19 = smov (!%p37_p5, %s39_s19), %s5657_s15 }
  0x19   : > { %7275 = sst [smem:[#allocation14_spill]] %s7397_s18  ;;  %p80_p7 = scmp.eq.s32.totalorder %s5661_s16, 0 }
  0x1a   : > { %p85_p8 = scmp.ne.s32.totalorder %s5637_s11, %s5633_s10  ;;  %p41_p9 = scmp.ge.s32.totalorder %s7399_s19, 2 }
  0x1b   : > { %p86_p10 = scmp.eq.s32.totalorder %s3964_s17, 0  ;;  %p81_p11 = por %p80_p7, %p79_p6 }
  0x1c   : > { %s7401_s19 = smov (%p41_p9, %s7399_s19), 0  ;;  %p5263_p13 = scmp.lt.s32.totalorder %s5661_s16, 4 }
  0x1d   : > { %7276 = sst [smem:[#allocation15_spill]] %s7401_s19  ;;  %p5770_p12 = por %p86_p10, %p85_p8 }
  0x1e   : > { %s69_s22 = ssub.s32 %s5657_s15, %s7401_s19  ;;  %s273_s23 = sand.u32 1, %s5641_s0  }
  0x1f   : > { %p70_p0 = scmp.eq.s32.totalorder %s69_s22, 0  ;;  %s5254_s24 = smul.u32 1152, %s273_s23 }
  0x20   : > { %p5778_p1 = pnand %p5263_p13, %p81_p11  ;;  %s5255_s27 = smul.u32 18432, %s5657_s15 }
  0x21   : > { %s5783_s26 = scalar_select %p70_p0, %s5641_s0, %s72_s20  }
  0x22   : > { %s277_s28 = scalar_lea.vmem [#allocation8], %s5254_s24  ;;  %s7279_s2 = sld [smem:[#allocation32_spill]] }
  0x23   : > { %s284_s29 = sshll.u32 %s277_s28, 4  ;;  %s274_s17 = scalar_lea.sflag [#allocation9], %s273_s23  ;;  %s285_s29 = int_to_ptr.vmem [resolvable:$true] %s284_s29 }
  0x24   : > { %p5567_p2 = pneg %p5778_p1  ;;  %s5578_s22 = scalar_lea.vmem %s285_s29, 18432 }
  0x25   : > { %p5579_p3 = scmp.ne.s32.totalorder %s285_s29, %s5578_s22  ;;  %s5664_s19 = smov [#allocation8]  }
  0x26   : > { %s5583_s18 = sshll.u32 %s5664_s19, 4  ;;  %s5584_s18 = int_to_ptr.vmem [resolvable:$false] %s5583_s18 }
  0x27   : > { %p5581_p4 = pnand %p5579_p3, %p5567_p2  ;;  %s5585_s20 = scalar_lea.vmem %s5584_s18, 36864 }
  0x28   : > { %s283_s10 = scalar_lea.hbm %s7279_s2, %s5255_s27  ;;  %p5586_p6 = scmp.lt.s32.totalorder %s285_s29, %s5584_s18 }
  0x29   : > { %p5582_p5 = pneg %p5581_p4  ;;  %p5587_p7 = scmp.lt.s32.totalorder %s5585_s20, %s5578_s22 }
  0x2b   : > { %p5588_p8 = por %p5587_p7, %p5586_p6 }
  0x2d   : > { %p5589_p9 = pnand %p5588_p8, %p5582_p5 }
  0x2f   : > { %5592 = shalt.err (!%p5589_p9)
}
  0x30   : > { %s5665_s24 = smov 64   ;;  %s5666_s23 = smov 4  }
  0x31   : > { %5262 = dma.hbm_to_vmem [thread:$0]  (!%p5778_p1), %s283_s10, 18432, %s285_s29, %s274_s17, %s5665_s24, %s5665_s24, %s5666_s23  }
  0x32   : > { %p3969_p10 = scmp.ge.s32.totalorder %s5661_s16, 1  ;;  %p324_p11 = scmp.lt.s32.totalorder %s5661_s16, 5 }
  0x34   : > { %p325_p13 = pnand %p3969_p10, %p324_p11 }
  0x36   : > { %328 = sbr.rel (%p325_p13) target bundleno = 1343 (0x53f), region = 48 }
  0x3b   : > { %s330_s19 = sand.u32 1, %s5637_s11  }
  0x3c   : > { %s5256_s27 = smul.u32 1152, %s330_s19  ;;  %s331_s18 = scalar_lea.sflag [#allocation9], %s330_s19 }
  0x3e   : > { %s5796_s28 = scalar_lea.vmem [#allocation8], %s5256_s27 }
  0x3f   : > { %5628 = dma.done.wait (%p5770_p12), %s331_s18, 18432  }
  0x40   : > { %5630 = vsyncadd (%p5770_p12), %s331_s18, 4294948864  ;;  %p385_p0 = scmp.lt.s32.totalorder %s5645_s12, 1  ;;  %p390_p1 = scmp.lt.s32.totalorder %s5649_s13, 1 }
  0x41   : > { %p3974_p12 = scmp.ne.s32.totalorder %s5645_s12, 0 }
  0x42   : > { %s386_s25 = scalar_select %p385_p0, %s5645_s12, 1 }
  0x43   : > { %s7403_s13 = smov (!%p390_p1, %s5649_s13), 1  ;;  %414 = sbr.rel (%p3974_p12) target bundleno = 74 (0x4a), region = 56 }
  0x44   : > { %s4446_s29 = sshll.u32 %s386_s25, 7  ;;  %s395_s23 = scalar_lea.vmem %s7236_s4, %s7403_s13 }
  0x45   : > { %s5811_s21 = scalar_lea.vmem %s7233_s1, %s4446_s29  ;;  %s398_s18 = scalar_lea.vmem %s7237_s5, %s7403_s13 }
  0x46   : > { %s4447_s2 = sshll.u32 %s7403_s13, 7  ;;  %s406_s14 = scalar_lea.vmem %s7239_s7, %s7403_s13 }
  0x47   : > { %s5833_s9 = scalar_lea.vmem %s7238_s6, %s4447_s2  ;;  %s409_s22 = scalar_lea.vmem %s7240_s8, %s7403_s13 }
  0x48   : > { %v5667_v0 = vmov 0.0  }
  0x49   : > { %415 = vst [vmem:[#allocation4] sm:$0x1] %v5667_v0  ;;  %416 = vst [vmem:[#allocation5] sm:$0x1] %v5667_v0 }
  0x4a PF: > { %v5335_v1 = vld [vmem:[%s5796_s28 + $0x1f8] sm:$0xff]   ;;  %v5339_v5 = vld [vmem:[%s5796_s28 + $0x1f0] sm:$0xff]   ;;  %v5343_v9 = vld [vmem:[%s5796_s28 + $0x1e8] sm:$0xff]   ;;  %v7244_v15 = vlaneseq  ;;  %p4418_p2 = scmp.ne.s32.totalorder %s5645_s12, 1 }
  0x4b   : > { %v5336_v2 = vld [vmem:[%s5796_s28 + $0x278] sm:$0xff]   ;;  %4666 = vmatprep.subr.bf16.mxu0 %v5335_v1  ;;  %v5340_v6 = vld [vmem:[%s5796_s28 + $0x270] sm:$0xff]   ;;  %v5344_v10 = vld [vmem:[%s5796_s28 + $0x268] sm:$0xff]   ;;  %s4443_s25 = sld [smem:[#allocation7 + $0x1]] (!%p4418_p2) }
  0x4c   : > { %v5337_v3 = vld [vmem:[%s5796_s28 + $0x1b8] sm:$0xff]   ;;  %4706 = vmatprep.subr.bf16.mxu1 %v5336_v2  ;;  %v5341_v7 = vld [vmem:[%s5796_s28 + $0x1b0] sm:$0xff]   ;;  %v5345_v11 = vld [vmem:[%s5796_s28 + $0x1a8] sm:$0xff]   ;;  %v5859_v20 = vshrl.u32 %v7244_v15, 7 }
  0x4d   : > { %v5338_v4 = vld [vmem:[%s5796_s28 + $0x238] sm:$0xff]   ;;  %4667 = vmatpush3.bf16.msra.mxu0 %v5337_v3  ;;  %v5342_v8 = vld [vmem:[%s5796_s28 + $0x230] sm:$0xff]   ;;  %v5346_v12 = vld [vmem:[%s5796_s28 + $0x228] sm:$0xff]  }
  0x4e   : > { %4707 = vmatpush3.bf16.msra.mxu1 %v5338_v4  ;;  %4668 = vmatprep.subr.bf16.mxu0 %v5339_v5  ;;  %v5347_v13 = vld [vmem:[%s5796_s28 + $0x1e0] sm:$0xff]   ;;  %v5351_v18 = vld [vmem:[%s5796_s28 + $0x1d8] sm:$0xff]   ;;  %7280 = vst [vmem:[#allocation16_spill] sm:$0xff] %v5859_v20  ;;  %v5355_v23 = vld [vmem:[%s5796_s28 + $0x1d0] sm:$0xff]   ;;  %v5866_v25 = vadd.s32 8, %v5859_v20  ;;  %v5870_v27 = vadd.s32 16, %v5859_v20 }
  0x4f   : > { %4708 = vmatprep.subr.bf16.mxu1 %v5340_v6  ;;  %v5348_v14 = vld [vmem:[%s5796_s28 + $0x260] sm:$0xff]   ;;  %v5352_v19 = vld [vmem:[%s5796_s28 + $0x258] sm:$0xff]   ;;  %v5356_v24 = vld [vmem:[%s5796_s28 + $0x250] sm:$0xff]   ;;  %v430_v30 = vand.u32 7, %v5859_v20  ;;  %v5881_v36 = vadd.s32 24, %v5859_v20  ;;  %v5885_v38 = vadd.s32 32, %v5859_v20 }
  0x50   : > { %v5349_v16 = vld [vmem:[%s5796_s28 + $0x1a0] sm:$0xff]   ;;  %v5353_v21 = vld [vmem:[%s5796_s28 + $0x198] sm:$0xff]   ;;  %7281 = vst [vmem:[#allocation17_spill] sm:$0xff] %v5866_v25  ;;  %v5357_v26 = vld [vmem:[%s5796_s28 + $0x190] sm:$0xff]   ;;  %v437_v32 = vand.u32 7, %v5866_v25  ;;  %v7251_v34 = vand.u32 7, %v5870_v27 }
  0x51   : > { %4669 = vmatpush3.bf16.msra.mxu0 %v5341_v7  ;;  %v5350_v17 = vld [vmem:[%s5796_s28 + $0x220] sm:$0xff]   ;;  %v5354_v22 = vld [vmem:[%s5796_s28 + $0x218] sm:$0xff]   ;;  %7282 = vst [vmem:[#allocation18_spill] sm:$0xff] %v5870_v27  ;;  %v5358_v28 = vld [vmem:[%s5796_s28 + $0x210] sm:$0xff]   ;;  %vm5890_vm0 = vcmp.ge.s32.totalorder %v430_v30, 1  ;;  %v5896_v42 = vadd.s32 40, %v5859_v20 }
  0x52   : > { %4709 = vmatpush3.bf16.msra.mxu1 %v5342_v8  ;;  %4670 = vmatprep.subr.bf16.mxu0 %v5343_v9  ;;  %v5359_v29 = vld [vmem:[%s5796_s28 + $0x1c8] sm:$0xff]   ;;  %7283 = vst [vmem:[#allocation19_spill] sm:$0xff] %v5881_v36  ;;  %v5363_v37 = vld [vmem:[%s5796_s28 + $0x1c0] sm:$0xff]   ;;  %7284 = vst [vmem:[#allocation20_spill] sm:$0xff] %v5885_v38  ;;  %vm5901_vm1 = vcmp.ge.s32.totalorder %v437_v32, 1  ;;  %vm5907_vm2 = vcmp.ge.s32.totalorder %v7251_v34, 1 }
  0x53   : > { %4710 = vmatprep.subr.bf16.mxu1 %v5344_v10  ;;  %v5360_v31 = vld [vmem:[%s5796_s28 + $0x248] sm:$0xff]   ;;  %v5364_v39 = vld [vmem:[%s5796_s28 + $0x240] sm:$0xff]   ;;  %7287 = vst [vmem:[#allocation21_spill] sm:$0xff] %v5896_v42  ;;  %vm860_vm3 = vcmp.lt.s32.totalorder %v5859_v20, 1  ;;  %v7250_v49 = vand.u32 7, %v5881_v36  ;;  %v7249_v50 = vand.u32 7, %v5885_v38  ;;  %vm4528_vm4 = vmpackc.low %vm5901_vm1, %vm5890_vm0 }
  0x54   : > { %v5361_v33 = vld [vmem:[%s5796_s28 + $0x188] sm:$0xff]   ;;  %v5365_v41 = vld [vmem:[%s5796_s28 + $0x180] sm:$0xff]   ;;  %v5924_v51 = vld [vmem:[%s5811_s21 + $0x18] sm:$0xff]  ;;  %v7248_v62 = vand.u32 7, %v5896_v42  ;;  %vm925_vm10 = vcmp.lt.s32.totalorder %v5859_v20, 7  ;;  %vm6219_vm15 = vcmp.lt.s32.totalorder %v430_v30, 7 }
  0x55   : > { %4671 = vmatpush3.bf16.msra.mxu0 %v5345_v11  ;;  %v5362_v35 = vld [vmem:[%s5796_s28 + $0x208] sm:$0xff]   ;;  %v5366_v43 = vld [vmem:[%s5796_s28 + $0x200] sm:$0xff]   ;;  %v5930_v53 = vld [vmem:[%s5811_s21 + $0x38] sm:$0xff]  ;;  %v847_v59 = vrot.slane %v5924_v51, 7  ;;  %vm6013_vm5 = vcmp.ge.s32.totalorder %v7250_v49, 1  ;;  %vm6044_vm7 = vcmp.ge.s32.totalorder %v7249_v50, 1 }
  0x56   : > { %4711 = vmatpush3.bf16.msra.mxu1 %v5346_v12  ;;  %4672 = vmatprep.subr.bf16.mxu0 %v5347_v13  ;;  %v5912_v46 = vld [vmem:[%s5811_s21] sm:$0xff]  ;;  %v5915_v47 = vld [vmem:[%s5811_s21 + $0x8] sm:$0xff]  ;;  %v5918_v48 = vld [vmem:[%s5811_s21 + $0x10] sm:$0xff]  ;;  %v851_v61 = vrot.slane %v5930_v53, 7  ;;  %vm6050_vm8 = vcmp.ge.s32.totalorder %v7248_v62, 1 }
  0x57   : > { %4712 = vmatprep.subr.bf16.mxu1 %v5348_v14  ;;  %v5927_v52 = vld [vmem:[%s5811_s21 + $0x28] sm:$0xff]  ;;  %v844_v54 = vrot.slane %v5912_v46, 7  ;;  %v845_v55 = vrot.slane %v5915_v47, 7  ;;  %v846_v56 = vrot.slane %v5918_v48, 7  ;;  %v5936_v57 = vld [vmem:[%s5811_s21 + $0x70] sm:$0xff]  ;;  %v5939_v58 = vld [vmem:[%s5811_s21 + $0x78] sm:$0xff]  ;;  %v4506_v2 = vpack.c.bf16 %v5918_v48, %v5912_v46 }
  0x58   : > { %v849_v60 = vrot.slane %v5927_v52, 7  ;;  %v7253_v63 = vrot.slane %v5936_v57, 7  ;;  %v7254_v0 = vrot.slane %v5939_v58, 7  ;;  %v5367_v3 = vld [vmem:[%s5796_s28 + $0x2f8] sm:$0xff]   ;;  %v4507_v5 = vpack.c.bf16 %v5924_v51, %v5915_v47  ;;  %vm4534_vm6 = vmpackc.low %vm6013_vm5, %vm5907_vm2  ;;  %v6157_v50 = vld [vmem:[%s5811_s21 + $0x50] sm:$0xff] }
  0x59   : > { %4673 = vmatpush3.bf16.msra.mxu0 %v5349_v16  ;;  %v5951_v1 = vsel %vm860_vm3, %v844_v54, %v846_v56  ;;  %v5962_v4 = vsel %vm860_vm3, %v845_v55, %v847_v59  ;;  %v5368_v10 = vld [vmem:[%s5796_s28 + $0x78] sm:$0xff]   ;;  %v5996_v16 = vadd.s32 48, %v5859_v20  ;;  %vm4540_vm13 = vmpackc.low %vm6050_vm8, %vm6044_vm7  ;;  %v854_v49 = vrot.slane %v6157_v50, 7  ;;  %v5395_v44 = vld [vmem:[%s5796_s28 + $0x2c0] sm:$0xff]  }
  0x5a   : > { %4713 = vmatpush3.bf16.msra.mxu1 %v5350_v17  ;;  %4674 = vmatprep.subr.bf16.mxu0 %v5351_v18  ;;  %v5970_v6 = vsel %vm860_vm3, %v849_v60, %v851_v61  ;;  %v5974_v7 = vsel %vm860_vm3, %v847_v59, %v849_v60  ;;  %v5980_v8 = vsel %vm860_vm3, %v7253_v63, %v844_v54  ;;  %v5369_v13 = vld [vmem:[%s5796_s28 + $0x2b8] sm:$0xff]   ;;  %v5999_v17 = vadd.s32 56, %v5859_v20  ;;  %v5375_v60 = vld [vmem:[%s5796_s28 + $0x2e8] sm:$0xff]  }
  0x5b   : > { %4714 = vmatprep.subr.bf16.mxu1 %v5352_v19  ;;  %v5986_v9 = vsel %vm860_vm3, %v7254_v0, %v845_v55  ;;  %v4532_v12 = vpack.c.bf16 %v5951_v1, %v5980_v8  ;;  %1680 = vmatprep.mubr.bf16.mxu1 %v4507_v5  ;;  %v5370_v14 = vld [vmem:[%s5796_s28 + $0x38] sm:$0xff]   ;;  %7292 = vst [vmem:[#allocation22_spill] sm:$0xff] %v5996_v16  ;;  %v7252_v54 = vrot.slane %v5912_v46, 1  ;;  %v6062_v55 = vld [vmem:[%s5811_s21 + $0x30] sm:$0xff] }
  0x5c   : > { %v4529_v11 = vpack.c.bf16 %v5962_v4, %v5986_v9  ;;  %7293 = vst [vmem:[#allocation23_spill] sm:$0xff] %v5999_v17  ;;  %v4513_v18 = vpack.c.bf16 %v5930_v53, %v5927_v52  ;;  %v4535_v19 = vpack.c.bf16 %v5970_v6, %v5974_v7  ;;  %v6154_v62 = vld [vmem:[%s5811_s21 + $0x40] sm:$0xff]  ;;  %v5440_v30 = vld [vmem:[%s5796_s28 + $0x3e8] sm:$0xff]  }
  0x5d   : > { %4675 = vmatpush3.bf16.msra.mxu0 %v5353_v21  ;;  %v5371_v21 = vld [vmem:[%s5796_s28 + $0x2f0] sm:$0xff]   ;;  %v4518_v34 = vpack.c.bf16 %v6157_v50, %v6154_v62  ;;  %v5383_v0 = vld [vmem:[%s5796_s28 + $0x2d8] sm:$0xff]  }
  0x5e   : > { %4715 = vmatpush3.bf16.msra.mxu1 %v5354_v22  ;;  %4676 = vmatprep.subr.bf16.mxu0 %v5355_v23  ;;  %v6019_v23 = vpack.c.bf16 %v5927_v52, %v5924_v51 }
  0x5f   : > { %4716 = vmatprep.subr.bf16.mxu1 %v5356_v24  ;;  %4530 = vmatprep.mubr.msk.bf16.mxu0 %vm4528_vm4, %v4529_v11  ;;  %v4463_v24 = vpack.c.bf16 %v5939_v58, %v5936_v57 }
  0x61   : > { %4677 = vmatpush3.bf16.msra.mxu0 %v5357_v26  ;;  %v5372_v26 = vld [vmem:[%s5796_s28 + $0x70] sm:$0xff]  }
  0x62   : > { %4717 = vmatpush3.bf16.msra.mxu1 %v5358_v28  ;;  %4678 = vmatprep.subr.bf16.mxu0 %v5359_v29  ;;  %v5373_v28 = vld [vmem:[%s5796_s28 + $0x2b0] sm:$0xff]   ;;  %v7245_v29 = vand.u32 7, %v5996_v16 }
  0x63   : > { %4718 = vmatprep.subr.bf16.mxu1 %v5360_v31  ;;  %v7259_v31 = vmov 0  }
  0x64   : > { %vm6082_vm9 = vcmp.ge.s32.totalorder %v7245_v29, 1 }
  0x65   : > { %4679 = vmatpush3.bf16.msra.mxu0 %v5361_v33  ;;  %v6032_v33 = vcombine.high %v4463_v24, %v7259_v31 }
  0x66   : > { %4719 = vmatpush3.bf16.msra.mxu1 %v5362_v35  ;;  %4680 = vmatprep.subr.bf16.mxu0 %v5363_v37  ;;  %v5374_v35 = vld [vmem:[%s5796_s28 + $0x30] sm:$0xff]   ;;  %v6040_v37 = vld [vmem:[%s5811_s21 + $0x20] sm:$0xff] }
  0x67   : > { %4720 = vmatprep.subr.bf16.mxu1 %v5364_v39  ;;  %7296 = vst [vmem:[#allocation24_spill] sm:$0xff] %v6032_v33  ;;  %v848_v59 = vrot.slane %v6040_v37, 7  ;;  %v4512_v5 = vpack.c.bf16 %v6062_v55, %v6040_v37 }
  0x69   : > { %4681 = vmatpush3.bf16.msra.mxu0 %v5365_v41  ;;  %v6078_v11 = vsel %vm860_vm3, %v846_v56, %v848_v59  ;;  %v7256_v56 = vrot.slane %v5915_v47, 1  ;;  %v5425_v41 = vld [vmem:[%s5796_s28 + $0x88] sm:$0xff]  }
  0x6a   : > { %4721 = vmatpush3.bf16.msra.mxu1 %v5366_v43  ;;  %4746 = vmatprep.subr.bf16.mxu0 %v5367_v3  ;;  %v479_v43 = vand.u32 7, %v5999_v17  ;;  %v850_v3 = vrot.slane %v6062_v55, 7  ;;  %v7318_v17 = vrot.slane %v5915_v47, 1 }
  0x6b   : > { %4786 = vmatprep.subr.bf16.mxu1 %v5368_v10  ;;  %v5376_v10 = vld [vmem:[%s5796_s28 + $0x68] sm:$0xff]  }
  0x6c   : > { %4533 = vmatmul.mubr.msk.bf16.vlgmr.msra.gmra.mxu0 %vm4528_vm4, %v4532_v12  ;;  %vm6109_vm11 = vcmp.lt.s32.totalorder %v479_v43, 7  ;;  %vm6136_vm12 = vcmp.ge.s32.totalorder %v479_v43, 1 }
  0x6d   : > { %1681 = vmatmul.mubr.bf16.vlgmr.msra.gmra.mxu1 %v4506_v2  ;;  %4747 = vmatpush3.bf16.msra.mxu0 %v5369_v13  ;;  %v6068_v2 = vpack.c.bf16 %v6040_v37, %v5918_v48  ;;  %v6087_v13 = vcombine.low %v4463_v24, %v7259_v31  ;;  %v7247_v24 = vrot.slane %v5939_v58, 1  ;;  %vm4546_vm14 = vmpackc.low %vm6136_vm12, %vm6082_vm9 }
  0x6e   : > { %4787 = vmatpush3.bf16.msra.mxu1 %v5370_v14  ;;  %1688 = vmatprep.mubr.bf16.mxu1 %v4513_v18  ;;  %v6091_v14 = vsel %vm860_vm3, %v848_v59, %v850_v3  ;;  %v5377_v18 = vld [vmem:[%s5796_s28 + $0x2a8] sm:$0xff]   ;;  %v5381_v59 = vld [vmem:[%s5796_s28 + $0x2a0] sm:$0xff]  }
  0x6f   : > { %4748 = vmatprep.subr.bf16.mxu0 %v5371_v21  ;;  %4788 = vmatprep.subr.bf16.mxu1 %v5372_v26  ;;  %7301 = vst [vmem:[#allocation25_spill] sm:$0xff] %v6068_v2  ;;  %7304 = vst [vmem:[#allocation26_spill] sm:$0xff] %v6087_v13  ;;  %v5378_v21 = vld [vmem:[%s5796_s28 + $0x28] sm:$0xff]   ;;  %v5379_v26 = vld [vmem:[%s5796_s28 + $0x2e0] sm:$0xff]  }
  0x70   : > { %4536 = vmatprep.mubr.msk.bf16.mxu0 %vm4534_vm6, %v4535_v19  ;;  %v4538_v19 = vpack.c.bf16 %v6091_v14, %v6078_v11 }
  0x71   : > { %4749 = vmatpush3.bf16.msra.mxu0 %v5373_v28  ;;  %v7246_v28 = vrot.slane %v5936_v57, 1 }
  0x72   : > { %4789 = vmatpush3.bf16.msra.mxu1 %v5374_v35  ;;  %4750 = vmatprep.subr.bf16.mxu0 %v5375_v60  ;;  %v5380_v35 = vld [vmem:[%s5796_s28 + $0x60] sm:$0xff]  }
  0x73   : > { %4790 = vmatprep.subr.bf16.mxu1 %v5376_v10  ;;  %v6127_v10 = vsel %vm925_vm10, %v7246_v28, %v7252_v54  ;;  %v894_v54 = vsel %vm5890_vm0, %v5986_v9, 0.0 }
  0x74   : > { %4539 = vmatmul.mubr.msk.bf16.gmra.mxu0 %vm4534_vm6, %v4538_v19  ;;  %v6131_v19 = vld [vmem:[%s5811_s21 + $0x48] sm:$0xff]  ;;  %v972_v29 = vsel %vm6109_vm11, %v6127_v10, 0.0 }
  0x75   : > { %1689 = vmatmul.mubr.bf16.gmra.mxu1 %v4512_v5  ;;  %4751 = vmatpush3.bf16.msra.mxu0 %v5377_v18  ;;  %v6119_v5 = vsel %vm925_vm10, %v7247_v24, %v7256_v56  ;;  %v5382_v18 = vld [vmem:[%s5796_s28 + $0x20] sm:$0xff]  }
  0x76   : > { %4791 = vmatpush3.bf16.msra.mxu1 %v5378_v21  ;;  %4752 = vmatprep.subr.bf16.mxu0 %v5379_v26  ;;  %v6134_v21 = vld [vmem:[%s5811_s21 + $0x58] sm:$0xff]  ;;  %v973_v28 = vsel %vm6109_vm11, %v6119_v5, 0.0  ;;  %v893_v26 = vsel %vm5890_vm0, %v5980_v8, 0.0  ;;  %v852_v8 = vrot.slane %v6154_v62, 7  ;;  %vm6234_vm0 = vcmp.lt.s32.totalorder %v437_v32, 7 }
  0x77   : > { %4792 = vmatprep.subr.bf16.mxu1 %v5380_v35  ;;  %v853_v35 = vrot.slane %v6131_v19, 7  ;;  %v7255_v43 = vrot.slane %v6134_v21, 7  ;;  %v4519_v24 = vpack.c.bf16 %v6134_v21, %v6131_v19  ;;  %v6202_v56 = vpack.c.bf16 %v894_v54, %v893_v26  ;;  %vm4552_vm4 = vmpackc.low %vm6234_vm0, %vm6219_vm15 }
  0x78   : > { %v6187_v9 = vsel %vm860_vm3, %v852_v8, %v854_v49  ;;  %v6229_v26 = vpack.c.bf16 %v6154_v62, %v6062_v55  ;;  %v7317_v32 = vrot.slane %v5927_v52, 1  ;;  %v7321_v33 = vrot.slane %v6134_v21, 7 }
  0x79   : > { %4753 = vmatpush3.bf16.msra.mxu0 %v5381_v59  ;;  %v6180_v63 = vsel %vm860_vm3, %v851_v61, %v853_v35  ;;  %1696 = vmatprep.mubr.bf16.mxu1 %v4519_v24  ;;  %v6191_v59 = vsel %vm860_vm3, %v850_v3, %v852_v8  ;;  %v5385_v24 = vld [vmem:[%s5796_s28 + $0x298] sm:$0xff]   ;;  %v6225_v3 = vpack.c.bf16 %v6131_v19, %v5930_v53  ;;  %v5388_v8 = vld [vmem:[%s5796_s28 + $0x50] sm:$0xff]   ;;  %v7343_v54 = vand.u32 7, %v5996_v16 }
  0x7a   : > { %4793 = vmatpush3.bf16.msra.mxu1 %v5382_v18  ;;  %v6174_v18 = vsel %vm860_vm3, %v853_v35, %v7255_v43  ;;  %v5384_v43 = vld [vmem:[%s5796_s28 + $0x58] sm:$0xff]   ;;  %v4544_v61 = vpack.c.bf16 %v6187_v9, %v6191_v59  ;;  %4754 = vmatprep.subr.bf16.mxu0 %v5383_v0  ;;  %v912_v35 = vrot.slane %v5924_v51, 1  ;;  %v5387_v51 = vld [vmem:[%s5796_s28 + $0x2d0] sm:$0xff]   ;;  %7312 = vst [vmem:[#allocation28_spill] sm:$0xff] %v6229_v26  ;;  %v5392_v26 = vld [vmem:[%s5796_s28 + $0x48] sm:$0xff]  }
  0x7b   : > { %v4541_v40 = vpack.c.bf16 %v6174_v18, %v6180_v63  ;;  %4794 = vmatprep.subr.bf16.mxu1 %v5384_v43  ;;  %7311 = vst [vmem:[#allocation27_spill] sm:$0xff] %v6225_v3  ;;  %v4471_v43 = vpack.c.bf16 %v973_v28, %v972_v29  ;;  %v911_v29 = vrot.slane %v5918_v48, 1  ;;  %v5390_v28 = vld [vmem:[%s5796_s28 + $0x10] sm:$0xff]   ;;  %v4264_v48 = vcombine.high %v7259_v31, %v6202_v56 }
  0x7d   : > { %1697 = vmatmul.mubr.bf16.gmra.mxu1 %v4518_v34  ;;  %4542 = vmatprep.mubr.msk.bf16.mxu0 %vm4540_vm13, %v4541_v40  ;;  %v5386_v34 = vld [vmem:[%s5796_s28 + $0x18] sm:$0xff]   ;;  %v5389_v40 = vld [vmem:[%s5796_s28 + $0x290] sm:$0xff]   ;;  %v6243_v0 = vcombine.low %v4471_v43, %v7259_v31 }
  0x7e   : > { %4545 = vmatmul.mubr.msk.bf16.gmra.mxu0 %vm4540_vm13, %v4544_v61  ;;  %4795 = vmatpush3.bf16.msra.mxu1 %v5386_v34  ;;  %v6240_v61 = vcombine.high %v4471_v43, %v7259_v31  ;;  %v6251_v34 = vld [vmem:[%s5811_s21 + $0x60] sm:$0xff]  ;;  %v6263_v43 = vsel %vm925_vm10, %v7318_v17, %v912_v35  ;;  %v5391_v17 = vld [vmem:[%s5796_s28 + $0x2c8] sm:$0xff]  }
  0x7f   : > { %4755 = vmatpush3.bf16.msra.mxu0 %v5385_v24  ;;  %7316 = vst [vmem:[#allocation30_spill] sm:$0xff] %v6243_v0  ;;  %4796 = vmatprep.subr.bf16.mxu1 %v5388_v8  ;;  %v6248_v24 = vld [vmem:[%s5811_s21 + $0x68] sm:$0xff]  ;;  %v856_v0 = vrot.slane %v6251_v34, 7  ;;  %v6281_v31 = vpack.c.bf16 %v6251_v34, %v6157_v50  ;;  %s4480_s21 = sshll.u32 %s5645_s12, 5 }
  0x80   : > { %4756 = vmatprep.subr.bf16.mxu0 %v5387_v51  ;;  %7315 = vst [vmem:[#allocation29_spill] sm:$0xff] %v6240_v61  ;;  %v6257_v51 = vsel %vm925_vm10, %v912_v35, %v7317_v32  ;;  %v857_v8 = vrot.slane %v6248_v24, 7  ;;  %v4525_v25 = vpack.c.bf16 %v5939_v58, %v6248_v24  ;;  %v4524_v32 = vpack.c.bf16 %v5936_v57, %v6251_v34  ;;  %s3050_s20 = scalar_lea.vmem [#allocation2], %s4480_s21 }
  0x81   : > { %v916_v35 = vrot.slane %v5930_v53, 1  ;;  %7319 = vst [vmem:[#allocation31_spill] sm:$0xff] %v6281_v31  ;;  %v7320_v61 = vrot.slane %v5939_v58, 7  ;;  %v6299_v31 = vsel %vm860_vm3, %v854_v49, %v856_v0  ;;  %v5469_v49 = vld [vmem:[%s5796_s28 + $0x460] sm:$0xff]  }
  0x82   : > { %4797 = vmatpush3.bf16.msra.mxu1 %v5390_v28  ;;  %1704 = vmatprep.mubr.bf16.mxu1 %v4525_v25  ;;  %v7322_v28 = vrot.slane %v5936_v57, 7  ;;  %v5393_v25 = vld [vmem:[%s5796_s28 + $0x288] sm:$0xff]  }
  0x83   : > { %4757 = vmatpush3.bf16.msra.mxu0 %v5389_v40  ;;  %v862_v13 = vsel %vm860_vm3, %v857_v8, %v7320_v61  ;;  %v6291_v40 = vsel %vm860_vm3, %v7321_v33, %v857_v8  ;;  %v913_v61 = vrot.slane %v6040_v37, 1  ;;  %v4553_v33 = vpack.c.bf16 %v6257_v51, %v6263_v43  ;;  %4798 = vmatprep.subr.bf16.mxu1 %v5392_v26  ;;  %v5394_v37 = vld [vmem:[%s5796_s28 + $0x8] sm:$0xff]   ;;  %v5396_v26 = vld [vmem:[%s5796_s28 + $0x40] sm:$0xff]  }
  0x84   : > { %v861_v53 = vsel %vm860_vm3, %v856_v0, %v7322_v28  ;;  %v4547_v3 = vpack.c.bf16 %v862_v13, %v6291_v40  ;;  %4758 = vmatprep.subr.bf16.mxu0 %v5391_v17  ;;  %vm6312_vm3 = vmpackc.low %vm5907_vm2, %vm5901_vm1  ;;  %v908_v45 = vsel %vm6136_vm12, %v862_v13, 0.0  ;;  %v5397_v8 = vld [vmem:[%s5796_s28 + $0x280] sm:$0xff]   ;;  %v7325_v13 = vrot.slane %v5912_v46, 1  ;;  %v5399_v28 = vld [vmem:[%s5796_s28 + $0xf8] sm:$0xff]  }
  0x85   : > { %v4550_v2 = vpack.c.bf16 %v861_v53, %v6299_v31  ;;  %1705 = vmatmul.mubr.bf16.gmra.mxu1 %v4524_v32  ;;  %v907_v0 = vsel %vm6136_vm12, %v861_v53, 0.0  ;;  %v6342_v15 = vsel %vm925_vm10, %v911_v29, %v913_v61  ;;  %v7326_v32 = vmov 0  }
  0x86   : > { %2155 = vmatprep.mubr.bf16.mxu1 %v4264_v48  ;;  %4548 = vmatprep.mubr.msk.bf16.mxu0 %vm4546_vm14, %v4547_v3  ;;  %v918_v48 = vrot.slane %v6131_v19, 1  ;;  %v4455_v19 = vpack.c.bf16 %v908_v45, %v907_v0  ;;  %v5398_v3 = vld [vmem:[%s5796_s28] sm:$0xff]   ;;  %v4263_v17 = vcombine.low %v7326_v32, %v6202_v56  ;;  %v7327_v53 = vand.u32 7, %v5870_v27 }
  0x87   : > { %4759 = vmatpush3.bf16.msra.mxu0 %v5393_v25  ;;  %4799 = vmatpush3.bf16.msra.mxu1 %v5394_v37  ;;  %v5400_v37 = vld [vmem:[%s5796_s28 + $0x178] sm:$0xff]   ;;  %v5441_v25 = vld [vmem:[%s5796_s28 + $0x328] sm:$0xff]  }
  0x88   : > { %4551 = vmatmul.mubr.msk.bf16.gmra.mxu0 %vm4546_vm14, %v4550_v2  ;;  %4760 = vmatprep.subr.bf16.mxu0 %v5395_v44  ;;  %v6348_v2 = vsel %vm925_vm10, %v7325_v13, %v911_v29  ;;  %vm6356_vm1 = vcmp.lt.s32.totalorder %v7327_v53, 7  ;;  %v6364_v29 = vcombine.low %v4455_v19, %v7326_v32  ;;  %v6371_v0 = vsel %vm925_vm10, %v916_v35, %v918_v48  ;;  %v5401_v13 = vld [vmem:[%s5796_s28 + $0xb8] sm:$0xff]  }
  0x89   : > { %4554 = vmatprep.mubr.msk.bf16.mxu0 %vm4552_vm4, %v4553_v33  ;;  %4800 = vmatprep.subr.bf16.mxu1 %v5396_v26  ;;  %v6361_v33 = vcombine.high %v4455_v19, %v7326_v32  ;;  %v4556_v56 = vpack.c.bf16 %v6342_v15, %v6348_v2  ;;  %v7330_v44 = vrot.slane %v5927_v52, 1  ;;  %v915_v26 = vrot.slane %v6062_v55, 1  ;;  %v5403_v55 = vld [vmem:[%s5796_s28 + $0xf0] sm:$0xff]   ;;  %v5448_v53 = vld [vmem:[%s5796_s28 + $0x3d8] sm:$0xff]  }
  0x8a   : > { %v917_v19 = vrot.slane %v6154_v62, 1  ;;  %v7331_v52 = vand.u32 7, %v5881_v36  ;;  %v5404_v62 = vld [vmem:[%s5796_s28 + $0x170] sm:$0xff]   ;;  %v958_v39 = vsel %vm6219_vm15, %v6348_v2, 0.0  ;;  %v5418_v2 = vld [vmem:[%s5796_s28 + $0x118] sm:$0xff]  }
  0x8b   : > { %4761 = vmatpush3.bf16.msra.mxu0 %v5397_v8  ;;  %4801 = vmatpush3.bf16.msra.mxu1 %v5398_v3  ;;  %v6377_v45 = vsel %vm925_vm10, %v7330_v44, %v916_v35  ;;  %v6382_v8 = vpack.c.bf16 %v5974_v7, %v5962_v4  ;;  %v5402_v3 = vld [vmem:[%s5796_s28 + $0x138] sm:$0xff]   ;;  %v920_v7 = vrot.slane %v6134_v21, 1  ;;  %v922_v35 = vrot.slane %v6248_v24, 1 }
  0x8c   : > { %4826 = vmatprep.subr.bf16.mxu0 %v5399_v28  ;;  %4866 = vmatprep.subr.bf16.mxu1 %v5400_v37  ;;  %vm6389_vm2 = vcmp.lt.s32.totalorder %v7331_v52, 7  ;;  %v4559_v4 = vpack.c.bf16 %v6371_v0, %v6377_v45  ;;  %v6410_v28 = vsel %vm925_vm10, %v915_v26, %v917_v19  ;;  %v6414_v37 = vsel %vm925_vm10, %v913_v61, %v915_v26  ;;  %v5407_v61 = vld [vmem:[%s5796_s28 + $0xe8] sm:$0xff]  }
  0x8d   : > { %vm4558_vm6 = vmpackc.low %vm6389_vm2, %vm6356_vm1  ;;  %v6428_v44 = vpack.c.bf16 %v6078_v11, %v5951_v1  ;;  %v4562_v26 = vpack.c.bf16 %v6410_v28, %v6414_v37  ;;  %v6440_v52 = vsel %vm925_vm10, %v918_v48, %v920_v7  ;;  %v5409_v1 = vld [vmem:[%s5796_s28 + $0xa8] sm:$0xff]   ;;  %v921_v11 = vrot.slane %v6251_v34, 1 }
  0x8e   : > { %2156 = vmatmul.mubr.bf16.vlgmr.msra.gmra.mxu1 %v4263_v17  ;;  %v5405_v17 = vld [vmem:[%s5796_s28 + $0xb0] sm:$0xff]   ;;  %v7337_v48 = vand.u32 7, %v5896_v42 }
  0x8f   : > { %4867 = vmatpush3.bf16.msra.mxu1 %v5402_v3  ;;  %4596 = vmatprep.mubr.msk.bf16.mxu1 %vm6312_vm3, %v6382_v8  ;;  %v6436_v3 = vsel %vm925_vm10, %v920_v7, %v922_v35  ;;  %v5456_v7 = vld [vmem:[%s5796_s28 + $0x3c8] sm:$0xff]  }
  0x90   : > { %4557 = vmatmul.mubr.msk.bf16.vlgmr.msra.gmra.mxu0 %vm4552_vm4, %v4556_v56  ;;  %4868 = vmatprep.subr.bf16.mxu1 %v5404_v62  ;;  %v5406_v56 = vld [vmem:[%s5796_s28 + $0x130] sm:$0xff]   ;;  %v7334_v62 = vand.u32 7, %v5885_v38  ;;  %vm6458_vm13 = vcmp.lt.s32.totalorder %v7337_v48, 7  ;;  %v4565_v34 = vpack.c.bf16 %v6436_v3, %v6440_v52  ;;  %vm6497_vm4 = vmpackc.low %vm6044_vm7, %vm6013_vm5  ;;  %vm6537_vm5 = vcmp.lt.s32.totalorder %v7343_v54, 7 }
  0x91   : > { %4827 = vmatpush3.bf16.msra.mxu0 %v5401_v13  ;;  %4560 = vmatprep.mubr.msk.bf16.mxu0 %vm4558_vm6, %v4559_v4  ;;  %v5408_v13 = vld [vmem:[%s5796_s28 + $0x168] sm:$0xff]   ;;  %vm4570_vm7 = vmpackc.low %vm6109_vm11, %vm6537_vm5  ;;  %v5435_v54 = vld [vmem:[%s5796_s28 + $0x370] sm:$0xff]  }
  0x92   : > { %4828 = vmatprep.subr.bf16.mxu0 %v5403_v55  ;;  %v919_v55 = vrot.slane %v6157_v50, 1  ;;  %v5410_v4 = vld [vmem:[%s5796_s28 + $0x128] sm:$0xff]   ;;  %vm6448_vm12 = vcmp.lt.s32.totalorder %v7334_v62, 7  ;;  %v5411_v50 = vld [vmem:[%s5796_s28 + $0xe0] sm:$0xff]   ;;  %vm6689_vm11 = vmpackc.low %vm6537_vm5, %vm6458_vm13 }
  0x93   : > { %4869 = vmatpush3.bf16.msra.mxu1 %v5406_v56  ;;  %vm4564_vm14 = vmpackc.low %vm6458_vm13, %vm6448_vm12  ;;  %v6668_v56 = vpack.c.bf16 %v6248_v24, %v6134_v21  ;;  %v5452_v21 = vld [vmem:[%s5796_s28 + $0x3d0] sm:$0xff]  }
  0x94   : > { %4870 = vmatprep.subr.bf16.mxu1 %v5408_v13  ;;  %v5413_v13 = vld [vmem:[%s5796_s28 + $0xa0] sm:$0xff]   ;;  %v6477_v62 = vsel %vm925_vm10, %v919_v55, %v921_v11  ;;  %v6481_v48 = vsel %vm925_vm10, %v917_v19, %v919_v55  ;;  %v5415_v19 = vld [vmem:[%s5796_s28 + $0xd8] sm:$0xff]   ;;  %v5453_v24 = vld [vmem:[%s5796_s28 + $0x310] sm:$0xff]  }
  0x95   : > { %4829 = vmatpush3.bf16.msra.mxu0 %v5405_v17  ;;  %v5412_v17 = vld [vmem:[%s5796_s28 + $0x160] sm:$0xff]   ;;  %v4568_v22 = vpack.c.bf16 %v6477_v62, %v6481_v48  ;;  %v5416_v55 = vld [vmem:[%s5796_s28 + $0x158] sm:$0xff]  }
  0x96   : > { %4830 = vmatprep.subr.bf16.mxu0 %v5407_v61  ;;  %4599 = vmatmul.mubr.msk.bf16.gmra.mxu1 %vm6312_vm3, %v6428_v44  ;;  %v6472_v61 = vpack.c.bf16 %v6180_v63, %v5970_v6  ;;  %v6503_v6 = vpack.c.bf16 %v6191_v59, %v6091_v14  ;;  %v7342_v14 = vrot.slane %v5939_v58, 1  ;;  %v5419_v58 = vld [vmem:[%s5796_s28 + $0xd0] sm:$0xff]  }
  0x97   : > { %4871 = vmatpush3.bf16.msra.mxu1 %v5410_v4  ;;  %v5417_v4 = vld [vmem:[%s5796_s28 + $0x98] sm:$0xff]   ;;  %v5473_v63 = vld [vmem:[%s5796_s28 + $0x450] sm:$0xff]  }
  0x98   : > { %4563 = vmatmul.mubr.msk.bf16.gmra.mxu0 %vm4558_vm6, %v4562_v26  ;;  %4872 = vmatprep.subr.bf16.mxu1 %v5412_v17  ;;  %v5414_v26 = vld [vmem:[%s5796_s28 + $0x120] sm:$0xff]   ;;  %v6519_v59 = vsel %vm925_vm10, %v922_v35, %v7342_v14  ;;  %v7346_v17 = vrot.slane %v5936_v57, 1  ;;  %v6564_v57 = vpack.c.bf16 %v6299_v31, %v6187_v9  ;;  %v5423_v31 = vld [vmem:[%s5796_s28 + $0xc8] sm:$0xff]  }
  0x99   : > { %4831 = vmatpush3.bf16.msra.mxu0 %v5409_v1  ;;  %4566 = vmatprep.mubr.msk.bf16.mxu0 %vm4564_vm14, %v4565_v34  ;;  %v959_v1 = vsel %vm6219_vm15, %v6263_v43, 0.0  ;;  %v4571_v35 = vpack.c.bf16 %v6119_v5, %v6519_v59  ;;  %v5420_v34 = vld [vmem:[%s5796_s28 + $0x150] sm:$0xff]   ;;  %v4456_v5 = vpack.c.bf16 %v5915_v47, %v5912_v46  ;;  %v5424_v9 = vld [vmem:[%s5796_s28 + $0x148] sm:$0xff]   ;;  %v5478_v46 = vld [vmem:[%s5796_s28 + $0x400] sm:$0xff]  }
  0x9a   : > { %4832 = vmatprep.subr.bf16.mxu0 %v5411_v50  ;;  %4602 = vmatprep.mubr.msk.bf16.mxu1 %vm6497_vm4, %v6472_v61  ;;  %v4464_v50 = vpack.c.bf16 %v959_v1, %v958_v39  ;;  %v5429_v39 = vld [vmem:[%s5796_s28 + $0x80] sm:$0xff]   ;;  %v5431_v1 = vld [vmem:[%s5796_s28 + $0x378] sm:$0xff]   ;;  %v5457_v43 = vld [vmem:[%s5796_s28 + $0x308] sm:$0xff]  }
  0x9b   : > { %4873 = vmatpush3.bf16.msra.mxu1 %v5414_v26  ;;  %v5421_v26 = vld [vmem:[%s5796_s28 + $0x90] sm:$0xff]   ;;  %v4266_v12 = vcombine.high %v7326_v32, %v4456_v5  ;;  %v4265_v60 = vcombine.low %v7326_v32, %v4456_v5  ;;  %v6643_v5 = vpack.c.bf16 %v6440_v52, %v6371_v0  ;;  %v6659_v0 = vpack.c.bf16 %v6481_v48, %v6410_v28  ;;  %v5447_v52 = vld [vmem:[%s5796_s28 + $0x358] sm:$0xff]  }
  0x9c   : > { %4874 = vmatprep.subr.bf16.mxu1 %v5416_v55  ;;  %v5430_v55 = vld [vmem:[%s5796_s28 + $0x100] sm:$0xff]   ;;  %v4267_v14 = vcombine.low %v7326_v32, %v4464_v50  ;;  %v5450_v28 = vld [vmem:[%s5796_s28 + $0x398] sm:$0xff]   ;;  %v5451_v48 = vld [vmem:[%s5796_s28 + $0x350] sm:$0xff]  }
  0x9d   : > { %4833 = vmatpush3.bf16.msra.mxu0 %v5413_v13  ;;  %v6548_v13 = vsel %vm925_vm10, %v921_v11, %v7346_v17  ;;  %vm6575_vm10 = vmpackc.low %vm6082_vm9, %vm6050_vm8  ;;  %v5428_v11 = vld [vmem:[%s5796_s28 + $0x140] sm:$0xff]  }
  0x9e   : > { %4834 = vmatprep.subr.bf16.mxu0 %v5415_v19  ;;  %4605 = vmatmul.mubr.msk.bf16.gmra.mxu1 %vm6497_vm4, %v6503_v6  ;;  %v5422_v19 = vld [vmem:[%s5796_s28 + $0x110] sm:$0xff]   ;;  %v4574_v47 = vpack.c.bf16 %v6127_v10, %v6548_v13  ;;  %v5426_v10 = vld [vmem:[%s5796_s28 + $0x108] sm:$0xff]   ;;  %vm6621_vm8 = vmpackc.low %vm6356_vm1, %vm6234_vm0 }
  0x9f   : > { %4875 = vmatpush3.bf16.msra.mxu1 %v5418_v2  ;;  %v5433_v2 = vld [vmem:[%s5796_s28 + $0x338] sm:$0xff]   ;;  %vm6653_vm9 = vmpackc.low %vm6448_vm12, %vm6389_vm2 }
  0xa0   : > { %4569 = vmatmul.mubr.msk.bf16.gmra.mxu0 %vm4564_vm14, %v4568_v22  ;;  %v6553_v22 = vpack.c.bf16 %v6291_v40, %v6174_v18  ;;  %4876 = vmatprep.subr.bf16.mxu1 %v5420_v34  ;;  %v4268_v18 = vcombine.high %v7326_v32, %v4464_v50  ;;  %v5427_v40 = vld [vmem:[%s5796_s28 + $0xc0] sm:$0xff]   ;;  %v5437_v32 = vld [vmem:[%s5796_s28 + $0x330] sm:$0xff]   ;;  %v6614_v50 = vpack.c.bf16 %v6377_v45, %v6257_v51  ;;  %v5439_v51 = vld [vmem:[%s5796_s28 + $0x368] sm:$0xff]  }
  0xa1   : > { %4835 = vmatpush3.bf16.msra.mxu0 %v5417_v4  ;;  %4572 = vmatprep.mubr.msk.bf16.mxu0 %vm4570_vm7, %v4571_v35  ;;  %v5432_v4 = vld [vmem:[%s5796_s28 + $0x3f8] sm:$0xff]   ;;  %v5436_v35 = vld [vmem:[%s5796_s28 + $0x3f0] sm:$0xff]   ;;  %v7351_v45 = vld [vmem:[#allocation25_spill] sm:$0xff] }
  0xa2   : > { %4836 = vmatprep.subr.bf16.mxu0 %v5419_v58  ;;  %4608 = vmatprep.mubr.msk.bf16.mxu1 %vm6575_vm10, %v6553_v22  ;;  %v5434_v58 = vld [vmem:[%s5796_s28 + $0x3b8] sm:$0xff]   ;;  %v5438_v34 = vld [vmem:[%s5796_s28 + $0x3b0] sm:$0xff]  }
  0xa3   : > { %4877 = vmatpush3.bf16.msra.mxu1 %v5422_v19  ;;  %v5444_v19 = vld [vmem:[%s5796_s28 + $0x3e0] sm:$0xff]  }
  0xa4   : > { %4878 = vmatprep.subr.bf16.mxu1 %v5424_v9 }
  0xa5   : > { %4837 = vmatpush3.bf16.msra.mxu0 %v5421_v26  ;;  %v6627_v26 = vpack.c.bf16 %v6414_v37, %v6342_v15  ;;  %v5442_v15 = vld [vmem:[%s5796_s28 + $0x3a8] sm:$0xff]   ;;  %v5443_v37 = vld [vmem:[%s5796_s28 + $0x360] sm:$0xff]  }
  0xa6   : > { %4838 = vmatprep.subr.bf16.mxu0 %v5423_v31  ;;  %4611 = vmatmul.mubr.msk.bf16.gmra.mxu1 %vm6575_vm10, %v6564_v57  ;;  %v5445_v31 = vld [vmem:[%s5796_s28 + $0x320] sm:$0xff]  }
  0xa7   : > { %2285 = vmatprep.mubr.bf16.mxu1 %v4268_v18  ;;  %4879 = vmatpush3.bf16.msra.mxu1 %v5426_v10  ;;  %v5446_v18 = vld [vmem:[%s5796_s28 + $0x3a0] sm:$0xff]   ;;  %v6679_v10 = vpack.c.bf16 %v6519_v59, %v6436_v3  ;;  %v6695_v3 = vpack.c.bf16 %v6548_v13, %v6477_v62  ;;  %v5455_v59 = vld [vmem:[%s5796_s28 + $0x348] sm:$0xff]  }
  0xa8   : > { %4575 = vmatmul.mubr.msk.bf16.gmra.mxu0 %vm4570_vm7, %v4574_v47  ;;  %4880 = vmatprep.subr.bf16.mxu1 %v5428_v11  ;;  %v7352_v47 = vld [vmem:[#allocation27_spill] sm:$0xff]  ;;  %v5458_v62 = vld [vmem:[%s5796_s28 + $0x388] sm:$0xff]   ;;  %v5459_v13 = vld [vmem:[%s5796_s28 + $0x340] sm:$0xff]  }
  0xa9   : > { %4839 = vmatpush3.bf16.msra.mxu0 %v5425_v41  ;;  %2220 = vmatprep.mubr.bf16.mxu0 %v4266_v12  ;;  %v5449_v41 = vld [vmem:[%s5796_s28 + $0x318] sm:$0xff]   ;;  %v7355_v12 = vld [vmem:[#allocation28_spill] sm:$0xff] }
  0xaa   : > { %4840 = vmatprep.subr.bf16.mxu0 %v5427_v40  ;;  %v5454_v40 = vld [vmem:[%s5796_s28 + $0x390] sm:$0xff]  }
  0xab   : > { %4881 = vmatpush3.bf16.msra.mxu1 %v5430_v55  ;;  %v5460_v55 = vld [vmem:[%s5796_s28 + $0x3c0] sm:$0xff]  }
  0xac   : > { %4946 = vmatprep.subr.bf16.mxu1 %v5432_v4  ;;  %v5464_v4 = vld [vmem:[%s5796_s28 + $0x438] sm:$0xff]  }
  0xad   : > { %4841 = vmatpush3.bf16.msra.mxu0 %v5429_v39  ;;  %v7358_v39 = vld [vmem:[#allocation31_spill] sm:$0xff] }
  0xae   : > { %4906 = vmatprep.subr.bf16.mxu0 %v5431_v1  ;;  %2286 = vmatmul.mubr.bf16.vlgmr.msra.gmra.mxu1 %v4267_v14  ;;  %v5462_v14 = vld [vmem:[%s5796_s28 + $0x380] sm:$0xff]   ;;  %v5463_v1 = vld [vmem:[%s5796_s28 + $0x478] sm:$0xff]  }
  0xaf   : > { %4947 = vmatpush3.bf16.msra.mxu1 %v5434_v58  ;;  %4614 = vmatprep.mubr.msk.bf16.mxu1 %vm6621_vm8, %v6614_v50  ;;  %v5468_v58 = vld [vmem:[%s5796_s28 + $0x428] sm:$0xff]  }
  0xb0   : > { %2221 = vmatmul.mubr.bf16.vlgmr.msra.gmra.mxu0 %v4265_v60  ;;  %4948 = vmatprep.subr.bf16.mxu1 %v5436_v35  ;;  %v5461_v60 = vld [vmem:[%s5796_s28 + $0x300] sm:$0xff]  }
  0xb1   : > { %4907 = vmatpush3.bf16.msra.mxu0 %v5433_v2  ;;  %2228 = vmatprep.mubr.bf16.mxu0 %v6019_v23  ;;  %v5465_v2 = vld [vmem:[%s5796_s28 + $0x470] sm:$0xff]   ;;  %v7359_v35 = vld [vmem:[#allocation24_spill] sm:$0xff] }
  0xb2   : > { %4908 = vmatprep.subr.bf16.mxu0 %v5435_v54  ;;  %v5472_v54 = vld [vmem:[%s5796_s28 + $0x418] sm:$0xff]  }
  0xb3   : > { %4949 = vmatpush3.bf16.msra.mxu1 %v5438_v34  ;;  %v5477_v34 = vld [vmem:[%s5796_s28 + $0x440] sm:$0xff]  }
  0xb4   : > { %4950 = vmatprep.subr.bf16.mxu1 %v5440_v30 }
  0xb5   : > { %4909 = vmatpush3.bf16.msra.mxu0 %v5437_v32  ;;  %v5476_v32 = vld [vmem:[%s5796_s28 + $0x408] sm:$0xff]  }
  0xb6   : > { %4910 = vmatprep.subr.bf16.mxu0 %v5439_v51  ;;  %4617 = vmatmul.mubr.msk.bf16.gmra.mxu1 %vm6621_vm8, %v6627_v26 }
  0xb7   : > { %4951 = vmatpush3.bf16.msra.mxu1 %v5442_v15  ;;  %4620 = vmatprep.mubr.msk.bf16.mxu1 %vm6653_vm9, %v6643_v5 }
  0xb8   : > { %2229 = vmatmul.mubr.bf16.gmra.mxu0 %v7351_v45  ;;  %4952 = vmatprep.subr.bf16.mxu1 %v5444_v19 }
  0xb9   : > { %4911 = vmatpush3.bf16.msra.mxu0 %v5441_v25  ;;  %2236 = vmatprep.mubr.bf16.mxu0 %v7352_v47 }
  0xba   : > { %4912 = vmatprep.subr.bf16.mxu0 %v5443_v37 }
  0xbb   : > { %4953 = vmatpush3.bf16.msra.mxu1 %v5446_v18 }
  0xbc   : > { %4954 = vmatprep.subr.bf16.mxu1 %v5448_v53 }
  0xbd   : > { %4913 = vmatpush3.bf16.msra.mxu0 %v5445_v31 }
  0xbe   : > { %4914 = vmatprep.subr.bf16.mxu0 %v5447_v52  ;;  %4623 = vmatmul.mubr.msk.bf16.gmra.mxu1 %vm6653_vm9, %v6659_v0 }
  0xbf   : > { %4955 = vmatpush3.bf16.msra.mxu1 %v5450_v28  ;;  %4626 = vmatprep.mubr.msk.bf16.mxu1 %vm6689_vm11, %v6679_v10 }
  0xc0   : > { %2237 = vmatmul.mubr.bf16.gmra.mxu0 %v7355_v12  ;;  %4956 = vmatprep.subr.bf16.mxu1 %v5452_v21 }
  0xc1   : > { %4915 = vmatpush3.bf16.msra.mxu0 %v5449_v41  ;;  %2244 = vmatprep.mubr.bf16.mxu0 %v6668_v56 }
  0xc2   : > { %4916 = vmatprep.subr.bf16.mxu0 %v5451_v48 }
  0xc3   : > { %4957 = vmatpush3.bf16.msra.mxu1 %v5454_v40 }
  0xc4   : > { %4958 = vmatprep.subr.bf16.mxu1 %v5456_v7 }
  0xc5   : > { %4917 = vmatpush3.bf16.msra.mxu0 %v5453_v24 }
  0xc6   : > { %4918 = vmatprep.subr.bf16.mxu0 %v5455_v59  ;;  %4629 = vmatmul.mubr.msk.bf16.gmra.mxu1 %vm6689_vm11, %v6695_v3 }
  0xc7   : > { %4959 = vmatpush3.bf16.msra.mxu1 %v5458_v62  ;;  %2847 = vmatprep.mubr.bf16.mxu1 %v6019_v23  ;;  %v5466_v23 = vld [vmem:[%s5796_s28 + $0x430] sm:$0xff]  }
  0xc8   : > { %2245 = vmatmul.mubr.bf16.gmra.mxu0 %v7358_v39  ;;  %4960 = vmatprep.subr.bf16.mxu1 %v5460_v55 }
  0xc9   : > { %4919 = vmatpush3.bf16.msra.mxu0 %v5457_v43  ;;  %4632 = vmatprep.mubr.msk.bf16.mxu0 %vm6312_vm3, %v6382_v8  ;;  %v5467_v8 = vld [vmem:[%s5796_s28 + $0x468] sm:$0xff]  }
  0xca   : > { %4920 = vmatprep.subr.bf16.mxu0 %v5459_v13 }
  0xcb   : > { %4961 = vmatpush3.bf16.msra.mxu1 %v5462_v14 }
  0xcc   : > { %5238 = vmatprep.subr.bf16.mxu1 %v5463_v1 }
  0xcd   : > { %4921 = vmatpush3.bf16.msra.mxu0 %v5461_v60 }
  0xce   : > { %4986 = vmatprep.subr.bf16.mxu0 %v5463_v1  ;;  %2848 = vmatmul.mubr.bf16.vlgmr.msra.gmra.mxu1 %v7351_v45 }
  0xcf   : > { %5246 = vmatpush3.bf16.msra.mxu1 %v5464_v4  ;;  %2855 = vmatprep.mubr.bf16.mxu1 %v7352_v47 }
  0xd0   : > { %4635 = vmatmul.mubr.msk.bf16.vlgmr.msra.gmra.mxu0 %vm6312_vm3, %v6428_v44  ;;  %5239 = vmatprep.subr.bf16.mxu1 %v5465_v2  ;;  %v5470_v44 = vld [vmem:[%s5796_s28 + $0x420] sm:$0xff]  }
  0xd1   : > { %4987 = vmatpush3.bf16.msra.mxu0 %v5464_v4  ;;  %4638 = vmatprep.mubr.msk.bf16.mxu0 %vm6497_vm4, %v6472_v61  ;;  %v5471_v61 = vld [vmem:[%s5796_s28 + $0x458] sm:$0xff]  }
  0xd2   : > { %4988 = vmatprep.subr.bf16.mxu0 %v5465_v2 }
  0xd3   : > { %5247 = vmatpush3.bf16.msra.mxu1 %v5466_v23 }
  0xd4   : > { %5240 = vmatprep.subr.bf16.mxu1 %v5467_v8 }
  0xd5   : > { %4989 = vmatpush3.bf16.msra.mxu0 %v5466_v23 }
  0xd6   : > { %4990 = vmatprep.subr.bf16.mxu0 %v5467_v8  ;;  %2856 = vmatmul.mubr.bf16.gmra.mxu1 %v7355_v12 }
  0xd7   : > { %5248 = vmatpush3.bf16.msra.mxu1 %v5468_v58  ;;  %2863 = vmatprep.mubr.bf16.mxu1 %v6668_v56 }
  0xd8   : > { %4641 = vmatmul.mubr.msk.bf16.gmra.mxu0 %vm6497_vm4, %v6503_v6  ;;  %5241 = vmatprep.subr.bf16.mxu1 %v5469_v49  ;;  %v5474_v6 = vld [vmem:[%s5796_s28 + $0x410] sm:$0xff]  }
  0xd9   : > { %4991 = vmatpush3.bf16.msra.mxu0 %v5468_v58  ;;  %4644 = vmatprep.mubr.msk.bf16.mxu0 %vm6575_vm10, %v6553_v22  ;;  %v5475_v22 = vld [vmem:[%s5796_s28 + $0x448] sm:$0xff]   ;;  %s7369_s28 = scalar_lea.vmem %s7235_s3, %s7403_s13 }
  0xda   : > { %4992 = vmatprep.subr.bf16.mxu0 %v5469_v49 }
  0xdb   : > { %5249 = vmatpush3.bf16.msra.mxu1 %v5470_v44 }
  0xdc   : > { %5242 = vmatprep.subr.bf16.mxu1 %v5471_v61 }
  0xdd   : > { %4993 = vmatpush3.bf16.msra.mxu0 %v5470_v44 }
  0xde   : > { %4994 = vmatprep.subr.bf16.mxu0 %v5471_v61  ;;  %2864 = vmatmul.mubr.bf16.gmra.mxu1 %v7358_v39 }
  0xdf   : > { %5250 = vmatpush3.bf16.msra.mxu1 %v5472_v54  ;;  %2871 = vmatprep.mubr.bf16.mxu1 %v7359_v35 }
  0xe0   : > { %4647 = vmatmul.mubr.msk.bf16.gmra.mxu0 %vm6575_vm10, %v6564_v57  ;;  %5243 = vmatprep.subr.bf16.mxu1 %v5473_v63  ;;  %v7360_v57 = vld [vmem:[#allocation26_spill] sm:$0xff] }
  0xe1   : > { %4995 = vmatpush3.bf16.msra.mxu0 %v5472_v54  ;;  %2806 = vmatprep.mubr.bf16.mxu0 %v6361_v33  ;;  %v7361_v33 = vld [vmem:[#allocation29_spill] sm:$0xff] }
  0xe2   : > { %4996 = vmatprep.subr.bf16.mxu0 %v5473_v63 }
  0xe3   : > { %5251 = vmatpush3.bf16.msra.mxu1 %v5474_v6 }
  0xe4   : > { %5244 = vmatprep.subr.bf16.mxu1 %v5475_v22 }
  0xe5   : > { %4997 = vmatpush3.bf16.msra.mxu0 %v5474_v6 }
  0xe6   : > { %4998 = vmatprep.subr.bf16.mxu0 %v5475_v22  ;;  %2872 = vmatmul.mubr.bf16.gmra.mxu1 %v7360_v57 }
  0xe7   : > { %5252 = vmatpush3.bf16.msra.mxu1 %v5476_v32  ;;  %4662 = vmatprep.mubr.msk.bf16.mxu1 %vm6689_vm11, %v6679_v10 }
  0xe8   : > { %2807 = vmatmul.mubr.bf16.gmra.mxu0 %v6364_v29  ;;  %5245 = vmatprep.subr.bf16.mxu1 %v5477_v34  ;;  %v7362_v29 = vld [vmem:[#allocation30_spill] sm:$0xff] }
  0xe9   : > { %4999 = vmatpush3.bf16.msra.mxu0 %v5476_v32  ;;  %4650 = vmatprep.mubr.msk.bf16.mxu0 %vm6621_vm8, %v6614_v50 }
  0xea   : > { %5000 = vmatprep.subr.bf16.mxu0 %v5477_v34 }
  0xeb   : > { %5253 = vmatpush3.bf16.msra.mxu1 %v5478_v46 }
  0xed   : > { %5001 = vmatpush3.bf16.msra.mxu0 %v5478_v46 }
  0xee   : > { %4665 = vmatmul.mubr.msk.bf16.vlgmr.msra.gmra.mxu1 %vm6689_vm11, %v6695_v3 }
  0xef   : > { %2936 = vmatprep.mubr.bf16.mxu1 %v7361_v33 }
  0xf0   : > { %4653 = vmatmul.mubr.msk.bf16.vlgmr.msra.gmra.mxu0 %vm6621_vm8, %v6627_v26 }
  0xf1   : > { %4656 = vmatprep.mubr.msk.bf16.mxu0 %vm6653_vm9, %v6643_v5 }
  0xf6   : > { %2937 = vmatmul.mubr.bf16.gmra.mxu1 %v7362_v29 }
  0xf8   : > { %4659 = vmatmul.mubr.msk.bf16.gmra.mxu0 %vm6653_vm9, %v6659_v0 }
 0x12c   : > { %v4682_v51 = vpop.f32.mrf.mxu0 }
 0x12d   : > { %v4722_v50 = vpop.f32.mrf.mxu1 }
 0x12e   : > { %v4683_v30 = vpop.f32.mrf.mxu0 }
 0x12f   : > { %v4723_v17 = vpop.f32.mrf.mxu1  ;;  %v4684_v45 = vadd.f32 %v4683_v30, %v4682_v51 }
 0x130   : > { %v4724_v26 = vadd.f32 %v4723_v17, %v4722_v50  ;;  %v4685_v15 = vpop.f32.mrf.mxu0 }
 0x131   : > { %v4725_v25 = vpop.f32.mrf.mxu1 }
 0x132   : > { %v1683_v19 = vadd.f32 %v4724_v26, %v4684_v45  ;;  %v4686_v5 = vpop.f32.mrf.mxu0 }
 0x133   : > { %v4726_v37 = vpop.f32.mrf.mxu1  ;;  %v4687_v18 = vadd.f32 %v4686_v5, %v4685_v15 }
 0x134   : > { %v4727_v47 = vadd.f32 %v4726_v37, %v4725_v25  ;;  %v4688_v9 = vpop.f32.mrf.mxu0 }
 0x135   : > { %v4728_v31 = vpop.f32.mrf.mxu1 }
 0x136   : > { %v1686_v53 = vadd.f32 %v4727_v47, %v4687_v18  ;;  %v4689_v41 = vpop.f32.mrf.mxu0 }
 0x137   : > { %v4729_v52 = vpop.f32.mrf.mxu1  ;;  %v4690_v12 = vadd.f32 %v4689_v41, %v4688_v9 }
 0x138   : > { %v4730_v0 = vadd.f32 %v4729_v52, %v4728_v31  ;;  %v4691_v48 = vpop.f32.mrf.mxu0 }
 0x139   : > { %v4731_v56 = vpop.f32.mrf.mxu1 }
 0x13a   : > { %v1691_v21 = vadd.f32 %v4730_v0, %v4690_v12  ;;  %v4692_v24 = vpop.f32.mrf.mxu0 }
 0x13b   : > { %v4732_v28 = vpop.f32.mrf.mxu1  ;;  %v4693_v11 = vadd.f32 %v4692_v24, %v4691_v48 }
 0x13c   : > { %v4733_v10 = vadd.f32 %v4732_v28, %v4731_v56 }
 0x13d   : > { %v4734_v40 = vpop.f32.mrf.mxu1 }
 0x13e   : > { %v1694_v59 = vadd.f32 %v4733_v10, %v4693_v11  ;;  %v4694_v7 = vpop.f32.mrf.mxu0 }
 0x13f   : > { %v4735_v3 = vpop.f32.mrf.mxu1 }
 0x140   : > { %v4736_v43 = vadd.f32 %v4735_v3, %v4734_v40  ;;  %v4695_v62 = vpop.f32.mrf.mxu0 }
 0x141   : > { %v4737_v39 = vpop.f32.mrf.mxu1  ;;  %v4696_v13 = vadd.f32 %v4695_v62, %v4694_v7 }
 0x142   : > { %v4697_v60 = vpop.f32.mrf.mxu0 }
 0x143   : > { %v4738_v55 = vpop.f32.mrf.mxu1  ;;  %v1699_v1 = vadd.f32 %v4736_v43, %v4696_v13 }
 0x144   : > { %v4739_v14 = vadd.f32 %v4738_v55, %v4737_v39  ;;  %v4698_v4 = vpop.f32.mrf.mxu0 }
 0x145   : > { %v4699_v2 = vadd.f32 %v4698_v4, %v4697_v60  ;;  %v4740_v23 = vpop.f32.mrf.mxu1 }
 0x147   : > { %v1702_v8 = vadd.f32 %v4739_v14, %v4699_v2  ;;  %v4741_v58 = vpop.f32.mrf.mxu1 }
 0x148   : > { %v4700_v49 = vpop.f32.mrf.mxu0  ;;  %v4742_v44 = vadd.f32 %v4741_v58, %v4740_v23 }
 0x149   : > { %v4743_v61 = vpop.f32.mrf.mxu1 }
 0x14a   : > { %v4701_v54 = vpop.f32.mrf.mxu0 }
 0x14b   : > { %v4702_v63 = vadd.f32 %v4701_v54, %v4700_v49  ;;  %v4744_v6 = vpop.f32.mrf.mxu1 }
 0x14c   : > { %v4703_v22 = vpop.f32.mrf.mxu0  ;;  %v4745_v35 = vadd.f32 %v4744_v6, %v4743_v61 }
 0x14d   : > { %v1707_v32 = vadd.f32 %v4742_v44, %v4702_v63 }
 0x14e   : > { %v4704_v34 = vpop.f32.mrf.mxu0  ;;  %v4802_v46 = vpop.f32.mrf.mxu1 }
 0x14f   : > { %v4705_v57 = vadd.f32 %v4704_v34, %v4703_v22 }
 0x150   : > { %v4762_v33 = vpop.f32.mrf.mxu0  ;;  %v4803_v50 = vpop.f32.mrf.mxu1 }
 0x151   : > { %v6776_v29 = vadd.f32 %v4745_v35, %v4705_v57  ;;  %v4804_v17 = vadd.f32 %v4803_v50, %v4802_v46 }
 0x152   : > { %v4763_v51 = vpop.f32.mrf.mxu0  ;;  %v4805_v30 = vpop.f32.mrf.mxu1 }
 0x153   : > { %v4764_v26 = vadd.f32 %v4763_v51, %v4762_v33 }
 0x154   : > { %v4765_v25 = vpop.f32.mrf.mxu0  ;;  %v4806_v15 = vpop.f32.mrf.mxu1 }
 0x155   : > { %v1748_v45 = vadd.f32 %v4764_v26, %v1683_v19  ;;  %v4807_v47 = vadd.f32 %v4806_v15, %v4805_v30 }
 0x156   : > { %v4766_v37 = vpop.f32.mrf.mxu0  ;;  %v4808_v18 = vpop.f32.mrf.mxu1 }
 0x157   : > { %v2158_v5 = vadd.f32 %v4804_v17, %v1748_v45  ;;  %v4767_v31 = vadd.f32 %v4766_v37, %v4765_v25 }
 0x158   : > { %v4768_v52 = vpop.f32.mrf.mxu0  ;;  %v4809_v0 = vpop.f32.mrf.mxu1 }
 0x159   : > { %v1751_v9 = vadd.f32 %v4767_v31, %v1686_v53  ;;  %v4810_v41 = vadd.f32 %v4809_v0, %v4808_v18 }
 0x15a   : > { %v4769_v56 = vpop.f32.mrf.mxu0  ;;  %v4811_v48 = vpop.f32.mrf.mxu1 }
 0x15b   : > { %v2161_v12 = vadd.f32 %v4807_v47, %v1751_v9  ;;  %v4770_v28 = vadd.f32 %v4769_v56, %v4768_v52 }
 0x15c   : > { %v4771_v10 = vpop.f32.mrf.mxu0  ;;  %v4812_v40 = vpop.f32.mrf.mxu1 }
 0x15d   : > { %v1756_v24 = vadd.f32 %v4770_v28, %v1691_v21  ;;  %v4813_v3 = vadd.f32 %v4812_v40, %v4811_v48 }
 0x15e   : > { %v4772_v11 = vpop.f32.mrf.mxu0  ;;  %v4814_v43 = vpop.f32.mrf.mxu1 }
 0x15f   : > { %v2166_v19 = vadd.f32 %v4810_v41, %v1756_v24  ;;  %v4773_v7 = vadd.f32 %v4772_v11, %v4771_v10 }
 0x160   : > { %v4774_v39 = vpop.f32.mrf.mxu0  ;;  %v4815_v13 = vpop.f32.mrf.mxu1 }
 0x161   : > { %v1759_v62 = vadd.f32 %v4773_v7, %v1694_v59  ;;  %v4816_v60 = vadd.f32 %v4815_v13, %v4814_v43 }
 0x162   : > { %v4775_v55 = vpop.f32.mrf.mxu0  ;;  %v4817_v4 = vpop.f32.mrf.mxu1 }
 0x163   : > { %v2169_v53 = vadd.f32 %v4813_v3, %v1759_v62  ;;  %v4776_v14 = vadd.f32 %v4775_v55, %v4774_v39 }
 0x164   : > { %v4777_v2 = vpop.f32.mrf.mxu0  ;;  %v4818_v58 = vpop.f32.mrf.mxu1 }
 0x165   : > { %v1764_v23 = vadd.f32 %v4776_v14, %v1699_v1  ;;  %v4819_v44 = vadd.f32 %v4818_v58, %v4817_v4 }
 0x166   : > { %v4778_v49 = vpop.f32.mrf.mxu0  ;;  %v4820_v54 = vpop.f32.mrf.mxu1 }
 0x167   : > { %v6778_v21 = vadd.f32 %v4816_v60, %v1764_v23  ;;  %v4779_v61 = vadd.f32 %v4778_v49, %v4777_v2 }
 0x168   : > { %v4780_v63 = vpop.f32.mrf.mxu0  ;;  %v4821_v22 = vpop.f32.mrf.mxu1 }
 0x169   : > { %v1767_v6 = vadd.f32 %v4779_v61, %v1702_v8  ;;  %v4822_v59 = vadd.f32 %v4821_v22, %v4820_v54 }
 0x16a   : > { %v4781_v35 = vpop.f32.mrf.mxu0  ;;  %v4823_v46 = vpop.f32.mrf.mxu1 }
 0x16b   : > { %v6780_v34 = vadd.f32 %v4819_v44, %v1767_v6  ;;  %v4782_v57 = vadd.f32 %v4781_v35, %v4780_v63 }
 0x16c   : > { %v4783_v33 = vpop.f32.mrf.mxu0  ;;  %v4824_v51 = vpop.f32.mrf.mxu1 }
 0x16d   : > { %v1772_v50 = vadd.f32 %v4782_v57, %v1707_v32  ;;  %v4825_v17 = vadd.f32 %v4824_v51, %v4823_v46 }
 0x16e   : > { %v4784_v1 = vpop.f32.mrf.mxu0  ;;  %v4882_v45 = vpop.f32.mrf.mxu1 }
 0x16f   : > { %v6782_v26 = vadd.f32 %v4822_v59, %v1772_v50  ;;  %v4785_v30 = vadd.f32 %v4784_v1, %v4783_v33 }
 0x170   : > { %v4842_v25 = vpop.f32.mrf.mxu0  ;;  %v4883_v37 = vpop.f32.mrf.mxu1 }
 0x171   : > { %v1775_v15 = vadd.f32 %v4785_v30, %v6776_v29  ;;  %v4884_v18 = vadd.f32 %v4883_v37, %v4882_v45 }
 0x172   : > { %v4843_v8 = vpop.f32.mrf.mxu0  ;;  %v4885_v9 = vpop.f32.mrf.mxu1 }
 0x173   : > { %v6785_v47 = vadd.f32 %v4825_v17, %v1775_v15  ;;  %v4844_v31 = vadd.f32 %v4843_v8, %v4842_v25 }
 0x174   : > { %v4845_v52 = vpop.f32.mrf.mxu0  ;;  %v4886_v56 = vpop.f32.mrf.mxu1 }
 0x175   : > { %7363 = vst [vmem:[#allocation25_spill] sm:$0xff] %v6785_v47  ;;  %v2223_v0 = vadd.f32 %v4844_v31, %v2158_v5  ;;  %v4887_v48 = vadd.f32 %v4886_v56, %v4885_v9 }
 0x176   : > { %v4846_v32 = vpop.f32.mrf.mxu0  ;;  %v4888_v24 = vpop.f32.mrf.mxu1 }
 0x177   : > { %v6787_v41 = vadd.f32 %v4884_v18, %v2223_v0  ;;  %v4847_v28 = vadd.f32 %v4846_v32, %v4845_v52 }
 0x178   : > { %v4848_v10 = vpop.f32.mrf.mxu0  ;;  %v4889_v29 = vpop.f32.mrf.mxu1 }
 0x179   : > { %v2226_v40 = vadd.f32 %v4847_v28, %v2161_v12  ;;  %v4890_v43 = vadd.f32 %v4889_v29, %v4888_v24 }
 0x17a   : > { %v4849_v11 = vpop.f32.mrf.mxu0  ;;  %v4891_v62 = vpop.f32.mrf.mxu1 }
 0x17b   : > { %v6789_v3 = vadd.f32 %v4887_v48, %v2226_v40  ;;  %v4850_v7 = vadd.f32 %v4849_v11, %v4848_v10 }
 0x17c   : > { %v4851_v39 = vpop.f32.mrf.mxu0  ;;  %v4892_v5 = vpop.f32.mrf.mxu1 }
 0x17d   : > { %7364 = vst [vmem:[#allocation27_spill] sm:$0xff] %v6789_v3  ;;  %v2231_v13 = vadd.f32 %v4850_v7, %v2166_v19  ;;  %v4893_v4 = vadd.f32 %v4892_v5, %v4891_v62 }
 0x17e   : > { %v4852_v55 = vpop.f32.mrf.mxu0  ;;  %v4894_v23 = vpop.f32.mrf.mxu1 }
 0x17f   : > { %v6791_v60 = vadd.f32 %v4890_v43, %v2231_v13  ;;  %v4853_v14 = vadd.f32 %v4852_v55, %v4851_v39 }
 0x180   : > { %v4854_v2 = vpop.f32.mrf.mxu0  ;;  %v4895_v12 = vpop.f32.mrf.mxu1 }
 0x181   : > { %7365 = vst [vmem:[#allocation28_spill] sm:$0xff] %v6791_v60  ;;  %v2234_v58 = vadd.f32 %v4853_v14, %v2169_v53  ;;  %v4896_v60 = vadd.f32 %v4895_v12, %v4894_v23 }
 0x182   : > { %v4855_v49 = vpop.f32.mrf.mxu0  ;;  %v4897_v54 = vpop.f32.mrf.mxu1 }
 0x183   : > { %v6793_v44 = vadd.f32 %v4893_v4, %v2234_v58  ;;  %v4856_v55 = vadd.f32 %v4855_v49, %v4854_v2 }
 0x184   : > { %v4857_v61 = vpop.f32.mrf.mxu0  ;;  %v4898_v6 = vpop.f32.mrf.mxu1 }
 0x185   : > { %7366 = vst [vmem:[#allocation31_spill] sm:$0xff] %v6793_v44  ;;  %v2239_v44 = vadd.f32 %v4856_v55, %v6778_v21 }
 0x186   : > { %v4858_v63 = vpop.f32.mrf.mxu0  ;;  %v4900_v35 = vpop.f32.mrf.mxu1 }
 0x187   : > { %v4859_v5 = vadd.f32 %v4858_v63, %v4857_v61  ;;  %v2304_v23 = vadd.f32 %v4896_v60, %v2239_v44 }
 0x188   : > { %v4860_v22 = vpop.f32.mrf.mxu0  ;;  %v4901_v59 = vpop.f32.mrf.mxu1 }
 0x189   : > { %v4902_v2 = vadd.f32 %v4901_v59, %v4900_v35  ;;  %v6819_v35 = vld [vmem:[%s7369_s28] ss:$0 sm:$0xff] }
 0x18a   : > { %v4861_v19 = vpop.f32.mrf.mxu0  ;;  %v6797_v46 = vpop.f32.mrf.mxu1 }
 0x18b   : > { %7367 = vst [vmem:[#allocation24_spill] sm:$0xff] %v6797_v46  ;;  %v4862_v4 = vadd.f32 %v4861_v19, %v4860_v22  ;;  %v4899_v46 = vadd.f32 %v4898_v6, %v4897_v54 }
 0x18c   : > { %v6795_v57 = vpop.f32.mrf.mxu0  ;;  %v6801_v50 = vpop.f32.mrf.mxu1 }
 0x18d   : > { %7368 = vst [vmem:[#allocation26_spill] sm:$0xff] %v6801_v50  ;;  %v2242_v50 = vadd.f32 %v4859_v5, %v6780_v34  ;;  %v2247_v3 = vadd.f32 %v4862_v4, %v6782_v26 }
 0x18e   : > { %v6799_v33 = vpop.f32.mrf.mxu0  ;;  %v4962_v51 = vpop.f32.mrf.mxu1 }
 0x18f   : > { %v2307_v12 = vadd.f32 %v4899_v46, %v2242_v50  ;;  %v2312_v6 = vadd.f32 %v4902_v2, %v2247_v3 }
 0x190   : > { %v4922_v53 = vpop.f32.mrf.mxu0  ;;  %v4963_v17 = vpop.f32.mrf.mxu1 }
 0x191   : > { %v4964_v42 = vadd.f32 %v4963_v17, %v4962_v51 }
 0x192   : > { %v4923_v1 = vpop.f32.mrf.mxu0  ;;  %v4965_v25 = vpop.f32.mrf.mxu1 }
 0x193   : > { %v4924_v16 = vadd.f32 %v4923_v1, %v4922_v53 }
 0x194   : > { %v4925_v30 = vpop.f32.mrf.mxu0  ;;  %v4966_v15 = vpop.f32.mrf.mxu1 }
 0x195   : > { %v4967_v61 = vadd.f32 %v4966_v15, %v4965_v25  ;;  %v2850_v22 = vadd.f32 %v4964_v42, %v4924_v16 }
 0x196   : > { %v4926_v45 = vpop.f32.mrf.mxu0  ;;  %v4968_v37 = vpop.f32.mrf.mxu1 }
 0x197   : > { %v4927_v49 = vadd.f32 %v4926_v45, %v4925_v30  ;;  %v4865_v30 = vadd.f32 %v6799_v33, %v6795_v57 }
 0x198   : > { %v4928_v8 = vpop.f32.mrf.mxu0  ;;  %v4969_v18 = vpop.f32.mrf.mxu1 }
 0x19a   : > { %v4929_v31 = vpop.f32.mrf.mxu0  ;;  %v6805_v9 = vpop.f32.mrf.mxu1 }
 0x19b   : > { %v4930_v26 = vadd.f32 %v4929_v31, %v4928_v8 }
 0x19c   : > { %v6803_v52 = vpop.f32.mrf.mxu0  ;;  %v6809_v32 = vpop.f32.mrf.mxu1 }
 0x19e   : > { %v6807_v0 = vpop.f32.mrf.mxu0  ;;  %v4974_v28 = vpop.f32.mrf.mxu1 }
 0x19f   : > { %v4933_v25 = vadd.f32 %v6807_v0, %v6803_v52 }
 0x1a0   : > { %v4934_v56 = vpop.f32.mrf.mxu0  ;;  %v4975_v10 = vpop.f32.mrf.mxu1 }
 0x1a1   : > { %v4976_v27 = vadd.f32 %v4975_v10, %v4974_v28  ;;  %v2853_v28 = vadd.f32 %v4967_v61, %v4927_v49 }
 0x1a2   : > { %v4935_v48 = vpop.f32.mrf.mxu0  ;;  %v4977_v40 = vpop.f32.mrf.mxu1 }
 0x1a3   : > { %v4936_v36 = vadd.f32 %v4935_v48, %v4934_v56 }
 0x1a4   : > { %v4937_v24 = vpop.f32.mrf.mxu0  ;;  %v4978_v29 = vpop.f32.mrf.mxu1 }
 0x1a5   : > { %v4979_v53 = vadd.f32 %v4978_v29, %v4977_v40  ;;  %v2866_v17 = vadd.f32 %v4976_v27, %v4936_v36  ;;  %v7370_v40 = vld [vmem:[#allocation27_spill] sm:$0xff] }
 0x1a6   : > { %v4938_v11 = vpop.f32.mrf.mxu0  ;;  %v4980_v43 = vpop.f32.mrf.mxu1 }
 0x1a7   : > { %v4939_v19 = vadd.f32 %v4938_v11, %v4937_v24 }
 0x1a8   : > { %v4940_v7 = vpop.f32.mrf.mxu0  ;;  %v4981_v62 = vpop.f32.mrf.mxu1 }
 0x1a9   : > { %v2869_v59 = vadd.f32 %v4979_v53, %v4939_v19  ;;  %v4982_v44 = vadd.f32 %v4981_v62, %v4980_v43 }
 0x1aa   : > { %v4941_v39 = vpop.f32.mrf.mxu0  ;;  %v4983_v14 = vpop.f32.mrf.mxu1 }
 0x1ab   : > { %v4942_v60 = vadd.f32 %v4941_v39, %v4940_v7  ;;  %v7371_v39 = vld [vmem:[#allocation25_spill] sm:$0xff] }
 0x1ac   : > { %v4943_v13 = vpop.f32.mrf.mxu0  ;;  %v4984_v38 = vpop.f32.mrf.mxu1  ;;  %v2250_v62 = vadd.f32 %v4865_v30, %v7371_v39 }
 0x1ad   : > { %v4985_v31 = vadd.f32 %v4984_v38, %v4983_v14  ;;  %v2874_v52 = vadd.f32 %v4982_v44, %v4942_v60 }
 0x1ae   : > { %v4944_v58 = vpop.f32.mrf.mxu0  ;;  %v5014_v47 = vpop.f32.mrf.mxu1 }
 0x1b0   : > { %v5002_v20 = vpop.f32.mrf.mxu0  ;;  %v5015_v1 = vpop.f32.mrf.mxu1 }
 0x1b1   : > { %v5016_v56 = vadd.f32 %v5015_v1, %v5014_v47 }
 0x1b2   : > { %v5003_v63 = vpop.f32.mrf.mxu0  ;;  %v5017_v54 = vpop.f32.mrf.mxu1 }
 0x1b3   : > { %v5004_v51 = vadd.f32 %v5003_v63, %v5002_v20  ;;  %v2931_v42 = vadd.f32 %v5016_v56, %v2866_v17  ;;  %v4970_v20 = vadd.f32 %v4969_v18, %v4968_v37  ;;  %v4945_v37 = vadd.f32 %v4944_v58, %v4943_v13 }
 0x1b4   : > { %v5005_v21 = vpop.f32.mrf.mxu0  ;;  %v5018_v47 = vpop.f32.mrf.mxu1 }
 0x1b5   : > { %v2915_v34 = vadd.f32 %v5004_v51, %v2850_v22  ;;  %v2949_v46 = vadd.f32 %v2931_v42, %v2304_v23  ;;  %v5019_v3 = vadd.f32 %v5018_v47, %v5017_v54  ;;  %v2858_v10 = vadd.f32 %v4970_v20, %v4930_v26  ;;  %v7374_v22 = vld [vmem:[#allocation28_spill] sm:$0xff] }
 0x1b6   : > { %v5006_v16 = vpop.f32.mrf.mxu0  ;;  %v5020_v8 = vpop.f32.mrf.mxu1  ;;  %v2877_v4 = vadd.f32 %v4985_v31, %v4945_v37 }
 0x1b7   : > { %v2945_v27 = vadd.f32 %v2915_v34, %v6787_v41  ;;  %v5007_v36 = vadd.f32 %v5006_v16, %v5005_v21  ;;  %v4973_v41 = vadd.f32 %v6809_v32, %v6805_v9  ;;  %v2934_v18 = vadd.f32 %v5019_v3, %v2869_v59  ;;  %v7372_v9 = vld [vmem:[#allocation24_spill] sm:$0xff]  ;;  %v7373_v32 = vld [vmem:[#allocation26_spill] sm:$0xff] }
 0x1b8   : > { %v5008_v50 = vpop.f32.mrf.mxu0  ;;  %v2964_v24 = vadd.f32 %v6819_v35, %v2949_v46  ;;  %v5021_v11 = vpop.f32.mrf.mxu1  ;;  %v4905_v38 = vadd.f32 %v7373_v32, %v7372_v9 }
 0x1b9   : > { %v2960_v45 = vadd.f32 %v6819_v35, %v2945_v27  ;;  %v2918_v15 = vadd.f32 %v5007_v36, %v2853_v28  ;;  %v2950_v29 = vadd.f32 %v2934_v18, %v2307_v12  ;;  %v5022_v7 = vadd.f32 %v5021_v11, %v5020_v8  ;;  %v7375_v27 = vld [vmem:[#allocation31_spill] sm:$0xff] }
 0x1ba   : > { %v5009_v48 = vpop.f32.mrf.mxu0  ;;  %v5023_v5 = vpop.f32.mrf.mxu1  ;;  %v2861_v14 = vadd.f32 %v4973_v41, %v4933_v25  ;;  %v2972_v61 = vmax.f32 %v2964_v24, 0.0  ;;  %v2315_v42 = vadd.f32 %v4905_v38, %v2250_v62 }
 0x1bb   : > { %v2946_v57 = vadd.f32 %v2918_v15, %v7370_v40  ;;  %v5010_v33 = vadd.f32 %v5009_v48, %v5008_v50  ;;  %v2968_v0 = vmax.f32 %v2960_v45, 0.0  ;;  %v2965_v58 = vadd.f32 %v6819_v35, %v2950_v29 }
 0x1bc   : > { %v5011_v43 = vpop.f32.mrf.mxu0  ;;  %v2939_v2 = vadd.f32 %v5022_v7, %v2874_v52  ;;  %v5024_v51 = vpop.f32.mrf.mxu1  ;;  %v2997_v31 = vmul.f32 %v2972_v61, %v2972_v61 }
 0x1bd   : > { %v2961_v13 = vadd.f32 %v6819_v35, %v2946_v57  ;;  %v2923_v55 = vadd.f32 %v5010_v33, %v2858_v10  ;;  %v2993_v1 = vmul.f32 %v2968_v0, %v2968_v0  ;;  %v2973_v17 = vmax.f32 %v2965_v58, 0.0  ;;  %v2992_v58 = vld [vmem:[#allocation5] sm:$0x1] }
 0x1be   : > { %v5012_v49 = vpop.f32.mrf.mxu0  ;;  %v2951_v56 = vadd.f32 %v2939_v2, %v2312_v6  ;;  %v5025_v21 = vadd.f32 %v5024_v51, %v5023_v5  ;;  %v2976_v5 = vld [vmem:[#allocation4] sm:$0x1] }
 0x1bf   : > { %v2969_v63 = vmax.f32 %v2961_v13, 0.0  ;;  %v2947_v19 = vadd.f32 %v2923_v55, %v7374_v22  ;;  %v5013_v53 = vadd.f32 %v5012_v49, %v5011_v43  ;;  %v4494_v28 = vpack.c.bf16 %v2973_v17, %v2972_v61 }
 0x1c0   : > { %v2942_v59 = vadd.f32 %v5025_v21, %v2877_v4  ;;  %v2966_v6 = vadd.f32 %v6819_v35, %v2951_v56  ;;  %v2998_v10 = vmul.f32 %v2973_v17, %v2973_v17 }
 0x1c1   : > { %v2977_v23 = vadd.f32 %v2969_v63, %v2968_v0  ;;  %v2994_v12 = vmul.f32 %v2969_v63, %v2969_v63  ;;  %v4484_v34 = vpack.c.bf16 %v2969_v63, %v2968_v0  ;;  %v2962_v54 = vadd.f32 %v6819_v35, %v2947_v19  ;;  %4502 = vst [vmem:[%s3050_s20 + $0x10] sm:$0xff] %v4494_v28  }
 0x1c2   : > { %v2926_v26 = vadd.f32 %v5013_v53, %v2861_v14  ;;  %v2952_v44 = vadd.f32 %v2942_v59, %v2315_v42  ;;  %v2974_v25 = vmax.f32 %v2966_v6, 0.0 }
 0x1c3   : > { %v3001_v16 = vadd.f32 %v2994_v12, %v2993_v1  ;;  %4485 = vst [vmem:[%s3050_s20] sm:$0xff] %v4484_v34   ;;  %v2970_v20 = vmax.f32 %v2962_v54, 0.0 }
 0x1c4   : > { %v2948_v36 = vadd.f32 %v2926_v26, %v7375_v27  ;;  %v2967_v50 = vadd.f32 %v6819_v35, %v2952_v44  ;;  %v2999_v57 = vmul.f32 %v2974_v25, %v2974_v25 }
 0x1c5   : > { %v2978_v47 = vadd.f32 %v2977_v23, %v2970_v20  ;;  %v2995_v60 = vmul.f32 %v2970_v20, %v2970_v20 }
 0x1c6   : > { %v2963_v46 = vadd.f32 %v6819_v35, %v2948_v36  ;;  %v2975_v45 = vmax.f32 %v2967_v50, 0.0 }
 0x1c7   : > { %v3002_v3 = vadd.f32 %v3001_v16, %v2995_v60 }
 0x1c8   : > { %v2971_v30 = vmax.f32 %v2963_v46, 0.0  ;;  %v4499_v37 = vpack.c.bf16 %v2975_v45, %v2974_v25  ;;  %v3000_v35 = vmul.f32 %v2975_v45, %v2975_v45 }
 0x1ca   : > { %v2979_v15 = vadd.f32 %v2978_v47, %v2971_v30  ;;  %v2996_v8 = vmul.f32 %v2971_v30, %v2971_v30  ;;  %v4489_v41 = vpack.c.bf16 %v2971_v30, %v2970_v20  ;;  %4503 = vst [vmem:[%s3050_s20 + $0x18] sm:$0xff] %v4499_v37  }
 0x1cc   : > { %v2980_v18 = vadd.f32 %v2979_v15, %v2972_v61  ;;  %v3003_v48 = vadd.f32 %v3002_v3, %v2996_v8  ;;  %4501 = vst [vmem:[%s3050_s20 + $0x8] sm:$0xff] %v4489_v41  }
 0x1ce   : > { %v3004_v24 = vadd.f32 %v3003_v48, %v2997_v31  ;;  %v2981_v40 = vadd.f32 %v2980_v18, %v2973_v17 }
 0x1d0   : > { %v2982_v33 = vadd.f32 %v2981_v40, %v2974_v25  ;;  %v3005_v11 = vadd.f32 %v3004_v24, %v2998_v10 }
 0x1d2   : > { %v2983_v52 = vadd.f32 %v2982_v33, %v2975_v45  ;;  %v3006_v0 = vadd.f32 %v3005_v11, %v2999_v57 }
 0x1d4   : > { %v2984_v29 = vrot.slane %v2983_v52, 4  ;;  %v3007_v7 = vadd.f32 %v3006_v0, %v3000_v35 }
 0x1d6   : > { %v2985_v43 = vadd.f32 %v2984_v29, %v2983_v52  ;;  %v3008_v39 = vrot.slane %v3007_v7, 4 }
 0x1d8   : > { %v2986_v62 = vrot.slane %v2985_v43, 2  ;;  %v3009_v9 = vadd.f32 %v3008_v39, %v3007_v7 }
 0x1da   : > { %v2987_v32 = vadd.f32 %v2986_v62, %v2985_v43  ;;  %v3010_v38 = vrot.slane %v3009_v9, 2 }
 0x1dc   : > { %v2988_v13 = vrot.slane %v2987_v32, 1  ;;  %v3011_v55 = vadd.f32 %v3010_v38, %v3009_v9 }
 0x1de   : > { %v2989_v14 = vadd.f32 %v2988_v13, %v2987_v32  ;;  %v3012_v4 = vrot.slane %v3011_v55, 1 }
 0x1e0   : > { %v2990_v2 = vadd.f32 %v2989_v14, %v2976_v5  ;;  %v3013_v49 = vadd.f32 %v3012_v4, %v3011_v55  ;;  %3062 = sbr.rel (%p4418_p2) target bundleno = 1343 (0x53f), region = 60 }
 0x1e2   : > { %2991 = vst [vmem:[#allocation4] sm:$0x1] %v2990_v2  ;;  %v3014_v61 = vadd.f32 %v3013_v49, %v2992_v58 }
 0x1e4   : > { %3015 = vst [vmem:[#allocation5] sm:$0x1] %v3014_v61 }
 0x1e5   : > { %v6845_v63 = vld [vmem:[%s5833_s9 + $0x78] sm:$0xff]  ;;  %v6848_v22 = vld [vmem:[%s5833_s9 + $0x70] sm:$0xff]  ;;  %v6853_v19 = vld [vmem:[%s5833_s9 + $0x68] sm:$0xff]  ;;  %v7376_v44 = vlaneseq  ;;  %v5669_v29 = vmov 0.0  }
 0x1e6   : > { %5099 = vmatprep.subr.mxu0 %v6845_v63  ;;  %v6858_v53 = vld [vmem:[%s5833_s9 + $0x60] sm:$0xff]  ;;  %v6863_v17 = vld [vmem:[%s5833_s9 + $0x58] sm:$0xff]  ;;  %v6869_v23 = vld [vmem:[%s5833_s9 + $0x50] sm:$0xff]  ;;  %5155 = vmatprep.subr.mxu1 %v5669_v29 }
 0x1e7   : > { %5100 = vmatpush3.msra.mxu0 %v6845_v63  ;;  %v6873_v12 = vld [vmem:[%s5833_s9 + $0x48] sm:$0xff]  ;;  %v6882_v28 = vld [vmem:[%s5833_s9 + $0x40] sm:$0xff]  ;;  %v6887_v42 = vld [vmem:[%s5833_s9 + $0x38] sm:$0xff]  ;;  %v6926_v46 = vand.u32 127, %v7376_v44  ;;  %5156 = vmatpush3.msra.mxu1 %v6845_v63 }
 0x1e8   : > { %5101 = vmatprep.subr.mxu0 %v6848_v22  ;;  %v6892_v20 = vld [vmem:[%s5833_s9 + $0x30] sm:$0xff]  ;;  %v6897_v59 = vld [vmem:[%s5833_s9 + $0x28] sm:$0xff]  ;;  %v6902_v27 = vld [vmem:[%s5833_s9 + $0x20] sm:$0xff]  ;;  %5157 = vmatprep.subr.mxu1 %v5669_v29 }
 0x1e9   : > { %5102 = vmatpush3.msra.mxu0 %v6848_v22  ;;  %v3063_v51 = vld [vmem:[#allocation4] sm:$0x1]  ;;  %v6907_v36 = vld [vmem:[%s5833_s9 + $0x18] sm:$0xff]  ;;  %v6912_v47 = vld [vmem:[%s5833_s9 + $0x10] sm:$0xff]  ;;  %5158 = vmatpush3.msra.mxu1 %v6848_v22 }
 0x1ea   : > { %5103 = vmatprep.subr.mxu0 %v6853_v19  ;;  %v6865_v56 = vmul.f32 0.0078125, %v3063_v51  ;;  %v6917_v60 = vld [vmem:[%s5833_s9 + $0x8] sm:$0xff]  ;;  %v3070_v6 = vld [vmem:[%s395_s23] sm:$0x1]  ;;  %v7379_v41 = vld [vmem:[#allocation18_spill] sm:$0xff]  ;;  %5159 = vmatprep.subr.mxu1 %v5669_v29 }
 0x1eb   : > { %v3065_v1 = vld [vmem:[#allocation5] sm:$0x1]  ;;  %5104 = vmatpush3.msra.mxu0 %v6853_v19  ;;  %v7377_v50 = vld [vmem:[#allocation16_spill] sm:$0xff]  ;;  %v7378_v8 = vld [vmem:[#allocation17_spill] sm:$0xff]  ;;  %vm3105_vm3 = vcmp.eq.s32.totalorder %v7379_v41, %v6926_v46  ;;  %5160 = vmatpush3.msra.mxu1 %v6853_v19 }
 0x1ec   : > { %v3066_v21 = vmul.f32 0.0078125, %v3065_v1  ;;  %5105 = vmatprep.subr.mxu0 %v6858_v53  ;;  %v3067_v34 = vmul.f32 %v6865_v56, %v6865_v56  ;;  %v6930_v3 = vld [vmem:[%s5833_s9] sm:$0xff]  ;;  %v6933_v30 = vsub.s32 0, %v7377_v50  ;;  %vm3103_vm15 = vcmp.eq.s32.totalorder %v7377_v50, %v6926_v46  ;;  %v7382_v18 = vld [vmem:[#allocation21_spill] sm:$0xff]  ;;  %v7383_v48 = vld [vmem:[#allocation22_spill] sm:$0xff]  ;;  %5161 = vmatprep.subr.mxu1 %v5669_v29 }
 0x1ed   : > { %5106 = vmatpush3.msra.mxu0 %v6858_v53  ;;  %vm3104_vm0 = vcmp.eq.s32.totalorder %v7378_v8, %v6926_v46  ;;  %v7380_v37 = vld [vmem:[#allocation19_spill] sm:$0xff]  ;;  %v7381_v31 = vld [vmem:[#allocation20_spill] sm:$0xff]  ;;  %vm3108_vm6 = vcmp.eq.s32.totalorder %v7382_v18, %v6926_v46  ;;  %vm3109_vm12 = vcmp.eq.s32.totalorder %v7383_v48, %v6926_v46  ;;  %v3093_v10 = vadd.s32 64, %v7377_v50  ;;  %5162 = vmatpush3.msra.mxu1 %v6858_v53 }
 0x1ee   : > { %5107 = vmatprep.subr.mxu0 %v6863_v17  ;;  %v3068_v54 = vsub.f32 %v3066_v21, %v3067_v34  ;;  %vm3106_vm1 = vcmp.eq.s32.totalorder %v7380_v37, %v6926_v46  ;;  %vm3107_vm2 = vcmp.eq.s32.totalorder %v7381_v31, %v6926_v46  ;;  %v7384_v24 = vld [vmem:[#allocation23_spill] sm:$0xff]  ;;  %v3094_v40 = vadd.s32 72, %v7377_v50  ;;  %5163 = vmatprep.subr.mxu1 %v5669_v29 }
 0x1ef   : > { %5108 = vmatpush3.msra.mxu0 %v6863_v17  ;;  %vm3110_vm13 = vcmp.eq.s32.totalorder %v7384_v24, %v6926_v46  ;;  %vm3111_vm14 = vcmp.eq.s32.totalorder %v3093_v10, %v6926_v46  ;;  %v3095_v57 = vadd.s32 80, %v7377_v50  ;;  %v3096_v33 = vadd.s32 88, %v7377_v50  ;;  %5164 = vmatpush3.msra.mxu1 %v6863_v17  ;;  %v3074_v43 = vld [vmem:[%s398_s18] sm:$0x1] }
 0x1f0   : > { %5109 = vmatprep.subr.mxu0 %v6869_v23  ;;  %v3069_v26 = vmax.f32 %v3068_v54, 0.0  ;;  %vm3112_vm4 = vcmp.eq.s32.totalorder %v3094_v40, %v6926_v46  ;;  %v3097_v11 = vadd.s32 96, %v7377_v50  ;;  %v3098_v52 = vadd.s32 104, %v7377_v50  ;;  %5165 = vmatprep.subr.mxu1 %v5669_v29  ;;  %v5479_v9 = vld [vmem:[#allocation2] sm:$0xff]  }
 0x1f1   : > { %5110 = vmatpush3.msra.mxu0 %v6869_v23  ;;  %vm3113_vm5 = vcmp.eq.s32.totalorder %v3095_v57, %v6926_v46  ;;  %vm3114_vm7 = vcmp.eq.s32.totalorder %v3096_v33, %v6926_v46  ;;  %v3099_v35 = vadd.s32 112, %v7377_v50  ;;  %v3100_v0 = vadd.s32 120, %v7377_v50  ;;  %5166 = vmatpush3.msra.mxu1 %v6869_v23  ;;  %v5480_v32 = vld [vmem:[#allocation2 + $0x20] sm:$0xff]  }
 0x1f2   : > { %5111 = vmatprep.subr.mxu0 %v6873_v12  ;;  %v3071_v16 = vadd.f32 1e-05, %v3069_v26  ;;  %vm3115_vm10 = vcmp.eq.s32.totalorder %v3097_v11, %v6926_v46  ;;  %vm3116_vm8 = vcmp.eq.s32.totalorder %v3098_v52, %v6926_v46  ;;  %5167 = vmatprep.subr.mxu1 %v5669_v29  ;;  %v5481_v26 = vld [vmem:[#allocation2 + $0x8] sm:$0xff]  }
 0x1f3   : > { %5112 = vmatpush3.msra.mxu0 %v6873_v12  ;;  %vm3117_vm9 = vcmp.eq.s32.totalorder %v3099_v35, %v6926_v46  ;;  %vm3118_vm11 = vcmp.eq.s32.totalorder %v3100_v0, %v6926_v46  ;;  %5168 = vmatpush3.msra.mxu1 %v6873_v12 }
 0x1f4   : > { %5113 = vmatprep.subr.mxu0 %v6882_v28  ;;  %5487 = vrsqrt.f32 %v3071_v16  ;;  %5169 = vmatprep.subr.mxu1 %v5669_v29  ;;  %v5483_v16 = vld [vmem:[#allocation2 + $0x10] sm:$0xff]  }
 0x1f5   : > { %5114 = vmatpush3.msra.mxu0 %v6882_v28  ;;  %5170 = vmatpush3.msra.mxu1 %v6882_v28 }
 0x1f6   : > { %5115 = vmatprep.subr.mxu0 %v6887_v42  ;;  %5171 = vmatprep.subr.mxu1 %v5669_v29 }
 0x1f7   : > { %5116 = vmatpush3.msra.mxu0 %v6887_v42  ;;  %5172 = vmatpush3.msra.mxu1 %v6887_v42  ;;  %v5482_v42 = vld [vmem:[#allocation2 + $0x28] sm:$0xff]  }
 0x1f8   : > { %5117 = vmatprep.subr.mxu0 %v6892_v20  ;;  %5173 = vmatprep.subr.mxu1 %v5669_v29 }
 0x1f9   : > { %5118 = vmatpush3.msra.mxu0 %v6892_v20  ;;  %5174 = vmatpush3.msra.mxu1 %v6892_v20  ;;  %v5484_v20 = vld [vmem:[#allocation2 + $0x30] sm:$0xff]  }
 0x1fa   : > { %5119 = vmatprep.subr.mxu0 %v6897_v59  ;;  %5175 = vmatprep.subr.mxu1 %v5669_v29 }
 0x1fb   : > { %5120 = vmatpush3.msra.mxu0 %v6897_v59  ;;  %5176 = vmatpush3.msra.mxu1 %v6897_v59  ;;  %v5485_v59 = vld [vmem:[#allocation2 + $0x18] sm:$0xff]  }
 0x1fc   : > { %5121 = vmatprep.subr.mxu0 %v6902_v27  ;;  %5177 = vmatprep.subr.mxu1 %v5669_v29 }
 0x1fd   : > { %5122 = vmatpush3.msra.mxu0 %v6902_v27  ;;  %5178 = vmatpush3.msra.mxu1 %v6902_v27  ;;  %v5486_v27 = vld [vmem:[#allocation2 + $0x38] sm:$0xff]  }
 0x1fe   : > { %5123 = vmatprep.subr.mxu0 %v6907_v36  ;;  %5179 = vmatprep.subr.mxu1 %v5669_v29 }
 0x1ff   : > { %5124 = vmatpush3.msra.mxu0 %v6907_v36  ;;  %5180 = vmatpush3.msra.mxu1 %v6907_v36 }
 0x200   : > { %5125 = vmatprep.subr.mxu0 %v6912_v47  ;;  %5181 = vmatprep.subr.mxu1 %v5669_v29 }
 0x201   : > { %5126 = vmatpush3.msra.mxu0 %v6912_v47  ;;  %v5488_v25 = vpop.eup %5487  ;;  %5182 = vmatpush3.msra.mxu1 %v6912_v47 }
 0x202   : > { %5127 = vmatprep.subr.mxu0 %v6917_v60  ;;  %v6937_v45 = vmul.f32 %v5488_v25, %v3070_v6  ;;  %5183 = vmatprep.subr.mxu1 %v5669_v29 }
 0x203   : > { %5128 = vmatpush3.msra.mxu0 %v6917_v60  ;;  %5184 = vmatpush3.msra.mxu1 %v6917_v60  ;;  %v3370_v60 = vld [vmem:[%s406_s14] sm:$0x1]  ;;  %s3553_s14 = sld [smem:[#allocation7]] }
 0x204   : > { %5129 = vmatprep.subr.mxu0 %v6930_v3  ;;  %v3123_v15 = vrot.slane %v6937_v45, %v6933_v30  ;;  %v3075_v7 = vmul.f32 %v6937_v45, %v6865_v56  ;;  %5185 = vmatprep.subr.mxu1 %v5669_v29 }
 0x205   : > { %5130 = vmatpush3.msra.mxu0 %v6930_v3  ;;  %5186 = vmatpush3.msra.mxu1 %v6930_v3 }
 0x206   : > { %5131 = vmatprep.mubr.msk.f32.mxu0 %vm3103_vm15, %v3123_v15  ;;  %v3076_v39 = vsub.f32 %v3074_v43, %v3075_v7  ;;  %vm5670_vm15 = vmmov 0  }
 0x207   : > { %5132 = vmatmul.mubr.msk.f32.vlgmr.msra.gmra.mxu0 %vm3104_vm0, %v3123_v15  ;;  %5187 = vmatprep.mubr.msk.f32.mxu1 %vm5670_vm15, %v5669_v29 }
 0x208   : > { %5134 = vmatprep.mubr.msk.f32.mxu0 %vm3105_vm3, %v3123_v15  ;;  %v3298_v62 = vrot.slane %v3076_v39, %v6933_v30 }
 0x20a   : > { %5188 = vmatmul.mubr.f32.vlgmr.msra.gmra.mxu1 %v3298_v62 }
 0x20b   : > { %5135 = vmatmul.mubr.msk.f32.gmra.mxu0 %vm3106_vm1, %v3123_v15  ;;  %5230 = vmatprep.mubr.bf16.mxu1 %v5480_v32 }
 0x20c   : > { %5137 = vmatprep.mubr.msk.f32.mxu0 %vm3107_vm2, %v3123_v15 }
 0x20f   : > { %5138 = vmatmul.mubr.msk.f32.gmra.mxu0 %vm3108_vm6, %v3123_v15 }
 0x210   : > { %5140 = vmatprep.mubr.msk.f32.mxu0 %vm3109_vm12, %v3123_v15 }
 0x213   : > { %5141 = vmatmul.mubr.msk.f32.gmra.mxu0 %vm3110_vm13, %v3123_v15 }
 0x214   : > { %5143 = vmatprep.mubr.msk.f32.mxu0 %vm3111_vm14, %v3123_v15 }
 0x217   : > { %5144 = vmatmul.mubr.msk.f32.gmra.mxu0 %vm3112_vm4, %v3123_v15 }
 0x218   : > { %5146 = vmatprep.mubr.msk.f32.mxu0 %vm3113_vm5, %v3123_v15 }
 0x21b   : > { %5147 = vmatmul.mubr.msk.f32.gmra.mxu0 %vm3114_vm7, %v3123_v15 }
 0x21c   : > { %5149 = vmatprep.mubr.msk.f32.mxu0 %vm3115_vm10, %v3123_v15 }
 0x21f   : > { %5150 = vmatmul.mubr.msk.f32.gmra.mxu0 %vm3116_vm8, %v3123_v15 }
 0x220   : > { %5152 = vmatprep.mubr.msk.f32.mxu0 %vm3117_vm9, %v3123_v15 }
 0x223   : > { %5153 = vmatmul.mubr.msk.f32.gmra.mxu0 %vm3118_vm11, %v3123_v15 }
 0x224   : > { %5206 = vmatprep.mubr.bf16.mxu0 %v5479_v9 }
 0x2c7   : > { %v5133_v38 = vpop.f32.mrf.mxu0 }
 0x2c9   : > { %v3207_v13 = vpop.f32.mrf.mxu0 }
 0x2ca   : > { %v3286_v28 = vpack.c.bf16 %v5133_v38, %v3207_v13  ;;  %v3366_v36 = vpop.f32.mrf.mxu1 }
 0x2cb   : > { %v5136_v55 = vpop.f32.mrf.mxu0  ;;  %v3371_v6 = vadd.f32 %v3370_v60, %v3366_v36 }
 0x2cc   : > { %v5189_v47 = vpop.f32.mrf.mxu1 }
 0x2cd   : > { %v3217_v5 = vpop.f32.mrf.mxu0  ;;  %v3383_v44 = vrot.slane %v3371_v6, %v6933_v30 }
 0x2ce   : > { %v3287_v54 = vpack.c.bf16 %v5136_v55, %v3217_v5 }
 0x2cf   : > { %v5139_v14 = vpop.f32.mrf.mxu0 }
 0x2d1   : > { %v3227_v4 = vpop.f32.mrf.mxu0 }
 0x2d2   : > { %v3288_v34 = vpack.c.bf16 %v5139_v14, %v3227_v4  ;;  %v3554_v14 = vstv %s3553_s14 }
 0x2d3   : > { %v5142_v58 = vpop.f32.mrf.mxu0  ;;  %vm7054_vm0 = vcmp.eq.s32.totalorder %v6926_v46, %v3554_v14 }
 0x2d5   : > { %v3237_v2 = vpop.f32.mrf.mxu0 }
 0x2d6   : > { %v3289_v12 = vpack.c.bf16 %v5142_v58, %v3237_v2 }
 0x2d7   : > { %v5145_v49 = vpop.f32.mrf.mxu0 }
 0x2d9   : > { %v3247_v61 = vpop.f32.mrf.mxu0 }
 0x2da   : > { %v3290_v23 = vpack.c.bf16 %v5145_v49, %v3247_v61  ;;  %v3781_v49 = vstv %s4443_s25 }
 0x2db   : > { %v5148_v63 = vpop.f32.mrf.mxu0  ;;  %vm7065_vm3 = vcmp.eq.s32.totalorder %v6926_v46, %v3781_v49 }
 0x2dd   : > { %v3257_v22 = vpop.f32.mrf.mxu0 }
 0x2de   : > { %v3291_v21 = vpack.c.bf16 %v5148_v63, %v3257_v22 }
 0x2df   : > { %v5151_v19 = vpop.f32.mrf.mxu0 }
 0x2e1   : > { %v3267_v53 = vpop.f32.mrf.mxu0 }
 0x2e2   : > { %v3292_v56 = vpack.c.bf16 %v5151_v19, %v3267_v53 }
 0x2e3   : > { %v5154_v51 = vpop.f32.mrf.mxu0 }
 0x2e5   : > { %v3277_v1 = vpop.f32.mrf.mxu0 }
 0x2e6   : > { %v3293_v17 = vpack.c.bf16 %v5154_v51, %v3277_v1 }
 0x2e8   : > { %5190 = vmatprep.subr.bf16.mxu0 %v3293_v17  ;;  %5214 = vmatprep.subr.bf16.mxu1 %v3293_v17 }
 0x2e9   : > { %5191 = vmatpush3.bf16.msra.mxu0 %v3293_v17  ;;  %5215 = vmatpush3.bf16.msra.mxu1 %v3293_v17 }
 0x2ea   : > { %5192 = vmatprep.subr.bf16.mxu0 %v3292_v56  ;;  %5216 = vmatprep.subr.bf16.mxu1 %v3292_v56 }
 0x2ed   : > { %5193 = vmatpush3.bf16.msra.mxu0 %v3292_v56  ;;  %5217 = vmatpush3.bf16.msra.mxu1 %v3292_v56 }
 0x2ee   : > { %5194 = vmatprep.subr.bf16.mxu0 %v3291_v21  ;;  %5218 = vmatprep.subr.bf16.mxu1 %v3291_v21 }
 0x2f1   : > { %5195 = vmatpush3.bf16.msra.mxu0 %v3291_v21  ;;  %5219 = vmatpush3.bf16.msra.mxu1 %v3291_v21 }
 0x2f2   : > { %5196 = vmatprep.subr.bf16.mxu0 %v3290_v23  ;;  %5220 = vmatprep.subr.bf16.mxu1 %v3290_v23 }
 0x2f5   : > { %5197 = vmatpush3.bf16.msra.mxu0 %v3290_v23  ;;  %5221 = vmatpush3.bf16.msra.mxu1 %v3290_v23 }
 0x2f6   : > { %5198 = vmatprep.subr.bf16.mxu0 %v3289_v12  ;;  %5222 = vmatprep.subr.bf16.mxu1 %v3289_v12 }
 0x2f9   : > { %5199 = vmatpush3.bf16.msra.mxu0 %v3289_v12  ;;  %5223 = vmatpush3.bf16.msra.mxu1 %v3289_v12 }
 0x2fa   : > { %5200 = vmatprep.subr.bf16.mxu0 %v3288_v34  ;;  %5224 = vmatprep.subr.bf16.mxu1 %v3288_v34 }
 0x2fd   : > { %5201 = vmatpush3.bf16.msra.mxu0 %v3288_v34  ;;  %5225 = vmatpush3.bf16.msra.mxu1 %v3288_v34 }
 0x2fe   : > { %5202 = vmatprep.subr.bf16.mxu0 %v3287_v54  ;;  %5226 = vmatprep.subr.bf16.mxu1 %v3287_v54 }
 0x301   : > { %5203 = vmatpush3.bf16.msra.mxu0 %v3287_v54  ;;  %5227 = vmatpush3.bf16.msra.mxu1 %v3287_v54 }
 0x302   : > { %5204 = vmatprep.subr.bf16.mxu0 %v3286_v28  ;;  %5228 = vmatprep.subr.bf16.mxu1 %v3286_v28 }
 0x305   : > { %5205 = vmatpush3.bf16.msra.mxu0 %v3286_v28  ;;  %5229 = vmatpush3.bf16.msra.mxu1 %v3286_v28 }
 0x308   : > { %5207 = vmatmul.mubr.bf16.vlgmr.msra.gmra.mxu0 %v5481_v26  ;;  %5231 = vmatmul.mubr.bf16.vlgmr.msra.gmra.mxu1 %v5482_v42 }
 0x309   : > { %5210 = vmatprep.mubr.bf16.mxu0 %v5483_v16  ;;  %5234 = vmatprep.mubr.bf16.mxu1 %v5484_v20 }
 0x310   : > { %5211 = vmatmul.mubr.bf16.gmra.mxu0 %v5485_v59  ;;  %5235 = vmatmul.mubr.bf16.gmra.mxu1 %v5486_v27 }
 0x3c8   : > { %v5208_v3 = vpop.f32.mrf.mxu0  ;;  %v5232_v50 = vpop.f32.mrf.mxu1 }
 0x3c9   : > { %v7005_v25 = vadd.f32 %v5208_v3, %v3383_v44  ;;  %v7007_v45 = vadd.f32 %v5232_v50, %v3383_v44 }
 0x3ca   : > { %v3442_v15 = vpop.f32.mrf.mxu0  ;;  %v3669_v8 = vpop.f32.mrf.mxu1 }
 0x3cb   : > { %3477 = vmax.xlane.f32.xlu0 %v7005_v25  ;;  %3704 = vmax.xlane.f32.xlu1 %v7007_v45  ;;  %v7011_v31 = vadd.f32 %v3442_v15, %v3383_v44  ;;  %v7013_v18 = vadd.f32 %v3669_v8, %v3383_v44 }
 0x3cc   : > { %v5209_v41 = vpop.f32.mrf.mxu0  ;;  %v5233_v37 = vpop.f32.mrf.mxu1 }
 0x3cd   : > { %v7017_v10 = vadd.f32 %v5209_v41, %v3383_v44  ;;  %v7019_v24 = vadd.f32 %v5233_v37, %v3383_v44  ;;  %v3556_v58 = vsel %vm7054_vm0, %v7011_v31, 0.0  ;;  %v3783_v22 = vsel %vm7065_vm3, %v7013_v18, 0.0 }
 0x3ce   : > { %v3445_v48 = vpop.f32.mrf.mxu0  ;;  %v3672_v30 = vpop.f32.mrf.mxu1 }
 0x3cf   : > { %3473 = vmax.xlane.f32.xlu0 %v7011_v31  ;;  %3700 = vmax.xlane.f32.xlu1 %v7013_v18  ;;  %v7023_v33 = vadd.f32 %v3445_v48, %v3383_v44  ;;  %v7025_v11 = vadd.f32 %v3672_v30, %v3383_v44 }
 0x3d0   : > { %v5212_v40 = vpop.f32.mrf.mxu0  ;;  %v5236_v57 = vpop.f32.mrf.mxu1 }
 0x3d1   : > { %v7029_v0 = vadd.f32 %v5212_v40, %v3383_v44  ;;  %v7031_v29 = vadd.f32 %v5236_v57, %v3383_v44  ;;  %v3557_v2 = vsel %vm7054_vm0, %v7023_v33, 0.0  ;;  %v3784_v63 = vsel %vm7065_vm3, %v7025_v11, 0.0 }
 0x3d2   : > { %v3458_v52 = vpop.f32.mrf.mxu0  ;;  %v3685_v35 = vpop.f32.mrf.mxu1 }
 0x3d3   : > { %3479 = vmax.xlane.f32.xlu0 %v7017_v10  ;;  %3706 = vmax.xlane.f32.xlu1 %v7019_v24  ;;  %v7035_v39 = vadd.f32 %v3458_v52, %v3383_v44  ;;  %v7037_v62 = vadd.f32 %v3685_v35, %v3383_v44 }
 0x3d4   : > { %v5213_v7 = vpop.f32.mrf.mxu0  ;;  %v5237_v43 = vpop.f32.mrf.mxu1 }
 0x3d5   : > { %v7047_v55 = vadd.f32 %v5213_v7, %v3383_v44  ;;  %v7049_v5 = vadd.f32 %v5237_v43, %v3383_v44 }
 0x3d6   : > { %v3461_v9 = vpop.f32.mrf.mxu0  ;;  %v3688_v32 = vpop.f32.mrf.mxu1 }
 0x3d7   : > { %3475 = vmax.xlane.f32.xlu0 %v7023_v33  ;;  %3702 = vmax.xlane.f32.xlu1 %v7025_v11  ;;  %v7041_v38 = vadd.f32 %v3461_v9, %v3383_v44  ;;  %v7043_v13 = vadd.f32 %v3688_v32, %v3383_v44 }
 0x3db   : > { %3485 = vmax.xlane.f32.xlu0 %v7029_v0  ;;  %3712 = vmax.xlane.f32.xlu1 %v7031_v29 }
 0x3df   : > { %3481 = vmax.xlane.f32.xlu0 %v7035_v39  ;;  %3708 = vmax.xlane.f32.xlu1 %v7037_v62 }
 0x3e3   : > { %3483 = vmax.xlane.f32.xlu0 %v7041_v38  ;;  %3710 = vmax.xlane.f32.xlu1 %v7043_v13 }
 0x3e7   : > { %3487 = vmax.xlane.f32.xlu0 %v7047_v55  ;;  %3714 = vmax.xlane.f32.xlu1 %v7049_v5 }
 0x3eb   : > { %3564 = vadd.xlane.f32.xlu0 %v3556_v58  ;;  %3566 = vadd.xlane.f32.xlu1 %v3557_v2 }
 0x3ef   : > { %3793 = vadd.xlane.f32.xlu1 %v3784_v63  ;;  %3791 = vadd.xlane.f32.xlu0 %v3783_v22 }
 0x454   : > { %v7075_v19 = vpop.xlane.xlu0 %3477  ;;  %v7077_v53 = vpop.xlane.xlu1 %3704 }
 0x455   : > { %v3491_v46 = vsub.f32 %v7005_v25, %v7075_v19  ;;  %v3718_v51 = vsub.f32 %v7007_v45, %v7077_v53 }
 0x457   : > { %v3501_v1 = vmul.f32 1.442695, %v3491_v46  ;;  %v3728_v17 = vmul.f32 1.442695, %v3718_v51 }
 0x458   : > { %v7083_v56 = vpop.xlane.xlu0 %3473  ;;  %v7085_v21 = vpop.xlane.xlu1 %3700 }
 0x459   : > { %5489 = vpow2.f32 %v3501_v1  ;;  %v3489_v23 = vsub.f32 %v7011_v31, %v7083_v56  ;;  %v3716_v12 = vsub.f32 %v7013_v18, %v7085_v21 }
 0x45a   : > { %5491 = vpow2.f32 %v3728_v17 }
 0x45b   : > { %v3497_v34 = vmul.f32 1.442695, %v3489_v23  ;;  %v3724_v26 = vmul.f32 1.442695, %v3716_v12 }
 0x45c   : > { %v7091_v54 = vpop.xlane.xlu0 %3479  ;;  %v7093_v28 = vpop.xlane.xlu1 %3706 }
 0x45d   : > { %5493 = vpow2.f32 %v3497_v34  ;;  %v3492_v42 = vsub.f32 %v7017_v10, %v7091_v54  ;;  %v3719_v16 = vsub.f32 %v7019_v24, %v7093_v28 }
 0x45e   : > { %5495 = vpow2.f32 %v3724_v26 }
 0x45f   : > { %v3730_v20 = vmul.f32 1.442695, %v3719_v16  ;;  %v3503_v59 = vmul.f32 1.442695, %v3492_v42 }
 0x460   : > { %v7099_v27 = vpop.xlane.xlu0 %3475  ;;  %v7101_v36 = vpop.xlane.xlu1 %3702 }
 0x461   : > { %v3490_v47 = vsub.f32 %v7023_v33, %v7099_v27  ;;  %5497 = vpow2.f32 %v3730_v20  ;;  %v3717_v60 = vsub.f32 %v7025_v11, %v7101_v36 }
 0x462   : > { %5499 = vpow2.f32 %v3503_v59 }
 0x463   : > { %v3499_v6 = vmul.f32 1.442695, %v3490_v47  ;;  %v3726_v8 = vmul.f32 1.442695, %v3717_v60 }
 0x464   : > { %v7107_v44 = vpop.xlane.xlu0 %3485  ;;  %v7109_v3 = vpop.xlane.xlu1 %3712 }
 0x465   : > { %5501 = vpow2.f32 %v3499_v6  ;;  %v3495_v50 = vsub.f32 %v7029_v0, %v7107_v44  ;;  %v3722_v41 = vsub.f32 %v7031_v29, %v7109_v3  ;;  %v3558_v6 = vsel %vm7054_vm0, %v7005_v25, 0.0 }
 0x466   : > { %v5490_v15 = vpop.eup %5489  ;;  %v3560_v25 = vsel %vm7054_vm0, %v7035_v39, 0.0 }
 0x467   : > { %v5492_v37 = vpop.eup %5491  ;;  %v3509_v31 = vmul.f32 1.442695, %v3495_v50  ;;  %3517 = vadd.xlane.f32.xlu0 %v5490_v15  ;;  %v3736_v57 = vmul.f32 1.442695, %v3722_v41  ;;  %v3785_v50 = vsel %vm7065_vm3, %v7007_v45, 0.0  ;;  %v3559_v15 = vsel %vm7054_vm0, %v7017_v10, 0.0 }
 0x468   : > { %3744 = vadd.xlane.f32.xlu1 %v5492_v37  ;;  %v7115_v18 = vpop.xlane.xlu0 %3481  ;;  %v7117_v48 = vpop.xlane.xlu1 %3708  ;;  %v3787_v45 = vsel %vm7065_vm3, %v7037_v62, 0.0  ;;  %v3561_v10 = vsel %vm7054_vm0, %v7041_v38, 0.0 }
 0x469   : > { %5503 = vpow2.f32 %v3509_v31  ;;  %v3493_v30 = vsub.f32 %v7035_v39, %v7115_v18  ;;  %v3720_v33 = vsub.f32 %v7037_v62, %v7117_v48  ;;  %v3562_v39 = vsel %vm7054_vm0, %v7029_v0, 0.0 }
 0x46a   : > { %v5494_v40 = vpop.eup %5493  ;;  %5505 = vpow2.f32 %v3726_v8  ;;  %v3786_v8 = vsel %vm7065_vm3, %v7019_v24, 0.0  ;;  %v3788_v24 = vsel %vm7065_vm3, %v7043_v13, 0.0  ;;  %v3789_v62 = vsel %vm7065_vm3, %v7031_v29, 0.0 }
 0x46b   : > { %v3505_v11 = vmul.f32 1.442695, %v3493_v30  ;;  %3513 = vadd.xlane.f32.xlu0 %v5494_v40  ;;  %v5496_v7 = vpop.eup %5495  ;;  %v3732_v43 = vmul.f32 1.442695, %v3720_v33 }
 0x46c   : > { %v7123_v52 = vpop.xlane.xlu0 %3483  ;;  %v7125_v35 = vpop.xlane.xlu1 %3710 }
 0x46d   : > { %5507 = vpow2.f32 %v3505_v11  ;;  %v3494_v2 = vsub.f32 %v7041_v38, %v7123_v52  ;;  %v3721_v46 = vsub.f32 %v7043_v13, %v7125_v35  ;;  %v3563_v38 = vsel %vm7054_vm0, %v7047_v55, 0.0 }
 0x46e   : > { %5509 = vpow2.f32 %v3736_v57  ;;  %v5498_v9 = vpop.eup %5497  ;;  %v3790_v13 = vsel %vm7065_vm3, %v7049_v5, 0.0 }
 0x46f   : > { %3740 = vadd.xlane.f32.xlu0 %v5496_v7  ;;  %3746 = vadd.xlane.f32.xlu1 %v5498_v9  ;;  %v5500_v58 = vpop.eup %5499  ;;  %5511 = vpow2.f32 %v3732_v43  ;;  %v3507_v17 = vmul.f32 1.442695, %v3494_v2  ;;  %v3734_v12 = vmul.f32 1.442695, %v3721_v46 }
 0x470   : > { %v7127_v32 = vpop.xlane.xlu0 %3487  ;;  %v7129_v14 = vpop.xlane.xlu1 %3714 }
 0x471   : > { %v3496_v49 = vsub.f32 %v7047_v55, %v7127_v32  ;;  %v3723_v63 = vsub.f32 %v7049_v5, %v7129_v14 }
 0x472   : > { %v5502_v22 = vpop.eup %5501 }
 0x473   : > { %v3511_v51 = vmul.f32 1.442695, %v3496_v49  ;;  %v3738_v1 = vmul.f32 1.442695, %v3723_v63  ;;  %3519 = vadd.xlane.f32.xlu0 %v5500_v58  ;;  %3515 = vadd.xlane.f32.xlu1 %v5502_v22 }
 0x474   : > { %v7175_v41 = vpop.xlane.xlu0 %3564  ;;  %v7177_v37 = vpop.xlane.xlu1 %3566 }
 0x475   : > { %5513 = vpow2.f32 %v3511_v51 }
 0x476   : > { %v5504_v23 = vpop.eup %5503  ;;  %5515 = vpow2.f32 %v3738_v1 }
 0x477   : > { %v5506_v34 = vpop.eup %5505  ;;  %3525 = vadd.xlane.f32.xlu0 %v5504_v23  ;;  %5517 = vpow2.f32 %v3507_v17 }
 0x478   : > { %3742 = vadd.xlane.f32.xlu1 %v5506_v34  ;;  %5519 = vpow2.f32 %v3734_v12  ;;  %v7179_v0 = vpop.xlane.xlu0 %3791  ;;  %v7181_v29 = vpop.xlane.xlu1 %3793 }
 0x47a   : > { %v5508_v26 = vpop.eup %5507 }
 0x47b   : > { %v5510_v42 = vpop.eup %5509  ;;  %3521 = vadd.xlane.f32.xlu0 %v5508_v26 }
 0x47c   : > { %3752 = vadd.xlane.f32.xlu1 %v5510_v42  ;;  %v5512_v16 = vpop.eup %5511 }
 0x480   : > { %3748 = vadd.xlane.f32.xlu1 %v5512_v16 }
 0x482   : > { %v5514_v20 = vpop.eup %5513 }
 0x483   : > { %v5516_v59 = vpop.eup %5515  ;;  %3527 = vadd.xlane.f32.xlu0 %v5514_v20 }
 0x484   : > { %3754 = vadd.xlane.f32.xlu1 %v5516_v59  ;;  %v5518_v47 = vpop.eup %5517 }
 0x485   : > { %v5520_v60 = vpop.eup %5519 }
 0x487   : > { %3523 = vadd.xlane.f32.xlu0 %v5518_v47 }
 0x488   : > { %3750 = vadd.xlane.f32.xlu1 %v5520_v60 }
 0x48b   : > { %3568 = vadd.xlane.f32.xlu0 %v3558_v6 }
 0x48c   : > { %3795 = vadd.xlane.f32.xlu1 %v3785_v50 }
 0x48f   : > { %3570 = vadd.xlane.f32.xlu0 %v3559_v15 }
 0x490   : > { %3797 = vadd.xlane.f32.xlu1 %v3786_v8 }
 0x493   : > { %3572 = vadd.xlane.f32.xlu0 %v3560_v25 }
 0x494   : > { %3799 = vadd.xlane.f32.xlu1 %v3787_v45 }
 0x497   : > { %3574 = vadd.xlane.f32.xlu0 %v3561_v10 }
 0x498   : > { %3801 = vadd.xlane.f32.xlu1 %v3788_v24 }
 0x49b   : > { %3576 = vadd.xlane.f32.xlu0 %v3562_v39 }
 0x49c   : > { %3803 = vadd.xlane.f32.xlu1 %v3789_v62 }
 0x49f   : > { %3578 = vadd.xlane.f32.xlu0 %v3563_v38 }
 0x4a0   : > { %3805 = vadd.xlane.f32.xlu1 %v3790_v13 }
 0x4f0   : > { %v3518_v31 = vpop.xlane.xlu0 %3517 }
 0x4f1   : > { %v3745_v40 = vpop.xlane.xlu1 %3744 }
 0x4f4   : > { %v3514_v30 = vpop.xlane.xlu0 %3513 }
 0x4f8   : > { %v3741_v57 = vpop.xlane.xlu0 %3740  ;;  %v3747_v4 = vpop.xlane.xlu1 %3746 }
 0x4f9   : > { %5521 = vlog2.f32 %v3741_v57 }
 0x4fc   : > { %v3520_v55 = vpop.xlane.xlu0 %3519  ;;  %v3516_v33 = vpop.xlane.xlu1 %3515 }
 0x4fd   : > { %5523 = vlog2.f32 %v3516_v33 }
 0x500   : > { %v3526_v61 = vpop.xlane.xlu0 %3525 }
 0x501   : > { %v3743_v5 = vpop.xlane.xlu1 %3742 }
 0x502   : > { %5525 = vlog2.f32 %v3743_v5 }
 0x503   : > { %5527 = vlog2.f32 %v3514_v30 }
 0x504   : > { %5529 = vlog2.f32 %v3518_v31  ;;  %v3522_v7 = vpop.xlane.xlu0 %3521 }
 0x505   : > { %v3753_v11 = vpop.xlane.xlu1 %3752  ;;  %5531 = vlog2.f32 %v3745_v40 }
 0x506   : > { %5533 = vlog2.f32 %v3520_v55  ;;  %v5522_v58 = vpop.eup %5521 }
 0x507   : > { %5535 = vlog2.f32 %v3747_v4  ;;  %v3757_v12 = vmul.f32 0.6931472, %v5522_v58 }
 0x508   : > { %5537 = vlog2.f32 %v3522_v7 }
 0x509   : > { %v3749_v43 = vpop.xlane.xlu1 %3748  ;;  %v3772_v8 = vadd.f32 %v3757_v12, %v7085_v21 }
 0x50a   : > { %5539 = vlog2.f32 %v3749_v43  ;;  %v5524_v49 = vpop.eup %5523 }
 0x50b   : > { %5541 = vlog2.f32 %v3526_v61  ;;  %v3532_v1 = vmul.f32 0.6931472, %v5524_v49  ;;  %v3807_v40 = vsub.f32 %v3772_v8, %v7179_v0 }
 0x50c   : > { %v3528_v9 = vpop.xlane.xlu0 %3527  ;;  %5543 = vlog2.f32 %v3753_v11 }
 0x50d   : > { %v3755_v2 = vpop.xlane.xlu1 %3754  ;;  %v3546_v60 = vadd.f32 %v3532_v1, %v7099_v27 }
 0x50f   : > { %v5526_v63 = vpop.eup %5525  ;;  %v3581_v13 = vsub.f32 %v3546_v60, %v7177_v37 }
 0x510   : > { %v5528_v22 = vpop.eup %5527  ;;  %v3759_v46 = vmul.f32 0.6931472, %v5526_v63  ;;  %v3524_v51 = vpop.xlane.xlu0 %3523 }
 0x511   : > { %v3751_v17 = vpop.xlane.xlu1 %3750  ;;  %5545 = vlog2.f32 %v3524_v51  ;;  %v5530_v23 = vpop.eup %5529  ;;  %v3530_v26 = vmul.f32 0.6931472, %v5528_v22 }
 0x512   : > { %5547 = vlog2.f32 %v3751_v17  ;;  %v5532_v34 = vpop.eup %5531  ;;  %v3773_v16 = vadd.f32 %v3759_v46, %v7101_v36  ;;  %v3534_v47 = vmul.f32 0.6931472, %v5530_v23 }
 0x513   : > { %5549 = vlog2.f32 %v3528_v9  ;;  %v5534_v42 = vpop.eup %5533  ;;  %v3761_v15 = vmul.f32 0.6931472, %v5532_v34  ;;  %v3545_v45 = vadd.f32 %v3530_v26, %v7083_v56 }
 0x514   : > { %5551 = vlog2.f32 %v3755_v2  ;;  %v3569_v20 = vpop.xlane.xlu0 %3568  ;;  %v5536_v59 = vpop.eup %5535  ;;  %v3536_v10 = vmul.f32 0.6931472, %v5534_v42  ;;  %v3808_v39 = vsub.f32 %v3773_v16, %v7181_v29  ;;  %v3547_v38 = vadd.f32 %v3534_v47, %v7075_v19 }
 0x515   : > { %v3796_v6 = vpop.xlane.xlu1 %3795  ;;  %v5538_v50 = vpop.eup %5537  ;;  %v3763_v24 = vmul.f32 0.6931472, %v5536_v59  ;;  %v3774_v30 = vadd.f32 %v3761_v15, %v7077_v53  ;;  %v3580_v21 = vsub.f32 %v3545_v45, %v7175_v41 }
 0x516   : > { %v3538_v36 = vmul.f32 0.6931472, %v5538_v50  ;;  %v3582_v57 = vsub.f32 %v3547_v38, %v3569_v20  ;;  %v3548_v56 = vadd.f32 %v3536_v10, %v7091_v54  ;;  %v3815_v29 = vadd.f32 %v3808_v39, %v3807_v40 }
 0x517   : > { %v5540_v25 = vpop.eup %5539  ;;  %v3809_v55 = vsub.f32 %v3774_v30, %v3796_v6  ;;  %v3775_v33 = vadd.f32 %v3763_v24, %v7093_v28  ;;  %v3588_v5 = vadd.f32 %v3581_v13, %v3580_v21 }
 0x518   : > { %v3571_v62 = vpop.xlane.xlu0 %3570  ;;  %v3765_v27 = vmul.f32 0.6931472, %v5540_v25  ;;  %v5542_v4 = vpop.eup %5541  ;;  %v3549_v7 = vadd.f32 %v3538_v36, %v7115_v18 }
 0x519   : > { %v3798_v31 = vpop.xlane.xlu1 %3797  ;;  %v5544_v19 = vpop.eup %5543  ;;  %v3583_v37 = vsub.f32 %v3548_v56, %v3571_v62  ;;  %v3542_v9 = vmul.f32 0.6931472, %v5542_v4  ;;  %v3589_v54 = vadd.f32 %v3588_v5, %v3582_v57  ;;  %v3816_v28 = vadd.f32 %v3815_v29, %v3809_v55 }
 0x51a   : > { %v3810_v43 = vsub.f32 %v3775_v33, %v3798_v31  ;;  %v3776_v0 = vadd.f32 %v3765_v27, %v7117_v48  ;;  %v3769_v63 = vmul.f32 0.6931472, %v5544_v19 }
 0x51b   : > { %v3590_v17 = vadd.f32 %v3589_v54, %v3583_v37  ;;  %v3551_v16 = vadd.f32 %v3542_v9, %v7107_v44 }
 0x51c   : > { %v3573_v61 = vpop.xlane.xlu0 %3572  ;;  %v3817_v12 = vadd.f32 %v3816_v28, %v3810_v43  ;;  %v3778_v60 = vadd.f32 %v3769_v63, %v7109_v3 }
 0x51d   : > { %v3800_v11 = vpop.xlane.xlu1 %3799  ;;  %v3584_v2 = vsub.f32 %v3549_v7, %v3573_v61 }
 0x51e   : > { %v5546_v53 = vpop.eup %5545  ;;  %v3811_v46 = vsub.f32 %v3776_v0, %v3800_v11 }
 0x51f   : > { %v5548_v41 = vpop.eup %5547  ;;  %v3540_v58 = vmul.f32 0.6931472, %v5546_v53  ;;  %v3591_v26 = vadd.f32 %v3590_v17, %v3584_v2 }
 0x520   : > { %v5550_v49 = vpop.eup %5549  ;;  %v3767_v22 = vmul.f32 0.6931472, %v5548_v41  ;;  %v3575_v51 = vpop.xlane.xlu0 %3574  ;;  %v3818_v59 = vadd.f32 %v3817_v12, %v3811_v46 }
 0x521   : > { %v5552_v1 = vpop.eup %5551  ;;  %v3802_v23 = vpop.xlane.xlu1 %3801  ;;  %v3550_v18 = vadd.f32 %v3540_v58, %v7123_v52  ;;  %v3544_v48 = vmul.f32 0.6931472, %v5550_v49 }
 0x522   : > { %v3777_v34 = vadd.f32 %v3767_v22, %v7125_v35  ;;  %v3771_v20 = vmul.f32 0.6931472, %v5552_v1 }
 0x523   : > { %v3585_v42 = vsub.f32 %v3550_v18, %v3575_v51  ;;  %v3552_v52 = vadd.f32 %v3544_v48, %v7127_v32 }
 0x524   : > { %v3812_v47 = vsub.f32 %v3777_v34, %v3802_v23  ;;  %v3577_v6 = vpop.xlane.xlu0 %3576  ;;  %v3779_v35 = vadd.f32 %v3771_v20, %v7129_v14 }
 0x525   : > { %v3592_v50 = vadd.f32 %v3591_v26, %v3585_v42  ;;  %v3804_v15 = vpop.xlane.xlu1 %3803  ;;  %v3586_v8 = vsub.f32 %v3551_v16, %v3577_v6 }
 0x526   : > { %v3819_v25 = vadd.f32 %v3818_v59, %v3812_v47  ;;  %v3813_v45 = vsub.f32 %v3778_v60, %v3804_v15 }
 0x527   : > { %v3593_v24 = vadd.f32 %v3592_v50, %v3586_v8 }
 0x528   : > { %v3579_v10 = vpop.xlane.xlu0 %3578  ;;  %v3820_v44 = vadd.f32 %v3819_v25, %v3813_v45 }
 0x529   : > { %v3806_v39 = vpop.xlane.xlu1 %3805  ;;  %v3587_v62 = vsub.f32 %v3552_v52, %v3579_v10 }
 0x52a   : > { %v3814_v36 = vsub.f32 %v3779_v35, %v3806_v39 }
 0x52b   : > { %v3594_v38 = vadd.f32 %v3593_v24, %v3587_v62 }
 0x52c   : > { %v3821_v13 = vadd.f32 %v3820_v44, %v3814_v36 }
 0x52d   : > { %v3595_v3 = vrot.slane %v3594_v38, 4 }
 0x52e   : > { %v3822_v31 = vrot.slane %v3821_v13, 4 }
 0x52f   : > { %v3596_v27 = vadd.f32 %v3595_v3, %v3594_v38 }
 0x530   : > { %v3823_v30 = vadd.f32 %v3822_v31, %v3821_v13 }
 0x531   : > { %v3597_v40 = vrot.slane %v3596_v27, 2 }
 0x532   : > { %v3824_v21 = vrot.slane %v3823_v30, 2 }
 0x533   : > { %v3598_v57 = vadd.f32 %v3597_v40, %v3596_v27 }
 0x534   : > { %v3825_v56 = vadd.f32 %v3824_v21, %v3823_v30 }
 0x535   : > { %v3599_v32 = vrot.slane %v3598_v57, 1 }
 0x536   : > { %v3826_v4 = vrot.slane %v3825_v56, 1 }
 0x537   : > { %v3600_v14 = vadd.f32 %v3599_v32, %v3598_v57 }
 0x538   : > { %v3827_v55 = vadd.f32 %v3826_v4, %v3825_v56 }
 0x53a   : > { %v3828_v29 = vadd.f32 %v3827_v55, %v3600_v14 }
 0x53c   : > { %v3829_v33 = vmul.f32 0.0078125, %v3828_v29 }
 0x53e   : > { %3831 = vst [vmem:[%s409_s22] sm:$0x1] %v3829_v33 }
 0x53f PF: > { %s27_s16 = sadd.s32 1, %s5661_s16   ;;  %s7389_s12 = sld [smem:[#allocation12_spill]] }
 0x540   : > { %p24_p3 = scmp.ge.s32.totalorder %s27_s16, 6   ;;  %s7390_s13 = sld [smem:[#allocation13_spill]] }
 0x541   : > { %s7391_s14 = sld [smem:[#allocation14_spill]]  ;;  %s7393_s10 = smov %s5637_s11 }
 0x542   : > { %s7392_s15 = sld [smem:[#allocation15_spill]]  ;;  %s7394_s11 = smov %s5641_s0 }
 0x543   : > { %s7395_s0 = smov %s5783_s26  ;;  %26 = sbr.rel (!%p24_p3) target bundleno = 20 (0x14), region = 118 }
 0x548   :  { %3849 = vsyncpa [#allocation9], 1 }
 0x549   :  { %3851 = vsyncpa [#allocation9 + $0x1], 1 }

</bundles_post_ra>
